<compile_context>
chip_gen: v7x
topology: tpu7x:2x2x1
jax: 0.10.0
libtpu: 0.0.40
codegen_flags: <defaults>
</compile_context>

<pallas_src>
import jax
import jax.numpy as jnp
from jax import lax
from jax.experimental import pallas as pl
from jax.experimental.pallas import tpu as pltpu

OCP = 128   # padded output-channel width for both convs and fc2 (lane-dense)
FC1P = 512  # padded fc1 output width


# ----------------------------------------------------------------------------
# Pallas kernels
# ----------------------------------------------------------------------------
def _conv_relu_pool_kernel(cols_ref, w_ref, b_ref, o_ref):
    """Fused conv (as matmul) + bias + ReLU + 2x2 maxpool for one image.

    cols_ref: (1, 4, Mp, K) bf16   4 pool positions of im2col patches
    w_ref:    (K, OCP)      bf16   conv weight (zero-padded to OCP lanes)
    b_ref:    (1, OCP)      f32
    o_ref:    (1, Mp, OCP)  bf16   pooled activation
    """
    w = w_ref[...]
    acc = jnp.dot(cols_ref[0, 0], w, preferred_element_type=jnp.float32)
    for p in range(1, 4):
        acc = jnp.maximum(
            acc, jnp.dot(cols_ref[0, p], w, preferred_element_type=jnp.float32))
    # relu(max_p(a_p) + b) == max_p relu(a_p + b)  (bias constant, relu monotone)
    acc = jnp.maximum(acc + b_ref[...], 0.0)
    o_ref[0] = acc.astype(o_ref.dtype)


def _classifier_kernel(x_ref, w1_ref, b1_ref, w2_ref, b2_ref, o_ref):
    """Fused fc1 + tanh + fc2.  All operands VMEM-resident, f32 epilogues."""
    h = jnp.dot(x_ref[...], w1_ref[...], preferred_element_type=jnp.float32)
    h = jnp.tanh(h + b1_ref[...])
    out = jnp.dot(h.astype(jnp.bfloat16), w2_ref[...],
                  preferred_element_type=jnp.float32)
    o_ref[...] = out + b2_ref[...]


# ----------------------------------------------------------------------------
# Wrappers
# ----------------------------------------------------------------------------
def _im2col_pooled(x, kh, kw):
    """NHWC im2col, grouped by 2x2 pool position.

    x: (N, H, W, C) -> cols (N, 4, OH2*OW2, KH*KW*C), column order (kh, kw, c).
    """
    n, h, w, c = x.shape
    oh, ow = h - kh + 1, w - kw + 1
    oh2, ow2 = oh // 2, ow // 2
    pools = []
    for ph in range(2):
        for pw in range(2):
            slabs = []
            for i in range(kh):
                for j in range(kw):
                    r0, c0 = ph + i, pw + j
                    slabs.append(
                        x[:, r0:r0 + 2 * (oh2 - 1) + 1:2,
                          c0:c0 + 2 * (ow2 - 1) + 1:2, :])   # (N, OH2, OW2, C)
            patch = jnp.concatenate(slabs, axis=-1)          # (N, OH2, OW2, KH*KW*C)
            pools.append(patch.reshape(n, oh2 * ow2, kh * kw * c))
    cols = jnp.stack(pools, axis=1)                          # (N, 4, Mp, K)
    return cols, oh2, ow2


def conv_relu_pool(x, w_mat, bias, kh=5, kw=5):
    """Conv2d(stride=1, valid) + ReLU + MaxPool2d(2), NHWC in / NHWC out.

    x: (N, H, W, C) bf16; w_mat: (KH*KW*C, OCP) bf16; bias: (1, OCP) f32.
    Returns (N, OH/2, OW/2, OCP) bf16 (channels beyond real OC are zero).
    """
    n = x.shape[0]
    cols, oh2, ow2 = _im2col_pooled(x, kh, kw)
    mp, k = cols.shape[2], cols.shape[3]
    ocp = w_mat.shape[1]
    out = pl.pallas_call(
        _conv_relu_pool_kernel,
        out_shape=jax.ShapeDtypeStruct((n, mp, ocp), jnp.bfloat16),
        grid=(n,),
        in_specs=[
            pl.BlockSpec((1, 4, mp, k), lambda b: (b, 0, 0, 0)),
            pl.BlockSpec((k, ocp), lambda b: (0, 0)),
            pl.BlockSpec((1, ocp), lambda b: (0, 0)),
        ],
        out_specs=pl.BlockSpec((1, mp, ocp), lambda b: (b, 0, 0)),
        compiler_params=pltpu.CompilerParams(
            dimension_semantics=("parallel",)),
    )(cols, w_mat, bias)
    return out.reshape(n, oh2, ow2, ocp)


def classifier(x, w1, b1, w2, b2):
    """Fused Linear(1250->500) + Tanh + Linear(500->n_classes), padded lanes."""
    n = x.shape[0]
    ocp = w2.shape[1]
    return pl.pallas_call(
        _classifier_kernel,
        out_shape=jax.ShapeDtypeStruct((n, ocp), jnp.float32),
        in_specs=[pl.BlockSpec(memory_space=pltpu.MemorySpace.VMEM)] * 5,
        out_specs=pl.BlockSpec(memory_space=pltpu.MemorySpace.VMEM),
    )(x, w1, b1, w2, b2)


# ----------------------------------------------------------------------------
# Parameters: PyTorch-layout init + one-time pre-layout (transpose/pad/bf16)
# ----------------------------------------------------------------------------
def init_params(key, n_classes=10):
    ks = jax.random.split(key, 8)
    s = 0.05
    return {
        "conv1_w": s * jax.random.normal(ks[0], (20, 3, 5, 5), jnp.float32),
        "conv1_b": s * jax.random.normal(ks[1], (20,), jnp.float32),
        "conv2_w": s * jax.random.normal(ks[2], (50, 20, 5, 5), jnp.float32),
        "conv2_b": s * jax.random.normal(ks[3], (50,), jnp.float32),
        "fc1_w": s * jax.random.normal(ks[4], (500, 5 * 5 * 50), jnp.float32),
        "fc1_b": s * jax.random.normal(ks[5], (500,), jnp.float32),
        "fc2_w": s * jax.random.normal(ks[6], (n_classes, 500), jnp.float32),
        "fc2_b": s * jax.random.normal(ks[7], (n_classes,), jnp.float32),
    }


def _pad_to(a, shape):
    return jnp.pad(a, [(0, t - s) for s, t in zip(a.shape, shape)])


def prepare_params(params):
    """One-time weight re-layout: (in, out) matrices, zero-padded lanes, bf16."""
    # conv1: (20,3,5,5) -> (kh,kw,ic,oc) -> (75, 128)
    c1 = jnp.transpose(params["conv1_w"], (2, 3, 1, 0))          # (5,5,3,20)
    c1 = _pad_to(c1, (5, 5, 3, OCP)).reshape(5 * 5 * 3, OCP)
    c1b = _pad_to(params["conv1_b"], (OCP,)).reshape(1, OCP)
    # conv2: (50,20,5,5) -> (kh,kw,ic_pad,oc_pad) -> (3200, 128)
    c2 = jnp.transpose(params["conv2_w"], (2, 3, 1, 0))          # (5,5,20,50)
    c2 = _pad_to(c2, (5, 5, OCP, OCP)).reshape(5 * 5 * OCP, OCP)
    c2b = _pad_to(params["conv2_b"], (OCP,)).reshape(1, OCP)
    # fc1: PyTorch input order is (c, h, w); ours is (h, w, c_pad).
    f1 = params["fc1_w"].reshape(500, 50, 5, 5)                  # (o, c, h, w)
    f1 = jnp.transpose(f1, (2, 3, 1, 0))                         # (h, w, c, o)
    f1 = _pad_to(f1, (5, 5, OCP, FC1P)).reshape(5 * 5 * OCP, FC1P)
    f1b = _pad_to(params["fc1_b"], (FC1P,)).reshape(1, FC1P)
    # fc2: (10, 500) -> (512, 128)
    f2 = _pad_to(params["fc2_w"].T, (FC1P, OCP))
    f2b = _pad_to(params["fc2_b"], (OCP,)).reshape(1, OCP)
    return {
        "c1_w": c1.astype(jnp.bfloat16), "c1_b": c1b.astype(jnp.float32),
        "c2_w": c2.astype(jnp.bfloat16), "c2_b": c2b.astype(jnp.float32),
        "fc1_w": f1.astype(jnp.bfloat16), "fc1_b": f1b.astype(jnp.float32),
        "fc2_w": f2.astype(jnp.bfloat16), "fc2_b": f2b.astype(jnp.float32),
    }


# ----------------------------------------------------------------------------
# Forward
# ----------------------------------------------------------------------------
def lenet5_cifar_forward(prepped, x_nchw, n_classes=10):
    # single tiny layout change at the boundary: NCHW -> NHWC, bf16
    x = jnp.transpose(x_nchw, (0, 2, 3, 1)).astype(jnp.bfloat16)   # (N,32,32,3)
    y = conv_relu_pool(x, prepped["c1_w"], prepped["c1_b"])        # (N,14,14,128)
    y = conv_relu_pool(y, prepped["c2_w"], prepped["c2_b"])        # (N,5,5,128)
    n = y.shape[0]
    feats = y.reshape(n, 5 * 5 * OCP)                              # (N, 3200)
    logits = classifier(feats, prepped["fc1_w"], prepped["fc1_b"],
                        prepped["fc2_w"], prepped["fc2_b"])        # (N, 128)
    return logits[:, :n_classes]


# ----------------------------------------------------------------------------
# Pure-JAX reference (f32) for a correctness sanity check
# ----------------------------------------------------------------------------
def reference_forward(params, x):
    dn = ("NCHW", "OIHW", "NCHW")
    y = lax.conv_general_dilated(x, params["conv1_w"], (1, 1), "VALID",
                                 dimension_numbers=dn)
    y = jnp.maximum(y + params["conv1_b"][None, :, None, None], 0.0)
    y = lax.reduce_window(y, -jnp.inf, lax.max, (1, 1, 2, 2), (1, 1, 2, 2), "VALID")
    y = lax.conv_general_dilated(y, params["conv2_w"], (1, 1), "VALID",
                                 dimension_numbers=dn)
    y = jnp.maximum(y + params["conv2_b"][None, :, None, None], 0.0)
    y = lax.reduce_window(y, -jnp.inf, lax.max, (1, 1, 2, 2), (1, 1, 2, 2), "VALID")
    y = y.reshape(y.shape[0], -1)
    y = jnp.tanh(y @ params["fc1_w"].T + params["fc1_b"])
    return y @ params["fc2_w"].T + params["fc2_b"]


if __name__ == "__main__":
    key = jax.random.PRNGKey(0)
    pkey, xkey = jax.random.split(key)
    params = init_params(pkey, n_classes=10)
    prepped = prepare_params(params)           # one-time weight pre-layout
    # CIFAR-sized input (required by the 5*5*50 flatten), small batch.
    x = jax.random.normal(xkey, (2, 3, 32, 32), jnp.float32)

    out = jax.block_until_ready(jax.jit(lenet5_cifar_forward)(prepped, x))
    assert out.shape == (2, 10), out.shape

    ref = jax.block_until_ready(jax.jit(reference_forward)(params, x))
    max_err = float(jnp.max(jnp.abs(out.astype(jnp.float32) - ref)))
    assert max_err < 0.1, f"max abs error vs reference: {max_err}"
    print("KERNEL_OK")
</pallas_src>

<mosaic_0001>
module attributes {stable_mosaic.version = 11 : i64} {
  func.func @_conv_relu_pool_kernel(%arg0: i32, %arg1: memref<1x4x196x75xbf16, #tpu.memory_space<vmem>>, %arg2: memref<75x128xbf16, #tpu.memory_space<vmem>>, %arg3: memref<1x128xf32, #tpu.memory_space<vmem>>, %arg4: memref<1x196x128xbf16, #tpu.memory_space<vmem>>) attributes {dimension_semantics = [#tpu.dimension_semantics<parallel>], iteration_bounds = array<i64: 2>, scalar_prefetch = 0 : i64, scratch_operands = 0 : i64, tpu.core_type = #tpu.core_type<tc>, window_params = [{transform_indices = @transform_0, window_bounds = array<i64: 1, 4, 196, 75>}, {pipeline_mode = #tpu.pipeline_mode<synchronous>, transform_indices = @transform_1, window_bounds = array<i64: 75, 128>}, {pipeline_mode = #tpu.pipeline_mode<synchronous>, transform_indices = @transform_2, window_bounds = array<i64: 1, 128>}, {transform_indices = @transform_3, window_bounds = array<i64: 1, 196, 128>}]} {
    %c0 = arith.constant 0 : index
    %c0_0 = arith.constant 0 : index
    %0 = vector.load %arg2[%c0, %c0_0] : memref<75x128xbf16, #tpu.memory_space<vmem>>, vector<75x128xbf16>
    %c0_1 = arith.constant 0 : index
    %c0_2 = arith.constant 0 : index
    %c0_3 = arith.constant 0 : index
    %c0_4 = arith.constant 0 : index
    %1 = vector.load %arg1[%c0_1, %c0_2, %c0_3, %c0_4] : memref<1x4x196x75xbf16, #tpu.memory_space<vmem>>, vector<1x1x196x75xbf16>
    %2 = vector.shape_cast %1 : vector<1x1x196x75xbf16> to vector<196x75xbf16>
    %cst = arith.constant dense<0.000000e+00> : vector<196x128xf32>
    %3 = tpu.matmul %2, %0, %cst {dimension_numbers = #tpu.dot_dimension_numbers<[1], [0], [0], [1], [0, 0, 1, 1], [], []>} : vector<196x75xbf16>, vector<75x128xbf16>, vector<196x128xf32> -> vector<196x128xf32>
    %c0_5 = arith.constant 0 : index
    %c1 = arith.constant 1 : index
    %c0_6 = arith.constant 0 : index
    %c0_7 = arith.constant 0 : index
    %4 = vector.load %arg1[%c0_5, %c1, %c0_6, %c0_7] : memref<1x4x196x75xbf16, #tpu.memory_space<vmem>>, vector<1x1x196x75xbf16>
    %5 = vector.shape_cast %4 : vector<1x1x196x75xbf16> to vector<196x75xbf16>
    %cst_8 = arith.constant dense<0.000000e+00> : vector<196x128xf32>
    %6 = tpu.matmul %5, %0, %cst_8 {dimension_numbers = #tpu.dot_dimension_numbers<[1], [0], [0], [1], [0, 0, 1, 1], [], []>} : vector<196x75xbf16>, vector<75x128xbf16>, vector<196x128xf32> -> vector<196x128xf32>
    %7 = arith.maximumf %3, %6 : vector<196x128xf32>
    %c0_9 = arith.constant 0 : index
    %c2 = arith.constant 2 : index
    %c0_10 = arith.constant 0 : index
    %c0_11 = arith.constant 0 : index
    %8 = vector.load %arg1[%c0_9, %c2, %c0_10, %c0_11] : memref<1x4x196x75xbf16, #tpu.memory_space<vmem>>, vector<1x1x196x75xbf16>
    %9 = vector.shape_cast %8 : vector<1x1x196x75xbf16> to vector<196x75xbf16>
    %cst_12 = arith.constant dense<0.000000e+00> : vector<196x128xf32>
    %10 = tpu.matmul %9, %0, %cst_12 {dimension_numbers = #tpu.dot_dimension_numbers<[1], [0], [0], [1], [0, 0, 1, 1], [], []>} : vector<196x75xbf16>, vector<75x128xbf16>, vector<196x128xf32> -> vector<196x128xf32>
    %11 = arith.maximumf %7, %10 : vector<196x128xf32>
    %c0_13 = arith.constant 0 : index
    %c3 = arith.constant 3 : index
    %c0_14 = arith.constant 0 : index
    %c0_15 = arith.constant 0 : index
    %12 = vector.load %arg1[%c0_13, %c3, %c0_14, %c0_15] : memref<1x4x196x75xbf16, #tpu.memory_space<vmem>>, vector<1x1x196x75xbf16>
    %13 = vector.shape_cast %12 : vector<1x1x196x75xbf16> to vector<196x75xbf16>
    %cst_16 = arith.constant dense<0.000000e+00> : vector<196x128xf32>
    %14 = tpu.matmul %13, %0, %cst_16 {dimension_numbers = #tpu.dot_dimension_numbers<[1], [0], [0], [1], [0, 0, 1, 1], [], []>} : vector<196x75xbf16>, vector<75x128xbf16>, vector<196x128xf32> -> vector<196x128xf32>
    %15 = arith.maximumf %11, %14 : vector<196x128xf32>
    %c0_17 = arith.constant 0 : index
    %c0_18 = arith.constant 0 : index
    %16 = vector.load %arg3[%c0_17, %c0_18] : memref<1x128xf32, #tpu.memory_space<vmem>>, vector<1x128xf32>
    %17 = vector.broadcast %16 : vector<1x128xf32> to vector<196x128xf32>
    %18 = arith.addf %15, %17 : vector<196x128xf32>
    %cst_19 = arith.constant 0.000000e+00 : f32
    %19 = vector.broadcast %cst_19 : f32 to vector<196x128xf32>
    %20 = arith.maximumf %18, %19 : vector<196x128xf32>
    %21 = arith.truncf %20 : vector<196x128xf32> to vector<196x128xbf16>
    %c0_20 = arith.constant 0 : index
    %c0_21 = arith.constant 0 : index
    %c0_22 = arith.constant 0 : index
    %22 = vector.load %arg4[%c0_20, %c0_21, %c0_22] : memref<1x196x128xbf16, #tpu.memory_space<vmem>>, vector<1x196x128xbf16>
    %23 = vector.shape_cast %22 : vector<1x196x128xbf16> to vector<196x128xbf16>
    %24 = vector.shape_cast %21 : vector<196x128xbf16> to vector<1x196x128xbf16>
    tpu.vector_store %arg4[%c0_20, %c0_21, %c0_22], %24 {strides = array<i32>} : memref<1x196x128xbf16, #tpu.memory_space<vmem>>, vector<1x196x128xbf16>,
    return
  }
  func.func @transform_0(%arg0: i32) -> (i32, i32, i32, i32) {
    %c0_i32 = arith.constant 0 : i32
    %c0_i32_0 = arith.constant 0 : i32
    %c0_i32_1 = arith.constant 0 : i32
    %c0_i32_2 = arith.constant 0 : i32
    return %arg0, %c0_i32, %c0_i32_0, %c0_i32_1 : i32, i32, i32, i32
  }
  func.func @transform_1(%arg0: i32) -> (i32, i32) {
    %c0_i32 = arith.constant 0 : i32
    %c0_i32_0 = arith.constant 0 : i32
    %c0_i32_1 = arith.constant 0 : i32
    return %c0_i32, %c0_i32_0 : i32, i32
  }
  func.func @transform_2(%arg0: i32) -> (i32, i32) {
    %c0_i32 = arith.constant 0 : i32
    %c0_i32_0 = arith.constant 0 : i32
    %c0_i32_1 = arith.constant 0 : i32
    return %c0_i32, %c0_i32_0 : i32, i32
  }
  func.func @transform_3(%arg0: i32) -> (i32, i32, i32) {
    %c0_i32 = arith.constant 0 : i32
    %c0_i32_0 = arith.constant 0 : i32
    %c0_i32_1 = arith.constant 0 : i32
    return %arg0, %c0_i32, %c0_i32_0 : i32, i32, i32
  }
}

module attributes {stable_mosaic.version = 11 : i64} {
  func.func @_classifier_kernel(%arg0: memref<2x3200xbf16, #tpu.memory_space<vmem>>, %arg1: memref<3200x512xbf16, #tpu.memory_space<vmem>>, %arg2: memref<1x512xf32, #tpu.memory_space<vmem>>, %arg3: memref<512x128xbf16, #tpu.memory_space<vmem>>, %arg4: memref<1x128xf32, #tpu.memory_space<vmem>>, %arg5: memref<2x128xf32, #tpu.memory_space<vmem>>) attributes {dimension_semantics = [], scalar_prefetch = 0 : i64, scratch_operands = 0 : i64, tpu.core_type = #tpu.core_type<tc>} {
    %c0 = arith.constant 0 : index
    %c0_0 = arith.constant 0 : index
    %0 = vector.load %arg0[%c0, %c0_0] : memref<2x3200xbf16, #tpu.memory_space<vmem>>, vector<2x3200xbf16>
    %c0_1 = arith.constant 0 : index
    %c0_2 = arith.constant 0 : index
    %1 = vector.load %arg1[%c0_1, %c0_2] : memref<3200x512xbf16, #tpu.memory_space<vmem>>, vector<3200x512xbf16>
    %cst = arith.constant dense<0.000000e+00> : vector<2x512xf32>
    %2 = tpu.matmul %0, %1, %cst {dimension_numbers = #tpu.dot_dimension_numbers<[1], [0], [0], [1], [0, 0, 1, 1], [], []>} : vector<2x3200xbf16>, vector<3200x512xbf16>, vector<2x512xf32> -> vector<2x512xf32>
    %c0_3 = arith.constant 0 : index
    %c0_4 = arith.constant 0 : index
    %3 = vector.load %arg2[%c0_3, %c0_4] : memref<1x512xf32, #tpu.memory_space<vmem>>, vector<1x512xf32>
    %4 = vector.broadcast %3 : vector<1x512xf32> to vector<2x512xf32>
    %5 = arith.addf %2, %4 : vector<2x512xf32>
    %6 = math.tanh %5 : vector<2x512xf32>
    %7 = arith.truncf %6 : vector<2x512xf32> to vector<2x512xbf16>
    %c0_5 = arith.constant 0 : index
    %c0_6 = arith.constant 0 : index
    %8 = vector.load %arg3[%c0_5, %c0_6] : memref<512x128xbf16, #tpu.memory_space<vmem>>, vector<512x128xbf16>
    %cst_7 = arith.constant dense<0.000000e+00> : vector<2x128xf32>
    %9 = tpu.matmul %7, %8, %cst_7 {dimension_numbers = #tpu.dot_dimension_numbers<[1], [0], [0], [1], [0, 0, 1, 1], [], []>} : vector<2x512xbf16>, vector<512x128xbf16>, vector<2x128xf32> -> vector<2x128xf32>
    %c0_8 = arith.constant 0 : index
    %c0_9 = arith.constant 0 : index
    %10 = vector.load %arg4[%c0_8, %c0_9] : memref<1x128xf32, #tpu.memory_space<vmem>>, vector<1x128xf32>
    %11 = vector.broadcast %10 : vector<1x128xf32> to vector<2x128xf32>
    %12 = arith.addf %9, %11 : vector<2x128xf32>
    %c0_10 = arith.constant 0 : index
    %c0_11 = arith.constant 0 : index
    %13 = vector.load %arg5[%c0_10, %c0_11] : memref<2x128xf32, #tpu.memory_space<vmem>>, vector<2x128xf32>
    tpu.vector_store %arg5[%c0_10, %c0_11], %12 {strides = array<i32>} : memref<2x128xf32, #tpu.memory_space<vmem>>, vector<2x128xf32>,
    return
  }
}

module attributes {stable_mosaic.version = 11 : i64} {
  func.func @_conv_relu_pool_kernel(%arg0: i32, %arg1: memref<1x4x25x3200xbf16, #tpu.memory_space<vmem>>, %arg2: memref<3200x128xbf16, #tpu.memory_space<vmem>>, %arg3: memref<1x128xf32, #tpu.memory_space<vmem>>, %arg4: memref<1x25x128xbf16, #tpu.memory_space<vmem>>) attributes {dimension_semantics = [#tpu.dimension_semantics<parallel>], iteration_bounds = array<i64: 2>, scalar_prefetch = 0 : i64, scratch_operands = 0 : i64, tpu.core_type = #tpu.core_type<tc>, window_params = [{transform_indices = @transform_0, window_bounds = array<i64: 1, 4, 25, 3200>}, {pipeline_mode = #tpu.pipeline_mode<synchronous>, transform_indices = @transform_1, window_bounds = array<i64: 3200, 128>}, {pipeline_mode = #tpu.pipeline_mode<synchronous>, transform_indices = @transform_2, window_bounds = array<i64: 1, 128>}, {transform_indices = @transform_3, window_bounds = array<i64: 1, 25, 128>}]} {
    %c0 = arith.constant 0 : index
    %c0_0 = arith.constant 0 : index
    %0 = vector.load %arg2[%c0, %c0_0] : memref<3200x128xbf16, #tpu.memory_space<vmem>>, vector<3200x128xbf16>
    %c0_1 = arith.constant 0 : index
    %c0_2 = arith.constant 0 : index
    %c0_3 = arith.constant 0 : index
    %c0_4 = arith.constant 0 : index
    %1 = vector.load %arg1[%c0_1, %c0_2, %c0_3, %c0_4] : memref<1x4x25x3200xbf16, #tpu.memory_space<vmem>>, vector<1x1x25x3200xbf16>
    %2 = vector.shape_cast %1 : vector<1x1x25x3200xbf16> to vector<25x3200xbf16>
    %cst = arith.constant dense<0.000000e+00> : vector<25x128xf32>
    %3 = tpu.matmul %2, %0, %cst {dimension_numbers = #tpu.dot_dimension_numbers<[1], [0], [0], [1], [0, 0, 1, 1], [], []>} : vector<25x3200xbf16>, vector<3200x128xbf16>, vector<25x128xf32> -> vector<25x128xf32>
    %c0_5 = arith.constant 0 : index
    %c1 = arith.constant 1 : index
    %c0_6 = arith.constant 0 : index
    %c0_7 = arith.constant 0 : index
    %4 = vector.load %arg1[%c0_5, %c1, %c0_6, %c0_7] : memref<1x4x25x3200xbf16, #tpu.memory_space<vmem>>, vector<1x1x25x3200xbf16>
    %5 = vector.shape_cast %4 : vector<1x1x25x3200xbf16> to vector<25x3200xbf16>
    %cst_8 = arith.constant dense<0.000000e+00> : vector<25x128xf32>
    %6 = tpu.matmul %5, %0, %cst_8 {dimension_numbers = #tpu.dot_dimension_numbers<[1], [0], [0], [1], [0, 0, 1, 1], [], []>} : vector<25x3200xbf16>, vector<3200x128xbf16>, vector<25x128xf32> -> vector<25x128xf32>
    %7 = arith.maximumf %3, %6 : vector<25x128xf32>
    %c0_9 = arith.constant 0 : index
    %c2 = arith.constant 2 : index
    %c0_10 = arith.constant 0 : index
    %c0_11 = arith.constant 0 : index
    %8 = vector.load %arg1[%c0_9, %c2, %c0_10, %c0_11] : memref<1x4x25x3200xbf16, #tpu.memory_space<vmem>>, vector<1x1x25x3200xbf16>
    %9 = vector.shape_cast %8 : vector<1x1x25x3200xbf16> to vector<25x3200xbf16>
    %cst_12 = arith.constant dense<0.000000e+00> : vector<25x128xf32>
    %10 = tpu.matmul %9, %0, %cst_12 {dimension_numbers = #tpu.dot_dimension_numbers<[1], [0], [0], [1], [0, 0, 1, 1], [], []>} : vector<25x3200xbf16>, vector<3200x128xbf16>, vector<25x128xf32> -> vector<25x128xf32>
    %11 = arith.maximumf %7, %10 : vector<25x128xf32>
    %c0_13 = arith.constant 0 : index
    %c3 = arith.constant 3 : index
    %c0_14 = arith.constant 0 : index
    %c0_15 = arith.constant 0 : index
    %12 = vector.load %arg1[%c0_13, %c3, %c0_14, %c0_15] : memref<1x4x25x3200xbf16, #tpu.memory_space<vmem>>, vector<1x1x25x3200xbf16>
    %13 = vector.shape_cast %12 : vector<1x1x25x3200xbf16> to vector<25x3200xbf16>
    %cst_16 = arith.constant dense<0.000000e+00> : vector<25x128xf32>
    %14 = tpu.matmul %13, %0, %cst_16 {dimension_numbers = #tpu.dot_dimension_numbers<[1], [0], [0], [1], [0, 0, 1, 1], [], []>} : vector<25x3200xbf16>, vector<3200x128xbf16>, vector<25x128xf32> -> vector<25x128xf32>
    %15 = arith.maximumf %11, %14 : vector<25x128xf32>
    %c0_17 = arith.constant 0 : index
    %c0_18 = arith.constant 0 : index
    %16 = vector.load %arg3[%c0_17, %c0_18] : memref<1x128xf32, #tpu.memory_space<vmem>>, vector<1x128xf32>
    %17 = vector.broadcast %16 : vector<1x128xf32> to vector<25x128xf32>
    %18 = arith.addf %15, %17 : vector<25x128xf32>
    %cst_19 = arith.constant 0.000000e+00 : f32
    %19 = vector.broadcast %cst_19 : f32 to vector<25x128xf32>
    %20 = arith.maximumf %18, %19 : vector<25x128xf32>
    %21 = arith.truncf %20 : vector<25x128xf32> to vector<25x128xbf16>
    %c0_20 = arith.constant 0 : index
    %c0_21 = arith.constant 0 : index
    %c0_22 = arith.constant 0 : index
    %22 = vector.load %arg4[%c0_20, %c0_21, %c0_22] : memref<1x25x128xbf16, #tpu.memory_space<vmem>>, vector<1x25x128xbf16>
    %23 = vector.shape_cast %22 : vector<1x25x128xbf16> to vector<25x128xbf16>
    %24 = vector.shape_cast %21 : vector<25x128xbf16> to vector<1x25x128xbf16>
    tpu.vector_store %arg4[%c0_20, %c0_21, %c0_22], %24 {strides = array<i32>} : memref<1x25x128xbf16, #tpu.memory_space<vmem>>, vector<1x25x128xbf16>,
    return
  }
  func.func @transform_0(%arg0: i32) -> (i32, i32, i32, i32) {
    %c0_i32 = arith.constant 0 : i32
    %c0_i32_0 = arith.constant 0 : i32
    %c0_i32_1 = arith.constant 0 : i32
    %c0_i32_2 = arith.constant 0 : i32
    return %arg0, %c0_i32, %c0_i32_0, %c0_i32_1 : i32, i32, i32, i32
  }
  func.func @transform_1(%arg0: i32) -> (i32, i32) {
    %c0_i32 = arith.constant 0 : i32
    %c0_i32_0 = arith.constant 0 : i32
    %c0_i32_1 = arith.constant 0 : i32
    return %c0_i32, %c0_i32_0 : i32, i32
  }
  func.func @transform_2(%arg0: i32) -> (i32, i32) {
    %c0_i32 = arith.constant 0 : i32
    %c0_i32_0 = arith.constant 0 : i32
    %c0_i32_1 = arith.constant 0 : i32
    return %c0_i32, %c0_i32_0 : i32, i32
  }
  func.func @transform_3(%arg0: i32) -> (i32, i32, i32) {
    %c0_i32 = arith.constant 0 : i32
    %c0_i32_0 = arith.constant 0 : i32
    %c0_i32_1 = arith.constant 0 : i32
    return %arg0, %c0_i32, %c0_i32_0 : i32, i32, i32
  }
}

</mosaic_0001>

<bundles_post_ra>
// kernel: lenet5_cifar_forward.3
= control target key start
LH: loop header
LB: loop body
LE: loop exit
PB: predicated region body
PF: predicated region fallthrough
CT: control target
= control target key end

     0   :  { %s2323_s12 = smov 0   ;;  %s2859_s0 = inlined_call_operand.vmem [shape: bf16[2,4,196,75], index: 0, kind: input, shape index: {}]   ;;  %s2860_s1 = inlined_call_operand.vmem [shape: bf16[75,128], index: 1, kind: input, shape index: {}]   ;;  %s2861_s2 = inlined_call_operand.vmem [shape: f32[1,128], index: 2, kind: input, shape index: {}]   ;;  %s2862_s3 = inlined_call_operand.vmem [shape: bf16[2,196,128], index: 3, kind: output, shape index: {}]  }
   0x1 LB: > { %s1587_s13 = sadd.s32 4294967295, %s2298_s12   ;;  %p1591_p0 = scmp.ge.s32.totalorder %s2298_s12, 1  ;;  %s2298_s12 = sphi %s2323_s12, %s13_s12  }
   0x2   : > { %p137_p1 = scmp.lt.s32.totalorder %s2298_s12, 3 }
   0x4   : > { %p138_p2 = pnand %p1591_p0, %p137_p1 }
   0x6   : > { %141 = sbr.rel (%p138_p2) target bundleno = 457 (0x1c9), region = 32 }
   0xd   : > { %v2235_v0 = vld [vmem:[%s2860_s1] sm:$0xff]   ;;  %v2300_v1 = vmov 0.0   ;;  %v2236_v2 = vld [vmem:[%s2860_s1 + $0x8] sm:$0xff]   ;;  %vm339_vm0 = vcmask 1044480   ;;  %p161_p3 = scmp.lt.s32.totalorder %s1587_s13, 1  ;;  %v2237_v3 = vld [vmem:[%s2860_s1 + $0x10] sm:$0xff]  }
   0xe   : > { %1974 = vmatprep.subr.bf16.mxu0 %v2300_v1  ;;  %2036 = vmatprep.subr.bf16.mxu1 %v2300_v1  ;;  %vm340_vm1 = vcmask 1045504   ;;  %v2301_v4 = vmov 65535   ;;  %vm2302_vm2 = vmmov 0   ;;  %v2238_v6 = vld [vmem:[%s2860_s1 + $0x18] sm:$0xff]   ;;  %v2239_v7 = vld [vmem:[%s2860_s1 + $0x20] sm:$0x3f]  }
   0xf   : > { %1975 = vmatpush3.bf16.msra.mxu0 %v2235_v0  ;;  %2037 = vmatpush3.bf16.msra.mxu1 %v2235_v0  ;;  %s2897_s13 = smov (!%p161_p3, %s1587_s13), 1  ;;  %v341_v5 = vsel %vm339_vm0, 4294967295, %v2301_v4  ;;  %vm299_vm3 = vcmask 613376  }
  0x10   : > { %1976 = vmatprep.subr.bf16.mxu0 %v2300_v1  ;;  %2038 = vmatprep.subr.bf16.mxu1 %v2300_v1  ;;  %s2222_s20 = smul.u32 400, %s2897_s13  ;;  %v342_v8 = vsel %vm340_vm1, %v341_v5, 0 }
  0x11   : > { %1984 = vmatprep.mubr.msk.bf16.mxu0 %vm2302_vm2, %v2300_v1  ;;  %2046 = vmatprep.mubr.msk.bf16.mxu1 %vm2302_vm2, %v2300_v1  ;;  %v344_v9 = vand.u32 %v2239_v7, %v342_v8  ;;  %s2223_s30 = smul.u32 100, %s2897_s13 }
  0x12   : > { %s2364_s27 = scalar_lea.vmem %s2859_s0, %s2222_s20 }
  0x13   : > { %1977 = vmatpush3.bf16.msra.mxu0 %v2236_v2  ;;  %2039 = vmatpush3.bf16.msra.mxu1 %v2236_v2  ;;  %v2240_v10 = vld [vmem:[%s2364_s27] sm:$0xff]   ;;  %v2242_v12 = vld [vmem:[%s2364_s27 + $0x8] sm:$0xff]   ;;  %v2244_v14 = vld [vmem:[%s2364_s27 + $0x10] sm:$0xff]   ;;  %s2752_s6 = scalar_lea.vmem %s2862_s3, %s2223_s30 }
  0x14   : > { %1978 = vmatprep.subr.bf16.mxu0 %v2300_v1  ;;  %2040 = vmatprep.subr.bf16.mxu1 %v2300_v1  ;;  %v2241_v11 = vld [vmem:[%s2364_s27 + $0x64] sm:$0xff]   ;;  %v2243_v13 = vld [vmem:[%s2364_s27 + $0x6c] sm:$0xff]   ;;  %v2245_v15 = vld [vmem:[%s2364_s27 + $0x74] sm:$0xff]  }
  0x15   : > { %v2246_v16 = vld [vmem:[%s2364_s27 + $0x18] sm:$0xff]   ;;  %v2248_v18 = vld [vmem:[%s2364_s27 + $0x20] sm:$0xff]   ;;  %v2250_v20 = vld [vmem:[%s2364_s27 + $0x28] sm:$0xff]  }
  0x16   : > { %v2247_v17 = vld [vmem:[%s2364_s27 + $0x7c] sm:$0xff]   ;;  %v2249_v19 = vld [vmem:[%s2364_s27 + $0x84] sm:$0xff]   ;;  %v2251_v21 = vld [vmem:[%s2364_s27 + $0x8c] sm:$0xff]  }
  0x17   : > { %1979 = vmatpush3.bf16.msra.mxu0 %v2237_v3  ;;  %2041 = vmatpush3.bf16.msra.mxu1 %v2237_v3  ;;  %v2252_v22 = vld [vmem:[%s2364_s27 + $0x30] sm:$0xff]   ;;  %v2254_v24 = vld [vmem:[%s2364_s27 + $0x38] sm:$0xff]   ;;  %v2256_v26 = vld [vmem:[%s2364_s27 + $0x40] sm:$0xff]  }
  0x18   : > { %1980 = vmatprep.subr.bf16.mxu0 %v2300_v1  ;;  %2042 = vmatprep.subr.bf16.mxu1 %v2300_v1  ;;  %v2253_v23 = vld [vmem:[%s2364_s27 + $0x94] sm:$0xff]   ;;  %v2255_v25 = vld [vmem:[%s2364_s27 + $0x9c] sm:$0xff]   ;;  %v2257_v27 = vld [vmem:[%s2364_s27 + $0xa4] sm:$0xff]  }
  0x19   : > { %v2258_v28 = vld [vmem:[%s2364_s27 + $0x48] sm:$0xff]   ;;  %v2260_v30 = vld [vmem:[%s2364_s27 + $0x50] sm:$0xff]   ;;  %v2262_v32 = vld [vmem:[%s2364_s27 + $0x58] sm:$0xff]  }
  0x1a   : > { %v2259_v29 = vld [vmem:[%s2364_s27 + $0xac] sm:$0xff]   ;;  %v2261_v31 = vld [vmem:[%s2364_s27 + $0xb4] sm:$0xff]   ;;  %v2263_v33 = vld [vmem:[%s2364_s27 + $0xbc] sm:$0xff]  }
  0x1b   : > { %1981 = vmatpush3.bf16.msra.mxu0 %v2238_v6  ;;  %2043 = vmatpush3.bf16.msra.mxu1 %v2238_v6  ;;  %v2264_v34 = vld [vmem:[%s2364_s27 + $0x60] ss:$0 sps:$4 sm:$0x33]   ;;  %v2265_v35 = vld [vmem:[%s2364_s27 + $0xc4] ss:$0 sps:$4 sm:$0x33]  }
  0x1c   : > { %1982 = vmatprep.subr.bf16.mxu0 %v2300_v1  ;;  %2044 = vmatprep.subr.bf16.mxu1 %v2300_v1  ;;  %v2266_v36 = vld [vmem:[%s2364_s27 + $0xc8] sm:$0xff]   ;;  %v2268_v38 = vld [vmem:[%s2364_s27 + $0xd0] sm:$0xff]   ;;  %v2270_v40 = vld [vmem:[%s2364_s27 + $0xd8] sm:$0xff]  }
  0x1d   : > { %v2267_v37 = vld [vmem:[%s2364_s27 + $0x12c] sm:$0xff]   ;;  %v2269_v39 = vld [vmem:[%s2364_s27 + $0x134] sm:$0xff]   ;;  %v2271_v41 = vld [vmem:[%s2364_s27 + $0x13c] sm:$0xff]  }
  0x1e   : > { %v2272_v42 = vld [vmem:[%s2364_s27 + $0xe0] sm:$0xff]   ;;  %v2274_v44 = vld [vmem:[%s2364_s27 + $0xe8] sm:$0xff]   ;;  %v2276_v46 = vld [vmem:[%s2364_s27 + $0xf0] sm:$0xff]  }
  0x1f   : > { %1983 = vmatpush3.bf16.msra.mxu0 %v344_v9  ;;  %2045 = vmatpush3.bf16.msra.mxu1 %v344_v9  ;;  %v2273_v43 = vld [vmem:[%s2364_s27 + $0x144] sm:$0xff]   ;;  %v2275_v45 = vld [vmem:[%s2364_s27 + $0x14c] sm:$0xff]   ;;  %v2277_v47 = vld [vmem:[%s2364_s27 + $0x154] sm:$0xff]  }
  0x20   : > { %2098 = vmatprep.subr.bf16.mxu0 %v2300_v1  ;;  %2160 = vmatprep.subr.bf16.mxu1 %v2300_v1  ;;  %v2278_v48 = vld [vmem:[%s2364_s27 + $0xf8] sm:$0xff]   ;;  %v2280_v50 = vld [vmem:[%s2364_s27 + $0x100] sm:$0xff]   ;;  %v2282_v52 = vld [vmem:[%s2364_s27 + $0x108] sm:$0xff]  }
  0x21   : > { %v2279_v49 = vld [vmem:[%s2364_s27 + $0x15c] sm:$0xff]   ;;  %v2281_v51 = vld [vmem:[%s2364_s27 + $0x164] sm:$0xff]   ;;  %v2283_v53 = vld [vmem:[%s2364_s27 + $0x16c] sm:$0xff]  }
  0x22   : > { %1985 = vmatmul.mubr.msk.bf16.vlgmr.msra.gmra.mrb[0].mxu0 %vm299_vm3, %v2240_v10  ;;  %2047 = vmatmul.mubr.msk.bf16.vlgmr.msra.gmra.mrb[0].mxu1 %vm299_vm3, %v2241_v11  ;;  %v2284_v54 = vld [vmem:[%s2364_s27 + $0x110] sm:$0xff]   ;;  %v2286_v56 = vld [vmem:[%s2364_s27 + $0x118] sm:$0xff]   ;;  %v2288_v58 = vld [vmem:[%s2364_s27 + $0x120] sm:$0xff]  }
  0x23   : > { %2099 = vmatpush3.bf16.msra.mxu0 %v2235_v0  ;;  %2161 = vmatpush3.bf16.msra.mxu1 %v2235_v0  ;;  %v2285_v55 = vld [vmem:[%s2364_s27 + $0x174] sm:$0xff]   ;;  %v2287_v57 = vld [vmem:[%s2364_s27 + $0x17c] sm:$0xff]   ;;  %v2289_v59 = vld [vmem:[%s2364_s27 + $0x184] sm:$0xff]  }
  0x24   : > { %1988 = vmatprep.mubr.msk.bf16.mxu0 %vm2302_vm2, %v2300_v1  ;;  %2050 = vmatprep.mubr.msk.bf16.mxu1 %vm2302_vm2, %v2300_v1  ;;  %v2290_v60 = vld [vmem:[%s2364_s27 + $0x128] ss:$0 sps:$4 sm:$0x33]   ;;  %v2291_v61 = vld [vmem:[%s2364_s27 + $0x18c] ss:$0 sps:$4 sm:$0x33]  }
  0x25   : > { %2100 = vmatprep.subr.bf16.mxu0 %v2300_v1  ;;  %2162 = vmatprep.subr.bf16.mxu1 %v2300_v1 }
  0x27   : > { %2101 = vmatpush3.bf16.msra.mxu0 %v2236_v2  ;;  %2163 = vmatpush3.bf16.msra.mxu1 %v2236_v2 }
  0x28   : > { %2102 = vmatprep.subr.bf16.mxu0 %v2300_v1  ;;  %2164 = vmatprep.subr.bf16.mxu1 %v2300_v1 }
  0x2a   : > { %1989 = vmatmul.mubr.msk.bf16.gmra.mrb[4].mxu0 %vm299_vm3, %v2242_v12  ;;  %2051 = vmatmul.mubr.msk.bf16.gmra.mrb[4].mxu1 %vm299_vm3, %v2243_v13 }
  0x2b   : > { %1992 = vmatprep.mubr.msk.bf16.mxu0 %vm2302_vm2, %v2300_v1  ;;  %2054 = vmatprep.mubr.msk.bf16.mxu1 %vm2302_vm2, %v2300_v1 }
  0x2c   : > { %2103 = vmatpush3.bf16.msra.mxu0 %v2237_v3  ;;  %2165 = vmatpush3.bf16.msra.mxu1 %v2237_v3 }
  0x2d   : > { %2104 = vmatprep.subr.bf16.mxu0 %v2300_v1  ;;  %2166 = vmatprep.subr.bf16.mxu1 %v2300_v1 }
  0x30   : > { %2105 = vmatpush3.bf16.msra.mxu0 %v2238_v6  ;;  %2167 = vmatpush3.bf16.msra.mxu1 %v2238_v6 }
  0x31   : > { %2106 = vmatprep.subr.bf16.mxu0 %v2300_v1  ;;  %2168 = vmatprep.subr.bf16.mxu1 %v2300_v1 }
  0x32   : > { %1993 = vmatmul.mubr.msk.bf16.gmra.mrb[8].mxu0 %vm299_vm3, %v2244_v14  ;;  %2055 = vmatmul.mubr.msk.bf16.gmra.mrb[8].mxu1 %vm299_vm3, %v2245_v15 }
  0x33   : > { %1996 = vmatprep.mubr.msk.bf16.mxu0 %vm2302_vm2, %v2300_v1  ;;  %2058 = vmatprep.mubr.msk.bf16.mxu1 %vm2302_vm2, %v2300_v1 }
  0x34   : > { %2107 = vmatpush3.bf16.msra.mxu0 %v344_v9  ;;  %2169 = vmatpush3.bf16.msra.mxu1 %v344_v9 }
  0x3a   : > { %1997 = vmatmul.mubr.msk.bf16.gmra.mrb[12].mxu0 %vm299_vm3, %v2246_v16  ;;  %2059 = vmatmul.mubr.msk.bf16.gmra.mrb[12].mxu1 %vm299_vm3, %v2247_v17 }
  0x3b   : > { %2000 = vmatprep.mubr.msk.bf16.mxu0 %vm2302_vm2, %v2300_v1  ;;  %2062 = vmatprep.mubr.msk.bf16.mxu1 %vm2302_vm2, %v2300_v1 }
  0x42   : > { %2001 = vmatmul.mubr.msk.bf16.gmra.mrb[16].mxu0 %vm299_vm3, %v2248_v18  ;;  %2063 = vmatmul.mubr.msk.bf16.gmra.mrb[16].mxu1 %vm299_vm3, %v2249_v19 }
  0x43   : > { %2004 = vmatprep.mubr.msk.bf16.mxu0 %vm2302_vm2, %v2300_v1  ;;  %2066 = vmatprep.mubr.msk.bf16.mxu1 %vm2302_vm2, %v2300_v1 }
  0x4a   : > { %2005 = vmatmul.mubr.msk.bf16.gmra.mrb[20].mxu0 %vm299_vm3, %v2250_v20  ;;  %2067 = vmatmul.mubr.msk.bf16.gmra.mrb[20].mxu1 %vm299_vm3, %v2251_v21 }
  0x4b   : > { %2008 = vmatprep.mubr.msk.bf16.mxu0 %vm2302_vm2, %v2300_v1  ;;  %2070 = vmatprep.mubr.msk.bf16.mxu1 %vm2302_vm2, %v2300_v1 }
  0x52   : > { %2009 = vmatmul.mubr.msk.bf16.gmra.mrb[24].mxu0 %vm299_vm3, %v2252_v22  ;;  %2071 = vmatmul.mubr.msk.bf16.gmra.mrb[24].mxu1 %vm299_vm3, %v2253_v23 }
  0x53   : > { %2012 = vmatprep.mubr.msk.bf16.mxu0 %vm2302_vm2, %v2300_v1  ;;  %2074 = vmatprep.mubr.msk.bf16.mxu1 %vm2302_vm2, %v2300_v1 }
  0x5a   : > { %2013 = vmatmul.mubr.msk.bf16.gmra.mrb[28].mxu0 %vm299_vm3, %v2254_v24  ;;  %2075 = vmatmul.mubr.msk.bf16.gmra.mrb[28].mxu1 %vm299_vm3, %v2255_v25 }
  0x5b   : > { %2016 = vmatprep.mubr.msk.bf16.mxu0 %vm2302_vm2, %v2300_v1  ;;  %2078 = vmatprep.mubr.msk.bf16.mxu1 %vm2302_vm2, %v2300_v1 }
  0x62   : > { %2017 = vmatmul.mubr.msk.bf16.gmra.mrb[32].mxu0 %vm299_vm3, %v2256_v26  ;;  %2079 = vmatmul.mubr.msk.bf16.gmra.mrb[32].mxu1 %vm299_vm3, %v2257_v27 }
  0x63   : > { %2020 = vmatprep.mubr.msk.bf16.mxu0 %vm2302_vm2, %v2300_v1  ;;  %2082 = vmatprep.mubr.msk.bf16.mxu1 %vm2302_vm2, %v2300_v1 }
  0x6a   : > { %2021 = vmatmul.mubr.msk.bf16.gmra.mrb[36].mxu0 %vm299_vm3, %v2258_v28  ;;  %2083 = vmatmul.mubr.msk.bf16.gmra.mrb[36].mxu1 %vm299_vm3, %v2259_v29 }
  0x6b   : > { %2024 = vmatprep.mubr.msk.bf16.mxu0 %vm2302_vm2, %v2300_v1  ;;  %2086 = vmatprep.mubr.msk.bf16.mxu1 %vm2302_vm2, %v2300_v1 }
  0x72   : > { %2025 = vmatmul.mubr.msk.bf16.gmra.mrb[40].mxu0 %vm299_vm3, %v2260_v30  ;;  %2087 = vmatmul.mubr.msk.bf16.gmra.mrb[40].mxu1 %vm299_vm3, %v2261_v31 }
  0x73   : > { %2028 = vmatprep.mubr.msk.bf16.mxu0 %vm2302_vm2, %v2300_v1  ;;  %2090 = vmatprep.mubr.msk.bf16.mxu1 %vm2302_vm2, %v2300_v1 }
  0x7a   : > { %2029 = vmatmul.mubr.msk.bf16.gmra.mrb[44].mxu0 %vm299_vm3, %v2262_v32  ;;  %2091 = vmatmul.mubr.msk.bf16.gmra.mrb[44].mxu1 %vm299_vm3, %v2263_v33 }
  0x7b   : > { %2032 = vmatprep.mubr.msk.bf16.mxu0 %vm2302_vm2, %v2300_v1  ;;  %2094 = vmatprep.mubr.msk.bf16.mxu1 %vm2302_vm2, %v2300_v1 }
  0x82   : > { %2033 = vmatmul.mubr.msk.bf16.gmra.mrb[48].mxu0 %vm299_vm3, %v2264_v34  ;;  %2095 = vmatmul.mubr.msk.bf16.gmra.mrb[48].mxu1 %vm299_vm3, %v2265_v35 }
  0x83   : > { %2108 = vmatprep.mubr.msk.bf16.mxu0 %vm2302_vm2, %v2300_v1  ;;  %2170 = vmatprep.mubr.msk.bf16.mxu1 %vm2302_vm2, %v2300_v1 }
  0x8a   : > { %2109 = vmatmul.mubr.msk.bf16.vlgmr.msra.gmra.mrb[52].mxu0 %vm299_vm3, %v2266_v36  ;;  %2171 = vmatmul.mubr.msk.bf16.vlgmr.msra.gmra.mrb[52].mxu1 %vm299_vm3, %v2267_v37 }
  0x8b   : > { %2112 = vmatprep.mubr.msk.bf16.mxu0 %vm2302_vm2, %v2300_v1  ;;  %2174 = vmatprep.mubr.msk.bf16.mxu1 %vm2302_vm2, %v2300_v1 }
  0x92   : > { %2113 = vmatmul.mubr.msk.bf16.gmra.mrb[56].mxu0 %vm299_vm3, %v2268_v38  ;;  %2175 = vmatmul.mubr.msk.bf16.gmra.mrb[56].mxu1 %vm299_vm3, %v2269_v39 }
  0x93   : > { %2116 = vmatprep.mubr.msk.bf16.mxu0 %vm2302_vm2, %v2300_v1  ;;  %2178 = vmatprep.mubr.msk.bf16.mxu1 %vm2302_vm2, %v2300_v1 }
  0x9a   : > { %2117 = vmatmul.mubr.msk.bf16.gmra.mrb[60].mxu0 %vm299_vm3, %v2270_v40  ;;  %2179 = vmatmul.mubr.msk.bf16.gmra.mrb[60].mxu1 %vm299_vm3, %v2271_v41 }
  0x9b   : > { %2120 = vmatprep.mubr.msk.bf16.mxu0 %vm2302_vm2, %v2300_v1  ;;  %2182 = vmatprep.mubr.msk.bf16.mxu1 %vm2302_vm2, %v2300_v1 }
  0xa2   : > { %2121 = vmatmul.mubr.msk.bf16.gmra.mrb[64].mxu0 %vm299_vm3, %v2272_v42  ;;  %2183 = vmatmul.mubr.msk.bf16.gmra.mrb[64].mxu1 %vm299_vm3, %v2273_v43 }
  0xa3   : > { %2124 = vmatprep.mubr.msk.bf16.mxu0 %vm2302_vm2, %v2300_v1  ;;  %2186 = vmatprep.mubr.msk.bf16.mxu1 %vm2302_vm2, %v2300_v1 }
  0xaa   : > { %2125 = vmatmul.mubr.msk.bf16.gmra.mrb[68].mxu0 %vm299_vm3, %v2274_v44  ;;  %2187 = vmatmul.mubr.msk.bf16.gmra.mrb[68].mxu1 %vm299_vm3, %v2275_v45 }
  0xab   : > { %2128 = vmatprep.mubr.msk.bf16.mxu0 %vm2302_vm2, %v2300_v1  ;;  %2190 = vmatprep.mubr.msk.bf16.mxu1 %vm2302_vm2, %v2300_v1 }
  0xb2   : > { %2129 = vmatmul.mubr.msk.bf16.gmra.mrb[72].mxu0 %vm299_vm3, %v2276_v46  ;;  %2191 = vmatmul.mubr.msk.bf16.gmra.mrb[72].mxu1 %vm299_vm3, %v2277_v47 }
  0xb3   : > { %2132 = vmatprep.mubr.msk.bf16.mxu0 %vm2302_vm2, %v2300_v1  ;;  %2194 = vmatprep.mubr.msk.bf16.mxu1 %vm2302_vm2, %v2300_v1 }
  0xba   : > { %2133 = vmatmul.mubr.msk.bf16.gmra.mrb[76].mxu0 %vm299_vm3, %v2278_v48  ;;  %2195 = vmatmul.mubr.msk.bf16.gmra.mrb[76].mxu1 %vm299_vm3, %v2279_v49 }
  0xbb   : > { %2136 = vmatprep.mubr.msk.bf16.mxu0 %vm2302_vm2, %v2300_v1  ;;  %2198 = vmatprep.mubr.msk.bf16.mxu1 %vm2302_vm2, %v2300_v1 }
  0xc2   : > { %2137 = vmatmul.mubr.msk.bf16.gmra.mrb[80].mxu0 %vm299_vm3, %v2280_v50  ;;  %2199 = vmatmul.mubr.msk.bf16.gmra.mrb[80].mxu1 %vm299_vm3, %v2281_v51 }
  0xc3   : > { %2140 = vmatprep.mubr.msk.bf16.mxu0 %vm2302_vm2, %v2300_v1  ;;  %2202 = vmatprep.mubr.msk.bf16.mxu1 %vm2302_vm2, %v2300_v1 }
  0xca   : > { %2141 = vmatmul.mubr.msk.bf16.gmra.mrb[84].mxu0 %vm299_vm3, %v2282_v52  ;;  %2203 = vmatmul.mubr.msk.bf16.gmra.mrb[84].mxu1 %vm299_vm3, %v2283_v53 }
  0xcb   : > { %2144 = vmatprep.mubr.msk.bf16.mxu0 %vm2302_vm2, %v2300_v1  ;;  %2206 = vmatprep.mubr.msk.bf16.mxu1 %vm2302_vm2, %v2300_v1 }
  0xd2   : > { %2145 = vmatmul.mubr.msk.bf16.gmra.mrb[88].mxu0 %vm299_vm3, %v2284_v54  ;;  %2207 = vmatmul.mubr.msk.bf16.gmra.mrb[88].mxu1 %vm299_vm3, %v2285_v55 }
  0xd3   : > { %2148 = vmatprep.mubr.msk.bf16.mxu0 %vm2302_vm2, %v2300_v1  ;;  %2210 = vmatprep.mubr.msk.bf16.mxu1 %vm2302_vm2, %v2300_v1 }
  0xda   : > { %2149 = vmatmul.mubr.msk.bf16.gmra.mrb[92].mxu0 %vm299_vm3, %v2286_v56  ;;  %2211 = vmatmul.mubr.msk.bf16.gmra.mrb[92].mxu1 %vm299_vm3, %v2287_v57 }
  0xdb   : > { %2152 = vmatprep.mubr.msk.bf16.mxu0 %vm2302_vm2, %v2300_v1  ;;  %2214 = vmatprep.mubr.msk.bf16.mxu1 %vm2302_vm2, %v2300_v1 }
  0xe2   : > { %2153 = vmatmul.mubr.msk.bf16.gmra.mrb[96].mxu0 %vm299_vm3, %v2288_v58  ;;  %2215 = vmatmul.mubr.msk.bf16.gmra.mrb[96].mxu1 %vm299_vm3, %v2289_v59 }
  0xe3   : > { %2156 = vmatprep.mubr.msk.bf16.mxu0 %vm2302_vm2, %v2300_v1  ;;  %2218 = vmatprep.mubr.msk.bf16.mxu1 %vm2302_vm2, %v2300_v1  ;;  %v2738_v1 = vld [vmem:[%s2861_s2] ss:$0 sm:$0xff] }
  0xea   : > { %2157 = vmatmul.mubr.msk.bf16.gmra.mrb[100].mxu0 %vm299_vm3, %v2290_v60  ;;  %2219 = vmatmul.mubr.msk.bf16.gmra.mrb[100].mxu1 %vm299_vm3, %v2291_v61 }
  0xf5   : > { %v2582_v62 = vpop.f32.mrb[0].mxu0  ;;  %v2584_v63 = vpop.f32.mrb[0].mxu1 }
  0xf6   : > { %v746_v0 = vmax.f32 %v2582_v62, %v2584_v63  ;;  %v1986_v2 = vpop.f32.mrb[1].mxu0  ;;  %v2048_v3 = vpop.f32.mrb[1].mxu1 }
  0xf7   : > { %v2588_v4 = vpop.f32.mrb[2].mxu0  ;;  %v2590_v5 = vpop.f32.mrb[2].mxu1 }
  0xf8   : > { %v1987_v6 = vpop.f32.mrb[3].mxu0  ;;  %v2049_v7 = vpop.f32.mrb[3].mxu1 }
  0xfd   : > { %v2594_v8 = vpop.f32.mrb[4].mxu0  ;;  %v2596_v9 = vpop.f32.mrb[4].mxu1 }
  0xfe   : > { %v1990_v11 = vpop.f32.mrb[5].mxu0  ;;  %v2052_v12 = vpop.f32.mrb[5].mxu1 }
  0xff   : > { %v2600_v13 = vpop.f32.mrb[6].mxu0  ;;  %v2602_v14 = vpop.f32.mrb[6].mxu1 }
 0x100   : > { %v1991_v16 = vpop.f32.mrb[7].mxu0  ;;  %v2053_v17 = vpop.f32.mrb[7].mxu1 }
 0x105   : > { %v2606_v18 = vpop.f32.mrb[8].mxu0  ;;  %v2608_v19 = vpop.f32.mrb[8].mxu1 }
 0x106   : > { %v1994_v21 = vpop.f32.mrb[9].mxu0  ;;  %v2056_v22 = vpop.f32.mrb[9].mxu1 }
 0x107   : > { %v2612_v23 = vpop.f32.mrb[10].mxu0  ;;  %v2614_v24 = vpop.f32.mrb[10].mxu1 }
 0x108   : > { %v1995_v26 = vpop.f32.mrb[11].mxu0  ;;  %v2057_v27 = vpop.f32.mrb[11].mxu1 }
 0x10d   : > { %v2618_v28 = vpop.f32.mrb[12].mxu0  ;;  %v2620_v29 = vpop.f32.mrb[12].mxu1 }
 0x10e   : > { %v1998_v31 = vpop.f32.mrb[13].mxu0  ;;  %v2060_v32 = vpop.f32.mrb[13].mxu1 }
 0x10f   : > { %v2624_v33 = vpop.f32.mrb[14].mxu0  ;;  %v2626_v34 = vpop.f32.mrb[14].mxu1 }
 0x110   : > { %v1999_v36 = vpop.f32.mrb[15].mxu0  ;;  %v2061_v37 = vpop.f32.mrb[15].mxu1 }
 0x115   : > { %v2630_v38 = vpop.f32.mrb[16].mxu0  ;;  %v2632_v39 = vpop.f32.mrb[16].mxu1 }
 0x116   : > { %v2002_v41 = vpop.f32.mrb[17].mxu0  ;;  %v2064_v42 = vpop.f32.mrb[17].mxu1 }
 0x117   : > { %v2636_v43 = vpop.f32.mrb[18].mxu0  ;;  %v2638_v44 = vpop.f32.mrb[18].mxu1 }
 0x118   : > { %v2003_v46 = vpop.f32.mrb[19].mxu0  ;;  %v2065_v47 = vpop.f32.mrb[19].mxu1 }
 0x11d   : > { %v2642_v48 = vpop.f32.mrb[20].mxu0  ;;  %v2644_v49 = vpop.f32.mrb[20].mxu1 }
 0x11e   : > { %v2006_v51 = vpop.f32.mrb[21].mxu0  ;;  %v2068_v52 = vpop.f32.mrb[21].mxu1 }
 0x11f   : > { %v2648_v53 = vpop.f32.mrb[22].mxu0  ;;  %v2650_v54 = vpop.f32.mrb[22].mxu1 }
 0x120   : > { %v2007_v56 = vpop.f32.mrb[23].mxu0  ;;  %v2069_v57 = vpop.f32.mrb[23].mxu1 }
 0x125   : > { %v2654_v58 = vpop.f32.mrb[24].mxu0  ;;  %v2656_v59 = vpop.f32.mrb[24].mxu1 }
 0x126   : > { %v2010_v61 = vpop.f32.mrb[25].mxu0  ;;  %v2072_v2 = vpop.f32.mrb[25].mxu1 }
 0x127   : > { %v2660_v3 = vpop.f32.mrb[26].mxu0  ;;  %v2662_v6 = vpop.f32.mrb[26].mxu1 }
 0x128   : > { %v2011_v11 = vpop.f32.mrb[27].mxu0  ;;  %v2073_v12 = vpop.f32.mrb[27].mxu1 }
 0x12d   : > { %v2666_v16 = vpop.f32.mrb[28].mxu0  ;;  %v2668_v17 = vpop.f32.mrb[28].mxu1 }
 0x12e   : > { %v2014_v22 = vpop.f32.mrb[29].mxu0  ;;  %v2076_v26 = vpop.f32.mrb[29].mxu1 }
 0x12f   : > { %v2672_v27 = vpop.f32.mrb[30].mxu0  ;;  %v2674_v31 = vpop.f32.mrb[30].mxu1 }
 0x130   : > { %v2015_v36 = vpop.f32.mrb[31].mxu0  ;;  %v2077_v37 = vpop.f32.mrb[31].mxu1 }
 0x135   : > { %v2678_v41 = vpop.f32.mrb[32].mxu0  ;;  %v2680_v42 = vpop.f32.mrb[32].mxu1 }
 0x136   : > { %v2018_v47 = vpop.f32.mrb[33].mxu0  ;;  %v2080_v51 = vpop.f32.mrb[33].mxu1 }
 0x137   : > { %v2684_v52 = vpop.f32.mrb[34].mxu0  ;;  %v2686_v56 = vpop.f32.mrb[34].mxu1 }
 0x138   : > { %v2019_v61 = vpop.f32.mrb[35].mxu0  ;;  %v2081_v2 = vpop.f32.mrb[35].mxu1 }
 0x13d   : > { %v2690_v11 = vpop.f32.mrb[36].mxu0  ;;  %v2692_v12 = vpop.f32.mrb[36].mxu1 }
 0x13e   : > { %v2022_v26 = vpop.f32.mrb[37].mxu0  ;;  %v2084_v36 = vpop.f32.mrb[37].mxu1 }
 0x13f   : > { %v2696_v37 = vpop.f32.mrb[38].mxu0  ;;  %v2698_v47 = vpop.f32.mrb[38].mxu1 }
 0x140   : > { %v2023_v46 = vpop.f32.mrb[39].mxu0  ;;  %v2085_v57 = vpop.f32.mrb[39].mxu1 }
 0x145   : > { %v2702_v61 = vpop.f32.mrb[40].mxu0  ;;  %v2704_v2 = vpop.f32.mrb[40].mxu1 }
 0x146   : > { %v2026_v21 = vpop.f32.mrb[41].mxu0  ;;  %v2088_v22 = vpop.f32.mrb[41].mxu1 }
 0x147   : > { %v2708_v26 = vpop.f32.mrb[42].mxu0  ;;  %v2710_v36 = vpop.f32.mrb[42].mxu1 }
 0x148   : > { %v2027_v60 = vpop.f32.mrb[43].mxu0  ;;  %v2089_v51 = vpop.f32.mrb[43].mxu1 }
 0x14d   : > { %v2714_v46 = vpop.f32.mrb[44].mxu0  ;;  %v2716_v57 = vpop.f32.mrb[44].mxu1 }
 0x14e   : > { %v2030_v50 = vpop.f32.mrb[45].mxu0  ;;  %v2092_v32 = vpop.f32.mrb[45].mxu1 }
 0x14f   : > { %v2720_v21 = vpop.f32.mrb[46].mxu0  ;;  %v2722_v22 = vpop.f32.mrb[46].mxu1 }
 0x150   : > { %2866 = vst [vmem:[#allocation2_spill] sm:$0xff] %v2722_v22  ;;  %v2031_v40 = vpop.f32.mrb[47].mxu0  ;;  %v2093_v7 = vpop.f32.mrb[47].mxu1 }
 0x155   : > { %v2726_v60 = vpop.f32.mrb[48].mxu0  ;;  %v2728_v51 = vpop.f32.mrb[48].mxu1 }
 0x156   : > { %2867 = vst [vmem:[#allocation3_spill] sm:$0xff] %v2726_v60  ;;  %2868 = vst [vmem:[#allocation4_spill] sm:$0xff] %v2728_v51  ;;  %v2034_v30 = vpop.f32.mrb[49].mxu0  ;;  %v2096_v55 = vpop.f32.mrb[49].mxu1  ;;  %v2870_v60 = vmax.f32 %v2594_v8, %v2596_v9 }
 0x157   : > { %v479_v50 = vpop.f32.mrb[50].mxu0  ;;  %v743_v32 = vpop.f32.mrb[50].mxu1 }
 0x158   : > { %v2035_v25 = vpop.f32.mrb[51].mxu0  ;;  %v2097_v20 = vpop.f32.mrb[51].mxu1 }
 0x159   : > { %v2869_v25 = vmax.f32 %v2588_v4, %v2590_v5 }
 0x15d   : > { %v933_v15 = vpop.f32.mrb[52].mxu0  ;;  %v1222_v10 = vpop.f32.mrb[52].mxu1 }
 0x15e   : > { %v1035_v40 = vmax.f32 %v746_v0, %v933_v15  ;;  %v2110_v7 = vpop.f32.mrb[53].mxu0  ;;  %v2172_v45 = vpop.f32.mrb[53].mxu1 }
 0x15f   : > { %v936_v30 = vpop.f32.mrb[54].mxu0  ;;  %v1225_v55 = vpop.f32.mrb[54].mxu1 }
 0x160   : > { %v1324_v50 = vmax.f32 %v1035_v40, %v1222_v10  ;;  %v1036_v20 = vmax.f32 %v2869_v25, %v936_v30  ;;  %v2111_v32 = vpop.f32.mrb[55].mxu0  ;;  %v2173_v35 = vpop.f32.mrb[55].mxu1 }
 0x162   : > { %v1356_v51 = vadd.f32 %v2738_v1, %v1324_v50  ;;  %v1325_v62 = vmax.f32 %v1036_v20, %v1225_v55 }
 0x164   : > { %v1357_v63 = vadd.f32 %v2738_v1, %v1325_v62  ;;  %v1381_v45 = vmax.f32 %v1356_v51, 0.0  ;;  %v2871_v51 = vmax.f32 %v2600_v13, %v2602_v14 }
 0x165   : > { %v941_v0 = vpop.f32.mrb[56].mxu0  ;;  %v1230_v15 = vpop.f32.mrb[56].mxu1 }
 0x166   : > { %v1382_v7 = vmax.f32 %v1357_v63, 0.0  ;;  %v1037_v10 = vmax.f32 %v2870_v60, %v941_v0  ;;  %v2114_v40 = vpop.f32.mrb[57].mxu0  ;;  %v2176_v22 = vpop.f32.mrb[57].mxu1  ;;  %v2872_v63 = vmax.f32 %v2606_v18, %v2608_v19 }
 0x167   : > { %v944_v4 = vpop.f32.mrb[58].mxu0  ;;  %v1233_v5 = vpop.f32.mrb[58].mxu1  ;;  %v2873_v40 = vmax.f32 %v2612_v23, %v2614_v24 }
 0x168   : > { %v1834_v35 = vpack.c.bf16 %v1382_v7, %v1381_v45  ;;  %v1326_v30 = vmax.f32 %v1037_v10, %v1230_v15  ;;  %v1038_v55 = vmax.f32 %v2871_v51, %v944_v4  ;;  %v2115_v50 = vpop.f32.mrb[59].mxu0  ;;  %v2177_v25 = vpop.f32.mrb[59].mxu1 }
 0x16a   : > { %1835 = vst [vmem:[%s2752_s6] sm:$0xff] %v1834_v35   ;;  %v1358_v8 = vadd.f32 %v2738_v1, %v1326_v30  ;;  %v1327_v9 = vmax.f32 %v1038_v55, %v1233_v5 }
 0x16c   : > { %v1359_v22 = vadd.f32 %v2738_v1, %v1327_v9  ;;  %v1383_v32 = vmax.f32 %v1358_v8, 0.0  ;;  %v2874_v8 = vmax.f32 %v2618_v28, %v2620_v29 }
 0x16d   : > { %v949_v60 = vpop.f32.mrb[60].mxu0  ;;  %v1238_v20 = vpop.f32.mrb[60].mxu1 }
 0x16e   : > { %v1384_v62 = vmax.f32 %v1359_v22, 0.0  ;;  %v1039_v0 = vmax.f32 %v2872_v63, %v949_v60  ;;  %v2118_v15 = vpop.f32.mrb[61].mxu0  ;;  %v2180_v13 = vpop.f32.mrb[61].mxu1 }
 0x16f   : > { %v952_v14 = vpop.f32.mrb[62].mxu0  ;;  %v1241_v45 = vpop.f32.mrb[62].mxu1 }
 0x170   : > { %v1839_v7 = vpack.c.bf16 %v1384_v62, %v1383_v32  ;;  %v1328_v10 = vmax.f32 %v1039_v0, %v1238_v20  ;;  %v1040_v4 = vmax.f32 %v2873_v40, %v952_v14  ;;  %v2119_v5 = vpop.f32.mrb[63].mxu0  ;;  %v2181_v35 = vpop.f32.mrb[63].mxu1  ;;  %v2875_v62 = vmax.f32 %v2624_v33, %v2626_v34 }
 0x171   : > { %v2876_v40 = vmax.f32 %v2630_v38, %v2632_v39 }
 0x172   : > { %1891 = vst [vmem:[%s2752_s6 + $0x8] sm:$0xff] %v1839_v7   ;;  %v1360_v30 = vadd.f32 %v2738_v1, %v1328_v10  ;;  %v1329_v51 = vmax.f32 %v1040_v4, %v1241_v45 }
 0x174   : > { %v1361_v18 = vadd.f32 %v2738_v1, %v1329_v51  ;;  %v1385_v50 = vmax.f32 %v1360_v30, 0.0 }
 0x175   : > { %v957_v19 = vpop.f32.mrb[64].mxu0  ;;  %v1246_v55 = vpop.f32.mrb[64].mxu1 }
 0x176   : > { %v1386_v25 = vmax.f32 %v1361_v18, 0.0  ;;  %v1041_v9 = vmax.f32 %v2874_v8, %v957_v19  ;;  %v2122_v22 = vpop.f32.mrb[65].mxu0  ;;  %v2184_v23 = vpop.f32.mrb[65].mxu1  ;;  %v2877_v18 = vmax.f32 %v2636_v43, %v2638_v44 }
 0x177   : > { %v960_v24 = vpop.f32.mrb[66].mxu0  ;;  %v1249_v60 = vpop.f32.mrb[66].mxu1 }
 0x178   : > { %v1844_v20 = vpack.c.bf16 %v1386_v25, %v1385_v50  ;;  %v1330_v32 = vmax.f32 %v1041_v9, %v1246_v55  ;;  %v1042_v63 = vmax.f32 %v2875_v62, %v960_v24  ;;  %v2123_v0 = vpop.f32.mrb[67].mxu0  ;;  %v2185_v15 = vpop.f32.mrb[67].mxu1  ;;  %v2878_v24 = vmax.f32 %v2642_v48, %v2644_v49 }
 0x179   : > { %v2879_v0 = vmax.f32 %v2648_v53, %v2650_v54 }
 0x17a   : > { %1892 = vst [vmem:[%s2752_s6 + $0x10] sm:$0xff] %v1844_v20   ;;  %v1362_v13 = vadd.f32 %v2738_v1, %v1330_v32  ;;  %v1331_v14 = vmax.f32 %v1042_v63, %v1249_v60 }
 0x17c   : > { %v1363_v28 = vadd.f32 %v2738_v1, %v1331_v14  ;;  %v1387_v7 = vmax.f32 %v1362_v13, 0.0 }
 0x17d   : > { %v965_v29 = vpop.f32.mrb[68].mxu0  ;;  %v1254_v45 = vpop.f32.mrb[68].mxu1 }
 0x17e   : > { %v1388_v10 = vmax.f32 %v1363_v28, 0.0  ;;  %v1043_v4 = vmax.f32 %v2876_v40, %v965_v29  ;;  %v2126_v5 = vpop.f32.mrb[69].mxu0  ;;  %v2188_v33 = vpop.f32.mrb[69].mxu1  ;;  %v2880_v40 = vmax.f32 %v2654_v58, %v2656_v59 }
 0x17f   : > { %v968_v34 = vpop.f32.mrb[70].mxu0  ;;  %v1257_v35 = vpop.f32.mrb[70].mxu1 }
 0x180   : > { %v1849_v30 = vpack.c.bf16 %v1388_v10, %v1387_v7  ;;  %v1332_v51 = vmax.f32 %v1043_v4, %v1254_v45  ;;  %v1044_v19 = vmax.f32 %v2877_v18, %v968_v34  ;;  %v2127_v55 = vpop.f32.mrb[71].mxu0  ;;  %v2189_v50 = vpop.f32.mrb[71].mxu1 }
 0x182   : > { %1893 = vst [vmem:[%s2752_s6 + $0x18] sm:$0xff] %v1849_v30   ;;  %v1364_v25 = vadd.f32 %v2738_v1, %v1332_v51  ;;  %v1333_v8 = vmax.f32 %v1044_v19, %v1257_v35  ;;  %v2881_v30 = vmax.f32 %v2660_v3, %v2662_v6 }
 0x184   : > { %v1365_v38 = vadd.f32 %v2738_v1, %v1333_v8  ;;  %v1389_v22 = vmax.f32 %v1364_v25, 0.0 }
 0x185   : > { %v973_v39 = vpop.f32.mrb[72].mxu0  ;;  %v1262_v9 = vpop.f32.mrb[72].mxu1 }
 0x186   : > { %v1390_v23 = vmax.f32 %v1365_v38, 0.0  ;;  %v1045_v60 = vmax.f32 %v2878_v24, %v973_v39  ;;  %v2130_v20 = vpop.f32.mrb[73].mxu0  ;;  %v2192_v43 = vpop.f32.mrb[73].mxu1  ;;  %v2882_v39 = vmax.f32 %v2666_v16, %v2668_v17 }
 0x187   : > { %v976_v44 = vpop.f32.mrb[74].mxu0  ;;  %v1265_v32 = vpop.f32.mrb[74].mxu1  ;;  %v2883_v20 = vmax.f32 %v2672_v27, %v2674_v31 }
 0x188   : > { %v1854_v62 = vpack.c.bf16 %v1390_v23, %v1389_v22  ;;  %v1334_v63 = vmax.f32 %v1045_v60, %v1262_v9  ;;  %v1046_v15 = vmax.f32 %v2879_v0, %v976_v44  ;;  %v2131_v13 = vpop.f32.mrb[75].mxu0  ;;  %v2193_v14 = vpop.f32.mrb[75].mxu1 }
 0x189   : > { %v2884_v14 = vmax.f32 %v2678_v41, %v2680_v42 }
 0x18a   : > { %1894 = vst [vmem:[%s2752_s6 + $0x20] sm:$0xff] %v1854_v62   ;;  %v1366_v28 = vadd.f32 %v2738_v1, %v1334_v63  ;;  %v1335_v29 = vmax.f32 %v1046_v15, %v1265_v32 }
 0x18c   : > { %v1367_v48 = vadd.f32 %v2738_v1, %v1335_v29  ;;  %v1391_v7 = vmax.f32 %v1366_v28, 0.0 }
 0x18d   : > { %v981_v49 = vpop.f32.mrb[76].mxu0  ;;  %v1270_v45 = vpop.f32.mrb[76].mxu1 }
 0x18e   : > { %v1392_v10 = vmax.f32 %v1367_v48, 0.0  ;;  %v1047_v4 = vmax.f32 %v2880_v40, %v981_v49  ;;  %v2134_v5 = vpop.f32.mrb[77].mxu0  ;;  %v2196_v53 = vpop.f32.mrb[77].mxu1 }
 0x18f   : > { %v984_v54 = vpop.f32.mrb[78].mxu0  ;;  %v1273_v33 = vpop.f32.mrb[78].mxu1 }
 0x190   : > { %v1859_v34 = vpack.c.bf16 %v1392_v10, %v1391_v7  ;;  %v1336_v35 = vmax.f32 %v1047_v4, %v1270_v45  ;;  %v1048_v51 = vmax.f32 %v2881_v30, %v984_v54  ;;  %v2135_v18 = vpop.f32.mrb[79].mxu0  ;;  %v2197_v19 = vpop.f32.mrb[79].mxu1  ;;  %v2885_v7 = vmax.f32 %v2684_v52, %v2686_v56 }
 0x192   : > { %1895 = vst [vmem:[%s2752_s6 + $0x28] sm:$0xff] %v1859_v34   ;;  %v1368_v55 = vadd.f32 %v2738_v1, %v1336_v35  ;;  %v1337_v50 = vmax.f32 %v1048_v51, %v1273_v33  ;;  %v2886_v35 = vmax.f32 %v2690_v11, %v2692_v12 }
 0x194   : > { %v1369_v58 = vadd.f32 %v2738_v1, %v1337_v50  ;;  %v1393_v8 = vmax.f32 %v1368_v55, 0.0  ;;  %v2887_v50 = vmax.f32 %v2696_v37, %v2698_v47 }
 0x195   : > { %v989_v59 = vpop.f32.mrb[80].mxu0  ;;  %v1278_v25 = vpop.f32.mrb[80].mxu1 }
 0x196   : > { %v1394_v38 = vmax.f32 %v1369_v58, 0.0  ;;  %v1049_v9 = vmax.f32 %v2882_v39, %v989_v59  ;;  %v2138_v22 = vpop.f32.mrb[81].mxu0  ;;  %v2200_v3 = vpop.f32.mrb[81].mxu1 }
 0x197   : > { %v992_v6 = vpop.f32.mrb[82].mxu0  ;;  %v1281_v23 = vpop.f32.mrb[82].mxu1  ;;  %v2888_v3 = vmax.f32 %v2702_v61, %v2704_v2 }
 0x198   : > { %v1864_v24 = vpack.c.bf16 %v1394_v38, %v1393_v8  ;;  %v1338_v60 = vmax.f32 %v1049_v9, %v1278_v25  ;;  %v1050_v43 = vmax.f32 %v2883_v20, %v992_v6  ;;  %v2139_v44 = vpop.f32.mrb[83].mxu0  ;;  %v2201_v32 = vpop.f32.mrb[83].mxu1 }
 0x19a   : > { %1896 = vst [vmem:[%s2752_s6 + $0x30] sm:$0xff] %v1864_v24   ;;  %v1370_v62 = vadd.f32 %v2738_v1, %v1338_v60  ;;  %v1339_v63 = vmax.f32 %v1050_v43, %v1281_v23  ;;  %v2889_v43 = vmax.f32 %v2708_v26, %v2710_v36 }
 0x19c   : > { %v1371_v16 = vadd.f32 %v2738_v1, %v1339_v63  ;;  %v1395_v15 = vmax.f32 %v1370_v62, 0.0 }
 0x19d   : > { %v997_v17 = vpop.f32.mrb[84].mxu0  ;;  %v1286_v0 = vpop.f32.mrb[84].mxu1 }
 0x19e   : > { %v1396_v13 = vmax.f32 %v1371_v16, 0.0  ;;  %v1051_v28 = vmax.f32 %v2884_v14, %v997_v17  ;;  %v2142_v29 = vpop.f32.mrb[85].mxu0  ;;  %v2204_v27 = vpop.f32.mrb[85].mxu1 }
 0x19f   : > { %v1000_v31 = vpop.f32.mrb[86].mxu0  ;;  %v1289_v48 = vpop.f32.mrb[86].mxu1 }
 0x1a0   : > { %v1869_v49 = vpack.c.bf16 %v1396_v13, %v1395_v15  ;;  %v1340_v45 = vmax.f32 %v1051_v28, %v1286_v0  ;;  %v1052_v10 = vmax.f32 %v2885_v7, %v1000_v31  ;;  %v2143_v40 = vpop.f32.mrb[87].mxu0  ;;  %v2205_v4 = vpop.f32.mrb[87].mxu1  ;;  %v2890_v13 = vmax.f32 %v2714_v46, %v2716_v57 }
 0x1a2   : > { %1897 = vst [vmem:[%s2752_s6 + $0x38] sm:$0xff] %v1869_v49   ;;  %v1372_v5 = vadd.f32 %v2738_v1, %v1340_v45  ;;  %v1341_v53 = vmax.f32 %v1052_v10, %v1289_v48  ;;  %v2891_v48 = vld [vmem:[#allocation2_spill] sm:$0xff] }
 0x1a3   : > { %v2892_v49 = vmax.f32 %v2720_v21, %v2891_v48 }
 0x1a4   : > { %v1373_v41 = vadd.f32 %v2738_v1, %v1341_v53  ;;  %v1397_v33 = vmax.f32 %v1372_v5, 0.0 }
 0x1a5   : > { %v1005_v42 = vpop.f32.mrb[88].mxu0  ;;  %v1294_v54 = vpop.f32.mrb[88].mxu1 }
 0x1a6   : > { %v1398_v34 = vmax.f32 %v1373_v41, 0.0  ;;  %v1053_v30 = vmax.f32 %v2886_v35, %v1005_v42  ;;  %v2146_v51 = vpop.f32.mrb[89].mxu0  ;;  %v2208_v52 = vpop.f32.mrb[89].mxu1  ;;  %v2893_v42 = vld [vmem:[#allocation3_spill] sm:$0xff] }
 0x1a7   : > { %v1008_v56 = vpop.f32.mrb[90].mxu0  ;;  %v1297_v18 = vpop.f32.mrb[90].mxu1 }
 0x1a8   : > { %v1874_v19 = vpack.c.bf16 %v1398_v34, %v1397_v33  ;;  %v1342_v55 = vmax.f32 %v1053_v30, %v1294_v54  ;;  %v1054_v58 = vmax.f32 %v2887_v50, %v1008_v56  ;;  %v2147_v59 = vpop.f32.mrb[91].mxu0  ;;  %v2209_v25 = vpop.f32.mrb[91].mxu1  ;;  %v2894_v54 = vld [vmem:[#allocation4_spill] sm:$0xff] }
 0x1a9   : > { %v2895_v33 = vmax.f32 %v2893_v42, %v2894_v54 }
 0x1aa   : > { %1898 = vst [vmem:[%s2752_s6 + $0x40] sm:$0xff] %v1874_v19   ;;  %v1374_v8 = vadd.f32 %v2738_v1, %v1342_v55  ;;  %v1343_v38 = vmax.f32 %v1054_v58, %v1297_v18 }
 0x1ac   : > { %v1375_v11 = vadd.f32 %v2738_v1, %v1343_v38  ;;  %v1399_v9 = vmax.f32 %v1374_v8, 0.0 }
 0x1ad   : > { %v1013_v12 = vpop.f32.mrb[92].mxu0  ;;  %v1302_v39 = vpop.f32.mrb[92].mxu1 }
 0x1ae   : > { %v1400_v22 = vmax.f32 %v1375_v11, 0.0  ;;  %v1055_v6 = vmax.f32 %v2888_v3, %v1013_v12  ;;  %v2150_v23 = vpop.f32.mrb[93].mxu0  ;;  %v2212_v37 = vpop.f32.mrb[93].mxu1 }
 0x1af   : > { %v1016_v47 = vpop.f32.mrb[94].mxu0  ;;  %v1305_v24 = vpop.f32.mrb[94].mxu1 }
 0x1b0   : > { %v1879_v60 = vpack.c.bf16 %v1400_v22, %v1399_v9  ;;  %v1344_v20 = vmax.f32 %v1055_v6, %v1302_v39  ;;  %v1056_v44 = vmax.f32 %v2889_v43, %v1016_v47  ;;  %v2151_v32 = vpop.f32.mrb[95].mxu0  ;;  %v2213_v62 = vpop.f32.mrb[95].mxu1 }
 0x1b2   : > { %1899 = vst [vmem:[%s2752_s6 + $0x48] sm:$0xff] %v1879_v60   ;;  %v1376_v63 = vadd.f32 %v2738_v1, %v1344_v20  ;;  %v1345_v16 = vmax.f32 %v1056_v44, %v1305_v24 }
 0x1b4   : > { %v1377_v61 = vadd.f32 %v2738_v1, %v1345_v16  ;;  %v1401_v0 = vmax.f32 %v1376_v63, 0.0 }
 0x1b5   : > { %v1021_v2 = vpop.f32.mrb[96].mxu0  ;;  %v1310_v17 = vpop.f32.mrb[96].mxu1 }
 0x1b6   : > { %v1402_v15 = vmax.f32 %v1377_v61, 0.0  ;;  %v1057_v14 = vmax.f32 %v2890_v13, %v1021_v2  ;;  %v2154_v28 = vpop.f32.mrb[97].mxu0  ;;  %v2216_v26 = vpop.f32.mrb[97].mxu1 }
 0x1b7   : > { %v1024_v36 = vpop.f32.mrb[98].mxu0  ;;  %v1313_v29 = vpop.f32.mrb[98].mxu1 }
 0x1b8   : > { %v1884_v27 = vpack.c.bf16 %v1402_v15, %v1401_v0  ;;  %v1346_v31 = vmax.f32 %v1057_v14, %v1310_v17  ;;  %v1058_v45 = vmax.f32 %v2892_v49, %v1024_v36  ;;  %v2155_v7 = vpop.f32.mrb[99].mxu0  ;;  %v2217_v10 = vpop.f32.mrb[99].mxu1 }
 0x1ba   : > { %1900 = vst [vmem:[%s2752_s6 + $0x50] sm:$0xff] %v1884_v27   ;;  %v1378_v40 = vadd.f32 %v2738_v1, %v1346_v31  ;;  %v1347_v4 = vmax.f32 %v1058_v45, %v1313_v29 }
 0x1bc   : > { %v1379_v46 = vadd.f32 %v2738_v1, %v1347_v4  ;;  %v1403_v53 = vmax.f32 %v1378_v40, 0.0 }
 0x1bd   : > { %v1029_v57 = vpop.f32.mrb[100].mxu0  ;;  %v1318_v5 = vpop.f32.mrb[100].mxu1 }
 0x1be   : > { %v1404_v41 = vmax.f32 %v1379_v46, 0.0  ;;  %v1059_v34 = vmax.f32 %v2895_v33, %v1029_v57  ;;  %v2158_v21 = vpop.f32.mrb[101].mxu0  ;;  %v2220_v35 = vpop.f32.mrb[101].mxu1 }
 0x1bf   : > { %v1032_v30 = vpop.f32.mrb[102].mxu0  ;;  %v1321_v51 = vpop.f32.mrb[102].mxu1 }
 0x1c0   : > { %v1889_v52 = vpack.c.bf16 %v1404_v41, %v1403_v53  ;;  %v1348_v56 = vmax.f32 %v1059_v34, %v1318_v5  ;;  %v2159_v18 = vpop.f32.mrb[103].mxu0  ;;  %v2221_v19 = vpop.f32.mrb[103].mxu1 }
 0x1c2   : > { %1901 = vst [vmem:[%s2752_s6 + $0x58] sm:$0xff] %v1889_v52   ;;  %v1380_v55 = vadd.f32 %v2738_v1, %v1348_v56 }
 0x1c4   : > { %v1405_v50 = vmax.f32 %v1380_v55, 0.0 }
 0x1c6   : > { %v1830_v58 = vpack.c.bf16 %v1405_v50, %v1405_v50 }
 0x1c8   : > { %1531 = vst [vmem:[%s2752_s6 + $0x60] sm:$0x3] %v1830_v58 }
 0x1c9 PF: > { %s13_s12 = sadd.s32 1, %s2298_s12  }
 0x1ca   : > { %p10_p4 = scmp.ge.s32.totalorder %s13_s12, 4  }
 0x1cc   :  { %12 = sbr.rel (!%p10_p4) target bundleno = 1 (0x1), region = 65 }

// kernel: lenet5_cifar_forward.4
= control target key start
LH: loop header
LB: loop body
LE: loop exit
PB: predicated region body
PF: predicated region fallthrough
CT: control target
= control target key end

     0   :  { %s8639_s12 = smov 0   ;;  %s11716_s0 = inlined_call_operand.vmem [shape: bf16[2,4,25,3200], index: 0, kind: input, shape index: {}]   ;;  %s11717_s1 = inlined_call_operand.vmem [shape: bf16[3200,128], index: 1, kind: input, shape index: {}]   ;;  %s11718_s2 = inlined_call_operand.vmem [shape: f32[1,128], index: 2, kind: input, shape index: {}]   ;;  %s11719_s3 = inlined_call_operand.vmem [shape: bf16[2,25,128], index: 3, kind: output, shape index: {}]  }
   0x1 LB: > { %s5646_s13 = sadd.s32 4294967295, %s8617_s12   ;;  %p5650_p0 = scmp.ge.s32.totalorder %s8617_s12, 1  ;;  %s8617_s12 = sphi %s8639_s12, %s13_s12  }
   0x2   : > { %p137_p1 = scmp.lt.s32.totalorder %s8617_s12, 3 }
   0x4   : > { %p138_p2 = pnand %p5650_p0, %p137_p1 }
   0x6   : > { %141 = sbr.rel (%p138_p2) target bundleno = 1106 (0x452), region = 32 }
   0xd   : > { %v7700_v0 = vld [vmem:[%s11717_s1 + $0x40] sm:$0xff]   ;;  %v7704_v4 = vld [vmem:[%s11717_s1 + $0x48] sm:$0xff]   ;;  %v7708_v8 = vld [vmem:[%s11717_s1 + $0x50] sm:$0xff]   ;;  %p161_p3 = scmp.lt.s32.totalorder %s5646_s13, 1  ;;  %vm5585_vm0 = vcmask 1040384  }
   0xe   : > { %v7701_v1 = vld [vmem:[%s11717_s1 + $0xc0] sm:$0xff]   ;;  %6227 = vmatprep.subr.bf16.mxu0 %v7700_v0  ;;  %v7705_v5 = vld [vmem:[%s11717_s1 + $0xc8] sm:$0xff]   ;;  %v7709_v9 = vld [vmem:[%s11717_s1 + $0xd0] sm:$0xff]   ;;  %vm5586_vm1 = vsmask.f32 256 }
   0xf   : > { %v7702_v2 = vld [vmem:[%s11717_s1] sm:$0xff]   ;;  %6255 = vmatprep.subr.bf16.mxu1 %v7701_v1  ;;  %v7706_v6 = vld [vmem:[%s11717_s1 + $0x8] sm:$0xff]   ;;  %v7710_v10 = vld [vmem:[%s11717_s1 + $0x10] sm:$0xff]   ;;  %s12009_s13 = smov (!%p161_p3, %s5646_s13), 1 }
  0x10   : > { %v7703_v3 = vld [vmem:[%s11717_s1 + $0x80] sm:$0xff]   ;;  %6228 = vmatpush3.bf16.msra.mxu0 %v7702_v2  ;;  %v7707_v7 = vld [vmem:[%s11717_s1 + $0x88] sm:$0xff]   ;;  %v7711_v11 = vld [vmem:[%s11717_s1 + $0x90] sm:$0xff]   ;;  %s7691_s16 = smul.u32 1600, %s12009_s13  ;;  %s6217_s22 = sshll.u32 %s12009_s13, 4 }
  0x11   : > { %6256 = vmatpush3.bf16.msra.mxu1 %v7703_v3  ;;  %6229 = vmatprep.subr.bf16.mxu0 %v7704_v4  ;;  %v7712_v12 = vld [vmem:[%s11717_s1 + $0x58] sm:$0xff]   ;;  %v7716_v16 = vld [vmem:[%s11717_s1 + $0x60] sm:$0xff]   ;;  %v7720_v20 = vld [vmem:[%s11717_s1 + $0x68] sm:$0xff]   ;;  %s170_s25 = scalar_lea.vmem %s11719_s3, %s6217_s22 }
  0x12   : > { %6257 = vmatprep.subr.bf16.mxu1 %v7705_v5  ;;  %v7713_v13 = vld [vmem:[%s11717_s1 + $0xd8] sm:$0xff]   ;;  %v7717_v17 = vld [vmem:[%s11717_s1 + $0xe0] sm:$0xff]   ;;  %v7721_v21 = vld [vmem:[%s11717_s1 + $0xe8] sm:$0xff]   ;;  %s8747_s27 = scalar_lea.vmem %s11716_s0, %s7691_s16 }
  0x13   : > { %v7714_v14 = vld [vmem:[%s11717_s1 + $0x18] sm:$0xff]   ;;  %v7718_v18 = vld [vmem:[%s11717_s1 + $0x20] sm:$0xff]   ;;  %v7722_v22 = vld [vmem:[%s11717_s1 + $0x28] sm:$0xff]  }
  0x14   : > { %6230 = vmatpush3.bf16.msra.mxu0 %v7706_v6  ;;  %v7715_v15 = vld [vmem:[%s11717_s1 + $0x98] sm:$0xff]   ;;  %v7719_v19 = vld [vmem:[%s11717_s1 + $0xa0] sm:$0xff]   ;;  %v7723_v23 = vld [vmem:[%s11717_s1 + $0xa8] sm:$0xff]  }
  0x15   : > { %6258 = vmatpush3.bf16.msra.mxu1 %v7707_v7  ;;  %6231 = vmatprep.subr.bf16.mxu0 %v7708_v8  ;;  %v7724_v24 = vld [vmem:[%s11717_s1 + $0x70] sm:$0xff]   ;;  %v7728_v28 = vld [vmem:[%s11717_s1 + $0x78] sm:$0xff]   ;;  %v7732_v32 = vld [vmem:[%s8747_s27] ss:$100 sps:$4 sm:$0xff]  }
  0x16   : > { %6259 = vmatprep.subr.bf16.mxu1 %v7709_v9  ;;  %v7725_v25 = vld [vmem:[%s11717_s1 + $0xf0] sm:$0xff]   ;;  %v7729_v29 = vld [vmem:[%s11717_s1 + $0xf8] sm:$0xff]   ;;  %v7734_v33 = vld [vmem:[%s8747_s27 + $0x4] ss:$100 sps:$4 sm:$0xff]  }
  0x17   : > { %v7726_v26 = vld [vmem:[%s11717_s1 + $0x30] sm:$0xff]   ;;  %v7730_v30 = vld [vmem:[%s11717_s1 + $0x38] sm:$0xff]   ;;  %v7735_v34 = vld [vmem:[%s8747_s27 + $0x8] ss:$100 sps:$4 sm:$0xff]   ;;  %2108 = vmatprep.mubr.bf16.mxu0 %v7734_v33 }
  0x18   : > { %6232 = vmatpush3.bf16.msra.mxu0 %v7710_v10  ;;  %v7727_v27 = vld [vmem:[%s11717_s1 + $0xb0] sm:$0xff]   ;;  %v7731_v31 = vld [vmem:[%s11717_s1 + $0xb8] sm:$0xff]   ;;  %v7738_v36 = vld [vmem:[%s11717_s1 + $0x140] sm:$0xff]  }
  0x19   : > { %6260 = vmatpush3.bf16.msra.mxu1 %v7711_v11  ;;  %6233 = vmatprep.subr.bf16.mxu0 %v7712_v12  ;;  %v7737_v35 = vld [vmem:[%s8747_s27 + $0xc] ss:$100 sps:$4 sm:$0xff]   ;;  %v7739_v37 = vld [vmem:[%s11717_s1 + $0x1c0] sm:$0xff]   ;;  %v7750_v48 = vld [vmem:[%s11717_s1 + $0x158] sm:$0xff]  }
  0x1a   : > { %6261 = vmatprep.subr.bf16.mxu1 %v7713_v13  ;;  %2157 = vmatprep.mubr.bf16.mxu1 %v7737_v35  ;;  %v7740_v38 = vld [vmem:[%s11717_s1 + $0x100] sm:$0xff]   ;;  %v7742_v40 = vld [vmem:[%s11717_s1 + $0x148] sm:$0xff]   ;;  %v7746_v44 = vld [vmem:[%s11717_s1 + $0x150] sm:$0xff]  }
  0x1b   : > { %v7741_v39 = vld [vmem:[%s11717_s1 + $0x180] sm:$0xff]   ;;  %v7743_v41 = vld [vmem:[%s11717_s1 + $0x1c8] sm:$0xff]   ;;  %v7747_v45 = vld [vmem:[%s11717_s1 + $0x1d0] sm:$0xff]  }
  0x1c   : > { %6234 = vmatpush3.bf16.msra.mxu0 %v7714_v14  ;;  %v7744_v42 = vld [vmem:[%s11717_s1 + $0x108] sm:$0xff]   ;;  %v7748_v46 = vld [vmem:[%s11717_s1 + $0x110] sm:$0xff]   ;;  %v7751_v49 = vld [vmem:[%s11717_s1 + $0x1d8] sm:$0xff]  }
  0x1d   : > { %6262 = vmatpush3.bf16.msra.mxu1 %v7715_v15  ;;  %6235 = vmatprep.subr.bf16.mxu0 %v7716_v16  ;;  %v7745_v43 = vld [vmem:[%s11717_s1 + $0x188] sm:$0xff]   ;;  %v7749_v47 = vld [vmem:[%s11717_s1 + $0x190] sm:$0xff]   ;;  %v7752_v50 = vld [vmem:[%s11717_s1 + $0x118] sm:$0xff]  }
  0x1e   : > { %6263 = vmatprep.subr.bf16.mxu1 %v7717_v17  ;;  %v7753_v51 = vld [vmem:[%s11717_s1 + $0x198] sm:$0xff]   ;;  %v7754_v52 = vld [vmem:[%s11717_s1 + $0x160] sm:$0xff]   ;;  %v7758_v56 = vld [vmem:[%s11717_s1 + $0x168] sm:$0xff]  }
  0x1f   : > { %v7755_v53 = vld [vmem:[%s11717_s1 + $0x1e0] sm:$0xff]   ;;  %v7759_v57 = vld [vmem:[%s11717_s1 + $0x1e8] sm:$0xff]   ;;  %v7762_v59 = vld [vmem:[%s8747_s27 + $0xd4] ss:$100 sps:$4 sm:$0x1f]  }
  0x20   : > { %6236 = vmatpush3.bf16.msra.mxu0 %v7718_v18  ;;  %v7756_v54 = vld [vmem:[%s11717_s1 + $0x120] sm:$0xff]   ;;  %v7760_v58 = vld [vmem:[%s8747_s27 + $0xcc] ss:$100 sps:$4 sm:$0x1f]   ;;  %v7772_v4 = vld [vmem:[%s11717_s1 + $0x178] sm:$0xff]  }
  0x21   : > { %6264 = vmatpush3.bf16.msra.mxu1 %v7719_v19  ;;  %6237 = vmatprep.subr.bf16.mxu0 %v7720_v20  ;;  %v7757_v55 = vld [vmem:[%s11717_s1 + $0x1a0] sm:$0xff]   ;;  %v7764_v60 = vld [vmem:[%s11717_s1 + $0x128] sm:$0xff]   ;;  %v7767_v63 = vld [vmem:[%s8747_s27 + $0xd0] ss:$100 sps:$4 sm:$0x1f]  }
  0x22   : > { %6265 = vmatprep.subr.bf16.mxu1 %v7721_v21  ;;  %v7765_v61 = vld [vmem:[%s11717_s1 + $0x1a8] sm:$0xff]   ;;  %v7768_v0 = vld [vmem:[%s11717_s1 + $0x170] sm:$0xff]   ;;  %v7773_v5 = vld [vmem:[%s11717_s1 + $0x1f8] sm:$0xff]  }
  0x23   : > { %v7766_v62 = vld [vmem:[%s8747_s27 + $0xc8] ss:$100 sps:$4 sm:$0x1f]   ;;  %v7769_v1 = vld [vmem:[%s11717_s1 + $0x1f0] sm:$0xff]   ;;  %v7774_v6 = vld [vmem:[%s11717_s1 + $0x138] sm:$0xff]  }
  0x24   : > { %6238 = vmatpush3.bf16.msra.mxu0 %v7722_v22  ;;  %v7770_v2 = vld [vmem:[%s11717_s1 + $0x130] sm:$0xff]   ;;  %v7775_v7 = vld [vmem:[%s11717_s1 + $0x1b8] sm:$0xff]   ;;  %v7782_v12 = vld [vmem:[%s11717_s1 + $0x240] sm:$0xff]  }
  0x25   : > { %6266 = vmatpush3.bf16.msra.mxu1 %v7723_v23  ;;  %6239 = vmatprep.subr.bf16.mxu0 %v7724_v24  ;;  %v7771_v3 = vld [vmem:[%s11717_s1 + $0x1b0] sm:$0xff]   ;;  %v7779_v10 = vld [vmem:[%s8747_s27 + $0x18] ss:$100 sps:$4 sm:$0xff]   ;;  %v7783_v13 = vld [vmem:[%s11717_s1 + $0x2c0] sm:$0xff]  }
  0x26   : > { %6267 = vmatprep.subr.bf16.mxu1 %v7725_v25  ;;  %v7776_v8 = vld [vmem:[%s8747_s27 + $0x10] ss:$100 sps:$4 sm:$0xff]   ;;  %v7781_v11 = vld [vmem:[%s8747_s27 + $0x1c] ss:$100 sps:$4 sm:$0xff]   ;;  %v7786_v16 = vld [vmem:[%s11717_s1 + $0x248] sm:$0xff]  }
  0x27   : > { %v7778_v9 = vld [vmem:[%s8747_s27 + $0x14] ss:$100 sps:$4 sm:$0xff]   ;;  %v7784_v14 = vld [vmem:[%s11717_s1 + $0x200] sm:$0xff]   ;;  %v7787_v17 = vld [vmem:[%s11717_s1 + $0x2c8] sm:$0xff]  }
  0x28   : > { %6240 = vmatpush3.bf16.msra.mxu0 %v7726_v26  ;;  %v7785_v15 = vld [vmem:[%s11717_s1 + $0x280] sm:$0xff]   ;;  %v7788_v18 = vld [vmem:[%s11717_s1 + $0x208] sm:$0xff]   ;;  %v7792_v21 = vld [vmem:[%s8747_s27 + $0xd8] ss:$100 sps:$4 sm:$0x1f]  }
  0x29   : > { %6268 = vmatpush3.bf16.msra.mxu1 %v7727_v27  ;;  %6241 = vmatprep.subr.bf16.mxu0 %v7728_v28  ;;  %v7789_v19 = vld [vmem:[%s11717_s1 + $0x288] sm:$0xff]   ;;  %v7790_v20 = vld [vmem:[%s8747_s27 + $0xdc] ss:$100 sps:$4 sm:$0x1f]   ;;  %v7793_v22 = vld [vmem:[%s11717_s1 + $0x250] sm:$0xff]  }
  0x2a   : > { %6269 = vmatprep.subr.bf16.mxu1 %v7729_v29  ;;  %v7794_v23 = vld [vmem:[%s11717_s1 + $0x2d0] sm:$0xff]   ;;  %v7795_v24 = vld [vmem:[%s8747_s27 + $0xe4] ss:$100 sps:$4 sm:$0x1f]   ;;  %v7800_v28 = vld [vmem:[%s11717_s1 + $0x258] sm:$0xff]  }
  0x2b   : > { %v7797_v25 = vld [vmem:[%s11717_s1 + $0x210] sm:$0xff]   ;;  %v7799_v27 = vld [vmem:[%s8747_s27 + $0xe0] ss:$100 sps:$4 sm:$0x1f]   ;;  %v7801_v29 = vld [vmem:[%s11717_s1 + $0x2d8] sm:$0xff]  }
  0x2c   : > { %6242 = vmatpush3.bf16.msra.mxu0 %v7730_v30  ;;  %v7798_v26 = vld [vmem:[%s11717_s1 + $0x290] sm:$0xff]   ;;  %v7802_v30 = vld [vmem:[%s11717_s1 + $0x218] sm:$0xff]   ;;  %v7805_v33 = vld [vmem:[%s11717_s1 + $0x2e0] sm:$0xff]  }
  0x2d   : > { %6270 = vmatpush3.bf16.msra.mxu1 %v7731_v31  ;;  %6283 = vmatprep.subr.bf16.mxu0 %v7738_v36  ;;  %v7803_v31 = vld [vmem:[%s11717_s1 + $0x298] sm:$0xff]   ;;  %v7807_v35 = vld [vmem:[%s11717_s1 + $0x2a0] sm:$0xff]   ;;  %v7808_v36 = vld [vmem:[%s11717_s1 + $0x268] sm:$0xff]  }
  0x2e   : > { %6311 = vmatprep.subr.bf16.mxu1 %v7739_v37  ;;  %v7809_v37 = vld [vmem:[%s11717_s1 + $0x2e8] sm:$0xff]   ;;  %vm5587_vm2 = vmand %vm5585_vm0, %vm5586_vm1 }
  0x2f   : > { %2109 = vmatmul.mubr.bf16.vlgmr.msra.gmra.mrb[0].mxu0 %v7732_v32  ;;  %v7804_v32 = vld [vmem:[%s11717_s1 + $0x260] sm:$0xff]  }
  0x30   : > { %2158 = vmatmul.mubr.bf16.vlgmr.msra.gmra.mrb[0].mxu1 %v7735_v34  ;;  %6284 = vmatpush3.bf16.msra.mxu0 %v7740_v38  ;;  %v7806_v34 = vld [vmem:[%s11717_s1 + $0x220] sm:$0xff]   ;;  %v7810_v38 = vld [vmem:[%s11717_s1 + $0x228] sm:$0xff]  }
  0x31   : > { %6312 = vmatpush3.bf16.msra.mxu1 %v7741_v39  ;;  %6285 = vmatprep.subr.bf16.mxu0 %v7742_v40  ;;  %v7811_v39 = vld [vmem:[%s11717_s1 + $0x2a8] sm:$0xff]   ;;  %v7812_v40 = vld [vmem:[%s11717_s1 + $0x270] sm:$0xff]  }
  0x32   : > { %6313 = vmatprep.subr.bf16.mxu1 %v7743_v41  ;;  %2116 = vmatprep.mubr.bf16.mxu0 %v7760_v58  ;;  %v7813_v41 = vld [vmem:[%s11717_s1 + $0x2f0] sm:$0xff]   ;;  %v7832_v58 = vld [vmem:[%s11717_s1 + $0x308] sm:$0xff]  }
  0x33   : > { %2165 = vmatprep.mubr.bf16.mxu1 %v7762_v59  ;;  %v7833_v59 = vld [vmem:[%s11717_s1 + $0x388] sm:$0xff]  }
  0x34   : > { %6286 = vmatpush3.bf16.msra.mxu0 %v7744_v42  ;;  %v7814_v42 = vld [vmem:[%s11717_s1 + $0x230] sm:$0xff]  }
  0x35   : > { %6314 = vmatpush3.bf16.msra.mxu1 %v7745_v43  ;;  %6287 = vmatprep.subr.bf16.mxu0 %v7746_v44  ;;  %v7815_v43 = vld [vmem:[%s11717_s1 + $0x2b0] sm:$0xff]   ;;  %v7816_v44 = vld [vmem:[%s11717_s1 + $0x278] sm:$0xff]  }
  0x36   : > { %6315 = vmatprep.subr.bf16.mxu1 %v7747_v45  ;;  %v7817_v45 = vld [vmem:[%s11717_s1 + $0x2f8] sm:$0xff]  }
  0x37   : > { %2117 = vmatmul.mubr.bf16.gmra.mrb[4].mxu0 %v7766_v62  ;;  %v7837_v62 = vld [vmem:[%s11717_s1 + $0x350] sm:$0xff]  }
  0x38   : > { %6288 = vmatpush3.bf16.msra.mxu0 %v7748_v46  ;;  %2166 = vmatmul.mubr.bf16.gmra.mrb[4].mxu1 %v7767_v63  ;;  %v7818_v46 = vld [vmem:[%s11717_s1 + $0x238] sm:$0xff]   ;;  %v7838_v63 = vld [vmem:[%s11717_s1 + $0x3d0] sm:$0xff]  }
  0x39   : > { %6316 = vmatpush3.bf16.msra.mxu1 %v7749_v47  ;;  %6289 = vmatprep.subr.bf16.mxu0 %v7750_v48  ;;  %v7819_v47 = vld [vmem:[%s11717_s1 + $0x2b8] sm:$0xff]   ;;  %v7820_v48 = vld [vmem:[%s8747_s27 + $0x20] ss:$100 sps:$4 sm:$0xff]  }
  0x3a   : > { %6317 = vmatprep.subr.bf16.mxu1 %v7751_v49  ;;  %2206 = vmatprep.mubr.bf16.mxu0 %v7778_v9  ;;  %v7822_v49 = vld [vmem:[%s8747_s27 + $0x24] ss:$100 sps:$4 sm:$0xff]  }
  0x3b   : > { %2255 = vmatprep.mubr.bf16.mxu1 %v7781_v11  ;;  %v7849_v9 = vld [vmem:[%s11717_s1 + $0x3e0] sm:$0xff]  }
  0x3c   : > { %6290 = vmatpush3.bf16.msra.mxu0 %v7752_v50  ;;  %v7823_v50 = vld [vmem:[%s8747_s27 + $0x28] ss:$100 sps:$4 sm:$0xff]   ;;  %v7851_v11 = vld [vmem:[%s11717_s1 + $0x3a0] sm:$0xff]  }
  0x3d   : > { %6318 = vmatpush3.bf16.msra.mxu1 %v7753_v51  ;;  %6291 = vmatprep.subr.bf16.mxu0 %v7754_v52  ;;  %v7825_v51 = vld [vmem:[%s8747_s27 + $0x2c] ss:$100 sps:$4 sm:$0xff]   ;;  %v7826_v52 = vld [vmem:[%s11717_s1 + $0x340] sm:$0xff]  }
  0x3e   : > { %6319 = vmatprep.subr.bf16.mxu1 %v7755_v53  ;;  %v7827_v53 = vld [vmem:[%s11717_s1 + $0x3c0] sm:$0xff]  }
  0x40   : > { %6292 = vmatpush3.bf16.msra.mxu0 %v7756_v54  ;;  %v7828_v54 = vld [vmem:[%s11717_s1 + $0x300] sm:$0xff]  }
  0x41   : > { %6320 = vmatpush3.bf16.msra.mxu1 %v7757_v55  ;;  %6293 = vmatprep.subr.bf16.mxu0 %v7758_v56  ;;  %v7829_v55 = vld [vmem:[%s11717_s1 + $0x380] sm:$0xff]   ;;  %v7830_v56 = vld [vmem:[%s11717_s1 + $0x348] sm:$0xff]  }
  0x42   : > { %6321 = vmatprep.subr.bf16.mxu1 %v7759_v57  ;;  %v7831_v57 = vld [vmem:[%s11717_s1 + $0x3c8] sm:$0xff]  }
  0x44   : > { %6294 = vmatpush3.bf16.msra.mxu0 %v7764_v60  ;;  %v7834_v60 = vld [vmem:[%s8747_s27 + $0xec] ss:$100 sps:$4 sm:$0x1f]  }
  0x45   : > { %6322 = vmatpush3.bf16.msra.mxu1 %v7765_v61  ;;  %6295 = vmatprep.subr.bf16.mxu0 %v7768_v0  ;;  %v7836_v61 = vld [vmem:[%s8747_s27 + $0xe8] ss:$100 sps:$4 sm:$0x1f]   ;;  %v7839_v0 = vld [vmem:[%s8747_s27 + $0xf4] ss:$100 sps:$4 sm:$0x1f]  }
  0x46   : > { %6323 = vmatprep.subr.bf16.mxu1 %v7769_v1  ;;  %v7841_v1 = vld [vmem:[%s11717_s1 + $0x310] sm:$0xff]  }
  0x48   : > { %6296 = vmatpush3.bf16.msra.mxu0 %v7770_v2  ;;  %v7842_v2 = vld [vmem:[%s11717_s1 + $0x390] sm:$0xff]  }
  0x49   : > { %6324 = vmatpush3.bf16.msra.mxu1 %v7771_v3  ;;  %6297 = vmatprep.subr.bf16.mxu0 %v7772_v4  ;;  %v7843_v3 = vld [vmem:[%s8747_s27 + $0xf0] ss:$100 sps:$4 sm:$0x1f]   ;;  %v7844_v4 = vld [vmem:[%s11717_s1 + $0x358] sm:$0xff]  }
  0x4a   : > { %6325 = vmatprep.subr.bf16.mxu1 %v7773_v5  ;;  %v7845_v5 = vld [vmem:[%s11717_s1 + $0x3d8] sm:$0xff]  }
  0x4c   : > { %6298 = vmatpush3.bf16.msra.mxu0 %v7774_v6  ;;  %v7846_v6 = vld [vmem:[%s11717_s1 + $0x318] sm:$0xff]  }
  0x4d   : > { %6326 = vmatpush3.bf16.msra.mxu1 %v7775_v7  ;;  %6339 = vmatprep.subr.bf16.mxu0 %v7782_v12  ;;  %v7847_v7 = vld [vmem:[%s11717_s1 + $0x398] sm:$0xff]   ;;  %v7852_v12 = vld [vmem:[%s11717_s1 + $0x368] sm:$0xff]  }
  0x4e   : > { %6367 = vmatprep.subr.bf16.mxu1 %v7783_v13  ;;  %v7853_v13 = vld [vmem:[%s11717_s1 + $0x3e8] sm:$0xff]  }
  0x4f   : > { %2207 = vmatmul.mubr.bf16.vlgmr.msra.gmra.mrb[8].mxu0 %v7776_v8  ;;  %v7848_v8 = vld [vmem:[%s11717_s1 + $0x360] sm:$0xff]  }
  0x50   : > { %2256 = vmatmul.mubr.bf16.vlgmr.msra.gmra.mrb[8].mxu1 %v7779_v10  ;;  %6340 = vmatpush3.bf16.msra.mxu0 %v7784_v14  ;;  %v7850_v10 = vld [vmem:[%s11717_s1 + $0x320] sm:$0xff]   ;;  %v7854_v14 = vld [vmem:[%s11717_s1 + $0x328] sm:$0xff]  }
  0x51   : > { %6368 = vmatpush3.bf16.msra.mxu1 %v7785_v15  ;;  %6341 = vmatprep.subr.bf16.mxu0 %v7786_v16  ;;  %v7855_v15 = vld [vmem:[%s11717_s1 + $0x3a8] sm:$0xff]   ;;  %v7856_v16 = vld [vmem:[%s11717_s1 + $0x370] sm:$0xff]  }
  0x52   : > { %6369 = vmatprep.subr.bf16.mxu1 %v7787_v17  ;;  %2214 = vmatprep.mubr.bf16.mxu0 %v7790_v20  ;;  %v7857_v17 = vld [vmem:[%s11717_s1 + $0x3f0] sm:$0xff]   ;;  %v7860_v20 = vld [vmem:[%s11717_s1 + $0x378] sm:$0xff]  }
  0x53   : > { %2263 = vmatprep.mubr.bf16.mxu1 %v7795_v24  ;;  %v7864_v24 = vld [vmem:[%s8747_s27 + $0x30] ss:$100 sps:$4 sm:$0xff]  }
  0x54   : > { %6342 = vmatpush3.bf16.msra.mxu0 %v7788_v18  ;;  %v7858_v18 = vld [vmem:[%s11717_s1 + $0x330] sm:$0xff]  }
  0x55   : > { %6370 = vmatpush3.bf16.msra.mxu1 %v7789_v19  ;;  %6343 = vmatprep.subr.bf16.mxu0 %v7793_v22  ;;  %v7859_v19 = vld [vmem:[%s11717_s1 + $0x3b0] sm:$0xff]   ;;  %v7862_v22 = vld [vmem:[%s11717_s1 + $0x338] sm:$0xff]  }
  0x56   : > { %6371 = vmatprep.subr.bf16.mxu1 %v7794_v23  ;;  %v7863_v23 = vld [vmem:[%s11717_s1 + $0x3b8] sm:$0xff]  }
  0x57   : > { %2215 = vmatmul.mubr.bf16.gmra.mrb[12].mxu0 %v7792_v21  ;;  %v7861_v21 = vld [vmem:[%s11717_s1 + $0x3f8] sm:$0xff]  }
  0x58   : > { %6344 = vmatpush3.bf16.msra.mxu0 %v7797_v25  ;;  %2264 = vmatmul.mubr.bf16.gmra.mrb[12].mxu1 %v7799_v27  ;;  %v7866_v25 = vld [vmem:[%s8747_s27 + $0x34] ss:$100 sps:$4 sm:$0xff]   ;;  %v7869_v27 = vld [vmem:[%s8747_s27 + $0x3c] ss:$100 sps:$4 sm:$0xff]  }
  0x59   : > { %6372 = vmatpush3.bf16.msra.mxu1 %v7798_v26  ;;  %6345 = vmatprep.subr.bf16.mxu0 %v7800_v28  ;;  %v7867_v26 = vld [vmem:[%s8747_s27 + $0x38] ss:$100 sps:$4 sm:$0xff]   ;;  %v7870_v28 = vld [vmem:[%s11717_s1 + $0x440] sm:$0xff]  }
  0x5a   : > { %6373 = vmatprep.subr.bf16.mxu1 %v7801_v29  ;;  %2304 = vmatprep.mubr.bf16.mxu0 %v7822_v49  ;;  %v7871_v29 = vld [vmem:[%s11717_s1 + $0x4c0] sm:$0xff]  }
  0x5b   : > { %2353 = vmatprep.mubr.bf16.mxu1 %v7825_v51  ;;  %v7893_v49 = vld [vmem:[%s11717_s1 + $0x4e0] sm:$0xff]  }
  0x5c   : > { %6346 = vmatpush3.bf16.msra.mxu0 %v7802_v30  ;;  %v7872_v30 = vld [vmem:[%s11717_s1 + $0x400] sm:$0xff]  }
  0x5d   : > { %6374 = vmatpush3.bf16.msra.mxu1 %v7803_v31  ;;  %6347 = vmatprep.subr.bf16.mxu0 %v7804_v32  ;;  %v7873_v31 = vld [vmem:[%s11717_s1 + $0x480] sm:$0xff]   ;;  %v7874_v32 = vld [vmem:[%s11717_s1 + $0x448] sm:$0xff]  }
  0x5e   : > { %6375 = vmatprep.subr.bf16.mxu1 %v7805_v33  ;;  %v7875_v33 = vld [vmem:[%s11717_s1 + $0x4c8] sm:$0xff]   ;;  %v7895_v51 = vld [vmem:[%s11717_s1 + $0x4a0] sm:$0xff]  }
  0x60   : > { %6348 = vmatpush3.bf16.msra.mxu0 %v7806_v34  ;;  %v7876_v34 = vld [vmem:[%s11717_s1 + $0x408] sm:$0xff]  }
  0x61   : > { %6376 = vmatpush3.bf16.msra.mxu1 %v7807_v35  ;;  %6349 = vmatprep.subr.bf16.mxu0 %v7808_v36  ;;  %v7877_v35 = vld [vmem:[%s11717_s1 + $0x488] sm:$0xff]   ;;  %v7878_v36 = vld [vmem:[%s8747_s27 + $0xfc] ss:$100 sps:$4 sm:$0x1f]  }
  0x62   : > { %6377 = vmatprep.subr.bf16.mxu1 %v7809_v37  ;;  %v7880_v37 = vld [vmem:[%s8747_s27 + $0xf8] ss:$100 sps:$4 sm:$0x1f]  }
  0x64   : > { %6350 = vmatpush3.bf16.msra.mxu0 %v7810_v38  ;;  %v7881_v38 = vld [vmem:[%s11717_s1 + $0x450] sm:$0xff]  }
  0x65   : > { %6378 = vmatpush3.bf16.msra.mxu1 %v7811_v39  ;;  %6351 = vmatprep.subr.bf16.mxu0 %v7812_v40  ;;  %v7882_v39 = vld [vmem:[%s11717_s1 + $0x4d0] sm:$0xff]   ;;  %v7883_v40 = vld [vmem:[%s8747_s27 + $0x104] ss:$100 sps:$4 sm:$0x1f]  }
  0x66   : > { %6379 = vmatprep.subr.bf16.mxu1 %v7813_v41  ;;  %v7885_v41 = vld [vmem:[%s11717_s1 + $0x410] sm:$0xff]  }
  0x68   : > { %6352 = vmatpush3.bf16.msra.mxu0 %v7814_v42  ;;  %v7886_v42 = vld [vmem:[%s11717_s1 + $0x490] sm:$0xff]  }
  0x69   : > { %6380 = vmatpush3.bf16.msra.mxu1 %v7815_v43  ;;  %6353 = vmatprep.subr.bf16.mxu0 %v7816_v44  ;;  %v7887_v43 = vld [vmem:[%s8747_s27 + $0x100] ss:$100 sps:$4 sm:$0x1f]   ;;  %v7888_v44 = vld [vmem:[%s11717_s1 + $0x458] sm:$0xff]  }
  0x6a   : > { %6381 = vmatprep.subr.bf16.mxu1 %v7817_v45  ;;  %v7889_v45 = vld [vmem:[%s11717_s1 + $0x4d8] sm:$0xff]  }
  0x6c   : > { %6354 = vmatpush3.bf16.msra.mxu0 %v7818_v46  ;;  %v7890_v46 = vld [vmem:[%s11717_s1 + $0x418] sm:$0xff]  }
  0x6d   : > { %6382 = vmatpush3.bf16.msra.mxu1 %v7819_v47  ;;  %6395 = vmatprep.subr.bf16.mxu0 %v7826_v52  ;;  %v7891_v47 = vld [vmem:[%s11717_s1 + $0x498] sm:$0xff]   ;;  %v7896_v52 = vld [vmem:[%s11717_s1 + $0x468] sm:$0xff]  }
  0x6e   : > { %6423 = vmatprep.subr.bf16.mxu1 %v7827_v53  ;;  %v7897_v53 = vld [vmem:[%s11717_s1 + $0x4e8] sm:$0xff]  }
  0x6f   : > { %2305 = vmatmul.mubr.bf16.vlgmr.msra.gmra.mrb[16].mxu0 %v7820_v48  ;;  %v7892_v48 = vld [vmem:[%s11717_s1 + $0x460] sm:$0xff]  }
  0x70   : > { %2354 = vmatmul.mubr.bf16.vlgmr.msra.gmra.mrb[16].mxu1 %v7823_v50  ;;  %6396 = vmatpush3.bf16.msra.mxu0 %v7828_v54  ;;  %v7894_v50 = vld [vmem:[%s11717_s1 + $0x420] sm:$0xff]   ;;  %v7898_v54 = vld [vmem:[%s11717_s1 + $0x428] sm:$0xff]  }
  0x71   : > { %6424 = vmatpush3.bf16.msra.mxu1 %v7829_v55  ;;  %6397 = vmatprep.subr.bf16.mxu0 %v7830_v56  ;;  %v7899_v55 = vld [vmem:[%s11717_s1 + $0x4a8] sm:$0xff]   ;;  %v7900_v56 = vld [vmem:[%s11717_s1 + $0x470] sm:$0xff]  }
  0x72   : > { %6425 = vmatprep.subr.bf16.mxu1 %v7831_v57  ;;  %2312 = vmatprep.mubr.bf16.mxu0 %v7834_v60  ;;  %v7901_v57 = vld [vmem:[%s11717_s1 + $0x4f0] sm:$0xff]   ;;  %v7904_v60 = vld [vmem:[%s11717_s1 + $0x478] sm:$0xff]  }
  0x73   : > { %2361 = vmatprep.mubr.bf16.mxu1 %v7839_v0  ;;  %v7908_v0 = vld [vmem:[%s8747_s27 + $0x40] ss:$100 sps:$4 sm:$0xff]  }
  0x74   : > { %6398 = vmatpush3.bf16.msra.mxu0 %v7832_v58  ;;  %v7902_v58 = vld [vmem:[%s11717_s1 + $0x430] sm:$0xff]  }
  0x75   : > { %6426 = vmatpush3.bf16.msra.mxu1 %v7833_v59  ;;  %6399 = vmatprep.subr.bf16.mxu0 %v7837_v62  ;;  %v7903_v59 = vld [vmem:[%s11717_s1 + $0x4b0] sm:$0xff]   ;;  %v7906_v62 = vld [vmem:[%s11717_s1 + $0x438] sm:$0xff]  }
  0x76   : > { %6427 = vmatprep.subr.bf16.mxu1 %v7838_v63  ;;  %v7907_v63 = vld [vmem:[%s11717_s1 + $0x4b8] sm:$0xff]  }
  0x77   : > { %2313 = vmatmul.mubr.bf16.gmra.mrb[20].mxu0 %v7836_v61  ;;  %v7905_v61 = vld [vmem:[%s11717_s1 + $0x4f8] sm:$0xff]  }
  0x78   : > { %6400 = vmatpush3.bf16.msra.mxu0 %v7841_v1  ;;  %2362 = vmatmul.mubr.bf16.gmra.mrb[20].mxu1 %v7843_v3  ;;  %v7910_v1 = vld [vmem:[%s8747_s27 + $0x44] ss:$100 sps:$4 sm:$0xff]   ;;  %v7913_v3 = vld [vmem:[%s8747_s27 + $0x4c] ss:$100 sps:$4 sm:$0xff]  }
  0x79   : > { %6428 = vmatpush3.bf16.msra.mxu1 %v7842_v2  ;;  %6401 = vmatprep.subr.bf16.mxu0 %v7844_v4  ;;  %v7911_v2 = vld [vmem:[%s8747_s27 + $0x48] ss:$100 sps:$4 sm:$0xff]   ;;  %v7914_v4 = vld [vmem:[%s11717_s1 + $0x540] sm:$0xff]  }
  0x7a   : > { %6429 = vmatprep.subr.bf16.mxu1 %v7845_v5  ;;  %2402 = vmatprep.mubr.bf16.mxu0 %v7866_v25  ;;  %v7915_v5 = vld [vmem:[%s11717_s1 + $0x5c0] sm:$0xff]  }
  0x7b   : > { %2451 = vmatprep.mubr.bf16.mxu1 %v7869_v27  ;;  %v7937_v25 = vld [vmem:[%s11717_s1 + $0x5e0] sm:$0xff]  }
  0x7c   : > { %6402 = vmatpush3.bf16.msra.mxu0 %v7846_v6  ;;  %v7916_v6 = vld [vmem:[%s11717_s1 + $0x500] sm:$0xff]  }
  0x7d   : > { %6430 = vmatpush3.bf16.msra.mxu1 %v7847_v7  ;;  %6403 = vmatprep.subr.bf16.mxu0 %v7848_v8  ;;  %v7917_v7 = vld [vmem:[%s11717_s1 + $0x580] sm:$0xff]   ;;  %v7918_v8 = vld [vmem:[%s11717_s1 + $0x548] sm:$0xff]  }
  0x7e   : > { %6431 = vmatprep.subr.bf16.mxu1 %v7849_v9  ;;  %v7919_v9 = vld [vmem:[%s11717_s1 + $0x5c8] sm:$0xff]   ;;  %v7939_v27 = vld [vmem:[%s11717_s1 + $0x5a0] sm:$0xff]  }
  0x80   : > { %6404 = vmatpush3.bf16.msra.mxu0 %v7850_v10  ;;  %v7920_v10 = vld [vmem:[%s11717_s1 + $0x508] sm:$0xff]  }
  0x81   : > { %6432 = vmatpush3.bf16.msra.mxu1 %v7851_v11  ;;  %6405 = vmatprep.subr.bf16.mxu0 %v7852_v12  ;;  %v7921_v11 = vld [vmem:[%s11717_s1 + $0x588] sm:$0xff]  }
  0x82   : > { %6433 = vmatprep.subr.bf16.mxu1 %v7853_v13  ;;  %v7922_v12 = vld [vmem:[%s8747_s27 + $0x10c] ss:$100 sps:$4 sm:$0x1f]  }
  0x83   : > { %v7924_v13 = vld [vmem:[%s8747_s27 + $0x108] ss:$100 sps:$4 sm:$0x1f]  }
  0x84   : > { %6406 = vmatpush3.bf16.msra.mxu0 %v7854_v14  ;;  %v7925_v14 = vld [vmem:[%s11717_s1 + $0x550] sm:$0xff]  }
  0x85   : > { %6434 = vmatpush3.bf16.msra.mxu1 %v7855_v15  ;;  %6407 = vmatprep.subr.bf16.mxu0 %v7856_v16  ;;  %v7926_v15 = vld [vmem:[%s11717_s1 + $0x5d0] sm:$0xff]  }
  0x86   : > { %6435 = vmatprep.subr.bf16.mxu1 %v7857_v17  ;;  %v7927_v16 = vld [vmem:[%s8747_s27 + $0x114] ss:$100 sps:$4 sm:$0x1f]  }
  0x87   : > { %v7929_v17 = vld [vmem:[%s11717_s1 + $0x510] sm:$0xff]  }
  0x88   : > { %6408 = vmatpush3.bf16.msra.mxu0 %v7858_v18  ;;  %v7930_v18 = vld [vmem:[%s11717_s1 + $0x590] sm:$0xff]  }
  0x89   : > { %6436 = vmatpush3.bf16.msra.mxu1 %v7859_v19  ;;  %6409 = vmatprep.subr.bf16.mxu0 %v7860_v20  ;;  %v7931_v19 = vld [vmem:[%s8747_s27 + $0x110] ss:$100 sps:$4 sm:$0x1f]   ;;  %v7932_v20 = vld [vmem:[%s11717_s1 + $0x558] sm:$0xff]  }
  0x8a   : > { %6437 = vmatprep.subr.bf16.mxu1 %v7861_v21  ;;  %v7933_v21 = vld [vmem:[%s11717_s1 + $0x5d8] sm:$0xff]  }
  0x8c   : > { %6410 = vmatpush3.bf16.msra.mxu0 %v7862_v22  ;;  %v7934_v22 = vld [vmem:[%s11717_s1 + $0x518] sm:$0xff]  }
  0x8d   : > { %6438 = vmatpush3.bf16.msra.mxu1 %v7863_v23  ;;  %6451 = vmatprep.subr.bf16.mxu0 %v7870_v28  ;;  %v7935_v23 = vld [vmem:[%s11717_s1 + $0x598] sm:$0xff]   ;;  %v7940_v28 = vld [vmem:[%s11717_s1 + $0x568] sm:$0xff]  }
  0x8e   : > { %6479 = vmatprep.subr.bf16.mxu1 %v7871_v29  ;;  %v7941_v29 = vld [vmem:[%s11717_s1 + $0x5e8] sm:$0xff]  }
  0x8f   : > { %2403 = vmatmul.mubr.bf16.vlgmr.msra.gmra.mrb[24].mxu0 %v7864_v24  ;;  %v7936_v24 = vld [vmem:[%s11717_s1 + $0x560] sm:$0xff]  }
  0x90   : > { %2452 = vmatmul.mubr.bf16.vlgmr.msra.gmra.mrb[24].mxu1 %v7867_v26  ;;  %6452 = vmatpush3.bf16.msra.mxu0 %v7872_v30  ;;  %v7938_v26 = vld [vmem:[%s11717_s1 + $0x520] sm:$0xff]   ;;  %v7942_v30 = vld [vmem:[%s11717_s1 + $0x528] sm:$0xff]  }
  0x91   : > { %6480 = vmatpush3.bf16.msra.mxu1 %v7873_v31  ;;  %6453 = vmatprep.subr.bf16.mxu0 %v7874_v32  ;;  %v7943_v31 = vld [vmem:[%s11717_s1 + $0x5a8] sm:$0xff]   ;;  %v7944_v32 = vld [vmem:[%s11717_s1 + $0x570] sm:$0xff]  }
  0x92   : > { %6481 = vmatprep.subr.bf16.mxu1 %v7875_v33  ;;  %2410 = vmatprep.mubr.bf16.mxu0 %v7878_v36  ;;  %v7945_v33 = vld [vmem:[%s11717_s1 + $0x5f0] sm:$0xff]   ;;  %v7948_v36 = vld [vmem:[%s11717_s1 + $0x578] sm:$0xff]  }
  0x93   : > { %2459 = vmatprep.mubr.bf16.mxu1 %v7883_v40  ;;  %v7952_v40 = vld [vmem:[%s8747_s27 + $0x50] ss:$100 sps:$4 sm:$0xff]  }
  0x94   : > { %6454 = vmatpush3.bf16.msra.mxu0 %v7876_v34  ;;  %v7946_v34 = vld [vmem:[%s11717_s1 + $0x530] sm:$0xff]  }
  0x95   : > { %6482 = vmatpush3.bf16.msra.mxu1 %v7877_v35  ;;  %6455 = vmatprep.subr.bf16.mxu0 %v7881_v38  ;;  %v7947_v35 = vld [vmem:[%s11717_s1 + $0x5b0] sm:$0xff]   ;;  %v7950_v38 = vld [vmem:[%s11717_s1 + $0x538] sm:$0xff]  }
  0x96   : > { %6483 = vmatprep.subr.bf16.mxu1 %v7882_v39  ;;  %v7951_v39 = vld [vmem:[%s11717_s1 + $0x5b8] sm:$0xff]  }
  0x97   : > { %2411 = vmatmul.mubr.bf16.gmra.mrb[28].mxu0 %v7880_v37  ;;  %v7949_v37 = vld [vmem:[%s11717_s1 + $0x5f8] sm:$0xff]  }
  0x98   : > { %6456 = vmatpush3.bf16.msra.mxu0 %v7885_v41  ;;  %2460 = vmatmul.mubr.bf16.gmra.mrb[28].mxu1 %v7887_v43  ;;  %v7954_v41 = vld [vmem:[%s8747_s27 + $0x54] ss:$100 sps:$4 sm:$0xff]   ;;  %v7957_v43 = vld [vmem:[%s8747_s27 + $0x5c] ss:$100 sps:$4 sm:$0xff]  }
  0x99   : > { %6484 = vmatpush3.bf16.msra.mxu1 %v7886_v42  ;;  %6457 = vmatprep.subr.bf16.mxu0 %v7888_v44  ;;  %v7955_v42 = vld [vmem:[%s8747_s27 + $0x58] ss:$100 sps:$4 sm:$0xff]   ;;  %v7958_v44 = vld [vmem:[%s11717_s1 + $0x600] sm:$0xff]  }
  0x9a   : > { %6485 = vmatprep.subr.bf16.mxu1 %v7889_v45  ;;  %2500 = vmatprep.mubr.bf16.mxu0 %v7910_v1  ;;  %v8196_v45 = vld [vmem:[%s11717_s1 + $0x40] sm:$0xff]  }
  0x9b   : > { %2549 = vmatprep.mubr.bf16.mxu1 %v7913_v3  ;;  %v8205_v1 = vld [vmem:[%s11717_s1 + $0x20] sm:$0xff]   ;;  %v7970_v3 = vld [vmem:[%s11717_s1 + $0x630] sm:$0xff]  }
  0x9c   : > { %6458 = vmatpush3.bf16.msra.mxu0 %v7890_v46  ;;  %v7959_v46 = vld [vmem:[%s11717_s1 + $0x608] sm:$0xff]  }
  0x9d   : > { %6486 = vmatpush3.bf16.msra.mxu1 %v7891_v47  ;;  %6459 = vmatprep.subr.bf16.mxu0 %v7892_v48  ;;  %v7960_v47 = vld [vmem:[%s8747_s27 + $0x11c] ss:$100 sps:$4 sm:$0x1f]  }
  0x9e   : > { %6487 = vmatprep.subr.bf16.mxu1 %v7893_v49  ;;  %v8197_v48 = vld [vmem:[%s11717_s1] sm:$0xff]   ;;  %v7962_v49 = vld [vmem:[%s8747_s27 + $0x118] ss:$100 sps:$4 sm:$0x1f]  }
  0xa0   : > { %6460 = vmatpush3.bf16.msra.mxu0 %v7894_v50  ;;  %v7963_v50 = vld [vmem:[%s11717_s1 + $0x610] sm:$0xff]  }
  0xa1   : > { %6488 = vmatpush3.bf16.msra.mxu1 %v7895_v51  ;;  %6461 = vmatprep.subr.bf16.mxu0 %v7896_v52  ;;  %v8198_v51 = vld [vmem:[%s11717_s1 + $0x48] sm:$0xff]  }
  0xa2   : > { %6489 = vmatprep.subr.bf16.mxu1 %v7897_v53  ;;  %v7964_v52 = vld [vmem:[%s8747_s27 + $0x124] ss:$100 sps:$4 sm:$0x1f]  }
  0xa3   : > { %v7966_v53 = vld [vmem:[%s8747_s27 + $0x120] ss:$100 sps:$4 sm:$0x1f]  }
  0xa4   : > { %6462 = vmatpush3.bf16.msra.mxu0 %v7898_v54  ;;  %v8199_v54 = vld [vmem:[%s11717_s1 + $0x8] sm:$0xff]  }
  0xa5   : > { %6490 = vmatpush3.bf16.msra.mxu1 %v7899_v55  ;;  %6463 = vmatprep.subr.bf16.mxu0 %v7900_v56  ;;  %v8200_v55 = vld [vmem:[%s11717_s1 + $0x50] sm:$0xff]   ;;  %v7967_v56 = vld [vmem:[%s11717_s1 + $0x618] sm:$0xff]  }
  0xa6   : > { %6491 = vmatprep.subr.bf16.mxu1 %v7901_v57  ;;  %v7968_v57 = vld [vmem:[%s11717_s1 + $0x620] sm:$0xff]  }
  0xa8   : > { %6464 = vmatpush3.bf16.msra.mxu0 %v7902_v58  ;;  %v8201_v58 = vld [vmem:[%s11717_s1 + $0x10] sm:$0xff]  }
  0xa9   : > { %6492 = vmatpush3.bf16.msra.mxu1 %v7903_v59  ;;  %6465 = vmatprep.subr.bf16.mxu0 %v7904_v60  ;;  %v7972_v59 = vld [vmem:[%s8747_s27 + $0x60] ss:$100 sps:$4 sm:$0xff]   ;;  %v8202_v60 = vld [vmem:[%s11717_s1 + $0x58] sm:$0xff]  }
  0xaa   : > { %6493 = vmatprep.subr.bf16.mxu1 %v7905_v61  ;;  %v7976_v61 = vld [vmem:[%s8747_s27 + $0x194] ss:$100 sps:$4 sm:$0xff]  }
  0xac   : > { %6466 = vmatpush3.bf16.msra.mxu0 %v7906_v62  ;;  %v8203_v62 = vld [vmem:[%s11717_s1 + $0x18] sm:$0xff]  }
  0xad   : > { %6494 = vmatpush3.bf16.msra.mxu1 %v7907_v63  ;;  %6507 = vmatprep.subr.bf16.mxu0 %v7914_v4  ;;  %v8204_v63 = vld [vmem:[%s11717_s1 + $0x60] sm:$0xff]   ;;  %v8207_v4 = vld [vmem:[%s11717_s1 + $0x28] sm:$0xff]  }
  0xae   : > { %6535 = vmatprep.subr.bf16.mxu1 %v7915_v5  ;;  %v8208_v5 = vld [vmem:[%s11717_s1 + $0x70] sm:$0xff]  }
  0xaf   : > { %2501 = vmatmul.mubr.bf16.vlgmr.msra.gmra.mrb[32].mxu0 %v7908_v0  ;;  %v7969_v0 = vld [vmem:[%s11717_s1 + $0x628] sm:$0xff]  }
  0xb0   : > { %2550 = vmatmul.mubr.bf16.vlgmr.msra.gmra.mrb[32].mxu1 %v7911_v2  ;;  %6508 = vmatpush3.bf16.msra.mxu0 %v7916_v6  ;;  %v8206_v2 = vld [vmem:[%s11717_s1 + $0x68] sm:$0xff]   ;;  %v7971_v6 = vld [vmem:[%s11717_s1 + $0x638] sm:$0xff]  }
  0xb1   : > { %6536 = vmatpush3.bf16.msra.mxu1 %v7917_v7  ;;  %6509 = vmatprep.subr.bf16.mxu0 %v7918_v8 }
  0xb2   : > { %6537 = vmatprep.subr.bf16.mxu1 %v7919_v9  ;;  %2508 = vmatprep.mubr.bf16.mxu0 %v7922_v12 }
  0xb3   : > { %2557 = vmatprep.mubr.bf16.mxu1 %v7927_v16 }
  0xb4   : > { %6510 = vmatpush3.bf16.msra.mxu0 %v7920_v10  ;;  %v8209_v10 = vld [vmem:[%s11717_s1 + $0x30] sm:$0xff]  }
  0xb5   : > { %6538 = vmatpush3.bf16.msra.mxu1 %v7921_v11  ;;  %6511 = vmatprep.subr.bf16.mxu0 %v7925_v14  ;;  %v8210_v14 = vld [vmem:[%s11717_s1 + $0x78] sm:$0xff]  }
  0xb6   : > { %6539 = vmatprep.subr.bf16.mxu1 %v7926_v15 }
  0xb7   : > { %2509 = vmatmul.mubr.bf16.gmra.mrb[36].mxu0 %v7924_v13 }
  0xb8   : > { %6512 = vmatpush3.bf16.msra.mxu0 %v7929_v17  ;;  %2558 = vmatmul.mubr.bf16.gmra.mrb[36].mxu1 %v7931_v19 }
  0xb9   : > { %6540 = vmatpush3.bf16.msra.mxu1 %v7930_v18  ;;  %6513 = vmatprep.subr.bf16.mxu0 %v7932_v20  ;;  %v7973_v20 = vld [vmem:[%s8747_s27 + $0x128] ss:$100 sps:$4 sm:$0x1f]  }
  0xba   : > { %6541 = vmatprep.subr.bf16.mxu1 %v7933_v21  ;;  %2598 = vmatprep.mubr.bf16.mxu0 %v7954_v41  ;;  %v7974_v21 = vld [vmem:[%s8747_s27 + $0x190] ss:$100 sps:$4 sm:$0xff]  }
  0xbb   : > { %2647 = vmatprep.mubr.bf16.mxu1 %v7957_v43  ;;  %v8223_v41 = vld [vmem:[%s11717_s1 + $0x110] sm:$0xff]   ;;  %v8225_v43 = vld [vmem:[%s11717_s1 + $0x158] sm:$0xff]  }
  0xbc   : > { %6514 = vmatpush3.bf16.msra.mxu0 %v7934_v22 }
  0xbd   : > { %6542 = vmatpush3.bf16.msra.mxu1 %v7935_v23  ;;  %6515 = vmatprep.subr.bf16.mxu0 %v7936_v24  ;;  %v8211_v24 = vld [vmem:[%s11717_s1 + $0x38] sm:$0xff]  }
  0xbe   : > { %6543 = vmatprep.subr.bf16.mxu1 %v7937_v25  ;;  %v8212_v25 = vld [vmem:[%s11717_s1 + $0xc0] sm:$0xff]  }
  0xc0   : > { %6516 = vmatpush3.bf16.msra.mxu0 %v7938_v26  ;;  %v8213_v26 = vld [vmem:[%s11717_s1 + $0x140] sm:$0xff]  }
  0xc1   : > { %6544 = vmatpush3.bf16.msra.mxu1 %v7939_v27  ;;  %6517 = vmatprep.subr.bf16.mxu0 %v7940_v28  ;;  %v7977_v28 = vld [vmem:[%s8747_s27 + $0x25c] ss:$100 sps:$4 sm:$0x1f]  }
  0xc2   : > { %6545 = vmatprep.subr.bf16.mxu1 %v7941_v29  ;;  %v7982_v29 = vld [vmem:[%s8747_s27 + $0x19c] ss:$100 sps:$4 sm:$0xff]  }
  0xc4   : > { %6518 = vmatpush3.bf16.msra.mxu0 %v7942_v30  ;;  %v8214_v30 = vld [vmem:[%s11717_s1 + $0x80] sm:$0xff]  }
  0xc5   : > { %6546 = vmatpush3.bf16.msra.mxu1 %v7943_v31  ;;  %6519 = vmatprep.subr.bf16.mxu0 %v7944_v32  ;;  %v8215_v31 = vld [vmem:[%s11717_s1 + $0x100] sm:$0xff]   ;;  %v8216_v32 = vld [vmem:[%s11717_s1 + $0xc8] sm:$0xff]  }
  0xc6   : > { %6547 = vmatprep.subr.bf16.mxu1 %v7945_v33  ;;  %v8217_v33 = vld [vmem:[%s11717_s1 + $0x148] sm:$0xff]  }
  0xc8   : > { %6520 = vmatpush3.bf16.msra.mxu0 %v7946_v34  ;;  %v7979_v34 = vld [vmem:[%s8747_s27 + $0x258] ss:$100 sps:$4 sm:$0x1f]  }
  0xc9   : > { %6548 = vmatpush3.bf16.msra.mxu1 %v7947_v35  ;;  %6521 = vmatprep.subr.bf16.mxu0 %v7948_v36  ;;  %v8218_v35 = vld [vmem:[%s11717_s1 + $0x88] sm:$0xff]  }
  0xca   : > { %6549 = vmatprep.subr.bf16.mxu1 %v7949_v37  ;;  %v8219_v36 = vld [vmem:[%s11717_s1 + $0x108] sm:$0xff]   ;;  %v8220_v37 = vld [vmem:[%s11717_s1 + $0xd0] sm:$0xff]  }
  0xcc   : > { %6522 = vmatpush3.bf16.msra.mxu0 %v7950_v38  ;;  %v8221_v38 = vld [vmem:[%s11717_s1 + $0x150] sm:$0xff]  }
  0xcd   : > { %6550 = vmatpush3.bf16.msra.mxu1 %v7951_v39  ;;  %7611 = vmatprep.subr.bf16.mxu0 %v7958_v44  ;;  %v7985_v39 = vld [vmem:[%s8747_s27 + $0x1a4] ss:$100 sps:$4 sm:$0xff]  }
  0xce   : > { %6573 = vmatprep.subr.bf16.mxu1 %v8196_v45  ;;  %v8227_v45 = vld [vmem:[%s11717_s1 + $0x118] sm:$0xff]  }
  0xcf   : > { %2599 = vmatmul.mubr.bf16.vlgmr.msra.gmra.mrb[40].mxu0 %v7952_v40  ;;  %v8222_v40 = vld [vmem:[%s11717_s1 + $0x90] sm:$0xff]  }
  0xd0   : > { %2648 = vmatmul.mubr.bf16.vlgmr.msra.gmra.mrb[40].mxu1 %v7955_v42  ;;  %7612 = vmatpush3.bf16.msra.mxu0 %v7958_v44  ;;  %v8224_v42 = vld [vmem:[%s11717_s1 + $0xd8] sm:$0xff]  }
  0xd1   : > { %6574 = vmatpush3.bf16.msra.mxu1 %v8197_v48  ;;  %7613 = vmatprep.subr.bf16.mxu0 %v7959_v46  ;;  %v8226_v44 = vld [vmem:[%s11717_s1 + $0x98] sm:$0xff]   ;;  %v8230_v48 = vld [vmem:[%s11717_s1 + $0xa0] sm:$0xff]  }
  0xd2   : > { %6575 = vmatprep.subr.bf16.mxu1 %v8198_v51  ;;  %2606 = vmatprep.mubr.bf16.mxu0 %v7960_v47  ;;  %v8229_v47 = vld [vmem:[%s11717_s1 + $0x160] sm:$0xff]   ;;  %v8232_v51 = vld [vmem:[%s11717_s1 + $0xe8] sm:$0xff]  }
  0xd3   : > { %2655 = vmatprep.mubr.bf16.mxu1 %v7964_v52  ;;  %v8233_v52 = vld [vmem:[%s11717_s1 + $0x168] sm:$0xff]  }
  0xd4   : > { %7614 = vmatpush3.bf16.msra.mxu0 %v7959_v46  ;;  %v8228_v46 = vld [vmem:[%s11717_s1 + $0xe0] sm:$0xff]  }
  0xd5   : > { %6576 = vmatpush3.bf16.msra.mxu1 %v8199_v54  ;;  %7615 = vmatprep.subr.bf16.mxu0 %v7963_v50 }
  0xd6   : > { %6577 = vmatprep.subr.bf16.mxu1 %v8200_v55 }
  0xd7   : > { %2607 = vmatmul.mubr.bf16.gmra.mrb[44].mxu0 %v7962_v49  ;;  %v8231_v49 = vld [vmem:[%s11717_s1 + $0x120] sm:$0xff]  }
  0xd8   : > { %2656 = vmatmul.mubr.bf16.gmra.mrb[44].mxu1 %v7966_v53  ;;  %7616 = vmatpush3.bf16.msra.mxu0 %v7963_v50 }
  0xd9   : > { %6578 = vmatpush3.bf16.msra.mxu1 %v8201_v58  ;;  %7617 = vmatprep.subr.bf16.mxu0 %v7967_v56 }
  0xda   : > { %6579 = vmatprep.subr.bf16.mxu1 %v8202_v60  ;;  %7627 = vmatprep.mubr.bf16.mxu0 %v7972_v59 }
  0xdb   : > { %3050 = vmatprep.mubr.bf16.mxu1 %v7976_v61  ;;  %v8234_v61 = vld [vmem:[%s11717_s1 + $0xa8] sm:$0xff]  }
  0xdc   : > { %7618 = vmatpush3.bf16.msra.mxu0 %v7967_v56 }
  0xdd   : > { %6580 = vmatpush3.bf16.msra.mxu1 %v8203_v62  ;;  %7619 = vmatprep.subr.bf16.mxu0 %v7968_v57  ;;  %v8235_v62 = vld [vmem:[%s11717_s1 + $0x128] sm:$0xff]  }
  0xde   : > { %6581 = vmatprep.subr.bf16.mxu1 %v8204_v63 }
  0xe0   : > { %7620 = vmatpush3.bf16.msra.mxu0 %v7968_v57 }
  0xe1   : > { %6582 = vmatpush3.bf16.msra.mxu1 %v8205_v1  ;;  %7621 = vmatprep.subr.bf16.mxu0 %v7969_v0  ;;  %v8236_v1 = vld [vmem:[%s11717_s1 + $0xf0] sm:$0xff]  }
  0xe2   : > { %6583 = vmatprep.subr.bf16.mxu1 %v8206_v2  ;;  %v8237_v2 = vld [vmem:[%s11717_s1 + $0x170] sm:$0xff]  }
  0xe4   : > { %7622 = vmatpush3.bf16.msra.mxu0 %v7969_v0 }
  0xe5   : > { %6584 = vmatpush3.bf16.msra.mxu1 %v8207_v4  ;;  %7623 = vmatprep.subr.bf16.mxu0 %v7970_v3 }
  0xe6   : > { %6585 = vmatprep.subr.bf16.mxu1 %v8208_v5 }
  0xe8   : > { %7624 = vmatpush3.bf16.msra.mxu0 %v7970_v3 }
  0xe9   : > { %6586 = vmatpush3.bf16.msra.mxu1 %v8209_v10  ;;  %7625 = vmatprep.subr.bf16.mxu0 %v7971_v6  ;;  %v7980_v10 = vld [vmem:[%s8747_s27 + $0x198] ss:$100 sps:$4 sm:$0xff]  }
  0xea   : > { %6587 = vmatprep.subr.bf16.mxu1 %v8210_v14  ;;  %v8243_v14 = vld [vmem:[%s11717_s1 + $0x138] sm:$0xff]  }
  0xec   : > { %7626 = vmatpush3.bf16.msra.mxu0 %v7971_v6  ;;  %v8238_v6 = vld [vmem:[%s11717_s1 + $0xb0] sm:$0xff]  }
  0xed   : > { %6588 = vmatpush3.bf16.msra.mxu1 %v8211_v24  ;;  %6601 = vmatprep.subr.bf16.mxu0 %v8212_v25 }
  0xee   : > { %6629 = vmatprep.subr.bf16.mxu1 %v8213_v26 }
  0xef   : > { %7628 = vmatmul.mubr.bf16.vlgmr.msra.gmra.mrb[48].mxu0 %v7973_v20  ;;  %v7989_v20 = vld [vmem:[%s8747_s27 + $0x26c] ss:$100 sps:$4 sm:$0x1f]  }
  0xf0   : > { %3051 = vmatmul.mubr.bf16.vlgmr.msra.gmra.mrb[48].mxu1 %v7974_v21  ;;  %6602 = vmatpush3.bf16.msra.mxu0 %v8214_v30 }
  0xf1   : > { %6630 = vmatpush3.bf16.msra.mxu1 %v8215_v31  ;;  %6603 = vmatprep.subr.bf16.mxu0 %v8216_v32  ;;  %v9487_v32 = vld [vmem:[%s11717_s1 + $0x180] sm:$0xff]  }
  0xf2   : > { %6631 = vmatprep.subr.bf16.mxu1 %v8217_v33  ;;  %3058 = vmatprep.mubr.bf16.mxu1 %v7977_v28  ;;  %v8247_v33 = vld [vmem:[%s11717_s1 + $0x200] sm:$0xff]  }
  0xf3   : > { %3099 = vmatprep.mubr.bf16.mxu0 %v7982_v29 }
  0xf4   : > { %6604 = vmatpush3.bf16.msra.mxu0 %v8218_v35  ;;  %v8249_v35 = vld [vmem:[%s11717_s1 + $0x248] sm:$0xff]  }
  0xf5   : > { %6632 = vmatpush3.bf16.msra.mxu1 %v8219_v36  ;;  %6605 = vmatprep.subr.bf16.mxu0 %v8220_v37  ;;  %v7988_v36 = vld [vmem:[%s8747_s27 + $0x260] ss:$100 sps:$4 sm:$0x1f]   ;;  %v7991_v37 = vld [vmem:[%s8747_s27 + $0x268] ss:$100 sps:$4 sm:$0x1f]  }
  0xf6   : > { %6633 = vmatprep.subr.bf16.mxu1 %v8221_v38 }
  0xf8   : > { %3059 = vmatmul.mubr.bf16.gmra.mrb[52].mxu1 %v7979_v34  ;;  %6606 = vmatpush3.bf16.msra.mxu0 %v8222_v40 }
  0xf9   : > { %6634 = vmatpush3.bf16.msra.mxu1 %v8223_v41  ;;  %6607 = vmatprep.subr.bf16.mxu0 %v8224_v42  ;;  %v9512_v41 = vld [vmem:[%s11717_s1 + $0x188] sm:$0xff]  }
  0xfa   : > { %6635 = vmatprep.subr.bf16.mxu1 %v8225_v43  ;;  %3148 = vmatprep.mubr.bf16.mxu1 %v7985_v39  ;;  %v8251_v42 = vld [vmem:[%s11717_s1 + $0x208] sm:$0xff]   ;;  %v9522_v43 = vld [vmem:[%s11717_s1 + $0x1d0] sm:$0xff]  }
  0xfc   : > { %6608 = vmatpush3.bf16.msra.mxu0 %v8226_v44  ;;  %v8253_v44 = vld [vmem:[%s11717_s1 + $0x250] sm:$0xff]  }
  0xfd   : > { %6636 = vmatpush3.bf16.msra.mxu1 %v8227_v45  ;;  %6609 = vmatprep.subr.bf16.mxu0 %v8228_v46 }
  0xfe   : > { %6637 = vmatprep.subr.bf16.mxu1 %v8229_v47  ;;  %v7997_v47 = vld [vmem:[%s8747_s27 + $0x1b4] ss:$100 sps:$4 sm:$0xff]  }
 0x100   : > { %6610 = vmatpush3.bf16.msra.mxu0 %v8230_v48 }
 0x101   : > { %6638 = vmatpush3.bf16.msra.mxu1 %v8231_v49  ;;  %6611 = vmatprep.subr.bf16.mxu0 %v8232_v51  ;;  %v8255_v51 = vld [vmem:[%s11717_s1 + $0x210] sm:$0xff]  }
 0x102   : > { %v6243_v7 = vpop.f32.mrb[0].mxu0  ;;  %6639 = vmatprep.subr.bf16.mxu1 %v8233_v52 }
 0x103   : > { %v6271_v8 = vpop.f32.mrb[0].mxu1  ;;  %v6244_v9 = vpop.f32.mrb[1].mxu0 }
 0x104   : > { %v6245_v11 = vadd.f32 %v6244_v9, %v6243_v7  ;;  %v6272_v12 = vpop.f32.mrb[1].mxu1  ;;  %v6246_v13 = vpop.f32.mrb[2].mxu0  ;;  %6612 = vmatpush3.bf16.msra.mxu0 %v8234_v61  ;;  %v8239_v7 = vld [vmem:[%s11717_s1 + $0x130] sm:$0xff]   ;;  %v8241_v9 = vld [vmem:[%s11717_s1 + $0x178] sm:$0xff]  }
 0x105   : > { %v6273_v15 = vadd.f32 %v6272_v12, %v6271_v8  ;;  %v6274_v16 = vpop.f32.mrb[2].mxu1  ;;  %v6247_v17 = vpop.f32.mrb[3].mxu0  ;;  %6640 = vmatpush3.bf16.msra.mxu1 %v8235_v62  ;;  %6613 = vmatprep.subr.bf16.mxu0 %v8236_v1  ;;  %v8240_v8 = vld [vmem:[%s11717_s1 + $0xf8] sm:$0xff]   ;;  %v9561_v62 = vld [vmem:[%s11717_s1 + $0x1e0] sm:$0xff]  }
 0x106   : > { %v6248_v18 = vadd.f32 %v6247_v17, %v6246_v13  ;;  %v6275_v19 = vpop.f32.mrb[3].mxu1  ;;  %6641 = vmatprep.subr.bf16.mxu1 %v8237_v2  ;;  %v9466_v13 = vld [vmem:[%s11717_s1 + $0xb8] sm:$0xff]  }
 0x107   : > { %v9356_v22 = vadd.f32 %v6273_v15, %v6245_v11  ;;  %v6276_v23 = vadd.f32 %v6275_v19, %v6274_v16  ;;  %v7983_v11 = vld [vmem:[%s8747_s27 + $0x1a0] ss:$100 sps:$4 sm:$0xff]  }
 0x108   : > { %6614 = vmatpush3.bf16.msra.mxu0 %v8238_v6  ;;  %v7986_v15 = vld [vmem:[%s8747_s27 + $0x264] ss:$100 sps:$4 sm:$0x1f]  }
 0x109   : > { %v9367_v27 = vadd.f32 %v6276_v23, %v6248_v18  ;;  %6642 = vmatpush3.bf16.msra.mxu1 %v8239_v7  ;;  %6615 = vmatprep.subr.bf16.mxu0 %v8240_v8  ;;  %v9476_v18 = vld [vmem:[%s11717_s1 + $0x1c0] sm:$0xff]   ;;  %v9581_v7 = vld [vmem:[%s11717_s1 + $0x1e8] sm:$0xff]  }
 0x10a   : > { %v6249_v50 = vpop.f32.mrb[4].mxu0  ;;  %6643 = vmatprep.subr.bf16.mxu1 %v8241_v9  ;;  %v8245_v19 = vld [vmem:[%s11717_s1 + $0x240] sm:$0xff]   ;;  %v8265_v8 = vld [vmem:[%s11717_s1 + $0x268] sm:$0xff]  }
 0x10b   : > { %v6277_v53 = vpop.f32.mrb[4].mxu1  ;;  %v6250_v54 = vpop.f32.mrb[5].mxu0  ;;  %v8263_v6 = vld [vmem:[%s11717_s1 + $0x220] sm:$0xff]  }
 0x10c   : > { %v6251_v55 = vadd.f32 %v6250_v54, %v6249_v50  ;;  %v6278_v56 = vpop.f32.mrb[5].mxu1  ;;  %v6252_v57 = vpop.f32.mrb[6].mxu0  ;;  %6616 = vmatpush3.bf16.msra.mxu0 %v9466_v13  ;;  %v9532_v50 = vld [vmem:[%s11717_s1 + $0x190] sm:$0xff]   ;;  %v8257_v54 = vld [vmem:[%s11717_s1 + $0x258] sm:$0xff]  }
 0x10d   : > { %v6279_v58 = vadd.f32 %v6278_v56, %v6277_v53  ;;  %v6280_v59 = vpop.f32.mrb[6].mxu1  ;;  %v6253_v60 = vpop.f32.mrb[7].mxu0  ;;  %6644 = vmatpush3.bf16.msra.mxu1 %v8243_v14  ;;  %6657 = vmatprep.subr.bf16.mxu0 %v9476_v18  ;;  %v9541_v53 = vld [vmem:[%s11717_s1 + $0x1d8] sm:$0xff]   ;;  %v8269_v14 = vld [vmem:[%s11717_s1 + $0x270] sm:$0xff]  }
 0x10e   : > { %v6254_v63 = vadd.f32 %v6253_v60, %v6252_v57  ;;  %v6281_v0 = vpop.f32.mrb[7].mxu1  ;;  %6685 = vmatprep.subr.bf16.mxu1 %v8245_v19  ;;  %v8259_v60 = vld [vmem:[%s11717_s1 + $0x218] sm:$0xff]  }
 0x10f   : > { %v9445_v3 = vadd.f32 %v6279_v58, %v6251_v55  ;;  %v6282_v4 = vadd.f32 %v6281_v0, %v6280_v59  ;;  %3100 = vmatmul.mubr.bf16.vlgmr.msra.gmra.mrb[52].mxu0 %v7980_v10  ;;  %v9552_v59 = vld [vmem:[%s11717_s1 + $0x198] sm:$0xff]   ;;  %v9592_v10 = vld [vmem:[%s11717_s1 + $0x1a8] sm:$0xff]  }
 0x110   : > { %3149 = vmatmul.mubr.bf16.vlgmr.msra.gmra.mrb[56].mxu1 %v7983_v11  ;;  %6658 = vmatpush3.bf16.msra.mxu0 %v9487_v32  ;;  %v8267_v11 = vld [vmem:[%s11717_s1 + $0x228] sm:$0xff]   ;;  %v8273_v19 = vld [vmem:[%s11717_s1 + $0x278] sm:$0xff]  }
 0x111   : > { %v9447_v5 = vadd.f32 %v6282_v4, %v6254_v63  ;;  %6686 = vmatpush3.bf16.msra.mxu1 %v8247_v33  ;;  %3107 = vmatprep.mubr.bf16.mxu0 %v7986_v15  ;;  %v8261_v63 = vld [vmem:[%s11717_s1 + $0x260] sm:$0xff]   ;;  %v9610_v15 = vld [vmem:[%s11717_s1 + $0x1b0] sm:$0xff]  }
 0x112   : > { %6687 = vmatprep.subr.bf16.mxu1 %v8249_v35  ;;  %3156 = vmatprep.mubr.bf16.mxu1 %v7989_v20  ;;  %v7992_v20 = vld [vmem:[%s8747_s27 + $0x1a8] ss:$100 sps:$4 sm:$0xff]  }
 0x113   : > { %v8281_v35 = vld [vmem:[%s11717_s1 + $0x348] sm:$0xff]  }
 0x115   : > { %6688 = vmatpush3.bf16.msra.mxu1 %v8251_v42 }
 0x116   : > { %6689 = vmatprep.subr.bf16.mxu1 %v8253_v44  ;;  %v8003_v44 = vld [vmem:[%s8747_s27 + $0x278] ss:$100 sps:$4 sm:$0x1f]  }
 0x117   : > { %3108 = vmatmul.mubr.bf16.gmra.mrb[56].mxu0 %v7988_v36 }
 0x118   : > { %3157 = vmatmul.mubr.bf16.gmra.mrb[60].mxu1 %v7991_v37  ;;  %v8000_v37 = vld [vmem:[%s8747_s27 + $0x270] ss:$100 sps:$4 sm:$0x1f]  }
 0x119   : > { %6690 = vmatpush3.bf16.msra.mxu1 %v8255_v51  ;;  %3246 = vmatprep.mubr.bf16.mxu1 %v7997_v47  ;;  %v9670_v47 = vld [vmem:[%s11717_s1 + $0x288] sm:$0xff]  }
 0x11a   : > { %6691 = vmatprep.subr.bf16.mxu1 %v8257_v54 }
 0x11d   : > { %6692 = vmatpush3.bf16.msra.mxu1 %v8259_v60 }
 0x11e   : > { %6693 = vmatprep.subr.bf16.mxu1 %v8261_v63  ;;  %v8009_v63 = vld [vmem:[%s8747_s27 + $0x1c4] ss:$100 sps:$4 sm:$0xff]  }
 0x121   : > { %6694 = vmatpush3.bf16.msra.mxu1 %v8263_v6 }
 0x122   : > { %v6299_v12 = vpop.f32.mrb[8].mxu0  ;;  %6695 = vmatprep.subr.bf16.mxu1 %v8265_v8  ;;  %v9714_v8 = vld [vmem:[%s11717_s1 + $0x298] sm:$0xff]  }
 0x123   : > { %v6300_v16 = vpop.f32.mrb[9].mxu0  ;;  %v6327_v17 = vpop.f32.mrb[8].mxu1 }
 0x124   : > { %v6301_v21 = vadd.f32 %v6300_v16, %v6299_v12  ;;  %v6302_v23 = vpop.f32.mrb[10].mxu0  ;;  %v6328_v24 = vpop.f32.mrb[9].mxu1  ;;  %v9601_v12 = vld [vmem:[%s11717_s1 + $0x1f0] sm:$0xff]  }
 0x125   : > { %v6303_v25 = vpop.f32.mrb[11].mxu0  ;;  %v6329_v26 = vadd.f32 %v6328_v24, %v6327_v17  ;;  %v6330_v28 = vpop.f32.mrb[10].mxu1  ;;  %6696 = vmatpush3.bf16.msra.mxu1 %v8267_v11  ;;  %v8271_v16 = vld [vmem:[%s11717_s1 + $0x230] sm:$0xff]   ;;  %v9619_v17 = vld [vmem:[%s11717_s1 + $0x1f8] sm:$0xff]  }
 0x126   : > { %v2209_v29 = vadd.f32 %v6301_v21, %v9356_v22  ;;  %v6304_v30 = vadd.f32 %v6303_v25, %v6302_v23  ;;  %v6331_v31 = vpop.f32.mrb[11].mxu1  ;;  %v9496_v22 = vld [vmem:[%s11717_s1 + $0x1c8] sm:$0xff]   ;;  %6697 = vmatprep.subr.bf16.mxu1 %v8269_v14  ;;  %v7995_v21 = vld [vmem:[%s8747_s27 + $0x1b0] ss:$100 sps:$4 sm:$0xff]   ;;  %v9630_v23 = vld [vmem:[%s11717_s1 + $0x1b8] sm:$0xff]  }
 0x127   : > { %v6332_v34 = vadd.f32 %v6331_v31, %v6330_v28  ;;  %6659 = vmatprep.subr.bf16.mxu0 %v9496_v22  ;;  %v8275_v24 = vld [vmem:[%s11717_s1 + $0x238] sm:$0xff]   ;;  %v9639_v25 = vld [vmem:[%s11717_s1 + $0x2c0] sm:$0xff]  }
 0x128   : > { %v2212_v38 = vadd.f32 %v6304_v30, %v9367_v27  ;;  %v9505_v39 = vadd.f32 %v6329_v26, %v2209_v29  ;;  %6660 = vmatpush3.bf16.msra.mxu0 %v9512_v41  ;;  %v7994_v27 = vld [vmem:[%s8747_s27 + $0x1ac] ss:$100 sps:$4 sm:$0xff]   ;;  %v8277_v26 = vld [vmem:[%s11717_s1 + $0x340] sm:$0xff]   ;;  %v7998_v28 = vld [vmem:[%s8747_s27 + $0x274] ss:$100 sps:$4 sm:$0x1f]  }
 0x129   : > { %6661 = vmatprep.subr.bf16.mxu0 %v9522_v43  ;;  %3197 = vmatprep.mubr.bf16.mxu0 %v7994_v27  ;;  %v8001_v29 = vld [vmem:[%s8747_s27 + $0x27c] ss:$100 sps:$4 sm:$0x1f]  }
 0x12a   : > { %v9507_v40 = vadd.f32 %v6332_v34, %v2212_v38  ;;  %v6305_v45 = vpop.f32.mrb[12].mxu0  ;;  %6698 = vmatpush3.bf16.msra.mxu1 %v8271_v16  ;;  %v9650_v30 = vld [vmem:[%s11717_s1 + $0x280] sm:$0xff]   ;;  %v9659_v34 = vld [vmem:[%s11717_s1 + $0x2c8] sm:$0xff]   ;;  %v8291_v11 = vld [vmem:[%s11717_s1 + $0x318] sm:$0xff]  }
 0x12b   : > { %v6306_v46 = vpop.f32.mrb[13].mxu0  ;;  %v6333_v57 = vpop.f32.mrb[12].mxu1  ;;  %6699 = vmatprep.subr.bf16.mxu1 %v8273_v19  ;;  %v8279_v31 = vld [vmem:[%s11717_s1 + $0x300] sm:$0xff]  }
 0x12c   : > { %v6307_v48 = vadd.f32 %v6306_v46, %v6305_v45  ;;  %v6308_v49 = vpop.f32.mrb[14].mxu0  ;;  %6662 = vmatpush3.bf16.msra.mxu0 %v9532_v50  ;;  %v6334_v61 = vpop.f32.mrb[13].mxu1  ;;  %v9723_v16 = vld [vmem:[%s11717_s1 + $0x2e0] sm:$0xff]  }
 0x12d   : > { %v6309_v52 = vpop.f32.mrb[15].mxu0  ;;  %6663 = vmatprep.subr.bf16.mxu0 %v9541_v53  ;;  %v6335_v0 = vadd.f32 %v6334_v61, %v6333_v57  ;;  %v6336_v1 = vpop.f32.mrb[14].mxu1  ;;  %v8006_v61 = vld [vmem:[%s8747_s27 + $0x1bc] ss:$100 sps:$4 sm:$0xff]  }
 0x12e   : > { %v2217_v55 = vadd.f32 %v6307_v48, %v9445_v3  ;;  %v6310_v56 = vadd.f32 %v6309_v52, %v6308_v49  ;;  %v6337_v2 = vpop.f32.mrb[15].mxu1  ;;  %6700 = vmatpush3.bf16.msra.mxu1 %v8275_v24  ;;  %v8283_v48 = vld [vmem:[%s11717_s1 + $0x308] sm:$0xff]   ;;  %v8293_v19 = vld [vmem:[%s11717_s1 + $0x360] sm:$0xff]  }
 0x12f   : > { %v6338_v4 = vadd.f32 %v6337_v2, %v6336_v1  ;;  %6741 = vmatprep.subr.bf16.mxu1 %v8277_v26  ;;  %v8287_v1 = vld [vmem:[%s11717_s1 + $0x310] sm:$0xff]   ;;  %v9705_v2 = vld [vmem:[%s11717_s1 + $0x2d8] sm:$0xff]  }
 0x130   : > { %v2220_v58 = vadd.f32 %v6310_v56, %v9447_v5  ;;  %6664 = vmatpush3.bf16.msra.mxu0 %v9552_v59  ;;  %v9567_v3 = vadd.f32 %v6335_v0, %v2217_v55  ;;  %v9572_v5 = vld [vmem:[%s11717_s1 + $0x1a0] sm:$0xff]   ;;  %v9680_v55 = vld [vmem:[%s11717_s1 + $0x2d0] sm:$0xff]  }
 0x131   : > { %6665 = vmatprep.subr.bf16.mxu0 %v9561_v62  ;;  %3247 = vmatmul.mubr.bf16.vlgmr.msra.gmra.mrb[64].mxu1 %v7995_v21  ;;  %v8285_v56 = vld [vmem:[%s11717_s1 + $0x350] sm:$0xff]  }
 0x132   : > { %v9587_v9 = vadd.f32 %v6338_v4, %v2220_v58  ;;  %6742 = vmatpush3.bf16.msra.mxu1 %v8279_v31  ;;  %3254 = vmatprep.mubr.bf16.mxu1 %v8001_v29  ;;  %v9694_v0 = vld [vmem:[%s11717_s1 + $0x290] sm:$0xff]   ;;  %v8289_v4 = vld [vmem:[%s11717_s1 + $0x358] sm:$0xff]   ;;  %v9733_v29 = vld [vmem:[%s11717_s1 + $0x2a0] sm:$0xff]  }
 0x133   : > { %6743 = vmatprep.subr.bf16.mxu1 %v8281_v35  ;;  %v8295_v31 = vld [vmem:[%s11717_s1 + $0x320] sm:$0xff]   ;;  %v9742_v35 = vld [vmem:[%s11717_s1 + $0x2e8] sm:$0xff]  }
 0x134   : > { %6666 = vmatpush3.bf16.msra.mxu0 %v9572_v5 }
 0x135   : > { %6667 = vmatprep.subr.bf16.mxu0 %v9581_v7 }
 0x136   : > { %6744 = vmatpush3.bf16.msra.mxu1 %v8283_v48  ;;  %v9763_v48 = vld [vmem:[%s11717_s1 + $0x2f0] sm:$0xff]  }
 0x137   : > { %6745 = vmatprep.subr.bf16.mxu1 %v8285_v56  ;;  %v9783_v56 = vld [vmem:[%s11717_s1 + $0x2f8] sm:$0xff]  }
 0x138   : > { %6668 = vmatpush3.bf16.msra.mxu0 %v9592_v10 }
 0x139   : > { %6669 = vmatprep.subr.bf16.mxu0 %v9601_v12  ;;  %3255 = vmatmul.mubr.bf16.gmra.mrb[68].mxu1 %v8003_v44  ;;  %v9752_v44 = vld [vmem:[%s11717_s1 + $0x2a8] sm:$0xff]  }
 0x13a   : > { %6746 = vmatpush3.bf16.msra.mxu1 %v8287_v1  ;;  %3344 = vmatprep.mubr.bf16.mxu1 %v8009_v63  ;;  %v8307_v63 = vld [vmem:[%s11717_s1 + $0x338] sm:$0xff]   ;;  %v9803_v1 = vld [vmem:[%s11717_s1 + $0x3c0] sm:$0xff]  }
 0x13b   : > { %6747 = vmatprep.subr.bf16.mxu1 %v8289_v4  ;;  %v8309_v4 = vld [vmem:[%s11717_s1 + $0x440] sm:$0xff]  }
 0x13c   : > { %6670 = vmatpush3.bf16.msra.mxu0 %v9610_v15 }
 0x13d   : > { %6671 = vmatprep.subr.bf16.mxu0 %v9619_v17 }
 0x13e   : > { %6748 = vmatpush3.bf16.msra.mxu1 %v8291_v11  ;;  %v8013_v11 = vld [vmem:[%s8747_s27 + $0x28c] ss:$100 sps:$4 sm:$0x1f]  }
 0x13f   : > { %6749 = vmatprep.subr.bf16.mxu1 %v8293_v19  ;;  %v8311_v19 = vld [vmem:[%s11717_s1 + $0x400] sm:$0xff]  }
 0x140   : > { %6672 = vmatpush3.bf16.msra.mxu0 %v9630_v23 }
 0x141   : > { %6713 = vmatprep.subr.bf16.mxu0 %v9639_v25 }
 0x142   : > { %v6355_v33 = vpop.f32.mrb[16].mxu0  ;;  %6750 = vmatpush3.bf16.msra.mxu1 %v8295_v31  ;;  %v8315_v31 = vld [vmem:[%s11717_s1 + $0x408] sm:$0xff]  }
 0x143   : > { %3198 = vmatmul.mubr.bf16.vlgmr.msra.gmra.mrb[60].mxu0 %v7992_v20  ;;  %v6356_v36 = vpop.f32.mrb[17].mxu0  ;;  %v6383_v27 = vpop.f32.mrb[16].mxu1 }
 0x144   : > { %6714 = vmatpush3.bf16.msra.mxu0 %v9650_v30  ;;  %3205 = vmatprep.mubr.bf16.mxu0 %v7998_v28  ;;  %v6357_v38 = vadd.f32 %v6356_v36, %v6355_v33  ;;  %v6358_v42 = vpop.f32.mrb[18].mxu0  ;;  %v6384_v46 = vpop.f32.mrb[17].mxu1 }
 0x145   : > { %6715 = vmatprep.subr.bf16.mxu0 %v9659_v34  ;;  %v6359_v45 = vpop.f32.mrb[19].mxu0  ;;  %v6385_v52 = vadd.f32 %v6384_v46, %v6383_v27  ;;  %v6386_v54 = vpop.f32.mrb[18].mxu1 }
 0x146   : > { %v2307_v49 = vadd.f32 %v6357_v38, %v9505_v39  ;;  %v6360_v51 = vadd.f32 %v6359_v45, %v6358_v42  ;;  %v6387_v57 = vpop.f32.mrb[19].mxu1  ;;  %v8299_v45 = vld [vmem:[%s11717_s1 + $0x328] sm:$0xff]  }
 0x147   : > { %v6388_v39 = vadd.f32 %v6387_v57, %v6386_v54  ;;  %v8303_v54 = vld [vmem:[%s11717_s1 + $0x330] sm:$0xff]   ;;  %v8305_v57 = vld [vmem:[%s11717_s1 + $0x378] sm:$0xff]  }
 0x148   : > { %6716 = vmatpush3.bf16.msra.mxu0 %v9670_v47  ;;  %v2310_v58 = vadd.f32 %v6360_v51, %v9507_v40  ;;  %v9687_v60 = vadd.f32 %v6385_v52, %v2307_v49  ;;  %v8301_v49 = vld [vmem:[%s11717_s1 + $0x370] sm:$0xff]  }
 0x149   : > { %6717 = vmatprep.subr.bf16.mxu0 %v9680_v55  ;;  %v9774_v52 = vld [vmem:[%s11717_s1 + $0x2b0] sm:$0xff]  }
 0x14a   : > { %v9700_v40 = vadd.f32 %v6388_v39, %v2310_v58  ;;  %v6361_v6 = vpop.f32.mrb[20].mxu0  ;;  %v8004_v58 = vld [vmem:[%s8747_s27 + $0x1b8] ss:$100 sps:$4 sm:$0xff]   ;;  %v8007_v39 = vld [vmem:[%s8747_s27 + $0x1c0] ss:$100 sps:$4 sm:$0xff]  }
 0x14b   : > { %3206 = vmatmul.mubr.bf16.gmra.mrb[64].mxu0 %v8000_v37  ;;  %v6362_v14 = vpop.f32.mrb[21].mxu0  ;;  %v6389_v33 = vpop.f32.mrb[20].mxu1 }
 0x14c   : > { %6718 = vmatpush3.bf16.msra.mxu0 %v9694_v0  ;;  %3295 = vmatprep.mubr.bf16.mxu0 %v8006_v61  ;;  %v6363_v20 = vadd.f32 %v6362_v14, %v6361_v6  ;;  %v6364_v21 = vpop.f32.mrb[22].mxu0  ;;  %v6390_v37 = vpop.f32.mrb[21].mxu1  ;;  %v9794_v61 = vld [vmem:[%s11717_s1 + $0x2b8] sm:$0xff]   ;;  %v8010_v6 = vld [vmem:[%s8747_s27 + $0x284] ss:$100 sps:$4 sm:$0x1f]  }
 0x14d   : > { %6719 = vmatprep.subr.bf16.mxu0 %v9705_v2  ;;  %v6365_v24 = vpop.f32.mrb[23].mxu0  ;;  %v6391_v38 = vadd.f32 %v6390_v37, %v6389_v33  ;;  %v6392_v42 = vpop.f32.mrb[22].mxu1  ;;  %v9814_v14 = vld [vmem:[%s11717_s1 + $0x380] sm:$0xff]   ;;  %v9843_v33 = vld [vmem:[%s11717_s1 + $0x3d0] sm:$0xff]  }
 0x14e   : > { %v2315_v26 = vadd.f32 %v6363_v20, %v9567_v3  ;;  %v6366_v28 = vadd.f32 %v6365_v24, %v6364_v21  ;;  %v8297_v3 = vld [vmem:[%s11717_s1 + $0x368] sm:$0xff]   ;;  %v6393_v27 = vpop.f32.mrb[23].mxu1  ;;  %v8012_v24 = vld [vmem:[%s8747_s27 + $0x280] ss:$100 sps:$4 sm:$0x1f]  }
 0x14f   : > { %6751 = vmatprep.subr.bf16.mxu1 %v8297_v3  ;;  %v9823_v20 = vld [vmem:[%s11717_s1 + $0x3c8] sm:$0xff]   ;;  %v8317_v3 = vld [vmem:[%s11717_s1 + $0x450] sm:$0xff]  }
 0x150   : > { %6720 = vmatpush3.bf16.msra.mxu0 %v9714_v8  ;;  %v2318_v36 = vadd.f32 %v6366_v28, %v9587_v9  ;;  %6752 = vmatpush3.bf16.msra.mxu1 %v8299_v45  ;;  %v9758_v46 = vadd.f32 %v6391_v38, %v2315_v26  ;;  %v6394_v9 = vadd.f32 %v6393_v27, %v6392_v42  ;;  %v8313_v21 = vld [vmem:[%s11717_s1 + $0x448] sm:$0xff]   ;;  %v8021_v38 = vld [vmem:[%s8747_s27 + $0x1d4] ss:$100 sps:$4 sm:$0xff]  }
 0x151   : > { %6721 = vmatprep.subr.bf16.mxu0 %v9723_v16  ;;  %6753 = vmatprep.subr.bf16.mxu1 %v8301_v49  ;;  %v8015_v26 = vld [vmem:[%s8747_s27 + $0x288] ss:$100 sps:$4 sm:$0x1f]   ;;  %v9854_v45 = vld [vmem:[%s11717_s1 + $0x390] sm:$0xff]  }
 0x152   : > { %v9769_v51 = vadd.f32 %v6394_v9, %v2318_v36  ;;  %v9834_v28 = vld [vmem:[%s11717_s1 + $0x388] sm:$0xff]   ;;  %v8319_v9 = vld [vmem:[%s11717_s1 + $0x410] sm:$0xff]  }
 0x153   : > { %v8018_v37 = vld [vmem:[%s8747_s27 + $0x1cc] ss:$100 sps:$4 sm:$0xff]  }
 0x154   : > { %6722 = vmatpush3.bf16.msra.mxu0 %v9733_v29  ;;  %6754 = vmatpush3.bf16.msra.mxu1 %v8303_v54 }
 0x155   : > { %6723 = vmatprep.subr.bf16.mxu0 %v9742_v35  ;;  %6755 = vmatprep.subr.bf16.mxu1 %v8305_v57 }
 0x158   : > { %6724 = vmatpush3.bf16.msra.mxu0 %v9752_v44  ;;  %6756 = vmatpush3.bf16.msra.mxu1 %v8307_v63 }
 0x159   : > { %6725 = vmatprep.subr.bf16.mxu0 %v9763_v48  ;;  %6797 = vmatprep.subr.bf16.mxu1 %v8309_v4 }
 0x15b   : > { %3345 = vmatmul.mubr.bf16.vlgmr.msra.gmra.mrb[72].mxu1 %v8007_v39  ;;  %v8321_v39 = vld [vmem:[%s11717_s1 + $0x458] sm:$0xff]  }
 0x15c   : > { %6726 = vmatpush3.bf16.msra.mxu0 %v9774_v52  ;;  %6798 = vmatpush3.bf16.msra.mxu1 %v8311_v19 }
 0x15d   : > { %6727 = vmatprep.subr.bf16.mxu0 %v9783_v56  ;;  %6799 = vmatprep.subr.bf16.mxu1 %v8313_v21 }
 0x15e   : > { %3352 = vmatprep.mubr.bf16.mxu1 %v8013_v11 }
 0x160   : > { %6728 = vmatpush3.bf16.msra.mxu0 %v9794_v61  ;;  %6800 = vmatpush3.bf16.msra.mxu1 %v8315_v31  ;;  %v8323_v31 = vld [vmem:[%s11717_s1 + $0x418] sm:$0xff]  }
 0x161   : > { %6769 = vmatprep.subr.bf16.mxu0 %v9803_v1  ;;  %6801 = vmatprep.subr.bf16.mxu1 %v8317_v3 }
 0x162   : > { %v6411_v36 = vpop.f32.mrb[24].mxu0 }
 0x163   : > { %3296 = vmatmul.mubr.bf16.vlgmr.msra.gmra.mrb[68].mxu0 %v8004_v58  ;;  %3353 = vmatmul.mubr.bf16.gmra.mrb[76].mxu1 %v8015_v26  ;;  %v6412_v42 = vpop.f32.mrb[25].mxu0  ;;  %v6439_v27 = vpop.f32.mrb[24].mxu1  ;;  %v9863_v58 = vld [vmem:[%s11717_s1 + $0x3d8] sm:$0xff]  }
 0x164   : > { %6770 = vmatpush3.bf16.msra.mxu0 %v9814_v14  ;;  %3303 = vmatprep.mubr.bf16.mxu0 %v8010_v6  ;;  %v6413_v49 = vadd.f32 %v6412_v42, %v6411_v36  ;;  %v6414_v54 = vpop.f32.mrb[26].mxu0  ;;  %v6440_v57 = vpop.f32.mrb[25].mxu1  ;;  %v9873_v26 = vld [vmem:[%s11717_s1 + $0x398] sm:$0xff]   ;;  %v9885_v36 = vld [vmem:[%s11717_s1 + $0x3e0] sm:$0xff]  }
 0x165   : > { %6771 = vmatprep.subr.bf16.mxu0 %v9823_v20  ;;  %6802 = vmatpush3.bf16.msra.mxu1 %v8319_v9  ;;  %v6415_v63 = vpop.f32.mrb[27].mxu0  ;;  %v6441_v4 = vadd.f32 %v6440_v57, %v6439_v27  ;;  %v6442_v6 = vpop.f32.mrb[26].mxu1  ;;  %v8327_v42 = vld [vmem:[%s11717_s1 + $0x420] sm:$0xff]   ;;  %v9905_v9 = vld [vmem:[%s11717_s1 + $0x3e8] sm:$0xff]  }
 0x166   : > { %6803 = vmatprep.subr.bf16.mxu1 %v8321_v39  ;;  %v2405_v11 = vadd.f32 %v6413_v49, %v9687_v60  ;;  %v6416_v19 = vadd.f32 %v6415_v63, %v6414_v54  ;;  %v6443_v21 = vpop.f32.mrb[27].mxu1  ;;  %3442 = vmatprep.mubr.bf16.mxu1 %v8021_v38  ;;  %v8329_v49 = vld [vmem:[%s11717_s1 + $0x468] sm:$0xff]  }
 0x168   : > { %6772 = vmatpush3.bf16.msra.mxu0 %v9834_v28  ;;  %v2408_v3 = vadd.f32 %v6416_v19, %v9700_v40  ;;  %v9880_v60 = vadd.f32 %v6441_v4, %v2405_v11  ;;  %v9896_v40 = vld [vmem:[%s11717_s1 + $0x3a0] sm:$0xff]   ;;  %v9914_v4 = vld [vmem:[%s11717_s1 + $0x3a8] sm:$0xff]  }
 0x169   : > { %6773 = vmatprep.subr.bf16.mxu0 %v9843_v33  ;;  %6804 = vmatpush3.bf16.msra.mxu1 %v8323_v31  ;;  %11816 = vst [vmem:[#allocation2_spill] sm:$0xff] %v9914_v4 }
 0x16a   : > { %v6417_v27 = vpop.f32.mrb[28].mxu0 }
 0x16b   : > { %3304 = vmatmul.mubr.bf16.gmra.mrb[72].mxu0 %v8012_v24  ;;  %v6444_v24 = vadd.f32 %v6443_v21, %v6442_v6  ;;  %v6418_v54 = vpop.f32.mrb[29].mxu0  ;;  %v8331_v6 = vld [vmem:[%s11717_s1 + $0x428] sm:$0xff]   ;;  %v9924_v21 = vld [vmem:[%s11717_s1 + $0x3f0] sm:$0xff]   ;;  %v6445_v31 = vpop.f32.mrb[28].mxu1 }
 0x16c   : > { %6774 = vmatpush3.bf16.msra.mxu0 %v9854_v45  ;;  %3393 = vmatprep.mubr.bf16.mxu0 %v8018_v37  ;;  %v8325_v37 = vld [vmem:[%s11717_s1 + $0x460] sm:$0xff]   ;;  %v6419_v57 = vadd.f32 %v6418_v54, %v6417_v27  ;;  %v6420_v39 = vpop.f32.mrb[30].mxu0  ;;  %11817 = vst [vmem:[#allocation3_spill] sm:$0xff] %v9924_v21  ;;  %v8337_v54 = vld [vmem:[%s11717_s1 + $0x478] sm:$0xff]  }
 0x16d   : > { %6775 = vmatprep.subr.bf16.mxu0 %v9863_v58  ;;  %6805 = vmatprep.subr.bf16.mxu1 %v8325_v37  ;;  %v9891_v38 = vadd.f32 %v6444_v24, %v2408_v3  ;;  %v6421_v63 = vpop.f32.mrb[31].mxu0  ;;  %v8333_v24 = vld [vmem:[%s11717_s1 + $0x470] sm:$0xff]   ;;  %v6446_v37 = vpop.f32.mrb[29].mxu1 }
 0x16e   : > { %6806 = vmatpush3.bf16.msra.mxu1 %v8327_v42  ;;  %v2413_v11 = vadd.f32 %v6419_v57, %v9758_v46  ;;  %v6422_v19 = vadd.f32 %v6421_v63, %v6420_v39  ;;  %v9934_v46 = vld [vmem:[%s11717_s1 + $0x3b0] sm:$0xff]   ;;  %v6447_v27 = vadd.f32 %v6446_v37, %v6445_v31  ;;  %v8339_v31 = vld [vmem:[%s11717_s1 + $0x438] sm:$0xff]  }
 0x16f   : > { %6807 = vmatprep.subr.bf16.mxu1 %v8329_v49  ;;  %11818 = vst [vmem:[#allocation4_spill] sm:$0xff] %v9934_v46  ;;  %v8335_v42 = vld [vmem:[%s11717_s1 + $0x430] sm:$0xff]   ;;  %v6448_v49 = vpop.f32.mrb[30].mxu1 }
 0x170   : > { %6776 = vmatpush3.bf16.msra.mxu0 %v9873_v26  ;;  %v2416_v3 = vadd.f32 %v6422_v19, %v9769_v51  ;;  %v9943_v51 = vld [vmem:[%s11717_s1 + $0x3f8] sm:$0xff]   ;;  %v6449_v57 = vpop.f32.mrb[31].mxu1  ;;  %v9949_v39 = vadd.f32 %v6447_v27, %v2413_v11  ;;  %v8019_v19 = vld [vmem:[%s8747_s27 + $0x1d0] ss:$100 sps:$4 sm:$0xff]   ;;  %v9967_v11 = vld [vmem:[%s11717_s1 + $0x4c0] sm:$0xff]  }
 0x171   : > { %6777 = vmatprep.subr.bf16.mxu0 %v9885_v36  ;;  %11819 = vst [vmem:[#allocation5_spill] sm:$0xff] %v9943_v51  ;;  %v6450_v63 = vadd.f32 %v6449_v57, %v6448_v49  ;;  %11821 = vst [vmem:[#allocation7_spill] sm:$0xff] %v9967_v11  ;;  %v8022_v27 = vld [vmem:[%s8747_s27 + $0x294] ss:$100 sps:$4 sm:$0x1f]   ;;  %v9987_v57 = vld [vmem:[%s11717_s1 + $0x4c8] sm:$0xff]  }
 0x172   : > { %6808 = vmatpush3.bf16.msra.mxu1 %v8331_v6  ;;  %v8016_v6 = vld [vmem:[%s8747_s27 + $0x1c8] ss:$100 sps:$4 sm:$0xff]   ;;  %v8025_v49 = vld [vmem:[%s8747_s27 + $0x29c] ss:$100 sps:$4 sm:$0x1f]   ;;  %11823 = vst [vmem:[#allocation9_spill] sm:$0xff] %v9987_v57 }
 0x173   : > { %6809 = vmatprep.subr.bf16.mxu1 %v8333_v24  ;;  %v9956_v24 = vld [vmem:[%s11717_s1 + $0x3b8] sm:$0xff]   ;;  %v9962_v37 = vadd.f32 %v6450_v63, %v2416_v3  ;;  %v9978_v3 = vld [vmem:[%s11717_s1 + $0x480] sm:$0xff]   ;;  %v8345_v63 = vld [vmem:[%s11717_s1 + $0x548] sm:$0xff]  }
 0x174   : > { %6778 = vmatpush3.bf16.msra.mxu0 %v9896_v40  ;;  %11820 = vst [vmem:[#allocation6_spill] sm:$0xff] %v9956_v24  ;;  %11822 = vst [vmem:[#allocation8_spill] sm:$0xff] %v9978_v3 }
 0x175   : > { %6779 = vmatprep.subr.bf16.mxu0 %v9905_v9 }
 0x176   : > { %6810 = vmatpush3.bf16.msra.mxu1 %v8335_v42  ;;  %v8341_v42 = vld [vmem:[%s11717_s1 + $0x540] sm:$0xff]  }
 0x177   : > { %6811 = vmatprep.subr.bf16.mxu1 %v8337_v54  ;;  %v8343_v54 = vld [vmem:[%s11717_s1 + $0x500] sm:$0xff]  }
 0x178   : > { %6780 = vmatpush3.bf16.msra.mxu0 %v9914_v4  ;;  %v8397_v4 = vld [vmem:[%s11717_s1 + $0xc0] sm:$0xff]  }
 0x179   : > { %6781 = vmatprep.subr.bf16.mxu0 %v9924_v21 }
 0x17a   : > { %6812 = vmatpush3.bf16.msra.mxu1 %v8339_v31  ;;  %v9998_v31 = vld [vmem:[%s11717_s1 + $0x488] sm:$0xff]  }
 0x17b   : > { %6853 = vmatprep.subr.bf16.mxu1 %v8341_v42  ;;  %11824 = vst [vmem:[#allocation10_spill] sm:$0xff] %v9998_v31  ;;  %v8347_v42 = vld [vmem:[%s11717_s1 + $0x508] sm:$0xff]  }
 0x17c   : > { %6782 = vmatpush3.bf16.msra.mxu0 %v9934_v46  ;;  %v10055_v46 = vld [vmem:[%s11717_s1 + $0x4a0] sm:$0xff]  }
 0x17d   : > { %6783 = vmatprep.subr.bf16.mxu0 %v9943_v51  ;;  %3443 = vmatmul.mubr.bf16.vlgmr.msra.gmra.mrb[80].mxu1 %v8019_v19  ;;  %v8027_v19 = vld [vmem:[%s8747_s27 + $0x298] ss:$100 sps:$4 sm:$0x1f]   ;;  %11830 = vst [vmem:[#allocation16_spill] sm:$0xff] %v10055_v46 }
 0x17e   : > { %6854 = vmatpush3.bf16.msra.mxu1 %v8343_v54  ;;  %3450 = vmatprep.mubr.bf16.mxu1 %v8025_v49  ;;  %v10007_v54 = vld [vmem:[%s11717_s1 + $0x4d0] sm:$0xff]   ;;  %v8030_v49 = vld [vmem:[%s8747_s27 + $0x1dc] ss:$100 sps:$4 sm:$0xff]  }
 0x17f   : > { %6855 = vmatprep.subr.bf16.mxu1 %v8345_v63  ;;  %11825 = vst [vmem:[#allocation11_spill] sm:$0xff] %v10007_v54  ;;  %v8033_v63 = vld [vmem:[%s8747_s27 + $0x1e4] ss:$100 sps:$4 sm:$0xff]  }
 0x180   : > { %6784 = vmatpush3.bf16.msra.mxu0 %v9956_v24 }
 0x181   : > { %6825 = vmatprep.subr.bf16.mxu0 %v9967_v11 }
 0x182   : > { %6856 = vmatpush3.bf16.msra.mxu1 %v8347_v42  ;;  %v10018_v42 = vld [vmem:[%s11717_s1 + $0x490] sm:$0xff]  }
 0x183   : > { %3394 = vmatmul.mubr.bf16.vlgmr.msra.gmra.mrb[76].mxu0 %v8016_v6  ;;  %v8024_v6 = vld [vmem:[%s8747_s27 + $0x290] ss:$100 sps:$4 sm:$0x1f]   ;;  %11826 = vst [vmem:[#allocation12_spill] sm:$0xff] %v10018_v42 }
 0x184   : > { %6826 = vmatpush3.bf16.msra.mxu0 %v9978_v3  ;;  %3401 = vmatprep.mubr.bf16.mxu0 %v8022_v27  ;;  %v8349_v27 = vld [vmem:[%s11717_s1 + $0x550] sm:$0xff]  }
 0x185   : > { %6827 = vmatprep.subr.bf16.mxu0 %v9987_v57  ;;  %6857 = vmatprep.subr.bf16.mxu1 %v8349_v27  ;;  %v10027_v27 = vld [vmem:[%s11717_s1 + $0x4d8] sm:$0xff]  }
 0x186   : > { %3451 = vmatmul.mubr.bf16.gmra.mrb[84].mxu1 %v8027_v19  ;;  %11827 = vst [vmem:[#allocation13_spill] sm:$0xff] %v10027_v27  ;;  %v6467_v19 = vpop.f32.mrb[32].mxu0 }
 0x187   : > { %3540 = vmatprep.mubr.bf16.mxu1 %v8033_v63 }
 0x188   : > { %6828 = vmatpush3.bf16.msra.mxu0 %v9998_v31  ;;  %v6495_v31 = vpop.f32.mrb[32].mxu1 }
 0x189   : > { %6829 = vmatprep.subr.bf16.mxu0 %v10007_v54  ;;  %v8351_v54 = vld [vmem:[%s11717_s1 + $0x510] sm:$0xff]   ;;  %v6496_v3 = vpop.f32.mrb[33].mxu1 }
 0x18a   : > { %6858 = vmatpush3.bf16.msra.mxu1 %v8351_v54  ;;  %v8355_v54 = vld [vmem:[%s11717_s1 + $0x518] sm:$0xff]   ;;  %v6497_v24 = vadd.f32 %v6496_v3, %v6495_v31  ;;  %v6498_v51 = vpop.f32.mrb[34].mxu1  ;;  %v8361_v3 = vld [vmem:[%s11717_s1 + $0x568] sm:$0xff]  }
 0x18b   : > { %3402 = vmatmul.mubr.bf16.gmra.mrb[80].mxu0 %v8024_v6  ;;  %v8353_v6 = vld [vmem:[%s11717_s1 + $0x558] sm:$0xff]  }
 0x18c   : > { %6830 = vmatpush3.bf16.msra.mxu0 %v10018_v42  ;;  %6859 = vmatprep.subr.bf16.mxu1 %v8353_v6  ;;  %v10036_v42 = vld [vmem:[%s11717_s1 + $0x498] sm:$0xff]   ;;  %v10045_v6 = vld [vmem:[%s11717_s1 + $0x4e0] sm:$0xff]  }
 0x18d   : > { %6831 = vmatprep.subr.bf16.mxu0 %v10027_v27  ;;  %3491 = vmatprep.mubr.bf16.mxu0 %v8030_v49  ;;  %11828 = vst [vmem:[#allocation14_spill] sm:$0xff] %v10036_v42  ;;  %v6468_v27 = vpop.f32.mrb[33].mxu0  ;;  %11829 = vst [vmem:[#allocation15_spill] sm:$0xff] %v10045_v6  ;;  %v8357_v49 = vld [vmem:[%s11717_s1 + $0x560] sm:$0xff]  }
 0x18e   : > { %6860 = vmatpush3.bf16.msra.mxu1 %v8355_v54  ;;  %v6469_v63 = vadd.f32 %v6468_v27, %v6467_v19  ;;  %v8359_v27 = vld [vmem:[%s11717_s1 + $0x520] sm:$0xff]   ;;  %v6499_v19 = vpop.f32.mrb[35].mxu1 }
 0x18f   : > { %6861 = vmatprep.subr.bf16.mxu1 %v8357_v49 }
 0x190   : > { %6832 = vmatpush3.bf16.msra.mxu0 %v10036_v42  ;;  %v6470_v42 = vpop.f32.mrb[34].mxu0  ;;  %v2503_v54 = vadd.f32 %v6469_v63, %v9880_v60  ;;  %v10064_v60 = vld [vmem:[%s11717_s1 + $0x4e8] sm:$0xff]  }
 0x191   : > { %6833 = vmatprep.subr.bf16.mxu0 %v10045_v6  ;;  %v6471_v57 = vpop.f32.mrb[35].mxu0  ;;  %11831 = vst [vmem:[#allocation17_spill] sm:$0xff] %v10064_v60  ;;  %v10078_v63 = vld [vmem:[%s11717_s1 + $0x4a8] sm:$0xff]  }
 0x192   : > { %v6472_v11 = vadd.f32 %v6471_v57, %v6470_v42  ;;  %6862 = vmatpush3.bf16.msra.mxu1 %v8359_v27  ;;  %v10071_v31 = vadd.f32 %v6497_v24, %v2503_v54  ;;  %v6500_v42 = vadd.f32 %v6499_v19, %v6498_v51  ;;  %11832 = vst [vmem:[#allocation18_spill] sm:$0xff] %v10078_v63  ;;  %v8363_v27 = vld [vmem:[%s11717_s1 + $0x528] sm:$0xff]   ;;  %v8365_v51 = vld [vmem:[%s11717_s1 + $0x570] sm:$0xff]   ;;  %v6473_v24 = vpop.f32.mrb[36].mxu0 }
 0x193   : > { %6863 = vmatprep.subr.bf16.mxu1 %v8361_v3  ;;  %v10096_v54 = vld [vmem:[%s11717_s1 + $0x4b0] sm:$0xff]  }
 0x194   : > { %6834 = vmatpush3.bf16.msra.mxu0 %v10055_v46  ;;  %v2506_v57 = vadd.f32 %v6472_v11, %v9891_v38  ;;  %v10087_v38 = vld [vmem:[%s11717_s1 + $0x4f0] sm:$0xff]   ;;  %v6474_v11 = vpop.f32.mrb[37].mxu0  ;;  %11834 = vst [vmem:[#allocation20_spill] sm:$0xff] %v10096_v54 }
 0x195   : > { %6835 = vmatprep.subr.bf16.mxu0 %v10064_v60  ;;  %11833 = vst [vmem:[#allocation19_spill] sm:$0xff] %v10087_v38  ;;  %v8367_v19 = vld [vmem:[%s11717_s1 + $0x530] sm:$0xff]   ;;  %v6475_v3 = vadd.f32 %v6474_v11, %v6473_v24  ;;  %v8028_v24 = vld [vmem:[%s8747_s27 + $0x1d8] ss:$100 sps:$4 sm:$0xff]   ;;  %v8031_v11 = vld [vmem:[%s8747_s27 + $0x1e0] ss:$100 sps:$4 sm:$0xff]  }
 0x196   : > { %v10073_v49 = vadd.f32 %v6500_v42, %v2506_v57  ;;  %6864 = vmatpush3.bf16.msra.mxu1 %v8363_v27  ;;  %v6476_v57 = vpop.f32.mrb[38].mxu0  ;;  %v10105_v42 = vld [vmem:[%s11717_s1 + $0x4f8] sm:$0xff]   ;;  %v8034_v60 = vld [vmem:[%s8747_s27 + $0x2a4] ss:$100 sps:$4 sm:$0x1f]  }
 0x197   : > { %6865 = vmatprep.subr.bf16.mxu1 %v8365_v51  ;;  %11835 = vst [vmem:[#allocation21_spill] sm:$0xff] %v10105_v42  ;;  %v8369_v27 = vld [vmem:[%s11717_s1 + $0x578] sm:$0xff]   ;;  %v6477_v51 = vpop.f32.mrb[39].mxu0 }
 0x198   : > { %6836 = vmatpush3.bf16.msra.mxu0 %v10078_v63  ;;  %v10117_v63 = vld [vmem:[%s11717_s1 + $0x4b8] sm:$0xff]  }
 0x199   : > { %6837 = vmatprep.subr.bf16.mxu0 %v10087_v38  ;;  %v6478_v38 = vadd.f32 %v6477_v51, %v6476_v57  ;;  %11836 = vst [vmem:[#allocation22_spill] sm:$0xff] %v10117_v63 }
 0x19a   : > { %6866 = vmatpush3.bf16.msra.mxu1 %v8367_v19  ;;  %v6501_v19 = vpop.f32.mrb[36].mxu1 }
 0x19b   : > { %6867 = vmatprep.subr.bf16.mxu1 %v8369_v27  ;;  %v8371_v27 = vld [vmem:[%s11717_s1 + $0x538] sm:$0xff]  }
 0x19c   : > { %6838 = vmatpush3.bf16.msra.mxu0 %v10096_v54  ;;  %v2511_v54 = vadd.f32 %v6475_v3, %v9949_v39  ;;  %v2514_v39 = vadd.f32 %v6478_v38, %v9962_v37  ;;  %v6502_v3 = vpop.f32.mrb[37].mxu1 }
 0x19d   : > { %6839 = vmatprep.subr.bf16.mxu0 %v10105_v42  ;;  %v6503_v57 = vadd.f32 %v6502_v3, %v6501_v19  ;;  %v6504_v51 = vpop.f32.mrb[38].mxu1  ;;  %v10127_v42 = vld [vmem:[%s11717_s1 + $0x5c0] sm:$0xff]  }
 0x19e   : > { %6868 = vmatpush3.bf16.msra.mxu1 %v8371_v27  ;;  %11837 = vst [vmem:[#allocation23_spill] sm:$0xff] %v10127_v42  ;;  %v6505_v46 = vpop.f32.mrb[39].mxu1  ;;  %v8037_v27 = vld [vmem:[%s8747_s27 + $0x2ac] ss:$100 sps:$4 sm:$0x1f]   ;;  %v10140_v19 = vld [vmem:[%s11717_s1 + $0x580] sm:$0xff]  }
 0x19f   : > { %v10135_v37 = vadd.f32 %v6503_v57, %v2511_v54  ;;  %v6506_v38 = vadd.f32 %v6505_v46, %v6504_v51  ;;  %11838 = vst [vmem:[#allocation24_spill] sm:$0xff] %v10140_v19  ;;  %v8376_v46 = vld [vmem:[%s11717_s1 + $0x608] sm:$0xff]   ;;  %v8036_v54 = vld [vmem:[%s8747_s27 + $0x2a0] ss:$100 sps:$4 sm:$0x1f]   ;;  %v10176_v51 = vld [vmem:[%s11717_s1 + $0x590] sm:$0xff]  }
 0x1a0   : > { %6840 = vmatpush3.bf16.msra.mxu0 %v10117_v63  ;;  %v8373_v63 = vld [vmem:[%s11717_s1 + $0x600] sm:$0xff]   ;;  %v8043_v57 = vld [vmem:[%s8747_s27 + $0x1f0] ss:$100 sps:$4 sm:$0xff]   ;;  %11842 = vst [vmem:[#allocation28_spill] sm:$0xff] %v10176_v51 }
 0x1a1   : > { %6881 = vmatprep.subr.bf16.mxu0 %v10127_v42  ;;  %7631 = vmatprep.subr.bf16.mxu1 %v8373_v63  ;;  %v10143_v3 = vadd.f32 %v6506_v38, %v2514_v39  ;;  %v10148_v42 = vld [vmem:[%s11717_s1 + $0x5c8] sm:$0xff]   ;;  %v8382_v38 = vld [vmem:[%s11717_s1 + $0x618] sm:$0xff]  }
 0x1a2   : > { %3541 = vmatmul.mubr.bf16.vlgmr.msra.gmra.mrb[88].mxu1 %v8031_v11  ;;  %11839 = vst [vmem:[#allocation25_spill] sm:$0xff] %v10148_v42  ;;  %v10165_v11 = vld [vmem:[%s11717_s1 + $0x5d0] sm:$0xff]  }
 0x1a3   : > { %3492 = vmatmul.mubr.bf16.vlgmr.msra.gmra.mrb[84].mxu0 %v8028_v24  ;;  %7632 = vmatpush3.bf16.msra.mxu1 %v8373_v63  ;;  %v8039_v63 = vld [vmem:[%s8747_s27 + $0x2a8] ss:$100 sps:$4 sm:$0x1f]   ;;  %11841 = vst [vmem:[#allocation27_spill] sm:$0xff] %v10165_v11 }
 0x1a4   : > { %6882 = vmatpush3.bf16.msra.mxu0 %v10140_v19  ;;  %7633 = vmatprep.subr.bf16.mxu1 %v8376_v46  ;;  %v10159_v24 = vld [vmem:[%s11717_s1 + $0x588] sm:$0xff]  }
 0x1a5   : > { %6883 = vmatprep.subr.bf16.mxu0 %v10148_v42  ;;  %3499 = vmatprep.mubr.bf16.mxu0 %v8034_v60  ;;  %11840 = vst [vmem:[#allocation26_spill] sm:$0xff] %v10159_v24  ;;  %v8379_v60 = vld [vmem:[%s11717_s1 + $0x610] sm:$0xff]  }
 0x1a6   : > { %3548 = vmatprep.mubr.bf16.mxu1 %v8037_v27  ;;  %v8042_v39 = vld [vmem:[%s8747_s27 + $0x1ec] ss:$100 sps:$4 sm:$0xff]   ;;  %v10182_v27 = vld [vmem:[%s11717_s1 + $0x5d8] sm:$0xff]  }
 0x1a7   : > { %7634 = vmatpush3.bf16.msra.mxu1 %v8376_v46  ;;  %11843 = vst [vmem:[#allocation29_spill] sm:$0xff] %v10182_v27  ;;  %v10191_v46 = vld [vmem:[%s11717_s1 + $0x598] sm:$0xff]  }
 0x1a8   : > { %6884 = vmatpush3.bf16.msra.mxu0 %v10159_v24  ;;  %7635 = vmatprep.subr.bf16.mxu1 %v8379_v60  ;;  %11844 = vst [vmem:[#allocation30_spill] sm:$0xff] %v10191_v46 }
 0x1a9   : > { %6885 = vmatprep.subr.bf16.mxu0 %v10165_v11 }
 0x1aa   : > { %3549 = vmatmul.mubr.bf16.gmra.mrb[92].mxu1 %v8039_v63  ;;  %v8385_v63 = vld [vmem:[%s11717_s1 + $0x620] sm:$0xff]  }
 0x1ab   : > { %3500 = vmatmul.mubr.bf16.gmra.mrb[88].mxu0 %v8036_v54  ;;  %7636 = vmatpush3.bf16.msra.mxu1 %v8379_v60  ;;  %v10197_v54 = vld [vmem:[%s11717_s1 + $0x5e0] sm:$0xff]  }
 0x1ac   : > { %6886 = vmatpush3.bf16.msra.mxu0 %v10176_v51  ;;  %7637 = vmatprep.subr.bf16.mxu1 %v8382_v38  ;;  %11845 = vst [vmem:[#allocation31_spill] sm:$0xff] %v10197_v54  ;;  %v10206_v60 = vld [vmem:[%s11717_s1 + $0x5a0] sm:$0xff]  }
 0x1ad   : > { %6887 = vmatprep.subr.bf16.mxu0 %v10182_v27  ;;  %3589 = vmatprep.mubr.bf16.mxu0 %v8042_v39  ;;  %11846 = vst [vmem:[#allocation32_spill] sm:$0xff] %v10206_v60  ;;  %v6523_v39 = vpop.f32.mrb[40].mxu0 }
 0x1ae   : > { %7647 = vmatprep.mubr.bf16.mxu1 %v8043_v57  ;;  %v10212_v57 = vld [vmem:[%s11717_s1 + $0x5e8] sm:$0xff]  }
 0x1af   : > { %7638 = vmatpush3.bf16.msra.mxu1 %v8382_v38  ;;  %11847 = vst [vmem:[#allocation33_spill] sm:$0xff] %v10212_v57  ;;  %v8388_v38 = vld [vmem:[%s11717_s1 + $0x628] sm:$0xff]  }
 0x1b0   : > { %6888 = vmatpush3.bf16.msra.mxu0 %v10191_v46  ;;  %7639 = vmatprep.subr.bf16.mxu1 %v8385_v63  ;;  %v6551_v46 = vpop.f32.mrb[40].mxu1 }
 0x1b1   : > { %6889 = vmatprep.subr.bf16.mxu0 %v10197_v54  ;;  %v6524_v54 = vpop.f32.mrb[41].mxu0  ;;  %v6552_v11 = vpop.f32.mrb[41].mxu1 }
 0x1b2   : > { %v6525_v27 = vadd.f32 %v6524_v54, %v6523_v39  ;;  %v6526_v51 = vpop.f32.mrb[42].mxu0  ;;  %v6554_v24 = vpop.f32.mrb[42].mxu1  ;;  %v10228_v54 = vld [vmem:[%s11717_s1 + $0x5f0] sm:$0xff]  }
 0x1b3   : > { %7640 = vmatpush3.bf16.msra.mxu1 %v8385_v63  ;;  %v10221_v63 = vld [vmem:[%s11717_s1 + $0x5a8] sm:$0xff]   ;;  %v6555_v6 = vpop.f32.mrb[43].mxu1  ;;  %11849 = vst [vmem:[#allocation35_spill] sm:$0xff] %v10228_v54  ;;  %v8391_v39 = vld [vmem:[%s11717_s1 + $0x630] sm:$0xff]  }
 0x1b4   : > { %6890 = vmatpush3.bf16.msra.mxu0 %v10206_v60  ;;  %7641 = vmatprep.subr.bf16.mxu1 %v8388_v38  ;;  %11848 = vst [vmem:[#allocation34_spill] sm:$0xff] %v10221_v63  ;;  %v6527_v60 = vpop.f32.mrb[43].mxu0  ;;  %v2601_v42 = vadd.f32 %v6525_v27, %v10071_v31  ;;  %v10240_v31 = vld [vmem:[%s11717_s1 + $0x5b0] sm:$0xff]   ;;  %v10246_v27 = vld [vmem:[%s11717_s1 + $0x5f8] sm:$0xff]  }
 0x1b5   : > { %6891 = vmatprep.subr.bf16.mxu0 %v10212_v57  ;;  %v6553_v57 = vadd.f32 %v6552_v11, %v6551_v46  ;;  %v6528_v19 = vadd.f32 %v6527_v60, %v6526_v51  ;;  %11850 = vst [vmem:[#allocation36_spill] sm:$0xff] %v10240_v31  ;;  %v6529_v51 = vpop.f32.mrb[44].mxu0  ;;  %11851 = vst [vmem:[#allocation37_spill] sm:$0xff] %v10246_v27 }
 0x1b7   : > { %7642 = vmatpush3.bf16.msra.mxu1 %v8388_v38  ;;  %v6556_v38 = vadd.f32 %v6555_v6, %v6554_v24  ;;  %v2604_v11 = vadd.f32 %v6528_v19, %v10073_v49  ;;  %v10235_v46 = vadd.f32 %v6553_v57, %v2601_v42  ;;  %v8394_v6 = vld [vmem:[%s11717_s1 + $0x638] sm:$0xff]   ;;  %v6530_v42 = vpop.f32.mrb[45].mxu0  ;;  %v6557_v19 = vpop.f32.mrb[44].mxu1  ;;  %v8040_v24 = vld [vmem:[%s8747_s27 + $0x1e8] ss:$100 sps:$4 sm:$0xff]  }
 0x1b8   : > { %6892 = vmatpush3.bf16.msra.mxu0 %v10221_v63  ;;  %7643 = vmatprep.subr.bf16.mxu1 %v8391_v39  ;;  %v6531_v60 = vadd.f32 %v6530_v42, %v6529_v51  ;;  %v6532_v57 = vpop.f32.mrb[46].mxu0  ;;  %v10266_v42 = vld [vmem:[%s11717_s1 + $0x40] sm:$0xff]  }
 0x1b9   : > { %6893 = vmatprep.subr.bf16.mxu0 %v10228_v54  ;;  %v10252_v49 = vadd.f32 %v6556_v38, %v2604_v11  ;;  %v6533_v54 = vpop.f32.mrb[47].mxu0 }
 0x1ba   : > { %v2609_v63 = vadd.f32 %v6531_v60, %v10135_v37  ;;  %v6534_v21 = vadd.f32 %v6533_v54, %v6532_v57  ;;  %v10278_v60 = vld [vmem:[%s11717_s1] sm:$0xff]   ;;  %v10287_v57 = vld [vmem:[%s11717_s1 + $0x48] sm:$0xff]  }
 0x1bb   : > { %7644 = vmatpush3.bf16.msra.mxu1 %v8391_v39  ;;  %v6558_v39 = vpop.f32.mrb[45].mxu1 }
 0x1bc   : > { %6894 = vmatpush3.bf16.msra.mxu0 %v10240_v31  ;;  %7645 = vmatprep.subr.bf16.mxu1 %v8394_v6  ;;  %v8044_v31 = vld [vmem:[%s8747_s27 + $0x2b8] ss:$100 sps:$4 sm:$0x1f]   ;;  %v6559_v38 = vadd.f32 %v6558_v39, %v6557_v19  ;;  %v6560_v11 = vpop.f32.mrb[46].mxu1  ;;  %v8053_v19 = vld [vmem:[%s8747_s27 + $0x32c] ss:$100 sps:$4 sm:$0xff]   ;;  %v2612_v37 = vadd.f32 %v6534_v21, %v10143_v3 }
 0x1bd   : > { %6895 = vmatprep.subr.bf16.mxu0 %v10246_v27  ;;  %v10259_v27 = vld [vmem:[%s11717_s1 + $0x5b8] sm:$0xff]   ;;  %v6561_v51 = vpop.f32.mrb[47].mxu1  ;;  %v8401_v21 = vld [vmem:[%s11717_s1 + $0xc8] sm:$0xff]   ;;  %v10306_v39 = vld [vmem:[%s11717_s1 + $0x50] sm:$0xff]  }
 0x1be   : > { %11852 = vst [vmem:[#allocation38_spill] sm:$0xff] %v10259_v27  ;;  %v2658_v54 = vadd.f32 %v6559_v38, %v2609_v63  ;;  %v8047_v63 = vld [vmem:[%s8747_s27 + $0x2b0] ss:$100 sps:$4 sm:$0x1f]   ;;  %v8050_v38 = vld [vmem:[%s8747_s27 + $0x324] ss:$100 sps:$4 sm:$0xff]  }
 0x1bf   : > { %7646 = vmatpush3.bf16.msra.mxu1 %v8394_v6  ;;  %v6562_v6 = vadd.f32 %v6561_v51, %v6560_v11  ;;  %v10316_v11 = vld [vmem:[%s11717_s1 + $0x10] sm:$0xff]  }
 0x1c0   : > { %6896 = vmatpush3.bf16.msra.mxu0 %v10259_v27  ;;  %6947 = vmatprep.subr.bf16.mxu1 %v8397_v4  ;;  %v8045_v27 = vld [vmem:[%s8747_s27 + $0x2b4] ss:$100 sps:$4 sm:$0x1f]   ;;  %v8399_v4 = vld [vmem:[%s11717_s1 + $0x80] sm:$0xff]  }
 0x1c1   : > { %6919 = vmatprep.subr.bf16.mxu0 %v10266_v42  ;;  %v2661_v3 = vadd.f32 %v6562_v6, %v2612_v37  ;;  %v8407_v51 = vld [vmem:[%s11717_s1 + $0x90] sm:$0xff]   ;;  %v10325_v6 = vld [vmem:[%s11717_s1 + $0x58] sm:$0xff]  }
 0x1c2   : > { %7648 = vmatmul.mubr.bf16.vlgmr.msra.gmra.mrb[96].mxu1 %v8044_v31  ;;  %v10297_v31 = vld [vmem:[%s11717_s1 + $0x8] sm:$0xff]   ;;  %11853 = vst [vmem:[#allocation39_spill] sm:$0xff] %v10325_v6  ;;  %v10334_v37 = vld [vmem:[%s11717_s1 + $0x18] sm:$0xff]  }
 0x1c3   : > { %3590 = vmatmul.mubr.bf16.vlgmr.msra.gmra.mrb[92].mxu0 %v8040_v24  ;;  %6948 = vmatpush3.bf16.msra.mxu1 %v8399_v4  ;;  %v8403_v24 = vld [vmem:[%s11717_s1 + $0x88] sm:$0xff]   ;;  %11854 = vst [vmem:[#allocation40_spill] sm:$0xff] %v10334_v37  ;;  %v8411_v4 = vld [vmem:[%s11717_s1 + $0x98] sm:$0xff]  }
 0x1c4   : > { %6920 = vmatpush3.bf16.msra.mxu0 %v10278_v60  ;;  %6949 = vmatprep.subr.bf16.mxu1 %v8401_v21  ;;  %v10343_v21 = vld [vmem:[%s11717_s1 + $0x60] sm:$0xff]  }
 0x1c5   : > { %6921 = vmatprep.subr.bf16.mxu0 %v10287_v57  ;;  %3597 = vmatprep.mubr.bf16.mxu0 %v8045_v27  ;;  %v8405_v27 = vld [vmem:[%s11717_s1 + $0xd0] sm:$0xff]   ;;  %11855 = vst [vmem:[#allocation41_spill] sm:$0xff] %v10343_v21 }
 0x1c6   : > { %4045 = vmatprep.mubr.bf16.mxu1 %v8053_v19  ;;  %v8409_v19 = vld [vmem:[%s11717_s1 + $0xd8] sm:$0xff]  }
 0x1c7   : > { %6950 = vmatpush3.bf16.msra.mxu1 %v8403_v24  ;;  %v10352_v24 = vld [vmem:[%s11717_s1 + $0x20] sm:$0xff]  }
 0x1c8   : > { %6922 = vmatpush3.bf16.msra.mxu0 %v10297_v31  ;;  %6951 = vmatprep.subr.bf16.mxu1 %v8405_v27  ;;  %11856 = vst [vmem:[#allocation42_spill] sm:$0xff] %v10352_v24  ;;  %v8415_v27 = vld [vmem:[%s11717_s1 + $0xa0] sm:$0xff]  }
 0x1c9   : > { %6923 = vmatprep.subr.bf16.mxu0 %v10306_v39 }
 0x1cb   : > { %3598 = vmatmul.mubr.bf16.gmra.mrb[96].mxu0 %v8047_v63  ;;  %6952 = vmatpush3.bf16.msra.mxu1 %v8407_v51  ;;  %v8413_v63 = vld [vmem:[%s11717_s1 + $0xe0] sm:$0xff]   ;;  %v8417_v51 = vld [vmem:[%s11717_s1 + $0xe8] sm:$0xff]  }
 0x1cc   : > { %6924 = vmatpush3.bf16.msra.mxu0 %v10316_v11  ;;  %6953 = vmatprep.subr.bf16.mxu1 %v8409_v19  ;;  %v7629_v19 = vpop.f32.mrb[48].mxu0 }
 0x1cd   : > { %6925 = vmatprep.subr.bf16.mxu0 %v10325_v6  ;;  %3996 = vmatprep.mubr.bf16.mxu0 %v8050_v38  ;;  %v10361_v38 = vld [vmem:[%s11717_s1 + $0x68] sm:$0xff]  }
 0x1ce   : > { %v10375_v6 = vld [vmem:[%s11717_s1 + $0x28] sm:$0xff]  }
 0x1cf   : > { %6954 = vmatpush3.bf16.msra.mxu1 %v8411_v4  ;;  %v6589_v4 = vpop.f32.mrb[48].mxu1  ;;  %11859 = vst [vmem:[#allocation45_spill] sm:$0xff] %v10375_v6 }
 0x1d0   : > { %6926 = vmatpush3.bf16.msra.mxu0 %v10334_v37  ;;  %6955 = vmatprep.subr.bf16.mxu1 %v8413_v63  ;;  %v10367_v63 = vadd.f32 %v7629_v19, %v2658_v54 }
 0x1d1   : > { %6927 = vmatprep.subr.bf16.mxu0 %v10343_v21  ;;  %v6590_v21 = vpop.f32.mrb[49].mxu1 }
 0x1d2   : > { %11857 = vst [vmem:[#allocation43_spill] sm:$0xff] %v10367_v63  ;;  %v10381_v54 = vadd.f32 %v6590_v21, %v6589_v4  ;;  %v6592_v19 = vpop.f32.mrb[50].mxu1 }
 0x1d3   : > { %6956 = vmatpush3.bf16.msra.mxu1 %v8415_v27  ;;  %v6593_v21 = vpop.f32.mrb[51].mxu1 }
 0x1d4   : > { %6928 = vmatpush3.bf16.msra.mxu0 %v10352_v24  ;;  %6957 = vmatprep.subr.bf16.mxu1 %v8417_v51  ;;  %v2698_v24 = vpop.f32.mrb[49].mxu0  ;;  %v8419_v51 = vld [vmem:[%s11717_s1 + $0xa8] sm:$0xff]  }
 0x1d5   : > { %6929 = vmatprep.subr.bf16.mxu0 %v10361_v38  ;;  %v10370_v27 = vadd.f32 %v2698_v24, %v10235_v46  ;;  %v7630_v37 = vpop.f32.mrb[50].mxu0  ;;  %v10388_v24 = vld [vmem:[%s11717_s1 + $0x70] sm:$0xff]  }
 0x1d6   : > { %v10383_v63 = vadd.f32 %v7630_v37, %v2661_v3  ;;  %v2701_v46 = vpop.f32.mrb[51].mxu0  ;;  %11861 = vst [vmem:[#allocation47_spill] sm:$0xff] %v10388_v24  ;;  %v10397_v3 = vadd.f32 %v6593_v21, %v6592_v19  ;;  %v10402_v37 = vld [vmem:[%s11717_s1 + $0x30] sm:$0xff]   ;;  %v6595_v19 = vpop.f32.mrb[52].mxu1  ;;  %v8051_v21 = vld [vmem:[%s8747_s27 + $0x328] ss:$100 sps:$4 sm:$0xff]  }
 0x1d7   : > { %11858 = vst [vmem:[#allocation44_spill] sm:$0xff] %v10370_v27  ;;  %6958 = vmatpush3.bf16.msra.mxu1 %v8419_v51  ;;  %v8421_v27 = vld [vmem:[%s11717_s1 + $0xf0] sm:$0xff]   ;;  %v10395_v4 = vadd.f32 %v2701_v46, %v10252_v49  ;;  %11863 = vst [vmem:[#allocation49_spill] sm:$0xff] %v10402_v37  ;;  %v8425_v49 = vld [vmem:[%s11717_s1 + $0xf8] sm:$0xff]  }
 0x1d8   : > { %6930 = vmatpush3.bf16.msra.mxu0 %v10375_v6  ;;  %11860 = vst [vmem:[#allocation46_spill] sm:$0xff] %v10383_v63  ;;  %6959 = vmatprep.subr.bf16.mxu1 %v8421_v27  ;;  %v8423_v51 = vld [vmem:[%s11717_s1 + $0xb0] sm:$0xff]   ;;  %v10411_v27 = vld [vmem:[%s11717_s1 + $0x78] sm:$0xff]   ;;  %v8048_v46 = vld [vmem:[%s8747_s27 + $0x320] ss:$100 sps:$4 sm:$0xff]   ;;  %v6596_v63 = vpop.f32.mrb[53].mxu1 }
 0x1d9   : > { %6931 = vmatprep.subr.bf16.mxu0 %v10388_v24  ;;  %11862 = vst [vmem:[#allocation48_spill] sm:$0xff] %v10395_v4  ;;  %11864 = vst [vmem:[#allocation50_spill] sm:$0xff] %v10411_v27  ;;  %v10426_v4 = vadd.f32 %v6596_v63, %v6595_v19  ;;  %v8056_v6 = vld [vmem:[%s8747_s27 + $0x3f4] ss:$100 sps:$4 sm:$0x1f]  }
 0x1da   : > { %v8058_v63 = vld [vmem:[%s8747_s27 + $0x3e8] ss:$100 sps:$4 sm:$0x1f]   ;;  %v10474_v19 = vld [vmem:[%s11717_s1 + $0x110] sm:$0xff]  }
 0x1db   : > { %6960 = vmatpush3.bf16.msra.mxu1 %v8423_v51  ;;  %v10422_v51 = vld [vmem:[%s11717_s1 + $0x38] sm:$0xff]  }
 0x1dc   : > { %6932 = vmatpush3.bf16.msra.mxu0 %v10402_v37  ;;  %6961 = vmatprep.subr.bf16.mxu1 %v8425_v49  ;;  %11865 = vst [vmem:[#allocation51_spill] sm:$0xff] %v10422_v51  ;;  %v10431_v49 = vld [vmem:[%s11717_s1 + $0x140] sm:$0xff]  }
 0x1dd   : > { %6933 = vmatprep.subr.bf16.mxu0 %v10411_v27  ;;  %v6598_v27 = vpop.f32.mrb[54].mxu1 }
 0x1de   : > { %v6599_v37 = vpop.f32.mrb[55].mxu1 }
 0x1df   : > { %6962 = vmatpush3.bf16.msra.mxu1 %v9466_v13  ;;  %v10435_v24 = vadd.f32 %v6599_v37, %v6598_v27  ;;  %v10442_v13 = vld [vmem:[%s11717_s1 + $0x100] sm:$0xff]   ;;  %v8059_v37 = vld [vmem:[%s8747_s27 + $0x3f0] ss:$100 sps:$4 sm:$0x1f]   ;;  %v10458_v27 = vld [vmem:[%s11717_s1 + $0x108] sm:$0xff]  }
 0x1e0   : > { %6934 = vmatpush3.bf16.msra.mxu0 %v10422_v51  ;;  %7003 = vmatprep.subr.bf16.mxu1 %v9476_v18  ;;  %v8054_v51 = vld [vmem:[%s8747_s27 + $0x3ec] ss:$100 sps:$4 sm:$0x1f]  }
 0x1e1   : > { %6975 = vmatprep.subr.bf16.mxu0 %v10431_v49  ;;  %v10449_v18 = vld [vmem:[%s11717_s1 + $0x148] sm:$0xff]  }
 0x1e2   : > { %4046 = vmatmul.mubr.bf16.vlgmr.msra.gmra.mrb[100].mxu1 %v8051_v21 }
 0x1e3   : > { %3997 = vmatmul.mubr.bf16.vlgmr.msra.gmra.mrb[100].mxu0 %v8048_v46  ;;  %7004 = vmatpush3.bf16.msra.mxu1 %v9487_v32  ;;  %v10465_v32 = vld [vmem:[%s11717_s1 + $0x150] sm:$0xff]   ;;  %v6617_v46 = vpop.f32.mrb[52].mxu0 }
 0x1e4   : > { %6976 = vmatpush3.bf16.msra.mxu0 %v10442_v13  ;;  %7005 = vmatprep.subr.bf16.mxu1 %v9496_v22  ;;  %v8062_v22 = vld [vmem:[%s8747_s27 + $0x334] ss:$100 sps:$4 sm:$0xff]   ;;  %v6618_v21 = vpop.f32.mrb[53].mxu0 }
 0x1e5   : > { %6977 = vmatprep.subr.bf16.mxu0 %v10449_v18  ;;  %4004 = vmatprep.mubr.bf16.mxu0 %v8054_v51 }
 0x1e6   : > { %4053 = vmatprep.mubr.bf16.mxu1 %v8056_v6  ;;  %v8065_v6 = vld [vmem:[%s8747_s27 + $0x33c] ss:$100 sps:$4 sm:$0xff]  }
 0x1e7   : > { %7006 = vmatpush3.bf16.msra.mxu1 %v9512_v41  ;;  %v10481_v41 = vld [vmem:[%s11717_s1 + $0x158] sm:$0xff]  }
 0x1e8   : > { %6978 = vmatpush3.bf16.msra.mxu0 %v10458_v27  ;;  %7007 = vmatprep.subr.bf16.mxu1 %v9522_v43  ;;  %v10488_v43 = vld [vmem:[%s11717_s1 + $0x118] sm:$0xff]  }
 0x1e9   : > { %6979 = vmatprep.subr.bf16.mxu0 %v10465_v32 }
 0x1ea   : > { %4054 = vmatmul.mubr.bf16.gmra.mrb[104].mxu1 %v8059_v37  ;;  %v6620_v37 = vpop.f32.mrb[54].mxu0 }
 0x1eb   : > { %4005 = vmatmul.mubr.bf16.gmra.mrb[104].mxu0 %v8058_v63  ;;  %7008 = vmatpush3.bf16.msra.mxu1 %v9532_v50  ;;  %v10495_v50 = vld [vmem:[%s11717_s1 + $0x160] sm:$0xff]   ;;  %v6619_v63 = vadd.f32 %v6618_v21, %v6617_v46 }
 0x1ec   : > { %6980 = vmatpush3.bf16.msra.mxu0 %v10474_v19  ;;  %7009 = vmatprep.subr.bf16.mxu1 %v9541_v53  ;;  %v10502_v53 = vld [vmem:[%s11717_s1 + $0x120] sm:$0xff]  }
 0x1ed   : > { %6981 = vmatprep.subr.bf16.mxu0 %v10481_v41  ;;  %4094 = vmatprep.mubr.bf16.mxu0 %v8062_v22  ;;  %11866 = vst [vmem:[#allocation52_spill] sm:$0xff] %v10502_v53  ;;  %v10516_v22 = vld [vmem:[%s11717_s1 + $0x128] sm:$0xff]   ;;  %v3102_v46 = vadd.f32 %v6619_v63, %v10381_v54 }
 0x1ee   : > { %4143 = vmatprep.mubr.bf16.mxu1 %v8065_v6  ;;  %11868 = vst [vmem:[#allocation54_spill] sm:$0xff] %v10516_v22 }
 0x1ef   : > { %7010 = vmatpush3.bf16.msra.mxu1 %v9552_v59  ;;  %v10509_v59 = vld [vmem:[%s11717_s1 + $0x168] sm:$0xff]  }
 0x1f0   : > { %6982 = vmatpush3.bf16.msra.mxu0 %v10488_v43  ;;  %7011 = vmatprep.subr.bf16.mxu1 %v9561_v62  ;;  %11867 = vst [vmem:[#allocation53_spill] sm:$0xff] %v10509_v59  ;;  %v6645_v62 = vpop.f32.mrb[56].mxu1 }
 0x1f1   : > { %6983 = vmatprep.subr.bf16.mxu0 %v10495_v50  ;;  %v6646_v51 = vpop.f32.mrb[57].mxu1 }
 0x1f2   : > { %v6648_v6 = vpop.f32.mrb[58].mxu1 }
 0x1f3   : > { %7012 = vmatpush3.bf16.msra.mxu1 %v9572_v5  ;;  %v6647_v5 = vadd.f32 %v6646_v51, %v6645_v62 }
 0x1f4   : > { %6984 = vmatpush3.bf16.msra.mxu0 %v10502_v53  ;;  %7013 = vmatprep.subr.bf16.mxu1 %v9581_v7  ;;  %v6649_v53 = vpop.f32.mrb[59].mxu1  ;;  %v10523_v7 = vld [vmem:[%s11717_s1 + $0x170] sm:$0xff]  }
 0x1f5   : > { %6985 = vmatprep.subr.bf16.mxu0 %v10509_v59  ;;  %v6621_v59 = vpop.f32.mrb[55].mxu0  ;;  %v6650_v62 = vadd.f32 %v6649_v53, %v6648_v6  ;;  %v6651_v53 = vpop.f32.mrb[60].mxu1 }
 0x1f6   : > { %v6622_v21 = vadd.f32 %v6621_v59, %v6620_v37  ;;  %v6652_v63 = vpop.f32.mrb[61].mxu1  ;;  %v8060_v37 = vld [vmem:[%s8747_s27 + $0x330] ss:$100 sps:$4 sm:$0xff]  }
 0x1f7   : > { %7014 = vmatpush3.bf16.msra.mxu1 %v9592_v10  ;;  %v10529_v10 = vadd.f32 %v6647_v5, %v3102_v46  ;;  %v8063_v5 = vld [vmem:[%s8747_s27 + $0x338] ss:$100 sps:$4 sm:$0xff]  }
 0x1f8   : > { %6986 = vmatpush3.bf16.msra.mxu0 %v10516_v22  ;;  %7015 = vmatprep.subr.bf16.mxu1 %v9601_v12  ;;  %v3105_v51 = vadd.f32 %v6622_v21, %v10397_v3  ;;  %v10534_v22 = vld [vmem:[%s11717_s1 + $0x130] sm:$0xff]   ;;  %v10541_v12 = vld [vmem:[%s11717_s1 + $0x178] sm:$0xff]   ;;  %v6623_v3 = vpop.f32.mrb[56].mxu0  ;;  %v6654_v21 = vpop.f32.mrb[62].mxu1 }
 0x1f9   : > { %6987 = vmatprep.subr.bf16.mxu0 %v10523_v7  ;;  %11869 = vst [vmem:[#allocation55_spill] sm:$0xff] %v10534_v22  ;;  %11870 = vst [vmem:[#allocation56_spill] sm:$0xff] %v10541_v12  ;;  %v6624_v59 = vpop.f32.mrb[57].mxu0  ;;  %v10552_v46 = vld [vmem:[%s11717_s1 + $0x138] sm:$0xff]  }
 0x1fa   : > { %v10545_v54 = vadd.f32 %v6650_v62, %v3105_v51  ;;  %v6625_v6 = vadd.f32 %v6624_v59, %v6623_v3  ;;  %11871 = vst [vmem:[#allocation57_spill] sm:$0xff] %v10552_v46  ;;  %v6655_v51 = vpop.f32.mrb[63].mxu1 }
 0x1fb   : > { %7016 = vmatpush3.bf16.msra.mxu1 %v9610_v15  ;;  %v6626_v15 = vpop.f32.mrb[58].mxu0 }
 0x1fc   : > { %6988 = vmatpush3.bf16.msra.mxu0 %v10534_v22  ;;  %7017 = vmatprep.subr.bf16.mxu1 %v9619_v17  ;;  %v6653_v17 = vadd.f32 %v6652_v63, %v6651_v53  ;;  %v6627_v62 = vpop.f32.mrb[59].mxu0  ;;  %v3110_v3 = vadd.f32 %v6625_v6, %v10426_v4  ;;  %v6656_v22 = vadd.f32 %v6655_v51, %v6654_v21  ;;  %v8066_v53 = vld [vmem:[%s8747_s27 + $0x3fc] ss:$100 sps:$4 sm:$0x1f]   ;;  %v10606_v6 = vld [vmem:[%s11717_s1 + $0x210] sm:$0xff]  }
 0x1fd   : > { %6989 = vmatprep.subr.bf16.mxu0 %v10541_v12  ;;  %v10559_v12 = vld [vmem:[%s11717_s1 + $0x240] sm:$0xff]   ;;  %v6628_v59 = vadd.f32 %v6627_v62, %v6626_v15  ;;  %v8068_v4 = vld [vmem:[%s8747_s27 + $0x3f8] ss:$100 sps:$4 sm:$0x1f]  }
 0x1fe   : > { %11872 = vst [vmem:[#allocation58_spill] sm:$0xff] %v10559_v12  ;;  %v8069_v63 = vld [vmem:[%s8747_s27 + $0x404] ss:$100 sps:$4 sm:$0x1f]  }
 0x1ff   : > { %7018 = vmatpush3.bf16.msra.mxu1 %v9630_v23  ;;  %v3113_v23 = vadd.f32 %v6628_v59, %v10435_v24 }
 0x200   : > { %6990 = vmatpush3.bf16.msra.mxu0 %v10552_v46  ;;  %7059 = vmatprep.subr.bf16.mxu1 %v9639_v25  ;;  %v10567_v46 = vadd.f32 %v6653_v17, %v3110_v3  ;;  %v10579_v25 = vld [vmem:[%s11717_s1 + $0x248] sm:$0xff]  }
 0x201   : > { %7031 = vmatprep.subr.bf16.mxu0 %v10559_v12  ;;  %v10572_v12 = vld [vmem:[%s11717_s1 + $0x200] sm:$0xff]   ;;  %v10583_v24 = vadd.f32 %v6656_v22, %v3113_v23  ;;  %v8077_v22 = vld [vmem:[%s8747_s27 + $0x34c] ss:$100 sps:$4 sm:$0xff]  }
 0x202   : > { %4144 = vmatmul.mubr.bf16.vlgmr.msra.gmra.mrb[108].mxu1 %v8063_v5  ;;  %v10597_v5 = vld [vmem:[%s11717_s1 + $0x250] sm:$0xff]   ;;  %v10648_v3 = vld [vmem:[%s11717_s1 + $0x228] sm:$0xff]  }
 0x203   : > { %4095 = vmatmul.mubr.bf16.vlgmr.msra.gmra.mrb[108].mxu0 %v8060_v37  ;;  %7060 = vmatpush3.bf16.msra.mxu1 %v9650_v30  ;;  %v8071_v37 = vld [vmem:[%s8747_s27 + $0x400] ss:$100 sps:$4 sm:$0x1f]   ;;  %v10590_v30 = vld [vmem:[%s11717_s1 + $0x208] sm:$0xff]  }
 0x204   : > { %7032 = vmatpush3.bf16.msra.mxu0 %v10572_v12  ;;  %7061 = vmatprep.subr.bf16.mxu1 %v9659_v34  ;;  %v8074_v34 = vld [vmem:[%s8747_s27 + $0x344] ss:$100 sps:$4 sm:$0xff]  }
 0x205   : > { %7033 = vmatprep.subr.bf16.mxu0 %v10579_v25  ;;  %4102 = vmatprep.mubr.bf16.mxu0 %v8066_v53 }
 0x206   : > { %4151 = vmatprep.mubr.bf16.mxu1 %v8069_v63 }
 0x207   : > { %7062 = vmatpush3.bf16.msra.mxu1 %v9670_v47  ;;  %v10613_v47 = vld [vmem:[%s11717_s1 + $0x258] sm:$0xff]  }
 0x208   : > { %7034 = vmatpush3.bf16.msra.mxu0 %v10590_v30  ;;  %7063 = vmatprep.subr.bf16.mxu1 %v9680_v55  ;;  %v10620_v55 = vld [vmem:[%s11717_s1 + $0x218] sm:$0xff]  }
 0x209   : > { %7035 = vmatprep.subr.bf16.mxu0 %v10597_v5 }
 0x20a   : > { %4152 = vmatmul.mubr.bf16.gmra.mrb[112].mxu1 %v8071_v37 }
 0x20b   : > { %4103 = vmatmul.mubr.bf16.gmra.mrb[112].mxu0 %v8068_v4  ;;  %7064 = vmatpush3.bf16.msra.mxu1 %v9694_v0  ;;  %v10627_v0 = vld [vmem:[%s11717_s1 + $0x260] sm:$0xff]  }
 0x20c   : > { %7036 = vmatpush3.bf16.msra.mxu0 %v10606_v6  ;;  %7065 = vmatprep.subr.bf16.mxu1 %v9705_v2  ;;  %v10634_v2 = vld [vmem:[%s11717_s1 + $0x220] sm:$0xff]  }
 0x20d   : > { %7037 = vmatprep.subr.bf16.mxu0 %v10613_v47  ;;  %4192 = vmatprep.mubr.bf16.mxu0 %v8074_v34 }
 0x20e   : > { %4241 = vmatprep.mubr.bf16.mxu1 %v8077_v22  ;;  %v10666_v22 = vld [vmem:[%s11717_s1 + $0x230] sm:$0xff]  }
 0x20f   : > { %7066 = vmatpush3.bf16.msra.mxu1 %v9714_v8  ;;  %v10641_v8 = vld [vmem:[%s11717_s1 + $0x268] sm:$0xff]  }
 0x210   : > { %7038 = vmatpush3.bf16.msra.mxu0 %v10620_v55  ;;  %7067 = vmatprep.subr.bf16.mxu1 %v9723_v16  ;;  %v6701_v16 = vpop.f32.mrb[64].mxu1 }
 0x211   : > { %7039 = vmatprep.subr.bf16.mxu0 %v10627_v0  ;;  %v6702_v21 = vpop.f32.mrb[65].mxu1 }
 0x212   : > { %v6704_v59 = vpop.f32.mrb[66].mxu1 }
 0x213   : > { %7068 = vmatpush3.bf16.msra.mxu1 %v9733_v29  ;;  %v6703_v29 = vadd.f32 %v6702_v21, %v6701_v16  ;;  %v6705_v63 = vpop.f32.mrb[67].mxu1  ;;  %v8072_v21 = vld [vmem:[%s8747_s27 + $0x340] ss:$100 sps:$4 sm:$0xff]  }
 0x214   : > { %7040 = vmatpush3.bf16.msra.mxu0 %v10634_v2  ;;  %7069 = vmatprep.subr.bf16.mxu1 %v9742_v35  ;;  %v10655_v35 = vld [vmem:[%s11717_s1 + $0x270] sm:$0xff]   ;;  %v6706_v37 = vadd.f32 %v6705_v63, %v6704_v59 }
 0x215   : > { %7041 = vmatprep.subr.bf16.mxu0 %v10641_v8 }
 0x216   : > { %v6673_v15 = vpop.f32.mrb[60].mxu0 }
 0x217   : > { %v6674_v17 = vpop.f32.mrb[61].mxu0  ;;  %7070 = vmatpush3.bf16.msra.mxu1 %v9752_v44 }
 0x218   : > { %v6675_v62 = vadd.f32 %v6674_v17, %v6673_v15  ;;  %v6676_v51 = vpop.f32.mrb[62].mxu0  ;;  %7042 = vmatpush3.bf16.msra.mxu0 %v10648_v3  ;;  %7071 = vmatprep.subr.bf16.mxu1 %v9763_v48  ;;  %v10673_v48 = vld [vmem:[%s11717_s1 + $0x278] sm:$0xff]   ;;  %v6707_v15 = vpop.f32.mrb[68].mxu1 }
 0x219   : > { %v6677_v53 = vpop.f32.mrb[63].mxu0  ;;  %7043 = vmatprep.subr.bf16.mxu0 %v10655_v35  ;;  %v6708_v17 = vpop.f32.mrb[69].mxu1 }
 0x21a   : > { %v3200_v23 = vadd.f32 %v6675_v62, %v10529_v10  ;;  %v6678_v4 = vadd.f32 %v6677_v53, %v6676_v51  ;;  %v8075_v62 = vld [vmem:[%s8747_s27 + $0x348] ss:$100 sps:$4 sm:$0xff]   ;;  %v6710_v59 = vpop.f32.mrb[70].mxu1 }
 0x21b   : > { %7072 = vmatpush3.bf16.msra.mxu1 %v9774_v52  ;;  %v6711_v63 = vpop.f32.mrb[71].mxu1 }
 0x21c   : > { %v3203_v34 = vadd.f32 %v6678_v4, %v10545_v54  ;;  %v10661_v44 = vadd.f32 %v6703_v29, %v3200_v23  ;;  %7044 = vmatpush3.bf16.msra.mxu0 %v10666_v22  ;;  %7073 = vmatprep.subr.bf16.mxu1 %v9783_v56  ;;  %v10684_v29 = vld [vmem:[%s11717_s1 + $0x238] sm:$0xff]   ;;  %v6709_v56 = vadd.f32 %v6708_v17, %v6707_v15  ;;  %v10691_v23 = vld [vmem:[%s11717_s1 + $0x340] sm:$0xff]  }
 0x21d   : > { %7045 = vmatprep.subr.bf16.mxu0 %v10673_v48  ;;  %v8081_v15 = vld [vmem:[%s8747_s27 + $0x414] ss:$100 sps:$4 sm:$0x1f]   ;;  %v10704_v17 = vld [vmem:[%s11717_s1 + $0x300] sm:$0xff]  }
 0x21e   : > { %v10677_v10 = vadd.f32 %v6706_v37, %v3203_v34  ;;  %v6679_v54 = vpop.f32.mrb[64].mxu0  ;;  %v6712_v34 = vadd.f32 %v6711_v63, %v6710_v59 }
 0x21f   : > { %v6680_v16 = vpop.f32.mrb[65].mxu0  ;;  %7074 = vmatpush3.bf16.msra.mxu1 %v9794_v61 }
 0x220   : > { %v6681_v51 = vadd.f32 %v6680_v16, %v6679_v54  ;;  %v6682_v52 = vpop.f32.mrb[66].mxu0  ;;  %7046 = vmatpush3.bf16.msra.mxu0 %v10684_v29  ;;  %7115 = vmatprep.subr.bf16.mxu1 %v9803_v1  ;;  %v8078_v54 = vld [vmem:[%s8747_s27 + $0x40c] ss:$100 sps:$4 sm:$0x1f]  }
 0x221   : > { %v6683_v53 = vpop.f32.mrb[67].mxu0  ;;  %7087 = vmatprep.subr.bf16.mxu0 %v10691_v23  ;;  %v10711_v1 = vld [vmem:[%s11717_s1 + $0x348] sm:$0xff]  }
 0x222   : > { %v3208_v4 = vadd.f32 %v6681_v51, %v10567_v46  ;;  %v6684_v37 = vadd.f32 %v6683_v53, %v6682_v52  ;;  %4242 = vmatmul.mubr.bf16.vlgmr.msra.gmra.mrb[116].mxu1 %v8075_v62  ;;  %v10729_v62 = vld [vmem:[%s11717_s1 + $0x350] sm:$0xff]   ;;  %v8089_v51 = vld [vmem:[%s8747_s27 + $0x35c] ss:$100 sps:$4 sm:$0xff]  }
 0x223   : > { %4193 = vmatmul.mubr.bf16.vlgmr.msra.gmra.mrb[116].mxu0 %v8072_v21  ;;  %7116 = vmatpush3.bf16.msra.mxu1 %v9814_v14  ;;  %v8083_v21 = vld [vmem:[%s8747_s27 + $0x410] ss:$100 sps:$4 sm:$0x1f]   ;;  %v10722_v14 = vld [vmem:[%s11717_s1 + $0x308] sm:$0xff]  }
 0x224   : > { %v3211_v61 = vadd.f32 %v6684_v37, %v10583_v24  ;;  %v10699_v16 = vadd.f32 %v6709_v56, %v3208_v4  ;;  %7088 = vmatpush3.bf16.msra.mxu0 %v10704_v17  ;;  %7117 = vmatprep.subr.bf16.mxu1 %v9823_v20  ;;  %v8080_v24 = vld [vmem:[%s8747_s27 + $0x408] ss:$100 sps:$4 sm:$0x1f]   ;;  %v8086_v20 = vld [vmem:[%s8747_s27 + $0x354] ss:$100 sps:$4 sm:$0xff]  }
 0x225   : > { %7089 = vmatprep.subr.bf16.mxu0 %v10711_v1  ;;  %4200 = vmatprep.mubr.bf16.mxu0 %v8078_v54  ;;  %v10738_v52 = vld [vmem:[%s11717_s1 + $0x310] sm:$0xff]   ;;  %v10780_v37 = vld [vmem:[%s11717_s1 + $0x328] sm:$0xff]   ;;  %v11874_v54 = vld [vmem:[#allocation2_spill] sm:$0xff] }
 0x226   : > { %v10715_v46 = vadd.f32 %v6712_v34, %v3211_v61  ;;  %4249 = vmatprep.mubr.bf16.mxu1 %v8081_v15  ;;  %11873 = vst [vmem:[#allocation59_spill] sm:$0xff] %v10780_v37 }
 0x227   : > { %7118 = vmatpush3.bf16.msra.mxu1 %v9834_v28  ;;  %v10745_v28 = vld [vmem:[%s11717_s1 + $0x358] sm:$0xff]  }
 0x228   : > { %7090 = vmatpush3.bf16.msra.mxu0 %v10722_v14  ;;  %7119 = vmatprep.subr.bf16.mxu1 %v9843_v33  ;;  %v10752_v33 = vld [vmem:[%s11717_s1 + $0x318] sm:$0xff]  }
 0x229   : > { %7091 = vmatprep.subr.bf16.mxu0 %v10729_v62 }
 0x22a   : > { %4250 = vmatmul.mubr.bf16.gmra.mrb[120].mxu1 %v8083_v21 }
 0x22b   : > { %4201 = vmatmul.mubr.bf16.gmra.mrb[120].mxu0 %v8080_v24  ;;  %7120 = vmatpush3.bf16.msra.mxu1 %v9854_v45  ;;  %v10759_v45 = vld [vmem:[%s11717_s1 + $0x360] sm:$0xff]   ;;  %v11876_v24 = vld [vmem:[#allocation3_spill] sm:$0xff] }
 0x22c   : > { %7092 = vmatpush3.bf16.msra.mxu0 %v10738_v52  ;;  %7121 = vmatprep.subr.bf16.mxu1 %v9863_v58  ;;  %v10766_v58 = vld [vmem:[%s11717_s1 + $0x320] sm:$0xff]  }
 0x22d   : > { %7093 = vmatprep.subr.bf16.mxu0 %v10745_v28  ;;  %4290 = vmatprep.mubr.bf16.mxu0 %v8086_v20 }
 0x22e   : > { %4339 = vmatprep.mubr.bf16.mxu1 %v8089_v51 }
 0x22f   : > { %7122 = vmatpush3.bf16.msra.mxu1 %v9873_v26  ;;  %v10773_v26 = vld [vmem:[%s11717_s1 + $0x368] sm:$0xff]  }
 0x230   : > { %7094 = vmatpush3.bf16.msra.mxu0 %v10752_v33  ;;  %7123 = vmatprep.subr.bf16.mxu1 %v9885_v36  ;;  %v6757_v36 = vpop.f32.mrb[72].mxu1 }
 0x231   : > { %7095 = vmatprep.subr.bf16.mxu0 %v10759_v45  ;;  %v6758_v53 = vpop.f32.mrb[73].mxu1 }
 0x232   : > { %v6760_v34 = vpop.f32.mrb[74].mxu1 }
 0x233   : > { %7124 = vmatpush3.bf16.msra.mxu1 %v9896_v40  ;;  %v6759_v40 = vadd.f32 %v6758_v53, %v6757_v36  ;;  %v6761_v61 = vpop.f32.mrb[75].mxu1  ;;  %v11878_v53 = vld [vmem:[#allocation4_spill] sm:$0xff] }
 0x234   : > { %7096 = vmatpush3.bf16.msra.mxu0 %v10766_v58  ;;  %7125 = vmatprep.subr.bf16.mxu1 %v9905_v9  ;;  %v10787_v9 = vld [vmem:[%s11717_s1 + $0x370] sm:$0xff]   ;;  %v6762_v51 = vadd.f32 %v6761_v61, %v6760_v34  ;;  %v8087_v61 = vld [vmem:[%s8747_s27 + $0x358] ss:$100 sps:$4 sm:$0xff]  }
 0x235   : > { %7097 = vmatprep.subr.bf16.mxu0 %v10773_v26  ;;  %11875 = vst [vmem:[#allocation2_spill] sm:$0xff] %v10787_v9 }
 0x236   : > { %v6729_v56 = vpop.f32.mrb[68].mxu0 }
 0x237   : > { %v6730_v59 = vpop.f32.mrb[69].mxu0  ;;  %7126 = vmatpush3.bf16.msra.mxu1 %v11874_v54 }
 0x238   : > { %v6731_v63 = vadd.f32 %v6730_v59, %v6729_v56  ;;  %v6732_v4 = vpop.f32.mrb[70].mxu0  ;;  %7098 = vmatpush3.bf16.msra.mxu0 %v10780_v37  ;;  %7127 = vmatprep.subr.bf16.mxu1 %v11876_v24  ;;  %v10798_v59 = vld [vmem:[%s11717_s1 + $0x330] sm:$0xff]  }
 0x239   : > { %v6733_v15 = vpop.f32.mrb[71].mxu0  ;;  %7099 = vmatprep.subr.bf16.mxu0 %v10787_v9  ;;  %11877 = vst [vmem:[#allocation3_spill] sm:$0xff] %v10798_v59 }
 0x23a   : > { %v3298_v21 = vadd.f32 %v6731_v63, %v10661_v44  ;;  %v6734_v20 = vadd.f32 %v6733_v15, %v6732_v4  ;;  %v10805_v44 = vld [vmem:[%s11717_s1 + $0x378] sm:$0xff]   ;;  %v8084_v15 = vld [vmem:[%s8747_s27 + $0x350] ss:$100 sps:$4 sm:$0xff]  }
 0x23b   : > { %7128 = vmatpush3.bf16.msra.mxu1 %v11878_v53  ;;  %11879 = vst [vmem:[#allocation4_spill] sm:$0xff] %v10805_v44  ;;  %v11880_v63 = vld [vmem:[#allocation5_spill] sm:$0xff] }
 0x23c   : > { %v3301_v56 = vadd.f32 %v6734_v20, %v10677_v10  ;;  %v10793_v36 = vadd.f32 %v6759_v40, %v3298_v21  ;;  %7100 = vmatpush3.bf16.msra.mxu0 %v10798_v59  ;;  %7129 = vmatprep.subr.bf16.mxu1 %v11880_v63  ;;  %v6763_v40 = vpop.f32.mrb[76].mxu1  ;;  %v10816_v20 = vld [vmem:[%s11717_s1 + $0x338] sm:$0xff]   ;;  %v10823_v59 = vld [vmem:[%s11717_s1 + $0x440] sm:$0xff]  }
 0x23d   : > { %7101 = vmatprep.subr.bf16.mxu0 %v10805_v44  ;;  %v6764_v54 = vpop.f32.mrb[77].mxu1  ;;  %11881 = vst [vmem:[#allocation5_spill] sm:$0xff] %v10816_v20 }
 0x23e   : > { %v10809_v10 = vadd.f32 %v6762_v51, %v3301_v56  ;;  %v6735_v4 = vpop.f32.mrb[72].mxu0  ;;  %v6765_v53 = vadd.f32 %v6764_v54, %v6763_v40  ;;  %v6766_v51 = vpop.f32.mrb[78].mxu1  ;;  %v11882_v56 = vld [vmem:[#allocation6_spill] sm:$0xff] }
 0x23f   : > { %v6736_v34 = vpop.f32.mrb[73].mxu0  ;;  %7130 = vmatpush3.bf16.msra.mxu1 %v11882_v56  ;;  %v6767_v44 = vpop.f32.mrb[79].mxu1  ;;  %11883 = vst [vmem:[#allocation6_spill] sm:$0xff] %v10823_v59  ;;  %v8090_v40 = vld [vmem:[%s8747_s27 + $0x41c] ss:$100 sps:$4 sm:$0x1f]  }
 0x240   : > { %v6737_v24 = vadd.f32 %v6736_v34, %v6735_v4  ;;  %v6738_v21 = vpop.f32.mrb[74].mxu0  ;;  %7102 = vmatpush3.bf16.msra.mxu0 %v10816_v20  ;;  %v11884_v4 = vld [vmem:[#allocation7_spill] sm:$0xff]  ;;  %v6768_v37 = vadd.f32 %v6767_v44, %v6766_v51 }
 0x241   : > { %v6739_v63 = vpop.f32.mrb[75].mxu0  ;;  %7143 = vmatprep.subr.bf16.mxu0 %v10823_v59  ;;  %7171 = vmatprep.subr.bf16.mxu1 %v11884_v4  ;;  %v8093_v54 = vld [vmem:[%s8747_s27 + $0x424] ss:$100 sps:$4 sm:$0x1f]   ;;  %v10870_v4 = vld [vmem:[%s11717_s1 + $0x410] sm:$0xff]  }
 0x242   : > { %v3306_v34 = vadd.f32 %v6737_v24, %v10699_v16  ;;  %v6740_v9 = vadd.f32 %v6739_v63, %v6738_v21  ;;  %4340 = vmatmul.mubr.bf16.vlgmr.msra.gmra.mrb[124].mxu1 %v8087_v61  ;;  %v10836_v59 = vld [vmem:[%s11717_s1 + $0x400] sm:$0xff]   ;;  %v11886_v16 = vld [vmem:[#allocation8_spill] sm:$0xff]  ;;  %v10843_v44 = vld [vmem:[%s11717_s1 + $0x448] sm:$0xff]  }
 0x243   : > { %4291 = vmatmul.mubr.bf16.vlgmr.msra.gmra.mrb[124].mxu0 %v8084_v15  ;;  %11885 = vst [vmem:[#allocation7_spill] sm:$0xff] %v10836_v59  ;;  %7172 = vmatpush3.bf16.msra.mxu1 %v11886_v16  ;;  %11887 = vst [vmem:[#allocation8_spill] sm:$0xff] %v10843_v44  ;;  %v8092_v15 = vld [vmem:[%s8747_s27 + $0x418] ss:$100 sps:$4 sm:$0x1f]   ;;  %v10854_v24 = vld [vmem:[%s11717_s1 + $0x408] sm:$0xff]  }
 0x244   : > { %v3309_v56 = vadd.f32 %v6740_v9, %v10715_v46  ;;  %v10831_v20 = vadd.f32 %v6765_v53, %v3306_v34  ;;  %7144 = vmatpush3.bf16.msra.mxu0 %v10836_v59  ;;  %v11888_v46 = vld [vmem:[#allocation9_spill] sm:$0xff]  ;;  %4298 = vmatprep.mubr.bf16.mxu0 %v8090_v40  ;;  %v8095_v61 = vld [vmem:[%s8747_s27 + $0x420] ss:$100 sps:$4 sm:$0x1f]   ;;  %v10861_v53 = vld [vmem:[%s11717_s1 + $0x450] sm:$0xff]  }
 0x245   : > { %7145 = vmatprep.subr.bf16.mxu0 %v10843_v44  ;;  %7173 = vmatprep.subr.bf16.mxu1 %v11888_v46  ;;  %11889 = vst [vmem:[#allocation9_spill] sm:$0xff] %v10854_v24  ;;  %v11890_v21 = vld [vmem:[#allocation10_spill] sm:$0xff]  ;;  %v8101_v63 = vld [vmem:[%s8747_s27 + $0x36c] ss:$100 sps:$4 sm:$0xff]   ;;  %v10877_v40 = vld [vmem:[%s11717_s1 + $0x458] sm:$0xff]  }
 0x246   : > { %v10847_v9 = vadd.f32 %v6768_v37, %v3309_v56  ;;  %4347 = vmatprep.mubr.bf16.mxu1 %v8093_v54  ;;  %11891 = vst [vmem:[#allocation10_spill] sm:$0xff] %v10861_v53  ;;  %v11892_v37 = vld [vmem:[#allocation11_spill] sm:$0xff]  ;;  %v11894_v34 = vld [vmem:[#allocation12_spill] sm:$0xff]  ;;  %v11896_v54 = vld [vmem:[#allocation13_spill] sm:$0xff] }
 0x247   : > { %7174 = vmatpush3.bf16.msra.mxu1 %v11890_v21  ;;  %v8098_v51 = vld [vmem:[%s8747_s27 + $0x364] ss:$100 sps:$4 sm:$0xff]   ;;  %11893 = vst [vmem:[#allocation11_spill] sm:$0xff] %v10870_v4  ;;  %11895 = vst [vmem:[#allocation12_spill] sm:$0xff] %v10877_v40  ;;  %v10884_v56 = vld [vmem:[%s11717_s1 + $0x418] sm:$0xff]  }
 0x248   : > { %7146 = vmatpush3.bf16.msra.mxu0 %v10854_v24  ;;  %7175 = vmatprep.subr.bf16.mxu1 %v11892_v37  ;;  %11897 = vst [vmem:[#allocation13_spill] sm:$0xff] %v10884_v56  ;;  %v11898_v16 = vld [vmem:[#allocation14_spill] sm:$0xff]  ;;  %v11902_v21 = vld [vmem:[#allocation16_spill] sm:$0xff]  ;;  %v10905_v37 = vld [vmem:[%s11717_s1 + $0x468] sm:$0xff]  }
 0x249   : > { %7147 = vmatprep.subr.bf16.mxu0 %v10861_v53  ;;  %v10891_v46 = vld [vmem:[%s11717_s1 + $0x460] sm:$0xff]   ;;  %11903 = vst [vmem:[#allocation16_spill] sm:$0xff] %v10905_v37 }
 0x24a   : > { %4348 = vmatmul.mubr.bf16.gmra.mrb[128].mxu1 %v8095_v61  ;;  %11899 = vst [vmem:[#allocation14_spill] sm:$0xff] %v10891_v46  ;;  %v10898_v61 = vld [vmem:[%s11717_s1 + $0x420] sm:$0xff]  }
 0x24b   : > { %4299 = vmatmul.mubr.bf16.gmra.mrb[128].mxu0 %v8092_v15  ;;  %7176 = vmatpush3.bf16.msra.mxu1 %v11894_v34  ;;  %v11900_v15 = vld [vmem:[#allocation15_spill] sm:$0xff]  ;;  %v10955_v24 = vld [vmem:[%s11717_s1 + $0x540] sm:$0xff]  }
 0x24c   : > { %7148 = vmatpush3.bf16.msra.mxu0 %v10870_v4  ;;  %7177 = vmatprep.subr.bf16.mxu1 %v11896_v54  ;;  %11901 = vst [vmem:[#allocation15_spill] sm:$0xff] %v10898_v61 }
 0x24d   : > { %7149 = vmatprep.subr.bf16.mxu0 %v10877_v40  ;;  %4388 = vmatprep.mubr.bf16.mxu0 %v8098_v51  ;;  %v11904_v51 = vld [vmem:[#allocation17_spill] sm:$0xff]  ;;  %v11906_v40 = vld [vmem:[#allocation18_spill] sm:$0xff] }
 0x24e   : > { %4437 = vmatprep.mubr.bf16.mxu1 %v8101_v63 }
 0x24f   : > { %7178 = vmatpush3.bf16.msra.mxu1 %v11898_v16 }
 0x250   : > { %7150 = vmatpush3.bf16.msra.mxu0 %v10884_v56  ;;  %7179 = vmatprep.subr.bf16.mxu1 %v11900_v15  ;;  %v6813_v34 = vpop.f32.mrb[80].mxu1 }
 0x251   : > { %7151 = vmatprep.subr.bf16.mxu0 %v10891_v46  ;;  %v6814_v16 = vpop.f32.mrb[81].mxu1 }
 0x252   : > { %v6816_v56 = vpop.f32.mrb[82].mxu1 }
 0x253   : > { %7180 = vmatpush3.bf16.msra.mxu1 %v11902_v21  ;;  %v6815_v21 = vadd.f32 %v6814_v16, %v6813_v34  ;;  %v6817_v4 = vpop.f32.mrb[83].mxu1 }
 0x254   : > { %7152 = vmatpush3.bf16.msra.mxu0 %v10898_v61  ;;  %7181 = vmatprep.subr.bf16.mxu1 %v11904_v51  ;;  %v10912_v61 = vld [vmem:[%s11717_s1 + $0x428] sm:$0xff]   ;;  %v10919_v51 = vld [vmem:[%s11717_s1 + $0x470] sm:$0xff]   ;;  %v6818_v34 = vadd.f32 %v6817_v4, %v6816_v56  ;;  %v11912_v4 = vld [vmem:[#allocation21_spill] sm:$0xff] }
 0x255   : > { %7153 = vmatprep.subr.bf16.mxu0 %v10905_v37  ;;  %11905 = vst [vmem:[#allocation17_spill] sm:$0xff] %v10912_v61  ;;  %11907 = vst [vmem:[#allocation18_spill] sm:$0xff] %v10919_v51 }
 0x256   : > { %v6785_v63 = vpop.f32.mrb[76].mxu0 }
 0x257   : > { %v6786_v54 = vpop.f32.mrb[77].mxu0  ;;  %7182 = vmatpush3.bf16.msra.mxu1 %v11906_v40 }
 0x258   : > { %v6787_v15 = vadd.f32 %v6786_v54, %v6785_v63  ;;  %v6788_v46 = vpop.f32.mrb[78].mxu0  ;;  %7154 = vmatpush3.bf16.msra.mxu0 %v10912_v61  ;;  %v11908_v63 = vld [vmem:[#allocation19_spill] sm:$0xff]  ;;  %v10930_v61 = vld [vmem:[%s11717_s1 + $0x430] sm:$0xff]  }
 0x259   : > { %v6789_v37 = vpop.f32.mrb[79].mxu0  ;;  %7155 = vmatprep.subr.bf16.mxu0 %v10919_v51  ;;  %7183 = vmatprep.subr.bf16.mxu1 %v11908_v63  ;;  %11909 = vst [vmem:[#allocation19_spill] sm:$0xff] %v10930_v61  ;;  %v11910_v51 = vld [vmem:[#allocation20_spill] sm:$0xff]  ;;  %v6819_v56 = vpop.f32.mrb[84].mxu1 }
 0x25a   : > { %v3396_v54 = vadd.f32 %v6787_v15, %v10793_v36  ;;  %v6790_v53 = vadd.f32 %v6789_v37, %v6788_v46  ;;  %v10937_v36 = vld [vmem:[%s11717_s1 + $0x478] sm:$0xff]   ;;  %v6820_v37 = vpop.f32.mrb[85].mxu1  ;;  %v8096_v15 = vld [vmem:[%s8747_s27 + $0x360] ss:$100 sps:$4 sm:$0xff]  }
 0x25b   : > { %7184 = vmatpush3.bf16.msra.mxu1 %v11910_v51  ;;  %11911 = vst [vmem:[#allocation20_spill] sm:$0xff] %v10937_v36 }
 0x25c   : > { %v3399_v16 = vadd.f32 %v6790_v53, %v10809_v10  ;;  %v10925_v40 = vadd.f32 %v6815_v21, %v3396_v54  ;;  %7156 = vmatpush3.bf16.msra.mxu0 %v10930_v61  ;;  %7185 = vmatprep.subr.bf16.mxu1 %v11912_v4  ;;  %v8099_v21 = vld [vmem:[%s8747_s27 + $0x368] ss:$100 sps:$4 sm:$0xff]   ;;  %v10948_v54 = vld [vmem:[%s11717_s1 + $0x438] sm:$0xff]   ;;  %v6821_v4 = vadd.f32 %v6820_v37, %v6819_v56 }
 0x25d   : > { %7157 = vmatprep.subr.bf16.mxu0 %v10937_v36  ;;  %11913 = vst [vmem:[#allocation21_spill] sm:$0xff] %v10948_v54  ;;  %v8102_v56 = vld [vmem:[%s8747_s27 + $0x42c] ss:$100 sps:$4 sm:$0x1f]  }
 0x25e   : > { %v10941_v10 = vadd.f32 %v6818_v34, %v3399_v16  ;;  %v6791_v53 = vpop.f32.mrb[80].mxu0  ;;  %v6822_v34 = vpop.f32.mrb[86].mxu1  ;;  %v11914_v16 = vld [vmem:[#allocation22_spill] sm:$0xff]  ;;  %v8105_v37 = vld [vmem:[%s8747_s27 + $0x434] ss:$100 sps:$4 sm:$0x1f]  }
 0x25f   : > { %v6792_v46 = vpop.f32.mrb[81].mxu0  ;;  %7186 = vmatpush3.bf16.msra.mxu1 %v11914_v16  ;;  %v6823_v61 = vpop.f32.mrb[87].mxu1  ;;  %11915 = vst [vmem:[#allocation22_spill] sm:$0xff] %v10955_v24 }
 0x260   : > { %v6793_v63 = vadd.f32 %v6792_v46, %v6791_v53  ;;  %v6794_v51 = vpop.f32.mrb[82].mxu0  ;;  %7158 = vmatpush3.bf16.msra.mxu0 %v10948_v54  ;;  %v11916_v53 = vld [vmem:[#allocation23_spill] sm:$0xff]  ;;  %v6824_v59 = vadd.f32 %v6823_v61, %v6822_v34  ;;  %v8113_v34 = vld [vmem:[%s8747_s27 + $0x37c] ss:$100 sps:$4 sm:$0xff]  }
 0x261   : > { %v6795_v36 = vpop.f32.mrb[83].mxu0  ;;  %7199 = vmatprep.subr.bf16.mxu0 %v10955_v24  ;;  %7227 = vmatprep.subr.bf16.mxu1 %v11916_v53  ;;  %v10968_v24 = vld [vmem:[%s11717_s1 + $0x500] sm:$0xff]   ;;  %v10975_v61 = vld [vmem:[%s11717_s1 + $0x548] sm:$0xff]   ;;  %v11002_v53 = vld [vmem:[%s11717_s1 + $0x510] sm:$0xff]  }
 0x262   : > { %v3404_v46 = vadd.f32 %v6793_v63, %v10831_v20  ;;  %v6796_v44 = vadd.f32 %v6795_v36, %v6794_v51  ;;  %4438 = vmatmul.mubr.bf16.vlgmr.msra.gmra.mrb[132].mxu1 %v8099_v21  ;;  %v11917_v20 = vld [vmem:[#allocation24_spill] sm:$0xff]  ;;  %11918 = vst [vmem:[#allocation23_spill] sm:$0xff] %v10975_v61  ;;  %v8104_v36 = vld [vmem:[%s8747_s27 + $0x428] ss:$100 sps:$4 sm:$0x1f]   ;;  %v11921_v63 = vld [vmem:[#allocation26_spill] sm:$0xff] }
 0x263   : > { %4389 = vmatmul.mubr.bf16.vlgmr.msra.gmra.mrb[132].mxu0 %v8096_v15  ;;  %7228 = vmatpush3.bf16.msra.mxu1 %v11917_v20  ;;  %v8107_v15 = vld [vmem:[%s8747_s27 + $0x430] ss:$100 sps:$4 sm:$0x1f]   ;;  %v10986_v21 = vld [vmem:[%s11717_s1 + $0x508] sm:$0xff]   ;;  %11924 = vst [vmem:[#allocation26_spill] sm:$0xff] %v11002_v53  ;;  %v11929_v20 = vld [vmem:[#allocation30_spill] sm:$0xff] }
 0x264   : > { %v3407_v16 = vadd.f32 %v6796_v44, %v10847_v9  ;;  %v10963_v54 = vadd.f32 %v6821_v4, %v3404_v46  ;;  %7200 = vmatpush3.bf16.msra.mxu0 %v10968_v24  ;;  %v11919_v44 = vld [vmem:[#allocation25_spill] sm:$0xff]  ;;  %4396 = vmatprep.mubr.bf16.mxu0 %v8102_v56  ;;  %11920 = vst [vmem:[#allocation24_spill] sm:$0xff] %v10986_v21  ;;  %v10993_v51 = vld [vmem:[%s11717_s1 + $0x550] sm:$0xff]  }
 0x265   : > { %7201 = vmatprep.subr.bf16.mxu0 %v10975_v61  ;;  %7229 = vmatprep.subr.bf16.mxu1 %v11919_v44  ;;  %11922 = vst [vmem:[#allocation25_spill] sm:$0xff] %v10993_v51  ;;  %v8110_v4 = vld [vmem:[%s8747_s27 + $0x374] ss:$100 sps:$4 sm:$0xff]   ;;  %v11023_v44 = vld [vmem:[%s11717_s1 + $0x560] sm:$0xff]  }
 0x266   : > { %v10979_v9 = vadd.f32 %v6824_v59, %v3407_v16  ;;  %4445 = vmatprep.mubr.bf16.mxu1 %v8105_v37  ;;  %v11923_v59 = vld [vmem:[#allocation27_spill] sm:$0xff]  ;;  %v11925_v46 = vld [vmem:[#allocation28_spill] sm:$0xff]  ;;  %v11009_v56 = vld [vmem:[%s11717_s1 + $0x558] sm:$0xff]  }
 0x267   : > { %7230 = vmatpush3.bf16.msra.mxu1 %v11921_v63  ;;  %11926 = vst [vmem:[#allocation27_spill] sm:$0xff] %v11009_v56  ;;  %v11927_v37 = vld [vmem:[#allocation29_spill] sm:$0xff]  ;;  %v11933_v63 = vld [vmem:[#allocation32_spill] sm:$0xff] }
 0x268   : > { %7202 = vmatpush3.bf16.msra.mxu0 %v10986_v21  ;;  %7231 = vmatprep.subr.bf16.mxu1 %v11923_v59  ;;  %v11016_v16 = vld [vmem:[%s11717_s1 + $0x518] sm:$0xff]   ;;  %11930 = vst [vmem:[#allocation29_spill] sm:$0xff] %v11023_v44  ;;  %v11037_v59 = vld [vmem:[%s11717_s1 + $0x568] sm:$0xff]   ;;  %v11087_v21 = vld [vmem:[%s11717_s1 + $0x600] sm:$0xff]  }
 0x269   : > { %7203 = vmatprep.subr.bf16.mxu0 %v10993_v51  ;;  %11928 = vst [vmem:[#allocation28_spill] sm:$0xff] %v11016_v16 }
 0x26a   : > { %4446 = vmatmul.mubr.bf16.gmra.mrb[136].mxu1 %v8107_v15  ;;  %v11030_v15 = vld [vmem:[%s11717_s1 + $0x520] sm:$0xff]  }
 0x26b   : > { %4397 = vmatmul.mubr.bf16.gmra.mrb[136].mxu0 %v8104_v36  ;;  %7232 = vmatpush3.bf16.msra.mxu1 %v11925_v46  ;;  %v11931_v36 = vld [vmem:[#allocation31_spill] sm:$0xff]  ;;  %11932 = vst [vmem:[#allocation30_spill] sm:$0xff] %v11030_v15 }
 0x26c   : > { %7204 = vmatpush3.bf16.msra.mxu0 %v11002_v53  ;;  %7233 = vmatprep.subr.bf16.mxu1 %v11927_v37  ;;  %11934 = vst [vmem:[#allocation31_spill] sm:$0xff] %v11037_v59 }
 0x26d   : > { %7205 = vmatprep.subr.bf16.mxu0 %v11009_v56  ;;  %4486 = vmatprep.mubr.bf16.mxu0 %v8110_v4  ;;  %v11935_v4 = vld [vmem:[#allocation33_spill] sm:$0xff]  ;;  %v11937_v56 = vld [vmem:[#allocation34_spill] sm:$0xff] }
 0x26e   : > { %4535 = vmatprep.mubr.bf16.mxu1 %v8113_v34 }
 0x26f   : > { %7234 = vmatpush3.bf16.msra.mxu1 %v11929_v20 }
 0x270   : > { %7206 = vmatpush3.bf16.msra.mxu0 %v11016_v16  ;;  %7235 = vmatprep.subr.bf16.mxu1 %v11931_v36 }
 0x271   : > { %7207 = vmatprep.subr.bf16.mxu0 %v11023_v44 }
 0x273   : > { %7236 = vmatpush3.bf16.msra.mxu1 %v11933_v63 }
 0x274   : > { %7208 = vmatpush3.bf16.msra.mxu0 %v11030_v15  ;;  %7237 = vmatprep.subr.bf16.mxu1 %v11935_v4  ;;  %v11044_v15 = vld [vmem:[%s11717_s1 + $0x528] sm:$0xff]   ;;  %v11051_v4 = vld [vmem:[%s11717_s1 + $0x570] sm:$0xff]  }
 0x275   : > { %7209 = vmatprep.subr.bf16.mxu0 %v11037_v59  ;;  %v6869_v46 = vpop.f32.mrb[88].mxu1  ;;  %11936 = vst [vmem:[#allocation32_spill] sm:$0xff] %v11044_v15  ;;  %11938 = vst [vmem:[#allocation33_spill] sm:$0xff] %v11051_v4 }
 0x276   : > { %v6841_v34 = vpop.f32.mrb[84].mxu0  ;;  %v6870_v20 = vpop.f32.mrb[89].mxu1 }
 0x277   : > { %v6842_v37 = vpop.f32.mrb[85].mxu0  ;;  %v6871_v63 = vadd.f32 %v6870_v20, %v6869_v46  ;;  %v6872_v16 = vpop.f32.mrb[90].mxu1  ;;  %7238 = vmatpush3.bf16.msra.mxu1 %v11937_v56 }
 0x278   : > { %v6843_v36 = vadd.f32 %v6842_v37, %v6841_v34  ;;  %v6844_v44 = vpop.f32.mrb[86].mxu0  ;;  %7210 = vmatpush3.bf16.msra.mxu0 %v11044_v15  ;;  %v6873_v53 = vpop.f32.mrb[91].mxu1  ;;  %v11939_v34 = vld [vmem:[#allocation35_spill] sm:$0xff]  ;;  %v11062_v15 = vld [vmem:[%s11717_s1 + $0x530] sm:$0xff]  }
 0x279   : > { %v6845_v59 = vpop.f32.mrb[87].mxu0  ;;  %7211 = vmatprep.subr.bf16.mxu0 %v11051_v4  ;;  %7239 = vmatprep.subr.bf16.mxu1 %v11939_v34  ;;  %v6874_v46 = vadd.f32 %v6873_v53, %v6872_v16  ;;  %11940 = vst [vmem:[#allocation34_spill] sm:$0xff] %v11062_v15  ;;  %v11941_v4 = vld [vmem:[#allocation36_spill] sm:$0xff]  ;;  %v11943_v53 = vld [vmem:[#allocation37_spill] sm:$0xff] }
 0x27a   : > { %v3494_v37 = vadd.f32 %v6843_v36, %v10925_v40  ;;  %v6846_v51 = vadd.f32 %v6845_v59, %v6844_v44  ;;  %v11069_v40 = vld [vmem:[%s11717_s1 + $0x578] sm:$0xff]   ;;  %v8108_v36 = vld [vmem:[%s8747_s27 + $0x370] ss:$100 sps:$4 sm:$0xff]  }
 0x27b   : > { %7240 = vmatpush3.bf16.msra.mxu1 %v11941_v4  ;;  %11942 = vst [vmem:[#allocation35_spill] sm:$0xff] %v11069_v40 }
 0x27c   : > { %v3497_v20 = vadd.f32 %v6846_v51, %v10941_v10  ;;  %v11057_v56 = vadd.f32 %v6871_v63, %v3494_v37  ;;  %7212 = vmatpush3.bf16.msra.mxu0 %v11062_v15  ;;  %7241 = vmatprep.subr.bf16.mxu1 %v11943_v53  ;;  %v8111_v63 = vld [vmem:[%s8747_s27 + $0x378] ss:$100 sps:$4 sm:$0xff]  }
 0x27d   : > { %7213 = vmatprep.subr.bf16.mxu0 %v11069_v40  ;;  %v6875_v16 = vpop.f32.mrb[92].mxu1  ;;  %v11080_v37 = vld [vmem:[%s11717_s1 + $0x538] sm:$0xff]  }
 0x27e   : > { %v11073_v10 = vadd.f32 %v6874_v46, %v3497_v20  ;;  %v6847_v51 = vpop.f32.mrb[88].mxu0  ;;  %v6876_v59 = vpop.f32.mrb[93].mxu1  ;;  %11944 = vst [vmem:[#allocation36_spill] sm:$0xff] %v11080_v37  ;;  %v11945_v20 = vld [vmem:[#allocation38_spill] sm:$0xff] }
 0x27f   : > { %v6848_v44 = vpop.f32.mrb[89].mxu0  ;;  %v6877_v53 = vadd.f32 %v6876_v59, %v6875_v16  ;;  %v6878_v46 = vpop.f32.mrb[94].mxu1  ;;  %7242 = vmatpush3.bf16.msra.mxu1 %v11945_v20  ;;  %v8114_v16 = vld [vmem:[%s8747_s27 + $0x43c] ss:$100 sps:$4 sm:$0x1f]  }
 0x280   : > { %v6849_v34 = vadd.f32 %v6848_v44, %v6847_v51  ;;  %v6850_v4 = vpop.f32.mrb[90].mxu0  ;;  %7214 = vmatpush3.bf16.msra.mxu0 %v11080_v37  ;;  %v6879_v15 = vpop.f32.mrb[95].mxu1  ;;  %7265 = vmatprep.subr.bf16.mxu1 %v10266_v42  ;;  %v8117_v59 = vld [vmem:[%s8747_s27 + $0x444] ss:$100 sps:$4 sm:$0x1f]  }
 0x281   : > { %v6851_v40 = vpop.f32.mrb[91].mxu0  ;;  %7651 = vmatprep.subr.bf16.mxu0 %v11087_v21  ;;  %v6880_v37 = vadd.f32 %v6879_v15, %v6878_v46  ;;  %v11102_v42 = vld [vmem:[%s11717_s1 + $0x608] sm:$0xff]   ;;  %v8119_v15 = vld [vmem:[%s8747_s27 + $0x440] ss:$100 sps:$4 sm:$0x1f]  }
 0x282   : > { %v3502_v51 = vadd.f32 %v6849_v34, %v10963_v54  ;;  %v6852_v44 = vadd.f32 %v6851_v40, %v6850_v4  ;;  %4536 = vmatmul.mubr.bf16.vlgmr.msra.gmra.mrb[140].mxu1 %v8111_v63  ;;  %v8124_v40 = vld [vmem:[%s8747_s27 + $0x4b4] ss:$100 sps:$4 sm:$0xff]   ;;  %v11135_v63 = vld [vmem:[%s11717_s1 + $0x620] sm:$0xff]   ;;  %v11144_v4 = vld [vmem:[%s11717_s1 + $0x628] sm:$0xff]  }
 0x283   : > { %4487 = vmatmul.mubr.bf16.vlgmr.msra.gmra.mrb[140].mxu0 %v8108_v36  ;;  %7266 = vmatpush3.bf16.msra.mxu1 %v10278_v60  ;;  %v11115_v60 = vld [vmem:[%s11717_s1 + $0x610] sm:$0xff]   ;;  %v11946_v36 = vld [vmem:[#allocation39_spill] sm:$0xff]  ;;  %v11949_v34 = vld [vmem:[#allocation42_spill] sm:$0xff] }
 0x284   : > { %v3505_v20 = vadd.f32 %v6852_v44, %v10979_v9  ;;  %v11095_v61 = vadd.f32 %v6877_v53, %v3502_v51  ;;  %7652 = vmatpush3.bf16.msra.mxu0 %v11087_v21  ;;  %7267 = vmatprep.subr.bf16.mxu1 %v10287_v57  ;;  %v8116_v9 = vld [vmem:[%s8747_s27 + $0x438] ss:$100 sps:$4 sm:$0x1f]   ;;  %v8120_v57 = vld [vmem:[%s8747_s27 + $0x380] ss:$100 sps:$4 sm:$0xff]  }
 0x285   : > { %7653 = vmatprep.subr.bf16.mxu0 %v11102_v42  ;;  %4494 = vmatprep.mubr.bf16.mxu0 %v8114_v16 }
 0x286   : > { %v11106_v54 = vadd.f32 %v6880_v37, %v3505_v20  ;;  %4543 = vmatprep.mubr.bf16.mxu1 %v8117_v59  ;;  %v11950_v59 = vld [vmem:[#allocation45_spill] sm:$0xff] }
 0x287   : > { %7268 = vmatpush3.bf16.msra.mxu1 %v10297_v31  ;;  %v11126_v31 = vld [vmem:[%s11717_s1 + $0x618] sm:$0xff]  }
 0x288   : > { %7654 = vmatpush3.bf16.msra.mxu0 %v11102_v42  ;;  %7269 = vmatprep.subr.bf16.mxu1 %v10306_v39  ;;  %v11947_v39 = vld [vmem:[#allocation40_spill] sm:$0xff] }
 0x289   : > { %7655 = vmatprep.subr.bf16.mxu0 %v11115_v60 }
 0x28a   : > { %4544 = vmatmul.mubr.bf16.gmra.mrb[144].mxu1 %v8119_v15  ;;  %v11153_v15 = vld [vmem:[%s11717_s1 + $0x630] sm:$0xff]  }
 0x28b   : > { %4495 = vmatmul.mubr.bf16.gmra.mrb[144].mxu0 %v8116_v9  ;;  %7270 = vmatpush3.bf16.msra.mxu1 %v10316_v11  ;;  %v11948_v11 = vld [vmem:[#allocation41_spill] sm:$0xff]  ;;  %11951 = vst [vmem:[#allocation37_spill] sm:$0xff] %v11153_v15 }
 0x28c   : > { %7656 = vmatpush3.bf16.msra.mxu0 %v11115_v60  ;;  %7271 = vmatprep.subr.bf16.mxu1 %v11946_v36 }
 0x28d   : > { %7657 = vmatprep.subr.bf16.mxu0 %v11126_v31  ;;  %7667 = vmatprep.mubr.bf16.mxu0 %v8120_v57  ;;  %v11952_v57 = vld [vmem:[#allocation47_spill] sm:$0xff] }
 0x28e   : > { %4942 = vmatprep.mubr.bf16.mxu1 %v8124_v40 }
 0x28f   : > { %7272 = vmatpush3.bf16.msra.mxu1 %v11947_v39 }
 0x290   : > { %7658 = vmatpush3.bf16.msra.mxu0 %v11126_v31  ;;  %7273 = vmatprep.subr.bf16.mxu1 %v11948_v11 }
 0x291   : > { %7659 = vmatprep.subr.bf16.mxu0 %v11135_v63 }
 0x293   : > { %7274 = vmatpush3.bf16.msra.mxu1 %v11949_v34  ;;  %v11954_v34 = vld [vmem:[#allocation49_spill] sm:$0xff] }
 0x294   : > { %7660 = vmatpush3.bf16.msra.mxu0 %v11135_v63  ;;  %7275 = vmatprep.subr.bf16.mxu1 %v10361_v38 }
 0x295   : > { %7661 = vmatprep.subr.bf16.mxu0 %v11144_v4  ;;  %v7649_v53 = vpop.f32.mrb[96].mxu1 }
 0x296   : > { %v6897_v37 = vpop.f32.mrb[92].mxu0  ;;  %v3640_v51 = vpop.f32.mrb[97].mxu1 }
 0x297   : > { %v6898_v46 = vpop.f32.mrb[93].mxu0  ;;  %7276 = vmatpush3.bf16.msra.mxu1 %v11950_v59  ;;  %v7650_v20 = vpop.f32.mrb[98].mxu1  ;;  %v8121_v59 = vld [vmem:[%s8747_s27 + $0x448] ss:$100 sps:$4 sm:$0x1f]  }
 0x298   : > { %v6899_v44 = vadd.f32 %v6898_v46, %v6897_v37  ;;  %v6900_v16 = vpop.f32.mrb[94].mxu0  ;;  %7662 = vmatpush3.bf16.msra.mxu0 %v11144_v4  ;;  %v3643_v38 = vpop.f32.mrb[99].mxu1  ;;  %7277 = vmatprep.subr.bf16.mxu1 %v11952_v57  ;;  %v11166_v37 = vld [vmem:[%s11717_s1 + $0x638] sm:$0xff]   ;;  %v11955_v46 = vld [vmem:[#allocation50_spill] sm:$0xff]  ;;  %v11957_v57 = vld [vmem:[#allocation48_spill] sm:$0xff] }
 0x299   : > { %v6901_v9 = vpop.f32.mrb[95].mxu0  ;;  %7663 = vmatprep.subr.bf16.mxu0 %v11153_v15 }
 0x29a   : > { %v6902_v40 = vadd.f32 %v6901_v9, %v6900_v16  ;;  %v3592_v36 = vadd.f32 %v6899_v44, %v11057_v56  ;;  %v11956_v16 = vld [vmem:[#allocation44_spill] sm:$0xff] }
 0x29b   : > { %7278 = vmatpush3.bf16.msra.mxu1 %v11954_v34  ;;  %v8122_v9 = vld [vmem:[%s8747_s27 + $0x4b0] ss:$100 sps:$4 sm:$0xff]  }
 0x29c   : > { %v11158_v39 = vadd.f32 %v3640_v51, %v3592_v36  ;;  %7664 = vmatpush3.bf16.msra.mxu0 %v11153_v15  ;;  %v3595_v11 = vadd.f32 %v6902_v40, %v11073_v10  ;;  %7279 = vmatprep.subr.bf16.mxu1 %v11955_v46  ;;  %v11958_v15 = vld [vmem:[#allocation51_spill] sm:$0xff]  ;;  %v8130_v40 = vld [vmem:[%s8747_s27 + $0x4bc] ss:$100 sps:$4 sm:$0xff]  }
 0x29d   : > { %7665 = vmatprep.subr.bf16.mxu0 %v11166_v37 }
 0x29e   : > { %11953 = vst [vmem:[#allocation38_spill] sm:$0xff] %v11158_v39  ;;  %v11172_v51 = vadd.f32 %v3643_v38, %v3595_v11  ;;  %v6903_v44 = vpop.f32.mrb[96].mxu0  ;;  %v8515_v38 = vld [vmem:[%s11717_s1 + $0xc0] sm:$0xff]  }
 0x29f   : > { %v6904_v10 = vpop.f32.mrb[97].mxu0  ;;  %7280 = vmatpush3.bf16.msra.mxu1 %v11958_v15  ;;  %v8125_v39 = vld [vmem:[%s8747_s27 + $0x57c] ss:$100 sps:$4 sm:$0x1f]  }
 0x2a0   : > { %v6905_v36 = vadd.f32 %v6904_v10, %v6903_v44  ;;  %v6906_v34 = vpop.f32.mrb[98].mxu0  ;;  %7666 = vmatpush3.bf16.msra.mxu0 %v11166_v37  ;;  %7321 = vmatprep.subr.bf16.mxu1 %v10431_v49  ;;  %v8516_v10 = vld [vmem:[%s11717_s1 + $0x80] sm:$0xff]   ;;  %v8517_v49 = vld [vmem:[%s11717_s1 + $0xc8] sm:$0xff]  }
 0x2a1   : > { %v6907_v46 = vpop.f32.mrb[99].mxu0  ;;  %7293 = vmatprep.subr.bf16.mxu0 %v8515_v38 }
 0x2a2   : > { %v3600_v11 = vadd.f32 %v6905_v36, %v11095_v61  ;;  %v6908_v56 = vadd.f32 %v6907_v46, %v6906_v34  ;;  %4943 = vmatmul.mubr.bf16.vlgmr.msra.gmra.mrb[148].mxu1 %v8122_v9  ;;  %v8525_v36 = vld [vmem:[%s11717_s1 + $0xe8] sm:$0xff]  }
 0x2a3   : > { %7668 = vmatmul.mubr.bf16.vlgmr.msra.gmra.mrb[148].mxu0 %v8121_v59  ;;  %7322 = vmatpush3.bf16.msra.mxu1 %v10442_v13  ;;  %v8518_v13 = vld [vmem:[%s11717_s1 + $0x88] sm:$0xff]   ;;  %v11960_v59 = vld [vmem:[#allocation46_spill] sm:$0xff] }
 0x2a4   : > { %v11187_v44 = vadd.f32 %v7649_v53, %v3600_v11  ;;  %v3603_v15 = vadd.f32 %v6908_v56, %v11106_v54  ;;  %7294 = vmatpush3.bf16.msra.mxu0 %v8516_v10  ;;  %7323 = vmatprep.subr.bf16.mxu1 %v10449_v18  ;;  %v11959_v54 = vld [vmem:[#allocation43_spill] sm:$0xff]  ;;  %v8127_v56 = vld [vmem:[%s8747_s27 + $0x578] ss:$100 sps:$4 sm:$0x1f]   ;;  %v8519_v18 = vld [vmem:[%s11717_s1 + $0xd0] sm:$0xff]  }
 0x2a5   : > { %7295 = vmatprep.subr.bf16.mxu0 %v8517_v49  ;;  %4950 = vmatprep.mubr.bf16.mxu1 %v8125_v39  ;;  %v8520_v39 = vld [vmem:[%s11717_s1 + $0x90] sm:$0xff]  }
 0x2a6   : > { %v11198_v61 = vadd.f32 %v7650_v20, %v3603_v15  ;;  %4991 = vmatprep.mubr.bf16.mxu0 %v8130_v40  ;;  %v3657_v53 = vmax.f32 %v11959_v54, %v11187_v44  ;;  %v8133_v20 = vld [vmem:[%s8747_s27 + $0x4c4] ss:$100 sps:$4 sm:$0xff]   ;;  %v12007_v44 = vmax.f32 %v11957_v57, %v11172_v51 }
 0x2a7   : > { %7324 = vmatpush3.bf16.msra.mxu1 %v10458_v27  ;;  %v8521_v27 = vld [vmem:[%s11717_s1 + $0xd8] sm:$0xff]   ;;  %v8523_v40 = vld [vmem:[%s11717_s1 + $0xe0] sm:$0xff]  }
 0x2a8   : > { %7296 = vmatpush3.bf16.msra.mxu0 %v8518_v13  ;;  %v3658_v9 = vmax.f32 %v11960_v59, %v11198_v61  ;;  %7325 = vmatprep.subr.bf16.mxu1 %v10465_v32  ;;  %v8522_v32 = vld [vmem:[%s11717_s1 + $0x98] sm:$0xff]   ;;  %v11963_v13 = vld [vmem:[#allocation54_spill] sm:$0xff] }
 0x2a9   : > { %7297 = vmatprep.subr.bf16.mxu0 %v8519_v18 }
 0x2aa   : > { %4951 = vmatmul.mubr.bf16.gmra.mrb[152].mxu1 %v8127_v56  ;;  %v8526_v56 = vld [vmem:[%s11717_s1 + $0xa8] sm:$0xff]  }
 0x2ab   : > { %7326 = vmatpush3.bf16.msra.mxu1 %v10474_v19  ;;  %5040 = vmatprep.mubr.bf16.mxu1 %v8133_v20  ;;  %v8524_v19 = vld [vmem:[%s11717_s1 + $0xa0] sm:$0xff]  }
 0x2ac   : > { %7298 = vmatpush3.bf16.msra.mxu0 %v8520_v39  ;;  %7327 = vmatprep.subr.bf16.mxu1 %v10481_v41  ;;  %v11961_v41 = vld [vmem:[#allocation52_spill] sm:$0xff] }
 0x2ad   : > { %7299 = vmatprep.subr.bf16.mxu0 %v8521_v27  ;;  %v8527_v39 = vld [vmem:[%s11717_s1 + $0xf0] sm:$0xff]  }
 0x2af   : > { %7328 = vmatpush3.bf16.msra.mxu1 %v10488_v43  ;;  %v11962_v43 = vld [vmem:[#allocation53_spill] sm:$0xff] }
 0x2b0   : > { %7300 = vmatpush3.bf16.msra.mxu0 %v8522_v32  ;;  %7329 = vmatprep.subr.bf16.mxu1 %v10495_v50 }
 0x2b1   : > { %7301 = vmatprep.subr.bf16.mxu0 %v8523_v40 }
 0x2b3   : > { %7330 = vmatpush3.bf16.msra.mxu1 %v11961_v41  ;;  %v8528_v41 = vld [vmem:[%s11717_s1 + $0xb0] sm:$0xff]  }
 0x2b4   : > { %7302 = vmatpush3.bf16.msra.mxu0 %v8524_v19  ;;  %7331 = vmatprep.subr.bf16.mxu1 %v11962_v43  ;;  %v8529_v43 = vld [vmem:[%s11717_s1 + $0xf8] sm:$0xff]  }
 0x2b5   : > { %7303 = vmatprep.subr.bf16.mxu0 %v8525_v36  ;;  %v6963_v46 = vpop.f32.mrb[100].mxu1  ;;  %v11964_v36 = vld [vmem:[#allocation55_spill] sm:$0xff] }
 0x2b6   : > { %v6935_v34 = vpop.f32.mrb[100].mxu0  ;;  %v6964_v11 = vpop.f32.mrb[101].mxu1 }
 0x2b7   : > { %v6936_v38 = vpop.f32.mrb[101].mxu0  ;;  %v6965_v50 = vadd.f32 %v6964_v11, %v6963_v46  ;;  %v6966_v49 = vpop.f32.mrb[102].mxu1  ;;  %7332 = vmatpush3.bf16.msra.mxu1 %v11963_v13  ;;  %v8131_v11 = vld [vmem:[%s8747_s27 + $0x4c0] ss:$100 sps:$4 sm:$0xff]  }
 0x2b8   : > { %v6937_v15 = vadd.f32 %v6936_v38, %v6935_v34  ;;  %v6938_v10 = vpop.f32.mrb[102].mxu0  ;;  %7304 = vmatpush3.bf16.msra.mxu0 %v8526_v56  ;;  %v6967_v20 = vpop.f32.mrb[103].mxu1  ;;  %7333 = vmatprep.subr.bf16.mxu1 %v10523_v7  ;;  %v11965_v34 = vld [vmem:[#allocation56_spill] sm:$0xff]  ;;  %v8128_v38 = vld [vmem:[%s8747_s27 + $0x4b8] ss:$100 sps:$4 sm:$0xff]  }
 0x2b9   : > { %v6939_v18 = vpop.f32.mrb[103].mxu0  ;;  %7305 = vmatprep.subr.bf16.mxu0 %v8527_v39  ;;  %v6968_v40 = vadd.f32 %v6967_v20, %v6966_v49  ;;  %v11966_v49 = vld [vmem:[#allocation57_spill] sm:$0xff]  ;;  %v8531_v39 = vld [vmem:[%s11717_s1 + $0x1c0] sm:$0xff]  }
 0x2ba   : > { %v11246_v27 = vadd.f32 %v6965_v50, %v6937_v15  ;;  %v6940_v32 = vadd.f32 %v6939_v18, %v6938_v10  ;;  %v8530_v10 = vld [vmem:[%s11717_s1 + $0xb8] sm:$0xff]  }
 0x2bb   : > { %7334 = vmatpush3.bf16.msra.mxu1 %v11964_v36  ;;  %v8134_v36 = vld [vmem:[%s8747_s27 + $0x584] ss:$100 sps:$4 sm:$0x1f]  }
 0x2bc   : > { %v11248_v19 = vadd.f32 %v6968_v40, %v6940_v32  ;;  %7306 = vmatpush3.bf16.msra.mxu0 %v8528_v41  ;;  %7335 = vmatprep.subr.bf16.mxu1 %v11965_v34  ;;  %v11967_v32 = vld [vmem:[#allocation58_spill] sm:$0xff] }
 0x2bd   : > { %7307 = vmatprep.subr.bf16.mxu0 %v8529_v43  ;;  %v6969_v46 = vpop.f32.mrb[104].mxu1  ;;  %v8137_v43 = vld [vmem:[%s8747_s27 + $0x58c] ss:$100 sps:$4 sm:$0x1f]  }
 0x2be   : > { %v6941_v7 = vpop.f32.mrb[104].mxu0  ;;  %v6970_v50 = vpop.f32.mrb[105].mxu1 }
 0x2bf   : > { %v6942_v15 = vpop.f32.mrb[105].mxu0  ;;  %7336 = vmatpush3.bf16.msra.mxu1 %v11966_v49  ;;  %v6971_v13 = vadd.f32 %v6970_v50, %v6969_v46  ;;  %v6972_v20 = vpop.f32.mrb[106].mxu1  ;;  %v8532_v46 = vld [vmem:[%s11717_s1 + $0x180] sm:$0xff]   ;;  %v8533_v50 = vld [vmem:[%s11717_s1 + $0x1c8] sm:$0xff]  }
 0x2c0   : > { %7308 = vmatpush3.bf16.msra.mxu0 %v8530_v10  ;;  %v6943_v56 = vadd.f32 %v6942_v15, %v6941_v7  ;;  %v6944_v18 = vpop.f32.mrb[106].mxu0  ;;  %7377 = vmatprep.subr.bf16.mxu1 %v11967_v32  ;;  %v6973_v41 = vpop.f32.mrb[107].mxu1  ;;  %v8534_v49 = vld [vmem:[%s11717_s1 + $0x188] sm:$0xff]  }
 0x2c1   : > { %7349 = vmatprep.subr.bf16.mxu0 %v8531_v39  ;;  %v6945_v40 = vpop.f32.mrb[107].mxu0  ;;  %v6974_v7 = vadd.f32 %v6973_v41, %v6972_v20  ;;  %v8542_v41 = vld [vmem:[%s11717_s1 + $0x1a8] sm:$0xff]  }
 0x2c2   : > { %v11270_v34 = vadd.f32 %v6971_v13, %v6943_v56  ;;  %v6946_v10 = vadd.f32 %v6945_v40, %v6944_v18  ;;  %5041 = vmatmul.mubr.bf16.vlgmr.msra.gmra.mrb[156].mxu1 %v8131_v11  ;;  %v8139_v11 = vld [vmem:[%s8747_s27 + $0x588] ss:$100 sps:$4 sm:$0x1f]   ;;  %v8536_v13 = vld [vmem:[%s11717_s1 + $0x190] sm:$0xff]  }
 0x2c3   : > { %4992 = vmatmul.mubr.bf16.vlgmr.msra.gmra.mrb[152].mxu0 %v8128_v38  ;;  %7378 = vmatpush3.bf16.msra.mxu1 %v10572_v12  ;;  %v8136_v38 = vld [vmem:[%s8747_s27 + $0x580] ss:$100 sps:$4 sm:$0x1f]   ;;  %v8535_v12 = vld [vmem:[%s11717_s1 + $0x1d0] sm:$0xff]   ;;  %v8541_v18 = vld [vmem:[%s11717_s1 + $0x1e8] sm:$0xff]  }
 0x2c4   : > { %7350 = vmatpush3.bf16.msra.mxu0 %v8532_v46  ;;  %v11276_v15 = vadd.f32 %v6974_v7, %v6946_v10  ;;  %7379 = vmatprep.subr.bf16.mxu1 %v10579_v25  ;;  %v8142_v56 = vld [vmem:[%s8747_s27 + $0x4cc] ss:$100 sps:$4 sm:$0xff]   ;;  %v8145_v25 = vld [vmem:[%s8747_s27 + $0x4d4] ss:$100 sps:$4 sm:$0xff]  }
 0x2c5   : > { %7351 = vmatprep.subr.bf16.mxu0 %v8533_v50  ;;  %4999 = vmatprep.mubr.bf16.mxu0 %v8134_v36 }
 0x2c6   : > { %5048 = vmatprep.mubr.bf16.mxu1 %v8137_v43 }
 0x2c7   : > { %7380 = vmatpush3.bf16.msra.mxu1 %v10590_v30  ;;  %v8537_v30 = vld [vmem:[%s11717_s1 + $0x1d8] sm:$0xff]  }
 0x2c8   : > { %7352 = vmatpush3.bf16.msra.mxu0 %v8534_v49  ;;  %7381 = vmatprep.subr.bf16.mxu1 %v10597_v5  ;;  %v8538_v5 = vld [vmem:[%s11717_s1 + $0x198] sm:$0xff]  }
 0x2c9   : > { %7353 = vmatprep.subr.bf16.mxu0 %v8535_v12 }
 0x2ca   : > { %5049 = vmatmul.mubr.bf16.gmra.mrb[160].mxu1 %v8139_v11 }
 0x2cb   : > { %5000 = vmatmul.mubr.bf16.gmra.mrb[156].mxu0 %v8136_v38  ;;  %7382 = vmatpush3.bf16.msra.mxu1 %v10606_v6  ;;  %v8539_v6 = vld [vmem:[%s11717_s1 + $0x1e0] sm:$0xff]  }
 0x2cc   : > { %7354 = vmatpush3.bf16.msra.mxu0 %v8536_v13  ;;  %7383 = vmatprep.subr.bf16.mxu1 %v10613_v47  ;;  %v8540_v47 = vld [vmem:[%s11717_s1 + $0x1a0] sm:$0xff]   ;;  %v8143_v13 = vld [vmem:[%s8747_s27 + $0x4d0] ss:$100 sps:$4 sm:$0xff]  }
 0x2cd   : > { %7355 = vmatprep.subr.bf16.mxu0 %v8537_v30  ;;  %5089 = vmatprep.mubr.bf16.mxu0 %v8142_v56 }
 0x2ce   : > { %5138 = vmatprep.mubr.bf16.mxu1 %v8145_v25  ;;  %v8140_v25 = vld [vmem:[%s8747_s27 + $0x4c8] ss:$100 sps:$4 sm:$0xff]  }
 0x2cf   : > { %7384 = vmatpush3.bf16.msra.mxu1 %v10620_v55 }
 0x2d0   : > { %7356 = vmatpush3.bf16.msra.mxu0 %v8538_v5  ;;  %7385 = vmatprep.subr.bf16.mxu1 %v10627_v0 }
 0x2d1   : > { %7357 = vmatprep.subr.bf16.mxu0 %v8539_v6 }
 0x2d3   : > { %7386 = vmatpush3.bf16.msra.mxu1 %v10634_v2 }
 0x2d4   : > { %7358 = vmatpush3.bf16.msra.mxu0 %v8540_v47  ;;  %7387 = vmatprep.subr.bf16.mxu1 %v10641_v8  ;;  %v8543_v8 = vld [vmem:[%s11717_s1 + $0x1f0] sm:$0xff]  }
 0x2d5   : > { %7359 = vmatprep.subr.bf16.mxu0 %v8541_v18  ;;  %v7019_v20 = vpop.f32.mrb[108].mxu1 }
 0x2d6   : > { %v6991_v55 = vpop.f32.mrb[108].mxu0  ;;  %v7020_v32 = vpop.f32.mrb[109].mxu1 }
 0x2d7   : > { %v6992_v39 = vpop.f32.mrb[109].mxu0  ;;  %v7021_v36 = vadd.f32 %v7020_v32, %v7019_v20  ;;  %v7022_v2 = vpop.f32.mrb[110].mxu1  ;;  %7388 = vmatpush3.bf16.msra.mxu1 %v10648_v3  ;;  %v8544_v3 = vld [vmem:[%s11717_s1 + $0x1b0] sm:$0xff]  }
 0x2d8   : > { %v6993_v40 = vadd.f32 %v6992_v39, %v6991_v55  ;;  %v6994_v0 = vpop.f32.mrb[110].mxu0  ;;  %7360 = vmatpush3.bf16.msra.mxu0 %v8542_v41  ;;  %v7023_v10 = vpop.f32.mrb[111].mxu1  ;;  %7389 = vmatprep.subr.bf16.mxu1 %v10655_v35  ;;  %v8545_v35 = vld [vmem:[%s11717_s1 + $0x1f8] sm:$0xff]   ;;  %v8547_v55 = vld [vmem:[%s11717_s1 + $0x2c0] sm:$0xff]  }
 0x2d9   : > { %v6995_v43 = vpop.f32.mrb[111].mxu0  ;;  %7361 = vmatprep.subr.bf16.mxu0 %v8543_v8  ;;  %v7024_v50 = vadd.f32 %v7023_v10, %v7022_v2  ;;  %v8151_v2 = vld [vmem:[%s8747_s27 + $0x598] ss:$100 sps:$4 sm:$0x1f]   ;;  %v8157_v10 = vld [vmem:[%s8747_s27 + $0x4e4] ss:$100 sps:$4 sm:$0xff]  }
 0x2da   : > { %v4097_v7 = vadd.f32 %v6993_v40, %v11246_v27  ;;  %v6996_v46 = vadd.f32 %v6995_v43, %v6994_v0  ;;  %v8146_v40 = vld [vmem:[%s8747_s27 + $0x594] ss:$100 sps:$4 sm:$0x1f]   ;;  %v8149_v0 = vld [vmem:[%s8747_s27 + $0x59c] ss:$100 sps:$4 sm:$0x1f]  }
 0x2db   : > { %7390 = vmatpush3.bf16.msra.mxu1 %v10666_v22  ;;  %v8546_v22 = vld [vmem:[%s11717_s1 + $0x1b8] sm:$0xff]   ;;  %v8550_v43 = vld [vmem:[%s11717_s1 + $0x288] sm:$0xff]   ;;  %v8552_v8 = vld [vmem:[%s11717_s1 + $0x290] sm:$0xff]  }
 0x2dc   : > { %v4100_v38 = vadd.f32 %v6996_v46, %v11248_v19  ;;  %v11328_v11 = vadd.f32 %v7021_v36, %v4097_v7  ;;  %7362 = vmatpush3.bf16.msra.mxu0 %v8544_v3  ;;  %7391 = vmatprep.subr.bf16.mxu1 %v10673_v48  ;;  %v8548_v36 = vld [vmem:[%s11717_s1 + $0x280] sm:$0xff]   ;;  %v8557_v7 = vld [vmem:[%s11717_s1 + $0x2e8] sm:$0xff]  }
 0x2dd   : > { %7363 = vmatprep.subr.bf16.mxu0 %v8545_v35  ;;  %v7025_v19 = vpop.f32.mrb[112].mxu1  ;;  %v8558_v35 = vld [vmem:[%s11717_s1 + $0x2a8] sm:$0xff]  }
 0x2de   : > { %v11338_v27 = vadd.f32 %v7024_v50, %v4100_v38  ;;  %v6997_v49 = vpop.f32.mrb[112].mxu0  ;;  %v7026_v56 = vpop.f32.mrb[113].mxu1 }
 0x2df   : > { %v6998_v12 = vpop.f32.mrb[113].mxu0  ;;  %v7027_v6 = vadd.f32 %v7026_v56, %v7025_v19  ;;  %v7028_v47 = vpop.f32.mrb[114].mxu1  ;;  %7392 = vmatpush3.bf16.msra.mxu1 %v10684_v29  ;;  %v11968_v19 = vld [vmem:[#allocation59_spill] sm:$0xff] }
 0x2e0   : > { %v6999_v30 = vadd.f32 %v6998_v12, %v6997_v49  ;;  %v7000_v5 = vpop.f32.mrb[114].mxu0  ;;  %7364 = vmatpush3.bf16.msra.mxu0 %v8546_v22  ;;  %v7029_v18 = vpop.f32.mrb[115].mxu1  ;;  %7433 = vmatprep.subr.bf16.mxu1 %v10691_v23  ;;  %v8549_v23 = vld [vmem:[%s11717_s1 + $0x2c8] sm:$0xff]  }
 0x2e1   : > { %v7001_v48 = vpop.f32.mrb[115].mxu0  ;;  %7405 = vmatprep.subr.bf16.mxu0 %v8547_v55  ;;  %v7030_v32 = vadd.f32 %v7029_v18, %v7028_v47  ;;  %v8560_v47 = vld [vmem:[%s11717_s1 + $0x2b0] sm:$0xff]   ;;  %v8561_v18 = vld [vmem:[%s11717_s1 + $0x2f8] sm:$0xff]  }
 0x2e2   : > { %v4105_v20 = vadd.f32 %v6999_v30, %v11270_v34  ;;  %v7002_v39 = vadd.f32 %v7001_v48, %v7000_v5  ;;  %5139 = vmatmul.mubr.bf16.vlgmr.msra.gmra.mrb[164].mxu1 %v8143_v13  ;;  %v11970_v48 = vld [vmem:[#allocation3_spill] sm:$0xff] }
 0x2e3   : > { %5090 = vmatmul.mubr.bf16.vlgmr.msra.gmra.mrb[160].mxu0 %v8140_v25  ;;  %7434 = vmatpush3.bf16.msra.mxu1 %v10704_v17  ;;  %v8551_v17 = vld [vmem:[%s11717_s1 + $0x2d0] sm:$0xff]   ;;  %v11969_v25 = vld [vmem:[#allocation2_spill] sm:$0xff] }
 0x2e4   : > { %v4108_v29 = vadd.f32 %v7002_v39, %v11276_v15  ;;  %v11354_v41 = vadd.f32 %v7027_v6, %v4105_v20  ;;  %7406 = vmatpush3.bf16.msra.mxu0 %v8548_v36  ;;  %7435 = vmatprep.subr.bf16.mxu1 %v10711_v1  ;;  %v8148_v15 = vld [vmem:[%s8747_s27 + $0x590] ss:$100 sps:$4 sm:$0x1f]   ;;  %v8154_v1 = vld [vmem:[%s8747_s27 + $0x4dc] ss:$100 sps:$4 sm:$0xff]  }
 0x2e5   : > { %7407 = vmatprep.subr.bf16.mxu0 %v8549_v23  ;;  %5097 = vmatprep.mubr.bf16.mxu0 %v8146_v40  ;;  %v8152_v40 = vld [vmem:[%s8747_s27 + $0x4d8] ss:$100 sps:$4 sm:$0xff]  }
 0x2e6   : > { %v11364_v34 = vadd.f32 %v7030_v32, %v4108_v29  ;;  %5146 = vmatprep.mubr.bf16.mxu1 %v8149_v0  ;;  %v8155_v0 = vld [vmem:[%s8747_s27 + $0x4e0] ss:$100 sps:$4 sm:$0xff]   ;;  %v8562_v23 = vld [vmem:[%s11717_s1 + $0x2b8] sm:$0xff]  }
 0x2e7   : > { %7436 = vmatpush3.bf16.msra.mxu1 %v10722_v14  ;;  %v8553_v14 = vld [vmem:[%s11717_s1 + $0x2d8] sm:$0xff]  }
 0x2e8   : > { %7408 = vmatpush3.bf16.msra.mxu0 %v8550_v43  ;;  %7437 = vmatprep.subr.bf16.mxu1 %v10729_v62  ;;  %v8554_v62 = vld [vmem:[%s11717_s1 + $0x298] sm:$0xff]  }
 0x2e9   : > { %7409 = vmatprep.subr.bf16.mxu0 %v8551_v17  ;;  %v11972_v43 = vld [vmem:[#allocation5_spill] sm:$0xff] }
 0x2ea   : > { %5147 = vmatmul.mubr.bf16.gmra.mrb[168].mxu1 %v8151_v2 }
 0x2eb   : > { %5098 = vmatmul.mubr.bf16.gmra.mrb[164].mxu0 %v8148_v15  ;;  %7438 = vmatpush3.bf16.msra.mxu1 %v10738_v52  ;;  %v8555_v52 = vld [vmem:[%s11717_s1 + $0x2e0] sm:$0xff]  }
 0x2ec   : > { %7410 = vmatpush3.bf16.msra.mxu0 %v8552_v8  ;;  %7439 = vmatprep.subr.bf16.mxu1 %v10745_v28  ;;  %v8556_v28 = vld [vmem:[%s11717_s1 + $0x2a0] sm:$0xff]  }
 0x2ed   : > { %7411 = vmatprep.subr.bf16.mxu0 %v8553_v14  ;;  %5187 = vmatprep.mubr.bf16.mxu0 %v8154_v1  ;;  %v11973_v8 = vld [vmem:[#allocation6_spill] sm:$0xff] }
 0x2ee   : > { %5236 = vmatprep.mubr.bf16.mxu1 %v8157_v10  ;;  %v8563_v10 = vld [vmem:[%s11717_s1 + $0x3c0] sm:$0xff]  }
 0x2ef   : > { %7440 = vmatpush3.bf16.msra.mxu1 %v10752_v33 }
 0x2f0   : > { %7412 = vmatpush3.bf16.msra.mxu0 %v8554_v62  ;;  %7441 = vmatprep.subr.bf16.mxu1 %v10759_v45 }
 0x2f1   : > { %7413 = vmatprep.subr.bf16.mxu0 %v8555_v52 }
 0x2f3   : > { %7442 = vmatpush3.bf16.msra.mxu1 %v10766_v58 }
 0x2f4   : > { %7414 = vmatpush3.bf16.msra.mxu0 %v8556_v28  ;;  %7443 = vmatprep.subr.bf16.mxu1 %v10773_v26  ;;  %v8559_v26 = vld [vmem:[%s11717_s1 + $0x2f0] sm:$0xff]   ;;  %v8158_v28 = vld [vmem:[%s8747_s27 + $0x5a4] ss:$100 sps:$4 sm:$0x1f]  }
 0x2f5   : > { %7415 = vmatprep.subr.bf16.mxu0 %v8557_v7  ;;  %v7075_v46 = vpop.f32.mrb[116].mxu1  ;;  %v8161_v7 = vld [vmem:[%s8747_s27 + $0x5ac] ss:$100 sps:$4 sm:$0x1f]  }
 0x2f6   : > { %v7047_v33 = vpop.f32.mrb[116].mxu0  ;;  %v7076_v38 = vpop.f32.mrb[117].mxu1 }
 0x2f7   : > { %v7048_v50 = vpop.f32.mrb[117].mxu0  ;;  %v7077_v49 = vadd.f32 %v7076_v38, %v7075_v46  ;;  %v7078_v58 = vpop.f32.mrb[118].mxu1  ;;  %7444 = vmatpush3.bf16.msra.mxu1 %v11968_v19  ;;  %v11974_v38 = vld [vmem:[#allocation7_spill] sm:$0xff]  ;;  %v8567_v19 = vld [vmem:[%s11717_s1 + $0x3d0] sm:$0xff]  }
 0x2f8   : > { %v7049_v3 = vadd.f32 %v7048_v50, %v7047_v33  ;;  %v7050_v45 = vpop.f32.mrb[118].mxu0  ;;  %7416 = vmatpush3.bf16.msra.mxu0 %v8558_v35  ;;  %v7079_v56 = vpop.f32.mrb[119].mxu1  ;;  %7445 = vmatprep.subr.bf16.mxu1 %v11969_v25  ;;  %v8564_v50 = vld [vmem:[%s11717_s1 + $0x380] sm:$0xff]   ;;  %v8163_v35 = vld [vmem:[%s8747_s27 + $0x5a8] ss:$100 sps:$4 sm:$0x1f]  }
 0x2f9   : > { %v7051_v12 = vpop.f32.mrb[119].mxu0  ;;  %7417 = vmatprep.subr.bf16.mxu0 %v8559_v26  ;;  %v7080_v5 = vadd.f32 %v7079_v56, %v7078_v58  ;;  %v11976_v58 = vld [vmem:[#allocation9_spill] sm:$0xff]  ;;  %v8166_v56 = vld [vmem:[%s8747_s27 + $0x4ec] ss:$100 sps:$4 sm:$0xff]  }
 0x2fa   : > { %v4195_v13 = vadd.f32 %v7049_v3, %v11328_v11  ;;  %v7052_v30 = vadd.f32 %v7051_v12, %v7050_v45  ;;  %v11971_v11 = vld [vmem:[#allocation4_spill] sm:$0xff]  ;;  %v11977_v12 = vld [vmem:[#allocation10_spill] sm:$0xff] }
 0x2fb   : > { %7446 = vmatpush3.bf16.msra.mxu1 %v11970_v48  ;;  %v11975_v3 = vld [vmem:[#allocation8_spill] sm:$0xff]  ;;  %v8571_v48 = vld [vmem:[%s11717_s1 + $0x3e0] sm:$0xff]  }
 0x2fc   : > { %v4198_v22 = vadd.f32 %v7052_v30, %v11338_v27  ;;  %v11412_v6 = vadd.f32 %v7077_v49, %v4195_v13  ;;  %7418 = vmatpush3.bf16.msra.mxu0 %v8560_v47  ;;  %7447 = vmatprep.subr.bf16.mxu1 %v11971_v11  ;;  %v8566_v49 = vld [vmem:[%s11717_s1 + $0x388] sm:$0xff]   ;;  %v8169_v26 = vld [vmem:[%s8747_s27 + $0x4f4] ss:$100 sps:$4 sm:$0xff]   ;;  %v8572_v11 = vld [vmem:[%s11717_s1 + $0x3a0] sm:$0xff]  }
 0x2fd   : > { %7419 = vmatprep.subr.bf16.mxu0 %v8561_v18  ;;  %v7081_v27 = vpop.f32.mrb[120].mxu1  ;;  %v8568_v25 = vld [vmem:[%s11717_s1 + $0x390] sm:$0xff]   ;;  %v11978_v13 = vld [vmem:[#allocation11_spill] sm:$0xff]  ;;  %v8569_v30 = vld [vmem:[%s11717_s1 + $0x3d8] sm:$0xff]  }
 0x2fe   : > { %v11422_v55 = vadd.f32 %v7080_v5, %v4198_v22  ;;  %v7053_v20 = vpop.f32.mrb[120].mxu0  ;;  %v7082_v32 = vpop.f32.mrb[121].mxu1  ;;  %v11979_v5 = vld [vmem:[#allocation12_spill] sm:$0xff]  ;;  %v8570_v22 = vld [vmem:[%s11717_s1 + $0x398] sm:$0xff]   ;;  %v11981_v18 = vld [vmem:[#allocation14_spill] sm:$0xff] }
 0x2ff   : > { %v7054_v39 = vpop.f32.mrb[121].mxu0  ;;  %v7083_v15 = vadd.f32 %v7082_v32, %v7081_v27  ;;  %v7084_v2 = vpop.f32.mrb[122].mxu1  ;;  %7448 = vmatpush3.bf16.msra.mxu1 %v11972_v43  ;;  %v11980_v47 = vld [vmem:[#allocation13_spill] sm:$0xff]  ;;  %v8573_v27 = vld [vmem:[%s11717_s1 + $0x3e8] sm:$0xff]  }
 0x300   : > { %v7055_v29 = vadd.f32 %v7054_v39, %v7053_v20  ;;  %v7056_v36 = vpop.f32.mrb[122].mxu0  ;;  %7420 = vmatpush3.bf16.msra.mxu0 %v8562_v23  ;;  %v7085_v1 = vpop.f32.mrb[123].mxu1  ;;  %7489 = vmatprep.subr.bf16.mxu1 %v11973_v8  ;;  %v11982_v20 = vld [vmem:[#allocation15_spill] sm:$0xff]  ;;  %v11983_v39 = vld [vmem:[#allocation16_spill] sm:$0xff] }
 0x301   : > { %v7057_v17 = vpop.f32.mrb[123].mxu0  ;;  %7461 = vmatprep.subr.bf16.mxu0 %v8563_v10  ;;  %v7086_v52 = vadd.f32 %v7085_v1, %v7084_v2  ;;  %v8575_v8 = vld [vmem:[%s11717_s1 + $0x3f0] sm:$0xff]  }
 0x302   : > { %v4203_v14 = vadd.f32 %v7055_v29, %v11354_v41  ;;  %v7058_v62 = vadd.f32 %v7057_v17, %v7056_v36  ;;  %5237 = vmatmul.mubr.bf16.vlgmr.msra.gmra.mrb[172].mxu1 %v8155_v0  ;;  %v8565_v41 = vld [vmem:[%s11717_s1 + $0x3c8] sm:$0xff]   ;;  %v11984_v17 = vld [vmem:[#allocation17_spill] sm:$0xff] }
 0x303   : > { %5188 = vmatmul.mubr.bf16.vlgmr.msra.gmra.mrb[168].mxu0 %v8152_v40  ;;  %7490 = vmatpush3.bf16.msra.mxu1 %v11974_v38  ;;  %v11986_v38 = vld [vmem:[#allocation19_spill] sm:$0xff] }
 0x304   : > { %v4206_v33 = vadd.f32 %v7058_v62, %v11364_v34  ;;  %v11438_v46 = vadd.f32 %v7083_v15, %v4203_v14  ;;  %7462 = vmatpush3.bf16.msra.mxu0 %v8564_v50  ;;  %7491 = vmatprep.subr.bf16.mxu1 %v11975_v3  ;;  %v8160_v34 = vld [vmem:[%s8747_s27 + $0x5a0] ss:$100 sps:$4 sm:$0x1f]   ;;  %v8574_v15 = vld [vmem:[%s11717_s1 + $0x3a8] sm:$0xff]   ;;  %v8576_v50 = vld [vmem:[%s11717_s1 + $0x3b0] sm:$0xff]  }
 0x305   : > { %7463 = vmatprep.subr.bf16.mxu0 %v8565_v41  ;;  %5195 = vmatprep.mubr.bf16.mxu0 %v8158_v28  ;;  %v11985_v14 = vld [vmem:[#allocation18_spill] sm:$0xff]  ;;  %v8577_v41 = vld [vmem:[%s11717_s1 + $0x3f8] sm:$0xff]  }
 0x306   : > { %v11448_v45 = vadd.f32 %v7086_v52, %v4206_v33  ;;  %5244 = vmatprep.mubr.bf16.mxu1 %v8161_v7 }
 0x307   : > { %7492 = vmatpush3.bf16.msra.mxu1 %v11976_v58  ;;  %v8164_v58 = vld [vmem:[%s8747_s27 + $0x4e8] ss:$100 sps:$4 sm:$0xff]  }
 0x308   : > { %7464 = vmatpush3.bf16.msra.mxu0 %v8566_v49  ;;  %7493 = vmatprep.subr.bf16.mxu1 %v11977_v12 }
 0x309   : > { %7465 = vmatprep.subr.bf16.mxu0 %v8567_v19  ;;  %v8167_v19 = vld [vmem:[%s8747_s27 + $0x4f0] ss:$100 sps:$4 sm:$0xff]  }
 0x30a   : > { %5245 = vmatmul.mubr.bf16.gmra.mrb[176].mxu1 %v8163_v35 }
 0x30b   : > { %5196 = vmatmul.mubr.bf16.gmra.mrb[172].mxu0 %v8160_v34  ;;  %7494 = vmatpush3.bf16.msra.mxu1 %v11978_v13 }
 0x30c   : > { %7466 = vmatpush3.bf16.msra.mxu0 %v8568_v25  ;;  %7495 = vmatprep.subr.bf16.mxu1 %v11979_v5 }
 0x30d   : > { %7467 = vmatprep.subr.bf16.mxu0 %v8569_v30  ;;  %5285 = vmatprep.mubr.bf16.mxu0 %v8166_v56  ;;  %v11988_v30 = vld [vmem:[#allocation21_spill] sm:$0xff] }
 0x30e   : > { %5334 = vmatprep.mubr.bf16.mxu1 %v8169_v26  ;;  %v8578_v26 = vld [vmem:[%s11717_s1 + $0x3b8] sm:$0xff]  }
 0x30f   : > { %7496 = vmatpush3.bf16.msra.mxu1 %v11980_v47  ;;  %v8579_v47 = vld [vmem:[%s11717_s1 + $0x4c0] sm:$0xff]  }
 0x310   : > { %7468 = vmatpush3.bf16.msra.mxu0 %v8570_v22  ;;  %7497 = vmatprep.subr.bf16.mxu1 %v11981_v18 }
 0x311   : > { %7469 = vmatprep.subr.bf16.mxu0 %v8571_v48  ;;  %v11989_v48 = vld [vmem:[#allocation22_spill] sm:$0xff] }
 0x313   : > { %7498 = vmatpush3.bf16.msra.mxu1 %v11982_v20 }
 0x314   : > { %7470 = vmatpush3.bf16.msra.mxu0 %v8572_v11  ;;  %7499 = vmatprep.subr.bf16.mxu1 %v11983_v39  ;;  %v8173_v39 = vld [vmem:[%s8747_s27 + $0x5bc] ss:$100 sps:$4 sm:$0x1f]  }
 0x315   : > { %7471 = vmatprep.subr.bf16.mxu0 %v8573_v27  ;;  %v7131_v40 = vpop.f32.mrb[124].mxu1  ;;  %v8170_v27 = vld [vmem:[%s8747_s27 + $0x5b4] ss:$100 sps:$4 sm:$0x1f]  }
 0x316   : > { %v7103_v32 = vpop.f32.mrb[124].mxu0  ;;  %v7132_v29 = vpop.f32.mrb[125].mxu1 }
 0x317   : > { %v7104_v0 = vpop.f32.mrb[125].mxu0  ;;  %v7133_v2 = vadd.f32 %v7132_v29, %v7131_v40  ;;  %v7134_v43 = vpop.f32.mrb[126].mxu1  ;;  %7500 = vmatpush3.bf16.msra.mxu1 %v11984_v17  ;;  %v11990_v29 = vld [vmem:[#allocation23_spill] sm:$0xff]  ;;  %v8178_v17 = vld [vmem:[%s8747_s27 + $0x4fc] ss:$100 sps:$4 sm:$0xff]  }
 0x318   : > { %v7105_v36 = vadd.f32 %v7104_v0, %v7103_v32  ;;  %v7106_v23 = vpop.f32.mrb[126].mxu0  ;;  %7472 = vmatpush3.bf16.msra.mxu0 %v8574_v15  ;;  %v7135_v10 = vpop.f32.mrb[127].mxu1  ;;  %7501 = vmatprep.subr.bf16.mxu1 %v11985_v14  ;;  %v8580_v0 = vld [vmem:[%s11717_s1 + $0x480] sm:$0xff]   ;;  %v8582_v15 = vld [vmem:[%s11717_s1 + $0x488] sm:$0xff]   ;;  %v8585_v14 = vld [vmem:[%s11717_s1 + $0x4d8] sm:$0xff]  }
 0x319   : > { %v7107_v1 = vpop.f32.mrb[127].mxu0  ;;  %7473 = vmatprep.subr.bf16.mxu0 %v8575_v8  ;;  %v7136_v28 = vadd.f32 %v7135_v10, %v7134_v43  ;;  %v11992_v43 = vld [vmem:[#allocation25_spill] sm:$0xff]  ;;  %v8584_v10 = vld [vmem:[%s11717_s1 + $0x490] sm:$0xff]   ;;  %v11993_v8 = vld [vmem:[#allocation26_spill] sm:$0xff] }
 0x31a   : > { %v4293_v62 = vadd.f32 %v7105_v36, %v11412_v6  ;;  %v7108_v52 = vadd.f32 %v7107_v1, %v7106_v23  ;;  %v11987_v6 = vld [vmem:[#allocation20_spill] sm:$0xff]  ;;  %v8175_v23 = vld [vmem:[%s8747_s27 + $0x5b8] ss:$100 sps:$4 sm:$0x1f]   ;;  %v8181_v1 = vld [vmem:[%s8747_s27 + $0x504] ss:$100 sps:$4 sm:$0xff]  }
 0x31b   : > { %7502 = vmatpush3.bf16.msra.mxu1 %v11986_v38  ;;  %v8588_v38 = vld [vmem:[%s11717_s1 + $0x4a0] sm:$0xff]  }
 0x31c   : > { %v4296_v7 = vadd.f32 %v7108_v52, %v11422_v55  ;;  %v11496_v33 = vadd.f32 %v7133_v2, %v4293_v62  ;;  %7474 = vmatpush3.bf16.msra.mxu0 %v8576_v50  ;;  %7503 = vmatprep.subr.bf16.mxu1 %v11987_v6  ;;  %v8583_v2 = vld [vmem:[%s11717_s1 + $0x4d0] sm:$0xff]   ;;  %v11994_v62 = vld [vmem:[#allocation27_spill] sm:$0xff]  ;;  %v8586_v52 = vld [vmem:[%s11717_s1 + $0x498] sm:$0xff]  }
 0x31d   : > { %7475 = vmatprep.subr.bf16.mxu0 %v8577_v41  ;;  %v7137_v55 = vpop.f32.mrb[128].mxu1  ;;  %v11996_v50 = vld [vmem:[#allocation29_spill] sm:$0xff]  ;;  %v11997_v41 = vld [vmem:[#allocation30_spill] sm:$0xff]  ;;  %v8589_v6 = vld [vmem:[%s11717_s1 + $0x4e8] sm:$0xff]  }
 0x31e   : > { %v11506_v3 = vadd.f32 %v7136_v28, %v4296_v7  ;;  %v7109_v34 = vpop.f32.mrb[128].mxu0  ;;  %v7138_v49 = vpop.f32.mrb[129].mxu1  ;;  %v11995_v28 = vld [vmem:[#allocation28_spill] sm:$0xff]  ;;  %v8587_v7 = vld [vmem:[%s11717_s1 + $0x4e0] sm:$0xff]  }
 0x31f   : > { %v7110_v35 = vpop.f32.mrb[129].mxu0  ;;  %v7139_v25 = vadd.f32 %v7138_v49, %v7137_v55  ;;  %v7140_v13 = vpop.f32.mrb[130].mxu1  ;;  %7504 = vmatpush3.bf16.msra.mxu1 %v11988_v30 }
 0x320   : > { %v7111_v12 = vadd.f32 %v7110_v35, %v7109_v34  ;;  %v7112_v56 = vpop.f32.mrb[130].mxu0  ;;  %7476 = vmatpush3.bf16.msra.mxu0 %v8578_v26  ;;  %v7141_v22 = vpop.f32.mrb[131].mxu1  ;;  %7545 = vmatprep.subr.bf16.mxu1 %v11989_v48  ;;  %v11998_v34 = vld [vmem:[#allocation31_spill] sm:$0xff] }
 0x321   : > { %v7113_v5 = vpop.f32.mrb[131].mxu0  ;;  %7517 = vmatprep.subr.bf16.mxu0 %v8579_v47  ;;  %v7142_v20 = vadd.f32 %v7141_v22, %v7140_v13  ;;  %v11999_v13 = vld [vmem:[#allocation32_spill] sm:$0xff]  ;;  %v12000_v47 = vld [vmem:[#allocation33_spill] sm:$0xff] }
 0x322   : > { %v4301_v18 = vadd.f32 %v7111_v12, %v11438_v46  ;;  %v7114_v11 = vadd.f32 %v7113_v5, %v7112_v56  ;;  %5335 = vmatmul.mubr.bf16.vlgmr.msra.gmra.mrb[180].mxu1 %v8167_v19  ;;  %v8581_v46 = vld [vmem:[%s11717_s1 + $0x4c8] sm:$0xff]   ;;  %v8591_v22 = vld [vmem:[%s11717_s1 + $0x4f0] sm:$0xff]  }
 0x323   : > { %5286 = vmatmul.mubr.bf16.vlgmr.msra.gmra.mrb[176].mxu0 %v8164_v58  ;;  %7546 = vmatpush3.bf16.msra.mxu1 %v10968_v24  ;;  %v11991_v24 = vld [vmem:[#allocation24_spill] sm:$0xff]  ;;  %v8590_v56 = vld [vmem:[%s11717_s1 + $0x4a8] sm:$0xff]  }
 0x324   : > { %v4304_v32 = vadd.f32 %v7114_v11, %v11448_v45  ;;  %v11522_v40 = vadd.f32 %v7139_v25, %v4301_v18  ;;  %7518 = vmatpush3.bf16.msra.mxu0 %v8580_v0  ;;  %7547 = vmatprep.subr.bf16.mxu1 %v11990_v29  ;;  %v8172_v45 = vld [vmem:[%s8747_s27 + $0x5b0] ss:$100 sps:$4 sm:$0x1f]   ;;  %v8593_v0 = vld [vmem:[%s11717_s1 + $0x4f8] sm:$0xff]  }
 0x325   : > { %7519 = vmatprep.subr.bf16.mxu0 %v8581_v46  ;;  %5293 = vmatprep.mubr.bf16.mxu0 %v8170_v27 }
 0x326   : > { %v11532_v36 = vadd.f32 %v7142_v20, %v4304_v32  ;;  %5342 = vmatprep.mubr.bf16.mxu1 %v8173_v39  ;;  %v8592_v39 = vld [vmem:[%s11717_s1 + $0x4b0] sm:$0xff]   ;;  %v12001_v32 = vld [vmem:[#allocation34_spill] sm:$0xff] }
 0x327   : > { %7548 = vmatpush3.bf16.msra.mxu1 %v11991_v24  ;;  %v8179_v24 = vld [vmem:[%s8747_s27 + $0x500] ss:$100 sps:$4 sm:$0xff]  }
 0x328   : > { %7520 = vmatpush3.bf16.msra.mxu0 %v8582_v15  ;;  %7549 = vmatprep.subr.bf16.mxu1 %v11992_v43  ;;  %v8176_v15 = vld [vmem:[%s8747_s27 + $0x4f8] ss:$100 sps:$4 sm:$0xff]  }
 0x329   : > { %7521 = vmatprep.subr.bf16.mxu0 %v8583_v2 }
 0x32a   : > { %5343 = vmatmul.mubr.bf16.gmra.mrb[184].mxu1 %v8175_v23 }
 0x32b   : > { %5294 = vmatmul.mubr.bf16.gmra.mrb[180].mxu0 %v8172_v45  ;;  %7550 = vmatpush3.bf16.msra.mxu1 %v11993_v8  ;;  %v12003_v8 = vld [vmem:[#allocation36_spill] sm:$0xff] }
 0x32c   : > { %7522 = vmatpush3.bf16.msra.mxu0 %v8584_v10  ;;  %7551 = vmatprep.subr.bf16.mxu1 %v11994_v62 }
 0x32d   : > { %7523 = vmatprep.subr.bf16.mxu0 %v8585_v14  ;;  %5383 = vmatprep.mubr.bf16.mxu0 %v8178_v17  ;;  %v8594_v17 = vld [vmem:[%s11717_s1 + $0x4b8] sm:$0xff]  }
 0x32e   : > { %5432 = vmatprep.mubr.bf16.mxu1 %v8181_v1 }
 0x32f   : > { %7552 = vmatpush3.bf16.msra.mxu1 %v11995_v28  ;;  %v8182_v28 = vld [vmem:[%s8747_s27 + $0x5c4] ss:$100 sps:$4 sm:$0x1f]  }
 0x330   : > { %7524 = vmatpush3.bf16.msra.mxu0 %v8586_v52  ;;  %7553 = vmatprep.subr.bf16.mxu1 %v11996_v50  ;;  %v8595_v52 = vld [vmem:[%s11717_s1 + $0x5c0] sm:$0xff]  }
 0x331   : > { %7525 = vmatprep.subr.bf16.mxu0 %v8587_v7 }
 0x333   : > { %7554 = vmatpush3.bf16.msra.mxu1 %v11997_v41  ;;  %v8185_v41 = vld [vmem:[%s8747_s27 + $0x5cc] ss:$100 sps:$4 sm:$0x1f]  }
 0x334   : > { %7526 = vmatpush3.bf16.msra.mxu0 %v8588_v38  ;;  %7555 = vmatprep.subr.bf16.mxu1 %v11998_v34 }
 0x335   : > { %7527 = vmatprep.subr.bf16.mxu0 %v8589_v6  ;;  %v7187_v35 = vpop.f32.mrb[132].mxu1 }
 0x336   : > { %v7159_v55 = vpop.f32.mrb[132].mxu0  ;;  %v7188_v58 = vpop.f32.mrb[133].mxu1 }
 0x337   : > { %v7160_v49 = vpop.f32.mrb[133].mxu0  ;;  %v7189_v26 = vadd.f32 %v7188_v58, %v7187_v35  ;;  %v7190_v25 = vpop.f32.mrb[134].mxu1  ;;  %7556 = vmatpush3.bf16.msra.mxu1 %v11999_v13  ;;  %v8598_v58 = vld [vmem:[%s11717_s1 + $0x588] sm:$0xff]  }
 0x338   : > { %v7161_v19 = vadd.f32 %v7160_v49, %v7159_v55  ;;  %v7162_v12 = vpop.f32.mrb[134].mxu0  ;;  %7528 = vmatpush3.bf16.msra.mxu0 %v8590_v56  ;;  %v7191_v5 = vpop.f32.mrb[135].mxu1  ;;  %7557 = vmatprep.subr.bf16.mxu1 %v12000_v47  ;;  %v8596_v55 = vld [vmem:[%s11717_s1 + $0x580] sm:$0xff]   ;;  %v8187_v49 = vld [vmem:[%s8747_s27 + $0x5c8] ss:$100 sps:$4 sm:$0x1f]  }
 0x339   : > { %v7163_v30 = vpop.f32.mrb[135].mxu0  ;;  %7529 = vmatprep.subr.bf16.mxu0 %v8591_v22  ;;  %v7192_v11 = vadd.f32 %v7191_v5, %v7190_v25  ;;  %v8600_v56 = vld [vmem:[%s11717_s1 + $0x590] sm:$0xff]   ;;  %v8604_v25 = vld [vmem:[%s11717_s1 + $0x5a0] sm:$0xff]   ;;  %v8605_v13 = vld [vmem:[%s11717_s1 + $0x5e8] sm:$0xff]  }
 0x33a   : > { %v4391_v48 = vadd.f32 %v7161_v19, %v11496_v33  ;;  %v7164_v18 = vadd.f32 %v7163_v30, %v7162_v12  ;;  %v12002_v33 = vld [vmem:[#allocation35_spill] sm:$0xff]  ;;  %v8191_v12 = vld [vmem:[%s8747_s27 + $0x510] ss:$100 sps:$4 sm:$0xff]  }
 0x33b   : > { %7558 = vmatpush3.bf16.msra.mxu1 %v12001_v32  ;;  %v8190_v19 = vld [vmem:[%s8747_s27 + $0x50c] ss:$100 sps:$4 sm:$0xff]  }
 0x33c   : > { %v4394_v20 = vadd.f32 %v7164_v18, %v11506_v3  ;;  %v11580_v27 = vadd.f32 %v7189_v26, %v4391_v48  ;;  %7530 = vmatpush3.bf16.msra.mxu0 %v8592_v39  ;;  %7559 = vmatprep.subr.bf16.mxu1 %v12002_v33  ;;  %v8602_v26 = vld [vmem:[%s11717_s1 + $0x598] sm:$0xff]   ;;  %v8606_v18 = vld [vmem:[%s11717_s1 + $0x5a8] sm:$0xff]   ;;  %v8607_v32 = vld [vmem:[%s11717_s1 + $0x5f0] sm:$0xff]  }
 0x33d   : > { %7531 = vmatprep.subr.bf16.mxu0 %v8593_v0  ;;  %v7193_v3 = vpop.f32.mrb[136].mxu1  ;;  %v12004_v0 = vld [vmem:[#allocation37_spill] sm:$0xff] }
 0x33e   : > { %v11590_v46 = vadd.f32 %v7192_v11, %v4394_v20  ;;  %v7165_v29 = vpop.f32.mrb[136].mxu0  ;;  %v7194_v23 = vpop.f32.mrb[137].mxu1 }
 0x33f   : > { %v7166_v45 = vpop.f32.mrb[137].mxu0  ;;  %v7195_v1 = vadd.f32 %v7194_v23, %v7193_v3  ;;  %v7196_v10 = vpop.f32.mrb[138].mxu1  ;;  %7560 = vmatpush3.bf16.msra.mxu1 %v12003_v8 }
 0x340   : > { %v7167_v2 = vadd.f32 %v7166_v45, %v7165_v29  ;;  %v7168_v43 = vpop.f32.mrb[138].mxu0  ;;  %7532 = vmatpush3.bf16.msra.mxu0 %v8594_v17  ;;  %v7197_v62 = vpop.f32.mrb[139].mxu1  ;;  %7671 = vmatprep.subr.bf16.mxu1 %v11087_v21 }
 0x341   : > { %v7169_v14 = vpop.f32.mrb[139].mxu0  ;;  %7573 = vmatprep.subr.bf16.mxu0 %v8595_v52  ;;  %v7198_v38 = vadd.f32 %v7197_v62, %v7196_v10 }
 0x342   : > { %v4399_v7 = vadd.f32 %v7167_v2, %v11522_v40  ;;  %v7170_v50 = vadd.f32 %v7169_v14, %v7168_v43  ;;  %5433 = vmatmul.mubr.bf16.vlgmr.msra.gmra.mrb[188].mxu1 %v8179_v24  ;;  %v8597_v40 = vld [vmem:[%s11717_s1 + $0x5c8] sm:$0xff]   ;;  %v8610_v14 = vld [vmem:[%s11717_s1 + $0x5b8] sm:$0xff]  }
 0x343   : > { %5384 = vmatmul.mubr.bf16.vlgmr.msra.gmra.mrb[184].mxu0 %v8176_v15  ;;  %7672 = vmatpush3.bf16.msra.mxu1 %v11087_v21  ;;  %v8599_v21 = vld [vmem:[%s11717_s1 + $0x5d0] sm:$0xff]   ;;  %v8609_v15 = vld [vmem:[%s11717_s1 + $0x5f8] sm:$0xff]   ;;  %v8188_v2 = vld [vmem:[%s8747_s27 + $0x508] ss:$100 sps:$4 sm:$0xff]  }
 0x344   : > { %v4402_v6 = vadd.f32 %v7170_v50, %v11532_v36  ;;  %v11606_v34 = vadd.f32 %v7195_v1, %v4399_v7  ;;  %7574 = vmatpush3.bf16.msra.mxu0 %v8596_v55  ;;  %5391 = vmatprep.mubr.bf16.mxu0 %v8182_v28  ;;  %v8184_v36 = vld [vmem:[%s8747_s27 + $0x5c0] ss:$100 sps:$4 sm:$0x1f]   ;;  %v8192_v1 = vld [vmem:[%s8747_s27 + $0x5d8] ss:$100 sps:$4 sm:$0x1f]  }
 0x345   : > { %7575 = vmatprep.subr.bf16.mxu0 %v8597_v40  ;;  %7673 = vmatprep.subr.bf16.mxu1 %v11102_v42  ;;  %v8193_v28 = vld [vmem:[%s8747_s27 + $0x5d4] ss:$100 sps:$4 sm:$0x1f]  }
 0x346   : > { %v11615_v35 = vadd.f32 %v7198_v38, %v4402_v6  ;;  %5440 = vmatprep.mubr.bf16.mxu1 %v8185_v41 }
 0x347   : > { %7674 = vmatpush3.bf16.msra.mxu1 %v11102_v42  ;;  %v8601_v42 = vld [vmem:[%s11717_s1 + $0x5d8] sm:$0xff]  }
 0x348   : > { %7576 = vmatpush3.bf16.msra.mxu0 %v8598_v58  ;;  %7675 = vmatprep.subr.bf16.mxu1 %v11115_v60 }
 0x349   : > { %7577 = vmatprep.subr.bf16.mxu0 %v8599_v21 }
 0x34a   : > { %5441 = vmatmul.mubr.bf16.gmra.mrb[192].mxu1 %v8187_v49  ;;  %v8195_v49 = vld [vmem:[%s8747_s27 + $0x5d0] ss:$100 sps:$4 sm:$0x1f]  }
 0x34b   : > { %5392 = vmatmul.mubr.bf16.gmra.mrb[188].mxu0 %v8184_v36  ;;  %7676 = vmatpush3.bf16.msra.mxu1 %v11115_v60  ;;  %v8603_v60 = vld [vmem:[%s11717_s1 + $0x5e0] sm:$0xff]  }
 0x34c   : > { %7578 = vmatpush3.bf16.msra.mxu0 %v8600_v56  ;;  %7677 = vmatprep.subr.bf16.mxu1 %v11126_v31 }
 0x34d   : > { %7579 = vmatprep.subr.bf16.mxu0 %v8601_v42  ;;  %5481 = vmatprep.mubr.bf16.mxu0 %v8190_v19 }
 0x34e   : > { %7687 = vmatprep.mubr.bf16.mxu1 %v8191_v12 }
 0x34f   : > { %7678 = vmatpush3.bf16.msra.mxu1 %v11126_v31 }
 0x350   : > { %7580 = vmatpush3.bf16.msra.mxu0 %v8602_v26  ;;  %7679 = vmatprep.subr.bf16.mxu1 %v11135_v63 }
 0x351   : > { %7581 = vmatprep.subr.bf16.mxu0 %v8603_v60 }
 0x353   : > { %7680 = vmatpush3.bf16.msra.mxu1 %v11135_v63 }
 0x354   : > { %7582 = vmatpush3.bf16.msra.mxu0 %v8604_v25  ;;  %7681 = vmatprep.subr.bf16.mxu1 %v11144_v4 }
 0x355   : > { %7583 = vmatprep.subr.bf16.mxu0 %v8605_v13  ;;  %v7243_v30 = vpop.f32.mrb[140].mxu1 }
 0x356   : > { %v7215_v31 = vpop.f32.mrb[140].mxu0  ;;  %v7244_v22 = vpop.f32.mrb[141].mxu1 }
 0x357   : > { %v7216_v5 = vpop.f32.mrb[141].mxu0  ;;  %v7245_v11 = vadd.f32 %v7244_v22, %v7243_v30  ;;  %v7246_v63 = vpop.f32.mrb[142].mxu1  ;;  %7682 = vmatpush3.bf16.msra.mxu1 %v11144_v4  ;;  %v8608_v4 = vld [vmem:[%s11717_s1 + $0x5b0] sm:$0xff]  }
 0x358   : > { %v7217_v47 = vadd.f32 %v7216_v5, %v7215_v31  ;;  %v7218_v48 = vpop.f32.mrb[142].mxu0  ;;  %7584 = vmatpush3.bf16.msra.mxu0 %v8606_v18  ;;  %v7247_v39 = vpop.f32.mrb[143].mxu1  ;;  %7683 = vmatprep.subr.bf16.mxu1 %v12004_v0  ;;  %v12005_v31 = vld [vmem:[#allocation38_spill] sm:$0xff] }
 0x359   : > { %v7219_v20 = vpop.f32.mrb[143].mxu0  ;;  %7585 = vmatprep.subr.bf16.mxu0 %v8607_v32  ;;  %v7248_v3 = vadd.f32 %v7247_v39, %v7246_v63  ;;  %v12006_v30 = vmax.f32 %v11956_v16, %v12005_v31 }
 0x35a   : > { %v4489_v33 = vadd.f32 %v7217_v47, %v11580_v27  ;;  %v7220_v29 = vadd.f32 %v7219_v20, %v7218_v48 }
 0x35b   : > { %7684 = vmatpush3.bf16.msra.mxu1 %v12004_v0 }
 0x35c   : > { %v4492_v45 = vadd.f32 %v7220_v29, %v11590_v46  ;;  %7586 = vmatpush3.bf16.msra.mxu0 %v8608_v4  ;;  %v4538_v23 = vadd.f32 %v7245_v11, %v4489_v33  ;;  %7685 = vmatprep.subr.bf16.mxu1 %v11166_v37 }
 0x35d   : > { %7587 = vmatprep.subr.bf16.mxu0 %v8609_v15  ;;  %v7249_v24 = vpop.f32.mrb[144].mxu1 }
 0x35e   : > { %v7221_v27 = vpop.f32.mrb[144].mxu0  ;;  %v4541_v46 = vadd.f32 %v7248_v3, %v4492_v45  ;;  %v7250_v17 = vpop.f32.mrb[145].mxu1 }
 0x35f   : > { %v7222_v43 = vpop.f32.mrb[145].mxu0  ;;  %v7251_v62 = vadd.f32 %v7250_v17, %v7249_v24  ;;  %v7252_v52 = vpop.f32.mrb[146].mxu1  ;;  %7686 = vmatpush3.bf16.msra.mxu1 %v11166_v37 }
 0x360   : > { %v7223_v10 = vadd.f32 %v7222_v43, %v7221_v27  ;;  %v7224_v8 = vpop.f32.mrb[146].mxu0  ;;  %7588 = vmatpush3.bf16.msra.mxu0 %v8610_v14  ;;  %v7253_v50 = vpop.f32.mrb[147].mxu1 }
 0x361   : > { %v7225_v7 = vpop.f32.mrb[147].mxu0  ;;  %v7254_v6 = vadd.f32 %v7253_v50, %v7252_v52 }
 0x362   : > { %v4497_v38 = vadd.f32 %v7223_v10, %v11606_v34  ;;  %v7226_v41 = vadd.f32 %v7225_v7, %v7224_v8  ;;  %7688 = vmatmul.mubr.bf16.vlgmr.msra.gmra.mrb[196].mxu1 %v8192_v1 }
 0x363   : > { %5482 = vmatmul.mubr.bf16.vlgmr.msra.gmra.mrb[192].mxu0 %v8188_v2 }
 0x364   : > { %v4500_v55 = vadd.f32 %v7226_v41, %v11615_v35  ;;  %5489 = vmatprep.mubr.bf16.mxu0 %v8193_v28  ;;  %v4546_v40 = vadd.f32 %v7251_v62, %v4497_v38 }
 0x366   : > { %v4549_v36 = vadd.f32 %v7254_v6, %v4500_v55 }
 0x36b   : > { %5490 = vmatmul.mubr.bf16.gmra.mrb[196].mxu0 %v8195_v49 }
 0x375   : > { %v7281_v21 = vpop.f32.mrb[148].mxu1 }
 0x376   : > { %v7669_v58 = vpop.f32.mrb[148].mxu0  ;;  %v7282_v12 = vpop.f32.mrb[149].mxu1 }
 0x377   : > { %v4595_v19 = vadd.f32 %v7669_v58, %v4546_v40  ;;  %v4586_v37 = vpop.f32.mrb[149].mxu0  ;;  %v7283_v26 = vadd.f32 %v7282_v12, %v7281_v21  ;;  %v7284_v34 = vpop.f32.mrb[150].mxu1 }
 0x378   : > { %v4587_v56 = vadd.f32 %v4586_v37, %v4538_v23  ;;  %v7670_v42 = vpop.f32.mrb[150].mxu0  ;;  %v7285_v13 = vpop.f32.mrb[151].mxu1 }
 0x379   : > { %v11685_v60 = vmax.f32 %v3657_v53, %v4595_v19  ;;  %v4598_v35 = vadd.f32 %v7670_v42, %v4549_v36  ;;  %v4589_v25 = vpop.f32.mrb[151].mxu0  ;;  %v7286_v47 = vadd.f32 %v7285_v13, %v7284_v34 }
 0x37a   : > { %v11690_v5 = vmax.f32 %v12006_v30, %v4587_v56  ;;  %v4590_v22 = vadd.f32 %v4589_v25, %v4541_v46 }
 0x37b   : > { %v11695_v48 = vmax.f32 %v3658_v9, %v4598_v35 }
 0x37c   : > { %v11700_v54 = vmax.f32 %v12007_v44, %v4590_v22 }
 0x37d   : > { %v7287_v53 = vpop.f32.mrb[152].mxu1 }
 0x37e   : > { %v7288_v18 = vpop.f32.mrb[153].mxu1 }
 0x37f   : > { %v7289_v11 = vadd.f32 %v7288_v18, %v7287_v53  ;;  %v7290_v63 = vpop.f32.mrb[154].mxu1 }
 0x380   : > { %v7291_v20 = vpop.f32.mrb[155].mxu1 }
 0x381   : > { %v7292_v16 = vadd.f32 %v7291_v20, %v7290_v63 }
 0x395   : > { %v7337_v32 = vpop.f32.mrb[156].mxu1 }
 0x396   : > { %v7309_v39 = vpop.f32.mrb[152].mxu0  ;;  %v7338_v33 = vpop.f32.mrb[157].mxu1 }
 0x397   : > { %v7310_v0 = vpop.f32.mrb[153].mxu0  ;;  %v7339_v61 = vadd.f32 %v7338_v33, %v7337_v32  ;;  %v7340_v59 = vpop.f32.mrb[158].mxu1 }
 0x398   : > { %v7311_v29 = vadd.f32 %v7310_v0, %v7309_v39  ;;  %v7312_v3 = vpop.f32.mrb[154].mxu0  ;;  %v7341_v45 = vpop.f32.mrb[159].mxu1 }
 0x399   : > { %v7313_v9 = vpop.f32.mrb[155].mxu0  ;;  %v7342_v57 = vadd.f32 %v7341_v45, %v7340_v59 }
 0x39a   : > { %v4994_v4 = vadd.f32 %v7311_v29, %v7283_v26  ;;  %v7314_v51 = vadd.f32 %v7313_v9, %v7312_v3 }
 0x39c   : > { %v4997_v23 = vadd.f32 %v7314_v51, %v7286_v47  ;;  %v5043_v15 = vadd.f32 %v7339_v61, %v4994_v4 }
 0x39d   : > { %v7343_v2 = vpop.f32.mrb[160].mxu1 }
 0x39e   : > { %v5046_v27 = vadd.f32 %v7342_v57, %v4997_v23  ;;  %v7315_v24 = vpop.f32.mrb[156].mxu0  ;;  %v7344_v43 = vpop.f32.mrb[161].mxu1 }
 0x39f   : > { %v7316_v46 = vpop.f32.mrb[157].mxu0  ;;  %v7345_v10 = vadd.f32 %v7344_v43, %v7343_v2  ;;  %v7346_v8 = vpop.f32.mrb[162].mxu1 }
 0x3a0   : > { %v7317_v17 = vadd.f32 %v7316_v46, %v7315_v24  ;;  %v7318_v1 = vpop.f32.mrb[158].mxu0  ;;  %v7347_v62 = vpop.f32.mrb[163].mxu1 }
 0x3a1   : > { %v7319_v14 = vpop.f32.mrb[159].mxu0  ;;  %v7348_v7 = vadd.f32 %v7347_v62, %v7346_v8 }
 0x3a2   : > { %v5002_v52 = vadd.f32 %v7317_v17, %v7289_v11  ;;  %v7320_v28 = vadd.f32 %v7319_v14, %v7318_v1 }
 0x3a4   : > { %v5005_v50 = vadd.f32 %v7320_v28, %v7292_v16  ;;  %v5051_v38 = vadd.f32 %v7345_v10, %v5002_v52 }
 0x3a6   : > { %v5054_v41 = vadd.f32 %v7348_v7, %v5005_v50 }
 0x3b5   : > { %v7393_v55 = vpop.f32.mrb[164].mxu1 }
 0x3b6   : > { %v7365_v6 = vpop.f32.mrb[160].mxu0  ;;  %v7394_v36 = vpop.f32.mrb[165].mxu1 }
 0x3b7   : > { %v7366_v40 = vpop.f32.mrb[161].mxu0  ;;  %v7395_v21 = vadd.f32 %v7394_v36, %v7393_v55  ;;  %v7396_v19 = vpop.f32.mrb[166].mxu1 }
 0x3b8   : > { %v7367_v49 = vadd.f32 %v7366_v40, %v7365_v6  ;;  %v7368_v58 = vpop.f32.mrb[162].mxu0  ;;  %v7397_v12 = vpop.f32.mrb[167].mxu1 }
 0x3b9   : > { %v7369_v37 = vpop.f32.mrb[163].mxu0  ;;  %v7398_v26 = vadd.f32 %v7397_v12, %v7396_v19 }
 0x3ba   : > { %v5092_v56 = vadd.f32 %v7367_v49, %v5043_v15  ;;  %v7370_v42 = vadd.f32 %v7369_v37, %v7368_v58 }
 0x3bc   : > { %v5095_v34 = vadd.f32 %v7370_v42, %v5046_v27  ;;  %v5141_v35 = vadd.f32 %v7395_v21, %v5092_v56 }
 0x3bd   : > { %v7399_v31 = vpop.f32.mrb[168].mxu1 }
 0x3be   : > { %v5144_v25 = vadd.f32 %v7398_v26, %v5095_v34  ;;  %v7371_v13 = vpop.f32.mrb[164].mxu0  ;;  %v7400_v22 = vpop.f32.mrb[169].mxu1 }
 0x3bf   : > { %v7372_v30 = vpop.f32.mrb[165].mxu0  ;;  %v7401_v53 = vadd.f32 %v7400_v22, %v7399_v31  ;;  %v7402_v18 = vpop.f32.mrb[170].mxu1 }
 0x3c0   : > { %v7373_v47 = vadd.f32 %v7372_v30, %v7371_v13  ;;  %v7374_v44 = vpop.f32.mrb[166].mxu0  ;;  %v7403_v63 = vpop.f32.mrb[171].mxu1 }
 0x3c1   : > { %v7375_v11 = vpop.f32.mrb[167].mxu0  ;;  %v7404_v39 = vadd.f32 %v7403_v63, %v7402_v18 }
 0x3c2   : > { %v5100_v20 = vadd.f32 %v7373_v47, %v5051_v38  ;;  %v7376_v16 = vadd.f32 %v7375_v11, %v7374_v44 }
 0x3c4   : > { %v5103_v32 = vadd.f32 %v7376_v16, %v5054_v41  ;;  %v5149_v0 = vadd.f32 %v7401_v53, %v5100_v20 }
 0x3c6   : > { %v5152_v33 = vadd.f32 %v7404_v39, %v5103_v32 }
 0x3d5   : > { %v7449_v3 = vpop.f32.mrb[172].mxu1 }
 0x3d6   : > { %v7421_v29 = vpop.f32.mrb[168].mxu0  ;;  %v7450_v59 = vpop.f32.mrb[173].mxu1 }
 0x3d7   : > { %v7422_v61 = vpop.f32.mrb[169].mxu0  ;;  %v7451_v4 = vadd.f32 %v7450_v59, %v7449_v3  ;;  %v7452_v51 = vpop.f32.mrb[174].mxu1 }
 0x3d8   : > { %v7423_v9 = vadd.f32 %v7422_v61, %v7421_v29  ;;  %v7424_v45 = vpop.f32.mrb[170].mxu0  ;;  %v7453_v23 = vpop.f32.mrb[175].mxu1 }
 0x3d9   : > { %v7425_v57 = vpop.f32.mrb[171].mxu0  ;;  %v7454_v24 = vadd.f32 %v7453_v23, %v7452_v51 }
 0x3da   : > { %v5190_v15 = vadd.f32 %v7423_v9, %v5141_v35  ;;  %v7426_v27 = vadd.f32 %v7425_v57, %v7424_v45 }
 0x3dc   : > { %v5193_v2 = vadd.f32 %v7426_v27, %v5144_v25  ;;  %v5239_v46 = vadd.f32 %v7451_v4, %v5190_v15 }
 0x3dd   : > { %v7455_v1 = vpop.f32.mrb[176].mxu1 }
 0x3de   : > { %v5242_v43 = vadd.f32 %v7454_v24, %v5193_v2  ;;  %v7427_v17 = vpop.f32.mrb[172].mxu0  ;;  %v7456_v8 = vpop.f32.mrb[177].mxu1 }
 0x3df   : > { %v7428_v10 = vpop.f32.mrb[173].mxu0  ;;  %v7457_v52 = vadd.f32 %v7456_v8, %v7455_v1  ;;  %v7458_v28 = vpop.f32.mrb[178].mxu1 }
 0x3e0   : > { %v7429_v14 = vadd.f32 %v7428_v10, %v7427_v17  ;;  %v7430_v62 = vpop.f32.mrb[174].mxu0  ;;  %v7459_v50 = vpop.f32.mrb[179].mxu1 }
 0x3e1   : > { %v7431_v7 = vpop.f32.mrb[175].mxu0  ;;  %v7460_v6 = vadd.f32 %v7459_v50, %v7458_v28 }
 0x3e2   : > { %v5198_v38 = vadd.f32 %v7429_v14, %v5149_v0  ;;  %v7432_v41 = vadd.f32 %v7431_v7, %v7430_v62 }
 0x3e4   : > { %v5201_v55 = vadd.f32 %v7432_v41, %v5152_v33  ;;  %v5247_v40 = vadd.f32 %v7457_v52, %v5198_v38 }
 0x3e6   : > { %v5250_v36 = vadd.f32 %v7460_v6, %v5201_v55 }
 0x3f5   : > { %v7505_v58 = vpop.f32.mrb[180].mxu1 }
 0x3f6   : > { %v7477_v49 = vpop.f32.mrb[176].mxu0  ;;  %v7506_v19 = vpop.f32.mrb[181].mxu1 }
 0x3f7   : > { %v7478_v21 = vpop.f32.mrb[177].mxu0  ;;  %v7507_v56 = vadd.f32 %v7506_v19, %v7505_v58  ;;  %v7508_v42 = vpop.f32.mrb[182].mxu1 }
 0x3f8   : > { %v7479_v37 = vadd.f32 %v7478_v21, %v7477_v49  ;;  %v7480_v12 = vpop.f32.mrb[178].mxu0  ;;  %v7509_v34 = vpop.f32.mrb[183].mxu1 }
 0x3f9   : > { %v7481_v26 = vpop.f32.mrb[179].mxu0  ;;  %v7510_v13 = vadd.f32 %v7509_v34, %v7508_v42 }
 0x3fa   : > { %v5288_v35 = vadd.f32 %v7479_v37, %v5239_v46  ;;  %v7482_v25 = vadd.f32 %v7481_v26, %v7480_v12 }
 0x3fc   : > { %v5291_v31 = vadd.f32 %v7482_v25, %v5242_v43  ;;  %v5337_v30 = vadd.f32 %v7507_v56, %v5288_v35 }
 0x3fd   : > { %v7511_v44 = vpop.f32.mrb[184].mxu1 }
 0x3fe   : > { %v5340_v22 = vadd.f32 %v7510_v13, %v5291_v31  ;;  %v7483_v47 = vpop.f32.mrb[180].mxu0  ;;  %v7512_v18 = vpop.f32.mrb[185].mxu1 }
 0x3ff   : > { %v7484_v53 = vpop.f32.mrb[181].mxu0  ;;  %v7513_v20 = vadd.f32 %v7512_v18, %v7511_v44  ;;  %v7514_v16 = vpop.f32.mrb[186].mxu1  ;;  %v6210_v44 = vld [vmem:[%s11718_s2] ss:$0 sm:$0xff] }
 0x400   : > { %v7485_v11 = vadd.f32 %v7484_v53, %v7483_v47  ;;  %v7486_v63 = vpop.f32.mrb[182].mxu0  ;;  %v7515_v32 = vpop.f32.mrb[187].mxu1 }
 0x401   : > { %v7487_v39 = vpop.f32.mrb[183].mxu0  ;;  %v7516_v29 = vadd.f32 %v7515_v32, %v7514_v16 }
 0x402   : > { %v5296_v0 = vadd.f32 %v7485_v11, %v5247_v40  ;;  %v7488_v33 = vadd.f32 %v7487_v39, %v7486_v63 }
 0x404   : > { %v5299_v3 = vadd.f32 %v7488_v33, %v5250_v36  ;;  %v5345_v61 = vadd.f32 %v7513_v20, %v5296_v0 }
 0x406   : > { %v5348_v59 = vadd.f32 %v7516_v29, %v5299_v3 }
 0x415   : > { %v7561_v45 = vpop.f32.mrb[188].mxu1 }
 0x416   : > { %v7533_v9 = vpop.f32.mrb[184].mxu0  ;;  %v7562_v51 = vpop.f32.mrb[189].mxu1 }
 0x417   : > { %v7534_v4 = vpop.f32.mrb[185].mxu0  ;;  %v7563_v15 = vadd.f32 %v7562_v51, %v7561_v45  ;;  %v7564_v27 = vpop.f32.mrb[190].mxu1 }
 0x418   : > { %v7535_v57 = vadd.f32 %v7534_v4, %v7533_v9  ;;  %v7536_v23 = vpop.f32.mrb[186].mxu0  ;;  %v7565_v2 = vpop.f32.mrb[191].mxu1 }
 0x419   : > { %v7537_v24 = vpop.f32.mrb[187].mxu0  ;;  %v7566_v17 = vadd.f32 %v7565_v2, %v7564_v27  ;;  %v5588_v2 = vld [vmem:[%s170_s25 + $0xc] sm:$0x1] }
 0x41a   : > { %v5386_v46 = vadd.f32 %v7535_v57, %v5337_v30  ;;  %v7538_v43 = vadd.f32 %v7537_v24, %v7536_v23 }
 0x41c   : > { %v5389_v1 = vadd.f32 %v7538_v43, %v5340_v22  ;;  %v5435_v10 = vadd.f32 %v7563_v15, %v5386_v46 }
 0x41d   : > { %v7567_v62 = vpop.f32.mrb[192].mxu1 }
 0x41e   : > { %v5438_v8 = vadd.f32 %v7566_v17, %v5389_v1  ;;  %v7539_v14 = vpop.f32.mrb[188].mxu0  ;;  %v7568_v28 = vpop.f32.mrb[193].mxu1 }
 0x41f   : > { %v7540_v52 = vpop.f32.mrb[189].mxu0  ;;  %v7569_v38 = vadd.f32 %v7568_v28, %v7567_v62  ;;  %v7570_v41 = vpop.f32.mrb[194].mxu1 }
 0x420   : > { %v7541_v7 = vadd.f32 %v7540_v52, %v7539_v14  ;;  %v7542_v50 = vpop.f32.mrb[190].mxu0  ;;  %v7571_v55 = vpop.f32.mrb[195].mxu1 }
 0x421   : > { %v7543_v6 = vpop.f32.mrb[191].mxu0  ;;  %v7572_v49 = vadd.f32 %v7571_v55, %v7570_v41 }
 0x422   : > { %v5394_v40 = vadd.f32 %v7541_v7, %v5345_v61  ;;  %v7544_v36 = vadd.f32 %v7543_v6, %v7542_v50 }
 0x424   : > { %v5397_v58 = vadd.f32 %v7544_v36, %v5348_v59  ;;  %v5443_v21 = vadd.f32 %v7569_v38, %v5394_v40 }
 0x426   : > { %v5446_v19 = vadd.f32 %v7572_v49, %v5397_v58 }
 0x435   : > { %v7689_v12 = vpop.f32.mrb[196].mxu1 }
 0x436   : > { %v7589_v37 = vpop.f32.mrb[192].mxu0  ;;  %v5532_v42 = vpop.f32.mrb[197].mxu1 }
 0x437   : > { %v7590_v56 = vpop.f32.mrb[193].mxu0  ;;  %v7690_v35 = vpop.f32.mrb[198].mxu1 }
 0x438   : > { %v7591_v26 = vadd.f32 %v7590_v56, %v7589_v37  ;;  %v7592_v34 = vpop.f32.mrb[194].mxu0  ;;  %v5535_v13 = vpop.f32.mrb[199].mxu1 }
 0x439   : > { %v7593_v25 = vpop.f32.mrb[195].mxu0 }
 0x43a   : > { %v7594_v31 = vadd.f32 %v7593_v25, %v7592_v34  ;;  %v5484_v30 = vadd.f32 %v7591_v26, %v5435_v10 }
 0x43c   : > { %v5533_v22 = vadd.f32 %v5532_v42, %v5484_v30  ;;  %v5487_v47 = vadd.f32 %v7594_v31, %v5438_v8 }
 0x43e   : > { %v5547_v53 = vmax.f32 %v11690_v5, %v5533_v22  ;;  %v5536_v18 = vadd.f32 %v5535_v13, %v5487_v47  ;;  %v7595_v11 = vpop.f32.mrb[196].mxu0 }
 0x43f   : > { %v7596_v63 = vpop.f32.mrb[197].mxu0 }
 0x440   : > { %v5558_v20 = vadd.f32 %v6210_v44, %v5547_v53  ;;  %v5548_v16 = vmax.f32 %v11700_v54, %v5536_v18  ;;  %v7597_v39 = vadd.f32 %v7596_v63, %v7595_v11  ;;  %v7598_v32 = vpop.f32.mrb[198].mxu0 }
 0x441   : > { %v7599_v0 = vpop.f32.mrb[199].mxu0 }
 0x442   : > { %v5559_v33 = vadd.f32 %v6210_v44, %v5548_v16  ;;  %v5492_v29 = vadd.f32 %v7597_v39, %v5443_v21  ;;  %v7600_v3 = vadd.f32 %v7599_v0, %v7598_v32  ;;  %v5562_v61 = vmax.f32 %v5558_v20, 0.0 }
 0x444   : > { %v5563_v59 = vmax.f32 %v5559_v33, 0.0  ;;  %v5541_v9 = vadd.f32 %v7689_v12, %v5492_v29  ;;  %v5495_v45 = vadd.f32 %v7600_v3, %v5446_v19 }
 0x446   : > { %v6225_v5 = vpack.c.bf16 %v5563_v59, %v5562_v61  ;;  %v5549_v4 = vmax.f32 %v11685_v60, %v5541_v9  ;;  %v5544_v51 = vadd.f32 %v7690_v35, %v5495_v45 }
 0x448   : > { %6226 = vst [vmem:[%s170_s25] sm:$0xff] %v6225_v5   ;;  %v5560_v54 = vadd.f32 %v6210_v44, %v5549_v4  ;;  %v5550_v57 = vmax.f32 %v11695_v48, %v5544_v51 }
 0x44a   : > { %v5564_v23 = vmax.f32 %v5560_v54, 0.0  ;;  %v5561_v15 = vadd.f32 %v6210_v44, %v5550_v57 }
 0x44c   : > { %v6220_v27 = vpack.c.bf16 %v5564_v23, %v5564_v23  ;;  %v5565_v24 = vmax.f32 %v5561_v15, 0.0 }
 0x44e   : > { %5584 = vst [vmem:[%s170_s25 + $0x8] sm:$0xf] %v6220_v27  ;;  %v6221_v46 = vpack.c.bf16 %v5565_v24, %v5565_v24 }
 0x450   : > { %v5589_v43 = vsel %vm5587_vm2, %v6221_v46, %v5588_v2 }
 0x451   : > { %5590 = vst [vmem:[%s170_s25 + $0xc] sm:$0x1] %v5589_v43 }
 0x452 PF: > { %s13_s12 = sadd.s32 1, %s8617_s12  }
 0x453   : > { %p10_p4 = scmp.ge.s32.totalorder %s13_s12, 4  }
 0x455   :  { %12 = sbr.rel (!%p10_p4) target bundleno = 1 (0x1), region = 65 }

// kernel: lenet5_cifar_forward.5
= control target key start
LH: loop header
LB: loop body
LE: loop exit
PB: predicated region body
PF: predicated region fallthrough
CT: control target
= control target key end

     0   :  { %v828_v36 = vlaneseq  ;;  %v8720_v37 = vmov 1966171168   ;;  %s11410_s0 = inlined_call_operand.vmem [shape: bf16[2,3200], index: 0, kind: input, shape index: {}]   ;;  %s11411_s1 = inlined_call_operand.vmem [shape: bf16[3200,512], index: 1, kind: input, shape index: {}]   ;;  %s11412_s2 = inlined_call_operand.vmem [shape: f32[1,512], index: 2, kind: input, shape index: {}]   ;;  %s11413_s3 = inlined_call_operand.vmem [shape: bf16[512,128], index: 3, kind: input, shape index: {}]   ;;  %s11414_s4 = inlined_call_operand.vmem [shape: f32[1,128], index: 4, kind: input, shape index: {}]   ;;  %s11415_s5 = inlined_call_operand.hbm [shape: f32[2,128], index: 5, kind: output, shape index: {}]  }
   0x1   :  { %v7451_v0 = vld [vmem:[%s11411_s1 + $0x4] ss:$16 sps:$4 sm:$0xff]   ;;  %v7453_v1 = vld [vmem:[%s11411_s1 + $0xc] ss:$16 sps:$4 sm:$0xff]   ;;  %v7455_v2 = vld [vmem:[%s11411_s1] ss:$16 sps:$4 sm:$0xff]   ;;  %v854_v38 = vunpack.c.l.s4 %v8720_v37 }
   0x2   :  { %5038 = vmatprep.subr.bf16.mxu0 %v7451_v0  ;;  %v7456_v3 = vld [vmem:[%s11411_s1 + $0x8] ss:$16 sps:$4 sm:$0xff]   ;;  %5571 = vmatprep.subr.bf16.mxu1 %v7453_v1  ;;  %v7457_v4 = vld [vmem:[%s11411_s1 + $0x24] ss:$16 sps:$4 sm:$0xff]   ;;  %v7459_v5 = vld [vmem:[%s11411_s1 + $0x2c] ss:$16 sps:$4 sm:$0xff]  }
   0x3   :  { %5039 = vmatpush1.bf16.msra.mxu0 %v7455_v2  ;;  %5572 = vmatpush1.bf16.msra.mxu1 %v7456_v3  ;;  %v7461_v6 = vld [vmem:[%s11411_s1 + $0x20] ss:$16 sps:$4 sm:$0xff]   ;;  %v7462_v7 = vld [vmem:[%s11411_s1 + $0x28] ss:$16 sps:$4 sm:$0xff]   ;;  %v7463_v8 = vld [vmem:[%s11411_s1 + $0x44] ss:$16 sps:$4 sm:$0xff]   ;;  %v855_v43 = vunpack.c.0.s8 %v854_v38 }
   0x4   :  { %5040 = vmatprep.subr.bf16.mxu0 %v7457_v4  ;;  %5573 = vmatprep.subr.bf16.mxu1 %v7459_v5  ;;  %v7465_v9 = vld [vmem:[%s11411_s1 + $0x4c] ss:$16 sps:$4 sm:$0xff]   ;;  %v7467_v10 = vld [vmem:[%s11411_s1 + $0x40] ss:$16 sps:$4 sm:$0xff]   ;;  %v7468_v11 = vld [vmem:[%s11411_s1 + $0x48] ss:$16 sps:$4 sm:$0xff]  }
   0x5   :  { %v7469_v12 = vld [vmem:[%s11411_s1 + $0x64] ss:$16 sps:$4 sm:$0xff]   ;;  %v7471_v13 = vld [vmem:[%s11411_s1 + $0x6c] ss:$16 sps:$4 sm:$0xff]   ;;  %v7473_v14 = vld [vmem:[%s11411_s1 + $0x60] ss:$16 sps:$4 sm:$0xff]  }
   0x6   :  { %v7474_v15 = vld [vmem:[%s11411_s1 + $0x68] ss:$16 sps:$4 sm:$0xff]   ;;  %v7475_v16 = vld [vmem:[%s11411_s1 + $0x84] ss:$16 sps:$4 sm:$0xff]   ;;  %v7477_v17 = vld [vmem:[%s11411_s1 + $0x8c] ss:$16 sps:$4 sm:$0xff]  }
   0x7   :  { %5041 = vmatpush1.bf16.msra.mxu0 %v7461_v6  ;;  %5574 = vmatpush1.bf16.msra.mxu1 %v7462_v7  ;;  %v7479_v18 = vld [vmem:[%s11411_s1 + $0x80] ss:$16 sps:$4 sm:$0xff]   ;;  %v7480_v19 = vld [vmem:[%s11411_s1 + $0x88] ss:$16 sps:$4 sm:$0xff]   ;;  %v7481_v20 = vld [vmem:[%s11411_s1 + $0xa4] ss:$16 sps:$4 sm:$0xff]  }
   0x8   :  { %5042 = vmatprep.subr.bf16.mxu0 %v7463_v8  ;;  %5575 = vmatprep.subr.bf16.mxu1 %v7465_v9  ;;  %v7483_v21 = vld [vmem:[%s11411_s1 + $0xac] ss:$16 sps:$4 sm:$0xff]   ;;  %v7485_v22 = vld [vmem:[%s11411_s1 + $0xa0] ss:$16 sps:$4 sm:$0xff]   ;;  %v7486_v23 = vld [vmem:[%s11411_s1 + $0xa8] ss:$16 sps:$4 sm:$0xff]  }
   0x9   :  { %v7487_v24 = vld [vmem:[%s11411_s1 + $0xc4] ss:$16 sps:$4 sm:$0xff]   ;;  %v7489_v25 = vld [vmem:[%s11411_s1 + $0xcc] ss:$16 sps:$4 sm:$0xff]   ;;  %v7491_v26 = vld [vmem:[%s11411_s1 + $0xc0] ss:$16 sps:$4 sm:$0xff]  }
   0xa   :  { %v7492_v27 = vld [vmem:[%s11411_s1 + $0xc8] ss:$16 sps:$4 sm:$0xff]   ;;  %v7493_v28 = vld [vmem:[%s11411_s1 + $0xe4] ss:$16 sps:$4 sm:$0xff]   ;;  %v7495_v29 = vld [vmem:[%s11411_s1 + $0xec] ss:$16 sps:$4 sm:$0xff]  }
   0xb   :  { %5043 = vmatpush1.bf16.msra.mxu0 %v7467_v10  ;;  %5576 = vmatpush1.bf16.msra.mxu1 %v7468_v11  ;;  %v7497_v30 = vld [vmem:[%s11411_s1 + $0xe0] ss:$16 sps:$4 sm:$0xff]   ;;  %v7498_v31 = vld [vmem:[%s11411_s1 + $0xe8] ss:$16 sps:$4 sm:$0xff]   ;;  %v7499_v32 = vld [vmem:[%s11411_s1 + $0x104] ss:$16 sps:$4 sm:$0xff]  }
   0xc   :  { %5044 = vmatprep.subr.bf16.mxu0 %v7469_v12  ;;  %5577 = vmatprep.subr.bf16.mxu1 %v7471_v13  ;;  %v7501_v33 = vld [vmem:[%s11411_s1 + $0x10c] ss:$16 sps:$4 sm:$0xff]   ;;  %v7503_v34 = vld [vmem:[%s11411_s1 + $0x100] ss:$16 sps:$4 sm:$0xff]   ;;  %v7504_v35 = vld [vmem:[%s11411_s1 + $0x108] ss:$16 sps:$4 sm:$0xff]  }
   0xd   :  { %v7505_v39 = vld [vmem:[%s11411_s1 + $0x124] ss:$16 sps:$4 sm:$0xff]   ;;  %v7507_v40 = vld [vmem:[%s11411_s1 + $0x12c] ss:$16 sps:$4 sm:$0xff]   ;;  %v7509_v41 = vld [vmem:[%s11411_s1 + $0x120] ss:$16 sps:$4 sm:$0xff]  }
   0xe   :  { %v8870_v42 = vshrl.u32 %v828_v36, 7  ;;  %v7510_v44 = vld [vmem:[%s11411_s1 + $0x128] ss:$16 sps:$4 sm:$0xff]   ;;  %v7511_v45 = vld [vmem:[%s11411_s1 + $0x144] ss:$16 sps:$4 sm:$0xff]  }
   0xf   :  { %5045 = vmatpush1.bf16.msra.mxu0 %v7473_v14  ;;  %5578 = vmatpush1.bf16.msra.mxu1 %v7474_v15  ;;  %v7513_v46 = vld [vmem:[%s11411_s1 + $0x14c] ss:$16 sps:$4 sm:$0xff]   ;;  %v7515_v47 = vld [vmem:[%s11411_s1 + $0x140] ss:$16 sps:$4 sm:$0xff]   ;;  %v7516_v48 = vld [vmem:[%s11411_s1 + $0x148] ss:$16 sps:$4 sm:$0xff]  }
  0x10   :  { %5046 = vmatprep.subr.bf16.mxu0 %v7475_v16  ;;  %5579 = vmatprep.subr.bf16.mxu1 %v7477_v17  ;;  %v8888_v49 = vsub.s32 %v855_v43, %v8870_v42  ;;  %v7517_v50 = vld [vmem:[%s11411_s1 + $0x164] ss:$16 sps:$4 sm:$0xff]   ;;  %v7519_v51 = vld [vmem:[%s11411_s1 + $0x16c] ss:$16 sps:$4 sm:$0xff]   ;;  %v7521_v53 = vld [vmem:[%s11411_s1 + $0x160] ss:$16 sps:$4 sm:$0xff]  }
  0x11   :  { %v8899_v52 = vld [vmem:[%s11410_s0] sm:$0xff]  ;;  %v7522_v55 = vld [vmem:[%s11411_s1 + $0x168] ss:$16 sps:$4 sm:$0xff]   ;;  %v7525_v57 = vld [vmem:[%s11411_s1 + $0x18c] ss:$16 sps:$4 sm:$0xff]  }
  0x12   :  { %v859_v54 = vrot.slane %v8899_v52, %v8888_v49  ;;  %v7523_v56 = vld [vmem:[%s11411_s1 + $0x184] ss:$16 sps:$4 sm:$0xff]   ;;  %v7527_v59 = vld [vmem:[%s11411_s1 + $0x180] ss:$16 sps:$4 sm:$0xff]   ;;  %v7528_v61 = vld [vmem:[%s11411_s1 + $0x188] ss:$16 sps:$4 sm:$0xff]  }
  0x13   :  { %5047 = vmatpush1.bf16.msra.mxu0 %v7479_v18  ;;  %5580 = vmatpush1.bf16.msra.mxu1 %v7480_v19  ;;  %v7529_v62 = vld [vmem:[%s11411_s1 + $0x1a4] ss:$16 sps:$4 sm:$0xff]   ;;  %v7531_v63 = vld [vmem:[%s11411_s1 + $0x1ac] ss:$16 sps:$4 sm:$0xff]   ;;  %v7533_v0 = vld [vmem:[%s11411_s1 + $0x1a0] ss:$16 sps:$4 sm:$0xff]  }
  0x14   :  { %5048 = vmatprep.subr.bf16.mxu0 %v7481_v20  ;;  %5581 = vmatprep.subr.bf16.mxu1 %v7483_v21  ;;  %v867_v58 = vcombine.high %v859_v54, %v859_v54  ;;  %v7534_v1 = vld [vmem:[%s11411_s1 + $0x1a8] ss:$16 sps:$4 sm:$0xff]   ;;  %v7535_v2 = vld [vmem:[%s11411_s1 + $0x1c4] ss:$16 sps:$4 sm:$0xff]   ;;  %v7537_v3 = vld [vmem:[%s11411_s1 + $0x1cc] ss:$16 sps:$4 sm:$0xff]   ;;  %v8968_v13 = vrot.slane %v859_v54, %v8888_v49 }
  0x15   :  { %v7539_v4 = vld [vmem:[%s11411_s1 + $0x1c0] ss:$16 sps:$4 sm:$0xff]   ;;  %v7540_v5 = vld [vmem:[%s11411_s1 + $0x1c8] ss:$16 sps:$4 sm:$0xff]   ;;  %v7541_v6 = vld [vmem:[%s11411_s1 + $0x1e4] ss:$16 sps:$4 sm:$0xff]  }
  0x16   :  { %v889_v60 = vrot.slane %v867_v58, %v8888_v49  ;;  %v7543_v7 = vld [vmem:[%s11411_s1 + $0x1ec] ss:$16 sps:$4 sm:$0xff]   ;;  %v7545_v8 = vld [vmem:[%s11411_s1 + $0x1e0] ss:$16 sps:$4 sm:$0xff]   ;;  %v7546_v9 = vld [vmem:[%s11411_s1 + $0x1e8] ss:$16 sps:$4 sm:$0xff]  }
  0x17   :  { %5049 = vmatpush1.bf16.msra.mxu0 %v7485_v22  ;;  %5582 = vmatpush1.bf16.msra.mxu1 %v7486_v23  ;;  %v7549_v10 = vld [vmem:[%s11411_s1 + $0x204] ss:$16 sps:$4 sm:$0xff]   ;;  %v7552_v11 = vld [vmem:[%s11411_s1 + $0x20c] ss:$16 sps:$4 sm:$0xff]   ;;  %v7547_v12 = vld [vmem:[%s11411_s1 + $0x200] ss:$16 sps:$4 sm:$0xff]  }
  0x18   :  { %5050 = vmatprep.subr.bf16.mxu0 %v7487_v24  ;;  %5583 = vmatprep.subr.bf16.mxu1 %v7489_v25  ;;  %v7550_v14 = vld [vmem:[%s11411_s1 + $0x208] ss:$16 sps:$4 sm:$0xff]   ;;  %v7555_v15 = vld [vmem:[%s11411_s1 + $0x224] ss:$16 sps:$4 sm:$0xff]   ;;  %v7558_v16 = vld [vmem:[%s11411_s1 + $0x22c] ss:$16 sps:$4 sm:$0xff]   ;;  %v899_v17 = vcombine.high %v889_v60, %v889_v60 }
  0x19   :  { %5070 = vmatprep.mubr.bf16.mxu0 %v889_v60  ;;  %5603 = vmatprep.mubr.bf16.mxu1 %v889_v60  ;;  %v7553_v18 = vld [vmem:[%s11411_s1 + $0x220] ss:$16 sps:$4 sm:$0xff]   ;;  %v7556_v19 = vld [vmem:[%s11411_s1 + $0x228] ss:$16 sps:$4 sm:$0xff]   ;;  %v7561_v20 = vld [vmem:[%s11411_s1 + $0x244] ss:$16 sps:$4 sm:$0xff]  }
  0x1a   :  { %v7564_v21 = vld [vmem:[%s11411_s1 + $0x24c] ss:$16 sps:$4 sm:$0xff]   ;;  %v7559_v22 = vld [vmem:[%s11411_s1 + $0x240] ss:$16 sps:$4 sm:$0xff]   ;;  %v7562_v23 = vld [vmem:[%s11411_s1 + $0x248] ss:$16 sps:$4 sm:$0xff]  }
  0x1b   :  { %5051 = vmatpush1.bf16.msra.mxu0 %v7491_v26  ;;  %5584 = vmatpush1.bf16.msra.mxu1 %v7492_v27  ;;  %v7567_v24 = vld [vmem:[%s11411_s1 + $0x264] ss:$16 sps:$4 sm:$0xff]   ;;  %v7570_v25 = vld [vmem:[%s11411_s1 + $0x26c] ss:$16 sps:$4 sm:$0xff]   ;;  %v7565_v26 = vld [vmem:[%s11411_s1 + $0x260] ss:$16 sps:$4 sm:$0xff]  }
  0x1c   :  { %5052 = vmatprep.subr.bf16.mxu0 %v7493_v28  ;;  %5585 = vmatprep.subr.bf16.mxu1 %v7495_v29  ;;  %v7568_v27 = vld [vmem:[%s11411_s1 + $0x268] ss:$16 sps:$4 sm:$0xff]   ;;  %v7573_v28 = vld [vmem:[%s11411_s1 + $0x284] ss:$16 sps:$4 sm:$0xff]   ;;  %v7576_v29 = vld [vmem:[%s11411_s1 + $0x28c] ss:$16 sps:$4 sm:$0xff]  }
  0x1d   :  { %v7585_v36 = vld [vmem:[%s11411_s1 + $0x2c4] ss:$16 sps:$4 sm:$0xff]   ;;  %v7588_v37 = vld [vmem:[%s11411_s1 + $0x2cc] ss:$16 sps:$4 sm:$0xff]   ;;  %v7583_v38 = vld [vmem:[%s11411_s1 + $0x2c0] ss:$16 sps:$4 sm:$0xff]  }
  0x1e   :  { %v7589_v43 = vld [vmem:[%s11411_s1 + $0x2e0] ss:$16 sps:$4 sm:$0xff]   ;;  %v7604_v54 = vld [vmem:[%s11411_s1 + $0x328] ss:$16 sps:$4 sm:$0xff]   ;;  %v7618_v60 = vld [vmem:[%s11411_s1 + $0x36c] ss:$16 sps:$4 sm:$0xff]  }
  0x1f   :  { %5053 = vmatpush1.bf16.msra.mxu0 %v7497_v30  ;;  %5586 = vmatpush1.bf16.msra.mxu1 %v7498_v31  ;;  %v7571_v30 = vld [vmem:[%s11411_s1 + $0x280] ss:$16 sps:$4 sm:$0xff]   ;;  %v7574_v31 = vld [vmem:[%s11411_s1 + $0x288] ss:$16 sps:$4 sm:$0xff]  }
  0x20   :  { %5054 = vmatprep.subr.bf16.mxu0 %v7499_v32  ;;  %5587 = vmatprep.subr.bf16.mxu1 %v7501_v33  ;;  %v7579_v32 = vld [vmem:[%s11411_s1 + $0x2a4] ss:$16 sps:$4 sm:$0xff]   ;;  %v7582_v33 = vld [vmem:[%s11411_s1 + $0x2ac] ss:$16 sps:$4 sm:$0xff]   ;;  %v7610_v58 = vld [vmem:[%s11411_s1 + $0x348] ss:$16 sps:$4 sm:$0xff]  }
  0x23   :  { %5055 = vmatpush1.bf16.msra.mxu0 %v7503_v34  ;;  %5588 = vmatpush1.bf16.msra.mxu1 %v7504_v35  ;;  %v7577_v34 = vld [vmem:[%s11411_s1 + $0x2a0] ss:$16 sps:$4 sm:$0xff]   ;;  %v7580_v35 = vld [vmem:[%s11411_s1 + $0x2a8] ss:$16 sps:$4 sm:$0xff]  }
  0x24   :  { %5056 = vmatprep.subr.bf16.mxu0 %v7505_v39  ;;  %5589 = vmatprep.subr.bf16.mxu1 %v7507_v40  ;;  %v7586_v39 = vld [vmem:[%s11411_s1 + $0x2c8] ss:$16 sps:$4 sm:$0xff]   ;;  %v7591_v40 = vld [vmem:[%s11411_s1 + $0x2e4] ss:$16 sps:$4 sm:$0xff]  }
  0x27   :  { %5057 = vmatpush1.bf16.msra.mxu0 %v7509_v41  ;;  %5590 = vmatpush1.bf16.msra.mxu1 %v7510_v44  ;;  %v7594_v41 = vld [vmem:[%s11411_s1 + $0x2ec] ss:$16 sps:$4 sm:$0xff]   ;;  %v7592_v44 = vld [vmem:[%s11411_s1 + $0x2e8] ss:$16 sps:$4 sm:$0xff]  }
  0x28   :  { %5058 = vmatprep.subr.bf16.mxu0 %v7511_v45  ;;  %5591 = vmatprep.subr.bf16.mxu1 %v7513_v46  ;;  %v7597_v45 = vld [vmem:[%s11411_s1 + $0x304] ss:$16 sps:$4 sm:$0xff]   ;;  %v7600_v46 = vld [vmem:[%s11411_s1 + $0x30c] ss:$16 sps:$4 sm:$0xff]  }
  0x2b   :  { %5059 = vmatpush1.bf16.msra.mxu0 %v7515_v47  ;;  %5592 = vmatpush1.bf16.msra.mxu1 %v7516_v48  ;;  %v7595_v47 = vld [vmem:[%s11411_s1 + $0x300] ss:$16 sps:$4 sm:$0xff]   ;;  %v7598_v48 = vld [vmem:[%s11411_s1 + $0x308] ss:$16 sps:$4 sm:$0xff]  }
  0x2c   :  { %5060 = vmatprep.subr.bf16.mxu0 %v7517_v50  ;;  %5593 = vmatprep.subr.bf16.mxu1 %v7519_v51  ;;  %v7603_v50 = vld [vmem:[%s11411_s1 + $0x324] ss:$16 sps:$4 sm:$0xff]   ;;  %v7606_v51 = vld [vmem:[%s11411_s1 + $0x32c] ss:$16 sps:$4 sm:$0xff]  }
  0x2f   :  { %5061 = vmatpush1.bf16.msra.mxu0 %v7521_v53  ;;  %5594 = vmatpush1.bf16.msra.mxu1 %v7522_v55  ;;  %v7601_v53 = vld [vmem:[%s11411_s1 + $0x320] ss:$16 sps:$4 sm:$0xff]   ;;  %v7609_v55 = vld [vmem:[%s11411_s1 + $0x344] ss:$16 sps:$4 sm:$0xff]  }
  0x30   :  { %5062 = vmatprep.subr.bf16.mxu0 %v7523_v56  ;;  %5595 = vmatprep.subr.bf16.mxu1 %v7525_v57  ;;  %v7612_v56 = vld [vmem:[%s11411_s1 + $0x34c] ss:$16 sps:$4 sm:$0xff]   ;;  %v7607_v57 = vld [vmem:[%s11411_s1 + $0x340] ss:$16 sps:$4 sm:$0xff]  }
  0x33   :  { %5063 = vmatpush1.bf16.msra.mxu0 %v7527_v59  ;;  %5596 = vmatpush1.bf16.msra.mxu1 %v7528_v61  ;;  %v7615_v59 = vld [vmem:[%s11411_s1 + $0x364] ss:$16 sps:$4 sm:$0xff]   ;;  %v7613_v61 = vld [vmem:[%s11411_s1 + $0x360] ss:$16 sps:$4 sm:$0xff]  }
  0x34   :  { %5064 = vmatprep.subr.bf16.mxu0 %v7529_v62  ;;  %5597 = vmatprep.subr.bf16.mxu1 %v7531_v63  ;;  %v7616_v62 = vld [vmem:[%s11411_s1 + $0x368] ss:$16 sps:$4 sm:$0xff]   ;;  %v7621_v63 = vld [vmem:[%s11411_s1 + $0x384] ss:$16 sps:$4 sm:$0xff]  }
  0x37   :  { %5065 = vmatpush1.bf16.msra.mxu0 %v7533_v0  ;;  %5598 = vmatpush1.bf16.msra.mxu1 %v7534_v1  ;;  %v7624_v0 = vld [vmem:[%s11411_s1 + $0x38c] ss:$16 sps:$4 sm:$0xff]   ;;  %v7619_v1 = vld [vmem:[%s11411_s1 + $0x380] ss:$16 sps:$4 sm:$0xff]  }
  0x38   :  { %5066 = vmatprep.subr.bf16.mxu0 %v7535_v2  ;;  %5599 = vmatprep.subr.bf16.mxu1 %v7537_v3  ;;  %v7622_v2 = vld [vmem:[%s11411_s1 + $0x388] ss:$16 sps:$4 sm:$0xff]   ;;  %v7627_v3 = vld [vmem:[%s11411_s1 + $0x3a4] ss:$16 sps:$4 sm:$0xff]  }
  0x3b   :  { %5067 = vmatpush1.bf16.msra.mxu0 %v7539_v4  ;;  %5600 = vmatpush1.bf16.msra.mxu1 %v7540_v5  ;;  %v7630_v4 = vld [vmem:[%s11411_s1 + $0x3ac] ss:$16 sps:$4 sm:$0xff]   ;;  %v7625_v5 = vld [vmem:[%s11411_s1 + $0x3a0] ss:$16 sps:$4 sm:$0xff]  }
  0x3c   :  { %5068 = vmatprep.subr.bf16.mxu0 %v7541_v6  ;;  %5601 = vmatprep.subr.bf16.mxu1 %v7543_v7  ;;  %v7628_v6 = vld [vmem:[%s11411_s1 + $0x3a8] ss:$16 sps:$4 sm:$0xff]   ;;  %v7633_v7 = vld [vmem:[%s11411_s1 + $0x3c4] ss:$16 sps:$4 sm:$0xff]  }
  0x3f   :  { %5069 = vmatpush1.bf16.msra.mxu0 %v7545_v8  ;;  %5602 = vmatpush1.bf16.msra.mxu1 %v7546_v9  ;;  %v7636_v8 = vld [vmem:[%s11411_s1 + $0x3cc] ss:$16 sps:$4 sm:$0xff]   ;;  %v852_v9 = vcombine.high %v8899_v52, %v8899_v52 }
  0x40   :  { %5079 = vmatprep.subr.bf16.mxu0 %v7549_v10  ;;  %5612 = vmatprep.subr.bf16.mxu1 %v7552_v11  ;;  %v7631_v10 = vld [vmem:[%s11411_s1 + $0x3c0] ss:$16 sps:$4 sm:$0xff]   ;;  %v7634_v11 = vld [vmem:[%s11411_s1 + $0x3c8] ss:$16 sps:$4 sm:$0xff]   ;;  %v7642_v52 = vld [vmem:[%s11411_s1 + $0x3ec] ss:$16 sps:$4 sm:$0xff]  }
  0x42   :  { %5071 = vmatmul.mubr.bf16.vlgmr.msra.gmra.mrb[0].mxu0 %v8968_v13  ;;  %5604 = vmatmul.mubr.bf16.vlgmr.msra.gmra.mrb[0].mxu1 %v8968_v13 }
  0x43   :  { %5080 = vmatpush1.bf16.msra.mxu0 %v7547_v12  ;;  %5613 = vmatpush1.bf16.msra.mxu1 %v7550_v14  ;;  %v7639_v12 = vld [vmem:[%s11411_s1 + $0x3e4] ss:$16 sps:$4 sm:$0xff]   ;;  %v9152_v14 = vrot.slane %v852_v9, %v8888_v49  ;;  %v7718_v9 = vld [vmem:[%s11411_s1 + $0x588] ss:$16 sps:$4 sm:$0xff]  }
  0x44   :  { %5081 = vmatprep.subr.bf16.mxu0 %v7555_v15  ;;  %5614 = vmatprep.subr.bf16.mxu1 %v7558_v16  ;;  %v7637_v15 = vld [vmem:[%s11411_s1 + $0x3e0] ss:$16 sps:$4 sm:$0xff]   ;;  %v7640_v16 = vld [vmem:[%s11411_s1 + $0x3e8] ss:$16 sps:$4 sm:$0xff]  }
  0x45   :  { %5111 = vmatprep.mubr.bf16.mxu0 %v899_v17  ;;  %5644 = vmatprep.mubr.bf16.mxu1 %v899_v17  ;;  %v7645_v17 = vld [vmem:[%s11411_s1 + $0x404] ss:$16 sps:$4 sm:$0xff]  }
  0x47   :  { %5082 = vmatpush1.bf16.msra.mxu0 %v7553_v18  ;;  %5615 = vmatpush1.bf16.msra.mxu1 %v7556_v19  ;;  %v7648_v18 = vld [vmem:[%s11411_s1 + $0x40c] ss:$16 sps:$4 sm:$0xff]   ;;  %v868_v19 = vcombine.high %v9152_v14, %v9152_v14 }
  0x48   :  { %5083 = vmatprep.subr.bf16.mxu0 %v7561_v20  ;;  %5616 = vmatprep.subr.bf16.mxu1 %v7564_v21  ;;  %v7643_v20 = vld [vmem:[%s11411_s1 + $0x400] ss:$16 sps:$4 sm:$0xff]   ;;  %v897_v21 = vcombine.high %v8968_v13, %v8968_v13 }
  0x49   :  { %v7649_v13 = vld [vmem:[%s11411_s1 + $0x420] ss:$16 sps:$4 sm:$0xff]  }
  0x4b   :  { %5084 = vmatpush1.bf16.msra.mxu0 %v7559_v22  ;;  %5617 = vmatpush1.bf16.msra.mxu1 %v7562_v23  ;;  %v7646_v22 = vld [vmem:[%s11411_s1 + $0x408] ss:$16 sps:$4 sm:$0xff]   ;;  %v7651_v23 = vld [vmem:[%s11411_s1 + $0x424] ss:$16 sps:$4 sm:$0xff]  }
  0x4c   :  { %5085 = vmatprep.subr.bf16.mxu0 %v7567_v24  ;;  %5618 = vmatprep.subr.bf16.mxu1 %v7570_v25  ;;  %v7654_v24 = vld [vmem:[%s11411_s1 + $0x42c] ss:$16 sps:$4 sm:$0xff]   ;;  %v9183_v25 = vrot.slane %v868_v19, %v8888_v49  ;;  %v7735_v19 = vld [vmem:[%s11411_s1 + $0x5e4] ss:$16 sps:$4 sm:$0xff]  }
  0x4f   :  { %5086 = vmatpush1.bf16.msra.mxu0 %v7565_v26  ;;  %5619 = vmatpush1.bf16.msra.mxu1 %v7568_v27  ;;  %v7652_v26 = vld [vmem:[%s11411_s1 + $0x428] ss:$16 sps:$4 sm:$0xff]   ;;  %v7657_v27 = vld [vmem:[%s11411_s1 + $0x444] ss:$16 sps:$4 sm:$0xff]  }
  0x50   :  { %5087 = vmatprep.subr.bf16.mxu0 %v7573_v28  ;;  %5620 = vmatprep.subr.bf16.mxu1 %v7576_v29  ;;  %v7660_v28 = vld [vmem:[%s11411_s1 + $0x44c] ss:$16 sps:$4 sm:$0xff]   ;;  %v7655_v29 = vld [vmem:[%s11411_s1 + $0x440] ss:$16 sps:$4 sm:$0xff]  }
  0x53   :  { %5088 = vmatpush1.bf16.msra.mxu0 %v7571_v30  ;;  %5621 = vmatpush1.bf16.msra.mxu1 %v7574_v31  ;;  %v7658_v30 = vld [vmem:[%s11411_s1 + $0x448] ss:$16 sps:$4 sm:$0xff]   ;;  %v7663_v31 = vld [vmem:[%s11411_s1 + $0x464] ss:$16 sps:$4 sm:$0xff]  }
  0x54   :  { %5089 = vmatprep.subr.bf16.mxu0 %v7579_v32  ;;  %5622 = vmatprep.subr.bf16.mxu1 %v7582_v33  ;;  %v7666_v32 = vld [vmem:[%s11411_s1 + $0x46c] ss:$16 sps:$4 sm:$0xff]   ;;  %v7661_v33 = vld [vmem:[%s11411_s1 + $0x460] ss:$16 sps:$4 sm:$0xff]  }
  0x57   :  { %5090 = vmatpush1.bf16.msra.mxu0 %v7577_v34  ;;  %5623 = vmatpush1.bf16.msra.mxu1 %v7580_v35  ;;  %v7664_v34 = vld [vmem:[%s11411_s1 + $0x468] ss:$16 sps:$4 sm:$0xff]   ;;  %v7669_v35 = vld [vmem:[%s11411_s1 + $0x484] ss:$16 sps:$4 sm:$0xff]  }
  0x58   :  { %5091 = vmatprep.subr.bf16.mxu0 %v7585_v36  ;;  %5624 = vmatprep.subr.bf16.mxu1 %v7588_v37  ;;  %v7672_v36 = vld [vmem:[%s11411_s1 + $0x48c] ss:$16 sps:$4 sm:$0xff]   ;;  %v7667_v37 = vld [vmem:[%s11411_s1 + $0x480] ss:$16 sps:$4 sm:$0xff]  }
  0x5b   :  { %5092 = vmatpush1.bf16.msra.mxu0 %v7583_v38  ;;  %5625 = vmatpush1.bf16.msra.mxu1 %v7586_v39  ;;  %v7670_v38 = vld [vmem:[%s11411_s1 + $0x488] ss:$16 sps:$4 sm:$0xff]   ;;  %v7675_v39 = vld [vmem:[%s11411_s1 + $0x4a4] ss:$16 sps:$4 sm:$0xff]  }
  0x5c   :  { %5093 = vmatprep.subr.bf16.mxu0 %v7591_v40  ;;  %5626 = vmatprep.subr.bf16.mxu1 %v7594_v41  ;;  %v7678_v40 = vld [vmem:[%s11411_s1 + $0x4ac] ss:$16 sps:$4 sm:$0xff]   ;;  %v7673_v41 = vld [vmem:[%s11411_s1 + $0x4a0] ss:$16 sps:$4 sm:$0xff]  }
  0x5f   :  { %5094 = vmatpush1.bf16.msra.mxu0 %v7589_v43  ;;  %5627 = vmatpush1.bf16.msra.mxu1 %v7592_v44  ;;  %v7676_v43 = vld [vmem:[%s11411_s1 + $0x4a8] ss:$16 sps:$4 sm:$0xff]   ;;  %v7681_v44 = vld [vmem:[%s11411_s1 + $0x4c4] ss:$16 sps:$4 sm:$0xff]  }
  0x60   :  { %5095 = vmatprep.subr.bf16.mxu0 %v7597_v45  ;;  %5628 = vmatprep.subr.bf16.mxu1 %v7600_v46  ;;  %v7684_v45 = vld [vmem:[%s11411_s1 + $0x4cc] ss:$16 sps:$4 sm:$0xff]   ;;  %v7679_v46 = vld [vmem:[%s11411_s1 + $0x4c0] ss:$16 sps:$4 sm:$0xff]  }
  0x63   :  { %5096 = vmatpush1.bf16.msra.mxu0 %v7595_v47  ;;  %5629 = vmatpush1.bf16.msra.mxu1 %v7598_v48  ;;  %v7682_v47 = vld [vmem:[%s11411_s1 + $0x4c8] ss:$16 sps:$4 sm:$0xff]   ;;  %v7687_v48 = vld [vmem:[%s11411_s1 + $0x4e4] ss:$16 sps:$4 sm:$0xff]  }
  0x64   :  { %5097 = vmatprep.subr.bf16.mxu0 %v7603_v50  ;;  %5630 = vmatprep.subr.bf16.mxu1 %v7606_v51  ;;  %v7690_v50 = vld [vmem:[%s11411_s1 + $0x4ec] ss:$16 sps:$4 sm:$0xff]   ;;  %v7685_v51 = vld [vmem:[%s11411_s1 + $0x4e0] ss:$16 sps:$4 sm:$0xff]  }
  0x67   :  { %5098 = vmatpush1.bf16.msra.mxu0 %v7601_v53  ;;  %5631 = vmatpush1.bf16.msra.mxu1 %v7604_v54  ;;  %v7688_v53 = vld [vmem:[%s11411_s1 + $0x4e8] ss:$16 sps:$4 sm:$0xff]   ;;  %v7693_v54 = vld [vmem:[%s11411_s1 + $0x504] ss:$16 sps:$4 sm:$0xff]  }
  0x68   :  { %5099 = vmatprep.subr.bf16.mxu0 %v7609_v55  ;;  %5632 = vmatprep.subr.bf16.mxu1 %v7612_v56  ;;  %v7696_v55 = vld [vmem:[%s11411_s1 + $0x50c] ss:$16 sps:$4 sm:$0xff]   ;;  %v7691_v56 = vld [vmem:[%s11411_s1 + $0x500] ss:$16 sps:$4 sm:$0xff]  }
  0x6b   :  { %5100 = vmatpush1.bf16.msra.mxu0 %v7607_v57  ;;  %5633 = vmatpush1.bf16.msra.mxu1 %v7610_v58  ;;  %v7694_v57 = vld [vmem:[%s11411_s1 + $0x508] ss:$16 sps:$4 sm:$0xff]   ;;  %v7699_v58 = vld [vmem:[%s11411_s1 + $0x524] ss:$16 sps:$4 sm:$0xff]  }
  0x6c   :  { %5101 = vmatprep.subr.bf16.mxu0 %v7615_v59  ;;  %5634 = vmatprep.subr.bf16.mxu1 %v7618_v60  ;;  %v7702_v59 = vld [vmem:[%s11411_s1 + $0x52c] ss:$16 sps:$4 sm:$0xff]   ;;  %v7697_v60 = vld [vmem:[%s11411_s1 + $0x520] ss:$16 sps:$4 sm:$0xff]  }
  0x6f   :  { %5102 = vmatpush1.bf16.msra.mxu0 %v7613_v61  ;;  %5635 = vmatpush1.bf16.msra.mxu1 %v7616_v62  ;;  %v7700_v61 = vld [vmem:[%s11411_s1 + $0x528] ss:$16 sps:$4 sm:$0xff]   ;;  %v7705_v62 = vld [vmem:[%s11411_s1 + $0x544] ss:$16 sps:$4 sm:$0xff]  }
  0x70   :  { %5103 = vmatprep.subr.bf16.mxu0 %v7621_v63  ;;  %5636 = vmatprep.subr.bf16.mxu1 %v7624_v0  ;;  %v7708_v63 = vld [vmem:[%s11411_s1 + $0x54c] ss:$16 sps:$4 sm:$0xff]   ;;  %v7703_v0 = vld [vmem:[%s11411_s1 + $0x540] ss:$16 sps:$4 sm:$0xff]  }
  0x73   :  { %5104 = vmatpush1.bf16.msra.mxu0 %v7619_v1  ;;  %5637 = vmatpush1.bf16.msra.mxu1 %v7622_v2  ;;  %v7706_v1 = vld [vmem:[%s11411_s1 + $0x548] ss:$16 sps:$4 sm:$0xff]   ;;  %v7711_v2 = vld [vmem:[%s11411_s1 + $0x564] ss:$16 sps:$4 sm:$0xff]  }
  0x74   :  { %5105 = vmatprep.subr.bf16.mxu0 %v7627_v3  ;;  %5638 = vmatprep.subr.bf16.mxu1 %v7630_v4  ;;  %v7714_v3 = vld [vmem:[%s11411_s1 + $0x56c] ss:$16 sps:$4 sm:$0xff]   ;;  %v7709_v4 = vld [vmem:[%s11411_s1 + $0x560] ss:$16 sps:$4 sm:$0xff]  }
  0x77   :  { %5106 = vmatpush1.bf16.msra.mxu0 %v7625_v5  ;;  %5639 = vmatpush1.bf16.msra.mxu1 %v7628_v6  ;;  %v7712_v5 = vld [vmem:[%s11411_s1 + $0x568] ss:$16 sps:$4 sm:$0xff]   ;;  %v7717_v6 = vld [vmem:[%s11411_s1 + $0x584] ss:$16 sps:$4 sm:$0xff]  }
  0x78   :  { %5107 = vmatprep.subr.bf16.mxu0 %v7633_v7  ;;  %5640 = vmatprep.subr.bf16.mxu1 %v7636_v8  ;;  %v7720_v7 = vld [vmem:[%s11411_s1 + $0x58c] ss:$16 sps:$4 sm:$0xff]   ;;  %v7715_v8 = vld [vmem:[%s11411_s1 + $0x580] ss:$16 sps:$4 sm:$0xff]  }
  0x7b   :  { %5108 = vmatpush1.bf16.msra.mxu0 %v7631_v10  ;;  %5641 = vmatpush1.bf16.msra.mxu1 %v7634_v11  ;;  %v7723_v10 = vld [vmem:[%s11411_s1 + $0x5a4] ss:$16 sps:$4 sm:$0xff]   ;;  %v7726_v11 = vld [vmem:[%s11411_s1 + $0x5ac] ss:$16 sps:$4 sm:$0xff]  }
  0x7c   :  { %5109 = vmatprep.subr.bf16.mxu0 %v7639_v12  ;;  %5642 = vmatprep.subr.bf16.mxu1 %v7642_v52  ;;  %v7721_v12 = vld [vmem:[%s11411_s1 + $0x5a0] ss:$16 sps:$4 sm:$0xff]   ;;  %v7724_v52 = vld [vmem:[%s11411_s1 + $0x5a8] ss:$16 sps:$4 sm:$0xff]  }
  0x7f   :  { %5110 = vmatpush1.bf16.msra.mxu0 %v7637_v15  ;;  %5643 = vmatpush1.bf16.msra.mxu1 %v7640_v16  ;;  %v7729_v15 = vld [vmem:[%s11411_s1 + $0x5c4] ss:$16 sps:$4 sm:$0xff]   ;;  %v7732_v16 = vld [vmem:[%s11411_s1 + $0x5cc] ss:$16 sps:$4 sm:$0xff]  }
  0x80   :  { %5120 = vmatprep.subr.bf16.mxu0 %v7645_v17  ;;  %5653 = vmatprep.subr.bf16.mxu1 %v7648_v18  ;;  %v7727_v17 = vld [vmem:[%s11411_s1 + $0x5c0] ss:$16 sps:$4 sm:$0xff]   ;;  %v7730_v18 = vld [vmem:[%s11411_s1 + $0x5c8] ss:$16 sps:$4 sm:$0xff]  }
  0x82   :  { %5112 = vmatmul.mubr.bf16.vlgmr.msra.gmra.mrb[0].mxu0 %v897_v21  ;;  %5645 = vmatmul.mubr.bf16.vlgmr.msra.gmra.mrb[0].mxu1 %v897_v21  ;;  %v7733_v21 = vld [vmem:[%s11411_s1 + $0x5e0] ss:$16 sps:$4 sm:$0xff]  }
  0x83   :  { %5121 = vmatpush1.bf16.msra.mxu0 %v7643_v20  ;;  %5654 = vmatpush1.bf16.msra.mxu1 %v7646_v22  ;;  %v7738_v20 = vld [vmem:[%s11411_s1 + $0x5ec] ss:$16 sps:$4 sm:$0xff]   ;;  %v7736_v22 = vld [vmem:[%s11411_s1 + $0x5e8] ss:$16 sps:$4 sm:$0xff]  }
  0x84   :  { %5122 = vmatprep.subr.bf16.mxu0 %v7651_v23  ;;  %5655 = vmatprep.subr.bf16.mxu1 %v7654_v24  ;;  %v7742_v23 = vld [vmem:[%s11411_s1 + $0x604] ss:$16 sps:$4 sm:$0xff]   ;;  %v7745_v24 = vld [vmem:[%s11411_s1 + $0x60c] ss:$16 sps:$4 sm:$0xff]  }
  0x85   :  { %5152 = vmatprep.mubr.bf16.mxu0 %v9183_v25  ;;  %5685 = vmatprep.mubr.bf16.mxu1 %v9183_v25 }
  0x87   :  { %5123 = vmatpush1.bf16.msra.mxu0 %v7649_v13  ;;  %5656 = vmatpush1.bf16.msra.mxu1 %v7652_v26  ;;  %v7740_v13 = vld [vmem:[%s11411_s1 + $0x600] ss:$16 sps:$4 sm:$0xff]   ;;  %v9372_v26 = vrot.slane %v9152_v14, %v8888_v49  ;;  %v900_v14 = vcombine.high %v9183_v25, %v9183_v25  ;;  %v7754_v25 = vld [vmem:[%s11411_s1 + $0x644] ss:$16 sps:$4 sm:$0xff]  }
  0x88   :  { %5124 = vmatprep.subr.bf16.mxu0 %v7657_v27  ;;  %5657 = vmatprep.subr.bf16.mxu1 %v7660_v28  ;;  %v7743_v27 = vld [vmem:[%s11411_s1 + $0x608] ss:$16 sps:$4 sm:$0xff]   ;;  %v7748_v28 = vld [vmem:[%s11411_s1 + $0x624] ss:$16 sps:$4 sm:$0xff]  }
  0x8b   :  { %5125 = vmatpush1.bf16.msra.mxu0 %v7655_v29  ;;  %5658 = vmatpush1.bf16.msra.mxu1 %v7658_v30  ;;  %v7751_v29 = vld [vmem:[%s11411_s1 + $0x62c] ss:$16 sps:$4 sm:$0xff]   ;;  %v7746_v30 = vld [vmem:[%s11411_s1 + $0x620] ss:$16 sps:$4 sm:$0xff]  }
  0x8c   :  { %5126 = vmatprep.subr.bf16.mxu0 %v7663_v31  ;;  %5659 = vmatprep.subr.bf16.mxu1 %v7666_v32  ;;  %v7749_v31 = vld [vmem:[%s11411_s1 + $0x628] ss:$16 sps:$4 sm:$0xff]   ;;  %v7757_v32 = vld [vmem:[%s11411_s1 + $0x64c] ss:$16 sps:$4 sm:$0xff]  }
  0x8f   :  { %5127 = vmatpush1.bf16.msra.mxu0 %v7661_v33  ;;  %5660 = vmatpush1.bf16.msra.mxu1 %v7664_v34  ;;  %v7752_v33 = vld [vmem:[%s11411_s1 + $0x640] ss:$16 sps:$4 sm:$0xff]   ;;  %v7755_v34 = vld [vmem:[%s11411_s1 + $0x648] ss:$16 sps:$4 sm:$0xff]  }
  0x90   :  { %5128 = vmatprep.subr.bf16.mxu0 %v7669_v35  ;;  %5661 = vmatprep.subr.bf16.mxu1 %v7672_v36  ;;  %v7760_v35 = vld [vmem:[%s11411_s1 + $0x664] ss:$16 sps:$4 sm:$0xff]   ;;  %v7763_v36 = vld [vmem:[%s11411_s1 + $0x66c] ss:$16 sps:$4 sm:$0xff]  }
  0x93   :  { %5129 = vmatpush1.bf16.msra.mxu0 %v7667_v37  ;;  %5662 = vmatpush1.bf16.msra.mxu1 %v7670_v38  ;;  %v7758_v37 = vld [vmem:[%s11411_s1 + $0x660] ss:$16 sps:$4 sm:$0xff]   ;;  %v7761_v38 = vld [vmem:[%s11411_s1 + $0x668] ss:$16 sps:$4 sm:$0xff]  }
  0x94   :  { %5130 = vmatprep.subr.bf16.mxu0 %v7675_v39  ;;  %5663 = vmatprep.subr.bf16.mxu1 %v7678_v40  ;;  %v7766_v39 = vld [vmem:[%s11411_s1 + $0x684] ss:$16 sps:$4 sm:$0xff]   ;;  %v7769_v40 = vld [vmem:[%s11411_s1 + $0x68c] ss:$16 sps:$4 sm:$0xff]  }
  0x97   :  { %5131 = vmatpush1.bf16.msra.mxu0 %v7673_v41  ;;  %5664 = vmatpush1.bf16.msra.mxu1 %v7676_v43  ;;  %v7764_v41 = vld [vmem:[%s11411_s1 + $0x680] ss:$16 sps:$4 sm:$0xff]   ;;  %v7767_v43 = vld [vmem:[%s11411_s1 + $0x688] ss:$16 sps:$4 sm:$0xff]  }
  0x98   :  { %5132 = vmatprep.subr.bf16.mxu0 %v7681_v44  ;;  %5665 = vmatprep.subr.bf16.mxu1 %v7684_v45  ;;  %v7772_v44 = vld [vmem:[%s11411_s1 + $0x6a4] ss:$16 sps:$4 sm:$0xff]   ;;  %v7775_v45 = vld [vmem:[%s11411_s1 + $0x6ac] ss:$16 sps:$4 sm:$0xff]  }
  0x9b   :  { %5133 = vmatpush1.bf16.msra.mxu0 %v7679_v46  ;;  %5666 = vmatpush1.bf16.msra.mxu1 %v7682_v47  ;;  %v7770_v46 = vld [vmem:[%s11411_s1 + $0x6a0] ss:$16 sps:$4 sm:$0xff]   ;;  %v7773_v47 = vld [vmem:[%s11411_s1 + $0x6a8] ss:$16 sps:$4 sm:$0xff]  }
  0x9c   :  { %5134 = vmatprep.subr.bf16.mxu0 %v7687_v48  ;;  %5667 = vmatprep.subr.bf16.mxu1 %v7690_v50  ;;  %v7778_v48 = vld [vmem:[%s11411_s1 + $0x6c4] ss:$16 sps:$4 sm:$0xff]   ;;  %v7781_v50 = vld [vmem:[%s11411_s1 + $0x6cc] ss:$16 sps:$4 sm:$0xff]  }
  0x9f   :  { %5135 = vmatpush1.bf16.msra.mxu0 %v7685_v51  ;;  %5668 = vmatpush1.bf16.msra.mxu1 %v7688_v53  ;;  %v7776_v51 = vld [vmem:[%s11411_s1 + $0x6c0] ss:$16 sps:$4 sm:$0xff]   ;;  %v7779_v53 = vld [vmem:[%s11411_s1 + $0x6c8] ss:$16 sps:$4 sm:$0xff]  }
  0xa0   :  { %5136 = vmatprep.subr.bf16.mxu0 %v7693_v54  ;;  %5669 = vmatprep.subr.bf16.mxu1 %v7696_v55  ;;  %v7784_v54 = vld [vmem:[%s11411_s1 + $0x6e4] ss:$16 sps:$4 sm:$0xff]   ;;  %v7787_v55 = vld [vmem:[%s11411_s1 + $0x6ec] ss:$16 sps:$4 sm:$0xff]  }
  0xa3   :  { %5137 = vmatpush1.bf16.msra.mxu0 %v7691_v56  ;;  %5670 = vmatpush1.bf16.msra.mxu1 %v7694_v57  ;;  %v7782_v56 = vld [vmem:[%s11411_s1 + $0x6e0] ss:$16 sps:$4 sm:$0xff]   ;;  %v7785_v57 = vld [vmem:[%s11411_s1 + $0x6e8] ss:$16 sps:$4 sm:$0xff]  }
  0xa4   :  { %5138 = vmatprep.subr.bf16.mxu0 %v7699_v58  ;;  %5671 = vmatprep.subr.bf16.mxu1 %v7702_v59  ;;  %v7790_v58 = vld [vmem:[%s11411_s1 + $0x704] ss:$16 sps:$4 sm:$0xff]   ;;  %v7793_v59 = vld [vmem:[%s11411_s1 + $0x70c] ss:$16 sps:$4 sm:$0xff]  }
  0xa7   :  { %5139 = vmatpush1.bf16.msra.mxu0 %v7697_v60  ;;  %5672 = vmatpush1.bf16.msra.mxu1 %v7700_v61  ;;  %v7788_v60 = vld [vmem:[%s11411_s1 + $0x700] ss:$16 sps:$4 sm:$0xff]   ;;  %v7791_v61 = vld [vmem:[%s11411_s1 + $0x708] ss:$16 sps:$4 sm:$0xff]  }
  0xa8   :  { %5140 = vmatprep.subr.bf16.mxu0 %v7705_v62  ;;  %5673 = vmatprep.subr.bf16.mxu1 %v7708_v63  ;;  %v7796_v62 = vld [vmem:[%s11411_s1 + $0x724] ss:$16 sps:$4 sm:$0xff]   ;;  %v7799_v63 = vld [vmem:[%s11411_s1 + $0x72c] ss:$16 sps:$4 sm:$0xff]  }
  0xab   :  { %5141 = vmatpush1.bf16.msra.mxu0 %v7703_v0  ;;  %5674 = vmatpush1.bf16.msra.mxu1 %v7706_v1  ;;  %v7794_v0 = vld [vmem:[%s11411_s1 + $0x720] ss:$16 sps:$4 sm:$0xff]   ;;  %v7797_v1 = vld [vmem:[%s11411_s1 + $0x728] ss:$16 sps:$4 sm:$0xff]  }
  0xac   :  { %5142 = vmatprep.subr.bf16.mxu0 %v7711_v2  ;;  %5675 = vmatprep.subr.bf16.mxu1 %v7714_v3  ;;  %v7802_v2 = vld [vmem:[%s11411_s1 + $0x744] ss:$16 sps:$4 sm:$0xff]   ;;  %v7805_v3 = vld [vmem:[%s11411_s1 + $0x74c] ss:$16 sps:$4 sm:$0xff]  }
  0xaf   :  { %5143 = vmatpush1.bf16.msra.mxu0 %v7709_v4  ;;  %5676 = vmatpush1.bf16.msra.mxu1 %v7712_v5  ;;  %v7800_v4 = vld [vmem:[%s11411_s1 + $0x740] ss:$16 sps:$4 sm:$0xff]   ;;  %v7803_v5 = vld [vmem:[%s11411_s1 + $0x748] ss:$16 sps:$4 sm:$0xff]  }
  0xb0   :  { %5144 = vmatprep.subr.bf16.mxu0 %v7717_v6  ;;  %5677 = vmatprep.subr.bf16.mxu1 %v7720_v7  ;;  %v7808_v6 = vld [vmem:[%s11411_s1 + $0x764] ss:$16 sps:$4 sm:$0xff]   ;;  %v7811_v7 = vld [vmem:[%s11411_s1 + $0x76c] ss:$16 sps:$4 sm:$0xff]  }
  0xb3   :  { %5145 = vmatpush1.bf16.msra.mxu0 %v7715_v8  ;;  %5678 = vmatpush1.bf16.msra.mxu1 %v7718_v9  ;;  %v7806_v8 = vld [vmem:[%s11411_s1 + $0x760] ss:$16 sps:$4 sm:$0xff]   ;;  %v7809_v9 = vld [vmem:[%s11411_s1 + $0x768] ss:$16 sps:$4 sm:$0xff]  }
  0xb4   :  { %5146 = vmatprep.subr.bf16.mxu0 %v7723_v10  ;;  %5679 = vmatprep.subr.bf16.mxu1 %v7726_v11  ;;  %v7814_v10 = vld [vmem:[%s11411_s1 + $0x784] ss:$16 sps:$4 sm:$0xff]   ;;  %v7817_v11 = vld [vmem:[%s11411_s1 + $0x78c] ss:$16 sps:$4 sm:$0xff]  }
  0xb7   :  { %5147 = vmatpush1.bf16.msra.mxu0 %v7721_v12  ;;  %5680 = vmatpush1.bf16.msra.mxu1 %v7724_v52  ;;  %v7812_v12 = vld [vmem:[%s11411_s1 + $0x780] ss:$16 sps:$4 sm:$0xff]   ;;  %v7815_v52 = vld [vmem:[%s11411_s1 + $0x788] ss:$16 sps:$4 sm:$0xff]  }
  0xb8   :  { %5148 = vmatprep.subr.bf16.mxu0 %v7729_v15  ;;  %5681 = vmatprep.subr.bf16.mxu1 %v7732_v16  ;;  %v7820_v15 = vld [vmem:[%s11411_s1 + $0x7a4] ss:$16 sps:$4 sm:$0xff]   ;;  %v7823_v16 = vld [vmem:[%s11411_s1 + $0x7ac] ss:$16 sps:$4 sm:$0xff]  }
  0xbb   :  { %5149 = vmatpush1.bf16.msra.mxu0 %v7727_v17  ;;  %5682 = vmatpush1.bf16.msra.mxu1 %v7730_v18  ;;  %v7818_v17 = vld [vmem:[%s11411_s1 + $0x7a0] ss:$16 sps:$4 sm:$0xff]   ;;  %v7821_v18 = vld [vmem:[%s11411_s1 + $0x7a8] ss:$16 sps:$4 sm:$0xff]  }
  0xbc   :  { %5150 = vmatprep.subr.bf16.mxu0 %v7735_v19  ;;  %5683 = vmatprep.subr.bf16.mxu1 %v7738_v20  ;;  %v7826_v19 = vld [vmem:[%s11411_s1 + $0x7c4] ss:$16 sps:$4 sm:$0xff]   ;;  %v7829_v20 = vld [vmem:[%s11411_s1 + $0x7cc] ss:$16 sps:$4 sm:$0xff]  }
  0xbf   :  { %5151 = vmatpush1.bf16.msra.mxu0 %v7733_v21  ;;  %5684 = vmatpush1.bf16.msra.mxu1 %v7736_v22  ;;  %v9546_v21 = vld.sshfl [vmem:[%s11410_s0 + $0x8] sm:$0xff pattern:$0x75316420]  ;;  %v7824_v22 = vld [vmem:[%s11411_s1 + $0x7c0] ss:$16 sps:$4 sm:$0xff]  }
  0xc0   :  { %5161 = vmatprep.subr.bf16.mxu0 %v7742_v23  ;;  %5694 = vmatprep.subr.bf16.mxu1 %v7745_v24  ;;  %v7827_v23 = vld [vmem:[%s11411_s1 + $0x7c8] ss:$16 sps:$4 sm:$0xff]   ;;  %v7832_v24 = vld [vmem:[%s11411_s1 + $0x7e4] ss:$16 sps:$4 sm:$0xff]  }
  0xc2   :  { %5153 = vmatmul.mubr.bf16.vlgmr.msra.gmra.mrb[0].mxu0 %v9372_v26  ;;  %5686 = vmatmul.mubr.bf16.vlgmr.msra.gmra.mrb[0].mxu1 %v9372_v26 }
  0xc3   :  { %5162 = vmatpush1.bf16.msra.mxu0 %v7740_v13  ;;  %5695 = vmatpush1.bf16.msra.mxu1 %v7743_v27  ;;  %v7835_v13 = vld [vmem:[%s11411_s1 + $0x7ec] ss:$16 sps:$4 sm:$0xff]   ;;  %v7830_v27 = vld [vmem:[%s11411_s1 + $0x7e0] ss:$16 sps:$4 sm:$0xff]  }
  0xc4   :  { %5163 = vmatprep.subr.bf16.mxu0 %v7748_v28  ;;  %5696 = vmatprep.subr.bf16.mxu1 %v7751_v29  ;;  %v7833_v28 = vld [vmem:[%s11411_s1 + $0x7e8] ss:$16 sps:$4 sm:$0xff]   ;;  %v7838_v29 = vld [vmem:[%s11411_s1 + $0x804] ss:$16 sps:$4 sm:$0xff]  }
  0xc5   :  { %5193 = vmatprep.mubr.bf16.mxu0 %v900_v14  ;;  %5726 = vmatprep.mubr.bf16.mxu1 %v900_v14  ;;  %v7841_v14 = vld [vmem:[%s11411_s1 + $0x80c] ss:$16 sps:$4 sm:$0xff]  }
  0xc7   :  { %5164 = vmatpush1.bf16.msra.mxu0 %v7746_v30  ;;  %5697 = vmatpush1.bf16.msra.mxu1 %v7749_v31  ;;  %v916_v30 = vcombine.high %v9546_v21, %v9546_v21  ;;  %v898_v31 = vcombine.high %v9372_v26, %v9372_v26  ;;  %v7847_v26 = vld [vmem:[%s11411_s1 + $0x82c] ss:$16 sps:$4 sm:$0xff]  }
  0xc8   :  { %5165 = vmatprep.subr.bf16.mxu0 %v7754_v25  ;;  %5698 = vmatprep.subr.bf16.mxu1 %v7757_v32  ;;  %v7836_v25 = vld [vmem:[%s11411_s1 + $0x800] ss:$16 sps:$4 sm:$0xff]   ;;  %v7839_v32 = vld [vmem:[%s11411_s1 + $0x808] ss:$16 sps:$4 sm:$0xff]  }
  0xcb   :  { %5166 = vmatpush1.bf16.msra.mxu0 %v7752_v33  ;;  %5699 = vmatpush1.bf16.msra.mxu1 %v7755_v34  ;;  %v7844_v33 = vld [vmem:[%s11411_s1 + $0x824] ss:$16 sps:$4 sm:$0xff]   ;;  %v9589_v34 = vrot.slane %v916_v30, %v8888_v49 }
  0xcc   :  { %5167 = vmatprep.subr.bf16.mxu0 %v7760_v35  ;;  %5700 = vmatprep.subr.bf16.mxu1 %v7763_v36  ;;  %v7842_v35 = vld [vmem:[%s11411_s1 + $0x820] ss:$16 sps:$4 sm:$0xff]   ;;  %v7845_v36 = vld [vmem:[%s11411_s1 + $0x828] ss:$16 sps:$4 sm:$0xff]   ;;  %v7928_v30 = vld [vmem:[%s11411_s1 + $0x9e4] ss:$16 sps:$4 sm:$0xff]  }
  0xcf   :  { %5168 = vmatpush1.bf16.msra.mxu0 %v7758_v37  ;;  %5701 = vmatpush1.bf16.msra.mxu1 %v7761_v38  ;;  %v7850_v37 = vld [vmem:[%s11411_s1 + $0x844] ss:$16 sps:$4 sm:$0xff]   ;;  %v7853_v38 = vld [vmem:[%s11411_s1 + $0x84c] ss:$16 sps:$4 sm:$0xff]  }
  0xd0   :  { %5169 = vmatprep.subr.bf16.mxu0 %v7766_v39  ;;  %5702 = vmatprep.subr.bf16.mxu1 %v7769_v40  ;;  %v7848_v39 = vld [vmem:[%s11411_s1 + $0x840] ss:$16 sps:$4 sm:$0xff]   ;;  %v7851_v40 = vld [vmem:[%s11411_s1 + $0x848] ss:$16 sps:$4 sm:$0xff]  }
  0xd3   :  { %5170 = vmatpush1.bf16.msra.mxu0 %v7764_v41  ;;  %5703 = vmatpush1.bf16.msra.mxu1 %v7767_v43  ;;  %v7856_v41 = vld [vmem:[%s11411_s1 + $0x864] ss:$16 sps:$4 sm:$0xff]   ;;  %v7859_v43 = vld [vmem:[%s11411_s1 + $0x86c] ss:$16 sps:$4 sm:$0xff]  }
  0xd4   :  { %5171 = vmatprep.subr.bf16.mxu0 %v7772_v44  ;;  %5704 = vmatprep.subr.bf16.mxu1 %v7775_v45  ;;  %v7854_v44 = vld [vmem:[%s11411_s1 + $0x860] ss:$16 sps:$4 sm:$0xff]   ;;  %v7857_v45 = vld [vmem:[%s11411_s1 + $0x868] ss:$16 sps:$4 sm:$0xff]  }
  0xd7   :  { %5172 = vmatpush1.bf16.msra.mxu0 %v7770_v46  ;;  %5705 = vmatpush1.bf16.msra.mxu1 %v7773_v47  ;;  %v7862_v46 = vld [vmem:[%s11411_s1 + $0x884] ss:$16 sps:$4 sm:$0xff]   ;;  %v7865_v47 = vld [vmem:[%s11411_s1 + $0x88c] ss:$16 sps:$4 sm:$0xff]  }
  0xd8   :  { %5173 = vmatprep.subr.bf16.mxu0 %v7778_v48  ;;  %5706 = vmatprep.subr.bf16.mxu1 %v7781_v50  ;;  %v7860_v48 = vld [vmem:[%s11411_s1 + $0x880] ss:$16 sps:$4 sm:$0xff]   ;;  %v7863_v50 = vld [vmem:[%s11411_s1 + $0x888] ss:$16 sps:$4 sm:$0xff]  }
  0xdb   :  { %5174 = vmatpush1.bf16.msra.mxu0 %v7776_v51  ;;  %5707 = vmatpush1.bf16.msra.mxu1 %v7779_v53  ;;  %v7868_v51 = vld [vmem:[%s11411_s1 + $0x8a4] ss:$16 sps:$4 sm:$0xff]   ;;  %v7871_v53 = vld [vmem:[%s11411_s1 + $0x8ac] ss:$16 sps:$4 sm:$0xff]  }
  0xdc   :  { %5175 = vmatprep.subr.bf16.mxu0 %v7784_v54  ;;  %5708 = vmatprep.subr.bf16.mxu1 %v7787_v55  ;;  %v7866_v54 = vld [vmem:[%s11411_s1 + $0x8a0] ss:$16 sps:$4 sm:$0xff]   ;;  %v7869_v55 = vld [vmem:[%s11411_s1 + $0x8a8] ss:$16 sps:$4 sm:$0xff]  }
  0xdf   :  { %5176 = vmatpush1.bf16.msra.mxu0 %v7782_v56  ;;  %5709 = vmatpush1.bf16.msra.mxu1 %v7785_v57  ;;  %v7874_v56 = vld [vmem:[%s11411_s1 + $0x8c4] ss:$16 sps:$4 sm:$0xff]   ;;  %v7877_v57 = vld [vmem:[%s11411_s1 + $0x8cc] ss:$16 sps:$4 sm:$0xff]  }
  0xe0   :  { %5177 = vmatprep.subr.bf16.mxu0 %v7790_v58  ;;  %5710 = vmatprep.subr.bf16.mxu1 %v7793_v59  ;;  %v7872_v58 = vld [vmem:[%s11411_s1 + $0x8c0] ss:$16 sps:$4 sm:$0xff]   ;;  %v7875_v59 = vld [vmem:[%s11411_s1 + $0x8c8] ss:$16 sps:$4 sm:$0xff]  }
  0xe3   :  { %5178 = vmatpush1.bf16.msra.mxu0 %v7788_v60  ;;  %5711 = vmatpush1.bf16.msra.mxu1 %v7791_v61  ;;  %v7880_v60 = vld [vmem:[%s11411_s1 + $0x8e4] ss:$16 sps:$4 sm:$0xff]   ;;  %v7883_v61 = vld [vmem:[%s11411_s1 + $0x8ec] ss:$16 sps:$4 sm:$0xff]  }
  0xe4   :  { %5179 = vmatprep.subr.bf16.mxu0 %v7796_v62  ;;  %5712 = vmatprep.subr.bf16.mxu1 %v7799_v63  ;;  %v7878_v62 = vld [vmem:[%s11411_s1 + $0x8e0] ss:$16 sps:$4 sm:$0xff]   ;;  %v7881_v63 = vld [vmem:[%s11411_s1 + $0x8e8] ss:$16 sps:$4 sm:$0xff]  }
  0xe7   :  { %5180 = vmatpush1.bf16.msra.mxu0 %v7794_v0  ;;  %5713 = vmatpush1.bf16.msra.mxu1 %v7797_v1  ;;  %v7886_v0 = vld [vmem:[%s11411_s1 + $0x904] ss:$16 sps:$4 sm:$0xff]   ;;  %v7889_v1 = vld [vmem:[%s11411_s1 + $0x90c] ss:$16 sps:$4 sm:$0xff]  }
  0xe8   :  { %5181 = vmatprep.subr.bf16.mxu0 %v7802_v2  ;;  %5714 = vmatprep.subr.bf16.mxu1 %v7805_v3  ;;  %v7884_v2 = vld [vmem:[%s11411_s1 + $0x900] ss:$16 sps:$4 sm:$0xff]   ;;  %v7887_v3 = vld [vmem:[%s11411_s1 + $0x908] ss:$16 sps:$4 sm:$0xff]  }
  0xeb   :  { %5182 = vmatpush1.bf16.msra.mxu0 %v7800_v4  ;;  %5715 = vmatpush1.bf16.msra.mxu1 %v7803_v5  ;;  %v7892_v4 = vld [vmem:[%s11411_s1 + $0x924] ss:$16 sps:$4 sm:$0xff]   ;;  %v7895_v5 = vld [vmem:[%s11411_s1 + $0x92c] ss:$16 sps:$4 sm:$0xff]  }
  0xec   :  { %5183 = vmatprep.subr.bf16.mxu0 %v7808_v6  ;;  %5716 = vmatprep.subr.bf16.mxu1 %v7811_v7  ;;  %v7890_v6 = vld [vmem:[%s11411_s1 + $0x920] ss:$16 sps:$4 sm:$0xff]   ;;  %v7893_v7 = vld [vmem:[%s11411_s1 + $0x928] ss:$16 sps:$4 sm:$0xff]  }
  0xef   :  { %5184 = vmatpush1.bf16.msra.mxu0 %v7806_v8  ;;  %5717 = vmatpush1.bf16.msra.mxu1 %v7809_v9  ;;  %v7898_v8 = vld [vmem:[%s11411_s1 + $0x944] ss:$16 sps:$4 sm:$0xff]   ;;  %v7901_v9 = vld [vmem:[%s11411_s1 + $0x94c] ss:$16 sps:$4 sm:$0xff]  }
  0xf0   :  { %5185 = vmatprep.subr.bf16.mxu0 %v7814_v10  ;;  %5718 = vmatprep.subr.bf16.mxu1 %v7817_v11  ;;  %v7896_v10 = vld [vmem:[%s11411_s1 + $0x940] ss:$16 sps:$4 sm:$0xff]   ;;  %v7899_v11 = vld [vmem:[%s11411_s1 + $0x948] ss:$16 sps:$4 sm:$0xff]  }
  0xf3   :  { %5186 = vmatpush1.bf16.msra.mxu0 %v7812_v12  ;;  %5719 = vmatpush1.bf16.msra.mxu1 %v7815_v52  ;;  %v7904_v12 = vld [vmem:[%s11411_s1 + $0x964] ss:$16 sps:$4 sm:$0xff]   ;;  %v7907_v52 = vld [vmem:[%s11411_s1 + $0x96c] ss:$16 sps:$4 sm:$0xff]  }
  0xf4   :  { %5187 = vmatprep.subr.bf16.mxu0 %v7820_v15  ;;  %5720 = vmatprep.subr.bf16.mxu1 %v7823_v16  ;;  %v7902_v15 = vld [vmem:[%s11411_s1 + $0x960] ss:$16 sps:$4 sm:$0xff]   ;;  %v7905_v16 = vld [vmem:[%s11411_s1 + $0x968] ss:$16 sps:$4 sm:$0xff]  }
  0xf7   :  { %5188 = vmatpush1.bf16.msra.mxu0 %v7818_v17  ;;  %5721 = vmatpush1.bf16.msra.mxu1 %v7821_v18  ;;  %v7910_v17 = vld [vmem:[%s11411_s1 + $0x984] ss:$16 sps:$4 sm:$0xff]   ;;  %v7913_v18 = vld [vmem:[%s11411_s1 + $0x98c] ss:$16 sps:$4 sm:$0xff]  }
  0xf8   :  { %5189 = vmatprep.subr.bf16.mxu0 %v7826_v19  ;;  %5722 = vmatprep.subr.bf16.mxu1 %v7829_v20  ;;  %v7908_v19 = vld [vmem:[%s11411_s1 + $0x980] ss:$16 sps:$4 sm:$0xff]   ;;  %v7911_v20 = vld [vmem:[%s11411_s1 + $0x988] ss:$16 sps:$4 sm:$0xff]  }
  0xfb   :  { %5190 = vmatpush1.bf16.msra.mxu0 %v7824_v22  ;;  %5723 = vmatpush1.bf16.msra.mxu1 %v7827_v23  ;;  %v7916_v22 = vld [vmem:[%s11411_s1 + $0x9a4] ss:$16 sps:$4 sm:$0xff]   ;;  %v7919_v23 = vld [vmem:[%s11411_s1 + $0x9ac] ss:$16 sps:$4 sm:$0xff]  }
  0xfc   :  { %5191 = vmatprep.subr.bf16.mxu0 %v7832_v24  ;;  %5724 = vmatprep.subr.bf16.mxu1 %v7835_v13  ;;  %v7914_v24 = vld [vmem:[%s11411_s1 + $0x9a0] ss:$16 sps:$4 sm:$0xff]   ;;  %v7917_v13 = vld [vmem:[%s11411_s1 + $0x9a8] ss:$16 sps:$4 sm:$0xff]  }
  0xff   :  { %5192 = vmatpush1.bf16.msra.mxu0 %v7830_v27  ;;  %5725 = vmatpush1.bf16.msra.mxu1 %v7833_v28  ;;  %v7922_v27 = vld [vmem:[%s11411_s1 + $0x9c4] ss:$16 sps:$4 sm:$0xff]   ;;  %v7925_v28 = vld [vmem:[%s11411_s1 + $0x9cc] ss:$16 sps:$4 sm:$0xff]  }
 0x100   :  { %5202 = vmatprep.subr.bf16.mxu0 %v7838_v29  ;;  %5735 = vmatprep.subr.bf16.mxu1 %v7841_v14  ;;  %v7920_v29 = vld [vmem:[%s11411_s1 + $0x9c0] ss:$16 sps:$4 sm:$0xff]   ;;  %v7923_v14 = vld [vmem:[%s11411_s1 + $0x9c8] ss:$16 sps:$4 sm:$0xff]  }
 0x102   :  { %5194 = vmatmul.mubr.bf16.vlgmr.msra.gmra.mrb[0].mxu0 %v898_v31  ;;  %5727 = vmatmul.mubr.bf16.vlgmr.msra.gmra.mrb[0].mxu1 %v898_v31  ;;  %v7931_v31 = vld [vmem:[%s11411_s1 + $0x9ec] ss:$16 sps:$4 sm:$0xff]  }
 0x103   :  { %5203 = vmatpush1.bf16.msra.mxu0 %v7836_v25  ;;  %5736 = vmatpush1.bf16.msra.mxu1 %v7839_v32  ;;  %v7926_v25 = vld [vmem:[%s11411_s1 + $0x9e0] ss:$16 sps:$4 sm:$0xff]   ;;  %v7929_v32 = vld [vmem:[%s11411_s1 + $0x9e8] ss:$16 sps:$4 sm:$0xff]  }
 0x104   :  { %5204 = vmatprep.subr.bf16.mxu0 %v7844_v33  ;;  %5737 = vmatprep.subr.bf16.mxu1 %v7847_v26  ;;  %v7934_v33 = vld [vmem:[%s11411_s1 + $0xa04] ss:$16 sps:$4 sm:$0xff]   ;;  %v7937_v26 = vld [vmem:[%s11411_s1 + $0xa0c] ss:$16 sps:$4 sm:$0xff]  }
 0x105   :  { %5234 = vmatprep.mubr.bf16.mxu0 %v9589_v34  ;;  %5767 = vmatprep.mubr.bf16.mxu1 %v9589_v34 }
 0x107   :  { %5205 = vmatpush1.bf16.msra.mxu0 %v7842_v35  ;;  %5738 = vmatpush1.bf16.msra.mxu1 %v7845_v36  ;;  %v9775_v35 = vrot.slane %v9546_v21, %v8888_v49  ;;  %v7932_v36 = vld [vmem:[%s11411_s1 + $0xa00] ss:$16 sps:$4 sm:$0xff]   ;;  %v7943_v21 = vld [vmem:[%s11411_s1 + $0xa2c] ss:$16 sps:$4 sm:$0xff]  }
 0x108   :  { %5206 = vmatprep.subr.bf16.mxu0 %v7850_v37  ;;  %5739 = vmatprep.subr.bf16.mxu1 %v7853_v38  ;;  %v7935_v37 = vld [vmem:[%s11411_s1 + $0xa08] ss:$16 sps:$4 sm:$0xff]   ;;  %v7940_v38 = vld [vmem:[%s11411_s1 + $0xa24] ss:$16 sps:$4 sm:$0xff]  }
 0x10b   :  { %5207 = vmatpush1.bf16.msra.mxu0 %v7848_v39  ;;  %5740 = vmatpush1.bf16.msra.mxu1 %v7851_v40  ;;  %v948_v39 = vcombine.high %v9589_v34, %v9589_v34  ;;  %v7938_v40 = vld [vmem:[%s11411_s1 + $0xa20] ss:$16 sps:$4 sm:$0xff]   ;;  %v7946_v34 = vld [vmem:[%s11411_s1 + $0xa44] ss:$16 sps:$4 sm:$0xff]  }
 0x10c   :  { %5208 = vmatprep.subr.bf16.mxu0 %v7856_v41  ;;  %5741 = vmatprep.subr.bf16.mxu1 %v7859_v43  ;;  %v7941_v41 = vld [vmem:[%s11411_s1 + $0xa28] ss:$16 sps:$4 sm:$0xff]   ;;  %v7949_v43 = vld [vmem:[%s11411_s1 + $0xa4c] ss:$16 sps:$4 sm:$0xff]  }
 0x10f   :  { %5209 = vmatpush1.bf16.msra.mxu0 %v7854_v44  ;;  %5742 = vmatpush1.bf16.msra.mxu1 %v7857_v45  ;;  %v7944_v44 = vld [vmem:[%s11411_s1 + $0xa40] ss:$16 sps:$4 sm:$0xff]   ;;  %v7947_v45 = vld [vmem:[%s11411_s1 + $0xa48] ss:$16 sps:$4 sm:$0xff]  }
 0x110   :  { %5210 = vmatprep.subr.bf16.mxu0 %v7862_v46  ;;  %5743 = vmatprep.subr.bf16.mxu1 %v7865_v47  ;;  %v7952_v46 = vld [vmem:[%s11411_s1 + $0xa64] ss:$16 sps:$4 sm:$0xff]   ;;  %v7955_v47 = vld [vmem:[%s11411_s1 + $0xa6c] ss:$16 sps:$4 sm:$0xff]  }
 0x113   :  { %5211 = vmatpush1.bf16.msra.mxu0 %v7860_v48  ;;  %5744 = vmatpush1.bf16.msra.mxu1 %v7863_v50  ;;  %v7950_v48 = vld [vmem:[%s11411_s1 + $0xa60] ss:$16 sps:$4 sm:$0xff]   ;;  %v7953_v50 = vld [vmem:[%s11411_s1 + $0xa68] ss:$16 sps:$4 sm:$0xff]  }
 0x114   :  { %5212 = vmatprep.subr.bf16.mxu0 %v7868_v51  ;;  %5745 = vmatprep.subr.bf16.mxu1 %v7871_v53  ;;  %v7958_v51 = vld [vmem:[%s11411_s1 + $0xa84] ss:$16 sps:$4 sm:$0xff]   ;;  %v7961_v53 = vld [vmem:[%s11411_s1 + $0xa8c] ss:$16 sps:$4 sm:$0xff]  }
 0x117   :  { %5213 = vmatpush1.bf16.msra.mxu0 %v7866_v54  ;;  %5746 = vmatpush1.bf16.msra.mxu1 %v7869_v55  ;;  %v7956_v54 = vld [vmem:[%s11411_s1 + $0xa80] ss:$16 sps:$4 sm:$0xff]   ;;  %v7959_v55 = vld [vmem:[%s11411_s1 + $0xa88] ss:$16 sps:$4 sm:$0xff]  }
 0x118   :  { %5214 = vmatprep.subr.bf16.mxu0 %v7874_v56  ;;  %5747 = vmatprep.subr.bf16.mxu1 %v7877_v57  ;;  %v7964_v56 = vld [vmem:[%s11411_s1 + $0xaa4] ss:$16 sps:$4 sm:$0xff]   ;;  %v7967_v57 = vld [vmem:[%s11411_s1 + $0xaac] ss:$16 sps:$4 sm:$0xff]  }
 0x11b   :  { %5215 = vmatpush1.bf16.msra.mxu0 %v7872_v58  ;;  %5748 = vmatpush1.bf16.msra.mxu1 %v7875_v59  ;;  %v7962_v58 = vld [vmem:[%s11411_s1 + $0xaa0] ss:$16 sps:$4 sm:$0xff]   ;;  %v7965_v59 = vld [vmem:[%s11411_s1 + $0xaa8] ss:$16 sps:$4 sm:$0xff]  }
 0x11c   :  { %5216 = vmatprep.subr.bf16.mxu0 %v7880_v60  ;;  %5749 = vmatprep.subr.bf16.mxu1 %v7883_v61  ;;  %v7970_v60 = vld [vmem:[%s11411_s1 + $0xac4] ss:$16 sps:$4 sm:$0xff]   ;;  %v7973_v61 = vld [vmem:[%s11411_s1 + $0xacc] ss:$16 sps:$4 sm:$0xff]  }
 0x11f   :  { %5217 = vmatpush1.bf16.msra.mxu0 %v7878_v62  ;;  %5750 = vmatpush1.bf16.msra.mxu1 %v7881_v63  ;;  %v7968_v62 = vld [vmem:[%s11411_s1 + $0xac0] ss:$16 sps:$4 sm:$0xff]   ;;  %v7971_v63 = vld [vmem:[%s11411_s1 + $0xac8] ss:$16 sps:$4 sm:$0xff]  }
 0x120   :  { %5218 = vmatprep.subr.bf16.mxu0 %v7886_v0  ;;  %5751 = vmatprep.subr.bf16.mxu1 %v7889_v1  ;;  %v7976_v0 = vld [vmem:[%s11411_s1 + $0xae4] ss:$16 sps:$4 sm:$0xff]   ;;  %v7979_v1 = vld [vmem:[%s11411_s1 + $0xaec] ss:$16 sps:$4 sm:$0xff]  }
 0x123   :  { %5219 = vmatpush1.bf16.msra.mxu0 %v7884_v2  ;;  %5752 = vmatpush1.bf16.msra.mxu1 %v7887_v3  ;;  %v7974_v2 = vld [vmem:[%s11411_s1 + $0xae0] ss:$16 sps:$4 sm:$0xff]   ;;  %v7977_v3 = vld [vmem:[%s11411_s1 + $0xae8] ss:$16 sps:$4 sm:$0xff]  }
 0x124   :  { %5220 = vmatprep.subr.bf16.mxu0 %v7892_v4  ;;  %5753 = vmatprep.subr.bf16.mxu1 %v7895_v5  ;;  %v7982_v4 = vld [vmem:[%s11411_s1 + $0xb04] ss:$16 sps:$4 sm:$0xff]   ;;  %v7985_v5 = vld [vmem:[%s11411_s1 + $0xb0c] ss:$16 sps:$4 sm:$0xff]  }
 0x127   :  { %5221 = vmatpush1.bf16.msra.mxu0 %v7890_v6  ;;  %5754 = vmatpush1.bf16.msra.mxu1 %v7893_v7  ;;  %v7980_v6 = vld [vmem:[%s11411_s1 + $0xb00] ss:$16 sps:$4 sm:$0xff]   ;;  %v7983_v7 = vld [vmem:[%s11411_s1 + $0xb08] ss:$16 sps:$4 sm:$0xff]  }
 0x128   :  { %5222 = vmatprep.subr.bf16.mxu0 %v7898_v8  ;;  %5755 = vmatprep.subr.bf16.mxu1 %v7901_v9  ;;  %v7988_v8 = vld [vmem:[%s11411_s1 + $0xb24] ss:$16 sps:$4 sm:$0xff]   ;;  %v7991_v9 = vld [vmem:[%s11411_s1 + $0xb2c] ss:$16 sps:$4 sm:$0xff]  }
 0x12b   :  { %5223 = vmatpush1.bf16.msra.mxu0 %v7896_v10  ;;  %5756 = vmatpush1.bf16.msra.mxu1 %v7899_v11  ;;  %v7986_v10 = vld [vmem:[%s11411_s1 + $0xb20] ss:$16 sps:$4 sm:$0xff]   ;;  %v7989_v11 = vld [vmem:[%s11411_s1 + $0xb28] ss:$16 sps:$4 sm:$0xff]  }
 0x12c   :  { %5224 = vmatprep.subr.bf16.mxu0 %v7904_v12  ;;  %5757 = vmatprep.subr.bf16.mxu1 %v7907_v52  ;;  %v7994_v12 = vld [vmem:[%s11411_s1 + $0xb44] ss:$16 sps:$4 sm:$0xff]   ;;  %v7997_v52 = vld [vmem:[%s11411_s1 + $0xb4c] ss:$16 sps:$4 sm:$0xff]  }
 0x12f   :  { %5225 = vmatpush1.bf16.msra.mxu0 %v7902_v15  ;;  %5758 = vmatpush1.bf16.msra.mxu1 %v7905_v16  ;;  %v7992_v15 = vld [vmem:[%s11411_s1 + $0xb40] ss:$16 sps:$4 sm:$0xff]   ;;  %v7995_v16 = vld [vmem:[%s11411_s1 + $0xb48] ss:$16 sps:$4 sm:$0xff]  }
 0x130   :  { %5226 = vmatprep.subr.bf16.mxu0 %v7910_v17  ;;  %5759 = vmatprep.subr.bf16.mxu1 %v7913_v18  ;;  %v8000_v17 = vld [vmem:[%s11411_s1 + $0xb64] ss:$16 sps:$4 sm:$0xff]   ;;  %v8003_v18 = vld [vmem:[%s11411_s1 + $0xb6c] ss:$16 sps:$4 sm:$0xff]  }
 0x133   :  { %5227 = vmatpush1.bf16.msra.mxu0 %v7908_v19  ;;  %5760 = vmatpush1.bf16.msra.mxu1 %v7911_v20  ;;  %v7998_v19 = vld [vmem:[%s11411_s1 + $0xb60] ss:$16 sps:$4 sm:$0xff]   ;;  %v8001_v20 = vld [vmem:[%s11411_s1 + $0xb68] ss:$16 sps:$4 sm:$0xff]  }
 0x134   :  { %5228 = vmatprep.subr.bf16.mxu0 %v7916_v22  ;;  %5761 = vmatprep.subr.bf16.mxu1 %v7919_v23  ;;  %v8006_v22 = vld [vmem:[%s11411_s1 + $0xb84] ss:$16 sps:$4 sm:$0xff]   ;;  %v8009_v23 = vld [vmem:[%s11411_s1 + $0xb8c] ss:$16 sps:$4 sm:$0xff]  }
 0x137   :  { %5229 = vmatpush1.bf16.msra.mxu0 %v7914_v24  ;;  %5762 = vmatpush1.bf16.msra.mxu1 %v7917_v13  ;;  %v8004_v24 = vld [vmem:[%s11411_s1 + $0xb80] ss:$16 sps:$4 sm:$0xff]   ;;  %v8007_v13 = vld [vmem:[%s11411_s1 + $0xb88] ss:$16 sps:$4 sm:$0xff]  }
 0x138   :  { %5230 = vmatprep.subr.bf16.mxu0 %v7922_v27  ;;  %5763 = vmatprep.subr.bf16.mxu1 %v7925_v28  ;;  %v8012_v27 = vld [vmem:[%s11411_s1 + $0xba4] ss:$16 sps:$4 sm:$0xff]   ;;  %v8015_v28 = vld [vmem:[%s11411_s1 + $0xbac] ss:$16 sps:$4 sm:$0xff]  }
 0x13b   :  { %5231 = vmatpush1.bf16.msra.mxu0 %v7920_v29  ;;  %5764 = vmatpush1.bf16.msra.mxu1 %v7923_v14  ;;  %v8010_v29 = vld [vmem:[%s11411_s1 + $0xba0] ss:$16 sps:$4 sm:$0xff]   ;;  %v8013_v14 = vld [vmem:[%s11411_s1 + $0xba8] ss:$16 sps:$4 sm:$0xff]  }
 0x13c   :  { %5232 = vmatprep.subr.bf16.mxu0 %v7928_v30  ;;  %5765 = vmatprep.subr.bf16.mxu1 %v7931_v31  ;;  %v8018_v30 = vld [vmem:[%s11411_s1 + $0xbc4] ss:$16 sps:$4 sm:$0xff]   ;;  %v8021_v31 = vld [vmem:[%s11411_s1 + $0xbcc] ss:$16 sps:$4 sm:$0xff]  }
 0x13f   :  { %5233 = vmatpush1.bf16.msra.mxu0 %v7926_v25  ;;  %5766 = vmatpush1.bf16.msra.mxu1 %v7929_v32  ;;  %v8694_v25 = vld [vmem:[%s11410_s0 + $0x8] sm:$0xff] }
 0x140   :  { %5243 = vmatprep.subr.bf16.mxu0 %v7934_v33  ;;  %5776 = vmatprep.subr.bf16.mxu1 %v7937_v26  ;;  %v901_v32 = vcombine.high %v8694_v25, %v8694_v25  ;;  %v8016_v33 = vld [vmem:[%s11411_s1 + $0xbc0] ss:$16 sps:$4 sm:$0xff]   ;;  %v8019_v26 = vld [vmem:[%s11411_s1 + $0xbc8] ss:$16 sps:$4 sm:$0xff]  }
 0x141   :  { %v8100_v25 = vld [vmem:[%s11411_s1 + $0xd80] ss:$16 sps:$4 sm:$0xff]  }
 0x142   :  { %5235 = vmatmul.mubr.bf16.vlgmr.msra.gmra.mrb[0].mxu0 %v9775_v35  ;;  %5768 = vmatmul.mubr.bf16.vlgmr.msra.gmra.mrb[0].mxu1 %v9775_v35 }
 0x143   :  { %5244 = vmatpush1.bf16.msra.mxu0 %v7932_v36  ;;  %5777 = vmatpush1.bf16.msra.mxu1 %v7935_v37  ;;  %v8024_v36 = vld [vmem:[%s11411_s1 + $0xbe4] ss:$16 sps:$4 sm:$0xff]   ;;  %v8027_v37 = vld [vmem:[%s11411_s1 + $0xbec] ss:$16 sps:$4 sm:$0xff]  }
 0x144   :  { %5245 = vmatprep.subr.bf16.mxu0 %v7940_v38  ;;  %5778 = vmatprep.subr.bf16.mxu1 %v7943_v21  ;;  %v9965_v38 = vrot.slane %v901_v32, %v8888_v49  ;;  %v8022_v21 = vld [vmem:[%s11411_s1 + $0xbe0] ss:$16 sps:$4 sm:$0xff]   ;;  %v8103_v32 = vld [vmem:[%s11411_s1 + $0xd88] ss:$16 sps:$4 sm:$0xff]  }
 0x145   :  { %5275 = vmatprep.mubr.bf16.mxu0 %v948_v39  ;;  %5808 = vmatprep.mubr.bf16.mxu1 %v948_v39  ;;  %v8025_v39 = vld [vmem:[%s11411_s1 + $0xbe8] ss:$16 sps:$4 sm:$0xff]  }
 0x147   :  { %5246 = vmatpush1.bf16.msra.mxu0 %v7938_v40  ;;  %5779 = vmatpush1.bf16.msra.mxu1 %v7941_v41  ;;  %v8030_v40 = vld [vmem:[%s11411_s1 + $0xc04] ss:$16 sps:$4 sm:$0xff]   ;;  %v8033_v41 = vld [vmem:[%s11411_s1 + $0xc0c] ss:$16 sps:$4 sm:$0xff]  }
 0x148   :  { %5247 = vmatprep.subr.bf16.mxu0 %v7946_v34  ;;  %5780 = vmatprep.subr.bf16.mxu1 %v7949_v43  ;;  %v917_v34 = vcombine.high %v9965_v38, %v9965_v38  ;;  %v946_v43 = vcombine.high %v9775_v35, %v9775_v35  ;;  %v8039_v35 = vld [vmem:[%s11411_s1 + $0xc2c] ss:$16 sps:$4 sm:$0xff]  }
 0x14b   :  { %5248 = vmatpush1.bf16.msra.mxu0 %v7944_v44  ;;  %5781 = vmatpush1.bf16.msra.mxu1 %v7947_v45  ;;  %v8028_v44 = vld [vmem:[%s11411_s1 + $0xc00] ss:$16 sps:$4 sm:$0xff]   ;;  %v8031_v45 = vld [vmem:[%s11411_s1 + $0xc08] ss:$16 sps:$4 sm:$0xff]  }
 0x14c   :  { %5249 = vmatprep.subr.bf16.mxu0 %v7952_v46  ;;  %5782 = vmatprep.subr.bf16.mxu1 %v7955_v47  ;;  %v8036_v46 = vld [vmem:[%s11411_s1 + $0xc24] ss:$16 sps:$4 sm:$0xff]   ;;  %v9996_v47 = vrot.slane %v917_v34, %v8888_v49 }
 0x14d   :  { %v8120_v34 = vld [vmem:[%s11411_s1 + $0xde4] ss:$16 sps:$4 sm:$0xff]  }
 0x14f   :  { %5250 = vmatpush1.bf16.msra.mxu0 %v7950_v48  ;;  %5783 = vmatpush1.bf16.msra.mxu1 %v7953_v50  ;;  %v8034_v48 = vld [vmem:[%s11411_s1 + $0xc20] ss:$16 sps:$4 sm:$0xff]   ;;  %v8037_v50 = vld [vmem:[%s11411_s1 + $0xc28] ss:$16 sps:$4 sm:$0xff]  }
 0x150   :  { %5251 = vmatprep.subr.bf16.mxu0 %v7958_v51  ;;  %5784 = vmatprep.subr.bf16.mxu1 %v7961_v53  ;;  %v8042_v51 = vld [vmem:[%s11411_s1 + $0xc44] ss:$16 sps:$4 sm:$0xff]   ;;  %v8045_v53 = vld [vmem:[%s11411_s1 + $0xc4c] ss:$16 sps:$4 sm:$0xff]  }
 0x153   :  { %5252 = vmatpush1.bf16.msra.mxu0 %v7956_v54  ;;  %5785 = vmatpush1.bf16.msra.mxu1 %v7959_v55  ;;  %v8040_v54 = vld [vmem:[%s11411_s1 + $0xc40] ss:$16 sps:$4 sm:$0xff]   ;;  %v8043_v55 = vld [vmem:[%s11411_s1 + $0xc48] ss:$16 sps:$4 sm:$0xff]  }
 0x154   :  { %5253 = vmatprep.subr.bf16.mxu0 %v7964_v56  ;;  %5786 = vmatprep.subr.bf16.mxu1 %v7967_v57  ;;  %v8048_v56 = vld [vmem:[%s11411_s1 + $0xc64] ss:$16 sps:$4 sm:$0xff]   ;;  %v8051_v57 = vld [vmem:[%s11411_s1 + $0xc6c] ss:$16 sps:$4 sm:$0xff]  }
 0x157   :  { %5254 = vmatpush1.bf16.msra.mxu0 %v7962_v58  ;;  %5787 = vmatpush1.bf16.msra.mxu1 %v7965_v59  ;;  %v8046_v58 = vld [vmem:[%s11411_s1 + $0xc60] ss:$16 sps:$4 sm:$0xff]   ;;  %v8049_v59 = vld [vmem:[%s11411_s1 + $0xc68] ss:$16 sps:$4 sm:$0xff]  }
 0x158   :  { %5255 = vmatprep.subr.bf16.mxu0 %v7970_v60  ;;  %5788 = vmatprep.subr.bf16.mxu1 %v7973_v61  ;;  %v8054_v60 = vld [vmem:[%s11411_s1 + $0xc84] ss:$16 sps:$4 sm:$0xff]   ;;  %v8057_v61 = vld [vmem:[%s11411_s1 + $0xc8c] ss:$16 sps:$4 sm:$0xff]  }
 0x15b   :  { %5256 = vmatpush1.bf16.msra.mxu0 %v7968_v62  ;;  %5789 = vmatpush1.bf16.msra.mxu1 %v7971_v63  ;;  %v8052_v62 = vld [vmem:[%s11411_s1 + $0xc80] ss:$16 sps:$4 sm:$0xff]   ;;  %v8055_v63 = vld [vmem:[%s11411_s1 + $0xc88] ss:$16 sps:$4 sm:$0xff]  }
 0x15c   :  { %5257 = vmatprep.subr.bf16.mxu0 %v7976_v0  ;;  %5790 = vmatprep.subr.bf16.mxu1 %v7979_v1  ;;  %v8060_v0 = vld [vmem:[%s11411_s1 + $0xca4] ss:$16 sps:$4 sm:$0xff]   ;;  %v8063_v1 = vld [vmem:[%s11411_s1 + $0xcac] ss:$16 sps:$4 sm:$0xff]  }
 0x15f   :  { %5258 = vmatpush1.bf16.msra.mxu0 %v7974_v2  ;;  %5791 = vmatpush1.bf16.msra.mxu1 %v7977_v3  ;;  %v8058_v2 = vld [vmem:[%s11411_s1 + $0xca0] ss:$16 sps:$4 sm:$0xff]   ;;  %v8061_v3 = vld [vmem:[%s11411_s1 + $0xca8] ss:$16 sps:$4 sm:$0xff]  }
 0x160   :  { %5259 = vmatprep.subr.bf16.mxu0 %v7982_v4  ;;  %5792 = vmatprep.subr.bf16.mxu1 %v7985_v5  ;;  %v8066_v4 = vld [vmem:[%s11411_s1 + $0xcc4] ss:$16 sps:$4 sm:$0xff]   ;;  %v8069_v5 = vld [vmem:[%s11411_s1 + $0xccc] ss:$16 sps:$4 sm:$0xff]  }
 0x163   :  { %5260 = vmatpush1.bf16.msra.mxu0 %v7980_v6  ;;  %5793 = vmatpush1.bf16.msra.mxu1 %v7983_v7  ;;  %v8064_v6 = vld [vmem:[%s11411_s1 + $0xcc0] ss:$16 sps:$4 sm:$0xff]   ;;  %v8067_v7 = vld [vmem:[%s11411_s1 + $0xcc8] ss:$16 sps:$4 sm:$0xff]  }
 0x164   :  { %5261 = vmatprep.subr.bf16.mxu0 %v7988_v8  ;;  %5794 = vmatprep.subr.bf16.mxu1 %v7991_v9  ;;  %v8072_v8 = vld [vmem:[%s11411_s1 + $0xce4] ss:$16 sps:$4 sm:$0xff]   ;;  %v8075_v9 = vld [vmem:[%s11411_s1 + $0xcec] ss:$16 sps:$4 sm:$0xff]  }
 0x167   :  { %5262 = vmatpush1.bf16.msra.mxu0 %v7986_v10  ;;  %5795 = vmatpush1.bf16.msra.mxu1 %v7989_v11  ;;  %v8070_v10 = vld [vmem:[%s11411_s1 + $0xce0] ss:$16 sps:$4 sm:$0xff]   ;;  %v8073_v11 = vld [vmem:[%s11411_s1 + $0xce8] ss:$16 sps:$4 sm:$0xff]  }
 0x168   :  { %5263 = vmatprep.subr.bf16.mxu0 %v7994_v12  ;;  %5796 = vmatprep.subr.bf16.mxu1 %v7997_v52  ;;  %v8078_v12 = vld [vmem:[%s11411_s1 + $0xd04] ss:$16 sps:$4 sm:$0xff]   ;;  %v8081_v52 = vld [vmem:[%s11411_s1 + $0xd0c] ss:$16 sps:$4 sm:$0xff]  }
 0x16b   :  { %5264 = vmatpush1.bf16.msra.mxu0 %v7992_v15  ;;  %5797 = vmatpush1.bf16.msra.mxu1 %v7995_v16  ;;  %v8076_v15 = vld [vmem:[%s11411_s1 + $0xd00] ss:$16 sps:$4 sm:$0xff]   ;;  %v8079_v16 = vld [vmem:[%s11411_s1 + $0xd08] ss:$16 sps:$4 sm:$0xff]  }
 0x16c   :  { %5265 = vmatprep.subr.bf16.mxu0 %v8000_v17  ;;  %5798 = vmatprep.subr.bf16.mxu1 %v8003_v18  ;;  %v8084_v17 = vld [vmem:[%s11411_s1 + $0xd24] ss:$16 sps:$4 sm:$0xff]   ;;  %v8087_v18 = vld [vmem:[%s11411_s1 + $0xd2c] ss:$16 sps:$4 sm:$0xff]  }
 0x16f   :  { %5266 = vmatpush1.bf16.msra.mxu0 %v7998_v19  ;;  %5799 = vmatpush1.bf16.msra.mxu1 %v8001_v20  ;;  %v8082_v19 = vld [vmem:[%s11411_s1 + $0xd20] ss:$16 sps:$4 sm:$0xff]   ;;  %v8085_v20 = vld [vmem:[%s11411_s1 + $0xd28] ss:$16 sps:$4 sm:$0xff]  }
 0x170   :  { %5267 = vmatprep.subr.bf16.mxu0 %v8006_v22  ;;  %5800 = vmatprep.subr.bf16.mxu1 %v8009_v23  ;;  %v8090_v22 = vld [vmem:[%s11411_s1 + $0xd44] ss:$16 sps:$4 sm:$0xff]   ;;  %v8093_v23 = vld [vmem:[%s11411_s1 + $0xd4c] ss:$16 sps:$4 sm:$0xff]  }
 0x173   :  { %5268 = vmatpush1.bf16.msra.mxu0 %v8004_v24  ;;  %5801 = vmatpush1.bf16.msra.mxu1 %v8007_v13  ;;  %v8088_v24 = vld [vmem:[%s11411_s1 + $0xd40] ss:$16 sps:$4 sm:$0xff]   ;;  %v8091_v13 = vld [vmem:[%s11411_s1 + $0xd48] ss:$16 sps:$4 sm:$0xff]  }
 0x174   :  { %5269 = vmatprep.subr.bf16.mxu0 %v8012_v27  ;;  %5802 = vmatprep.subr.bf16.mxu1 %v8015_v28  ;;  %v8096_v27 = vld [vmem:[%s11411_s1 + $0xd64] ss:$16 sps:$4 sm:$0xff]   ;;  %v8099_v28 = vld [vmem:[%s11411_s1 + $0xd6c] ss:$16 sps:$4 sm:$0xff]  }
 0x177   :  { %5270 = vmatpush1.bf16.msra.mxu0 %v8010_v29  ;;  %5803 = vmatpush1.bf16.msra.mxu1 %v8013_v14  ;;  %v8094_v29 = vld [vmem:[%s11411_s1 + $0xd60] ss:$16 sps:$4 sm:$0xff]   ;;  %v8097_v14 = vld [vmem:[%s11411_s1 + $0xd68] ss:$16 sps:$4 sm:$0xff]  }
 0x178   :  { %5271 = vmatprep.subr.bf16.mxu0 %v8018_v30  ;;  %5804 = vmatprep.subr.bf16.mxu1 %v8021_v31  ;;  %v8102_v30 = vld [vmem:[%s11411_s1 + $0xd84] ss:$16 sps:$4 sm:$0xff]   ;;  %v8105_v31 = vld [vmem:[%s11411_s1 + $0xd8c] ss:$16 sps:$4 sm:$0xff]  }
 0x17b   :  { %5272 = vmatpush1.bf16.msra.mxu0 %v8016_v33  ;;  %5805 = vmatpush1.bf16.msra.mxu1 %v8019_v26  ;;  %v8108_v33 = vld [vmem:[%s11411_s1 + $0xda4] ss:$16 sps:$4 sm:$0xff]   ;;  %v8111_v26 = vld [vmem:[%s11411_s1 + $0xdac] ss:$16 sps:$4 sm:$0xff]  }
 0x17c   :  { %5273 = vmatprep.subr.bf16.mxu0 %v8024_v36  ;;  %5806 = vmatprep.subr.bf16.mxu1 %v8027_v37  ;;  %v8106_v36 = vld [vmem:[%s11411_s1 + $0xda0] ss:$16 sps:$4 sm:$0xff]   ;;  %v8109_v37 = vld [vmem:[%s11411_s1 + $0xda8] ss:$16 sps:$4 sm:$0xff]  }
 0x17f   :  { %5274 = vmatpush1.bf16.msra.mxu0 %v8022_v21  ;;  %5807 = vmatpush1.bf16.msra.mxu1 %v8025_v39  ;;  %v8114_v21 = vld [vmem:[%s11411_s1 + $0xdc4] ss:$16 sps:$4 sm:$0xff]   ;;  %v8117_v39 = vld [vmem:[%s11411_s1 + $0xdcc] ss:$16 sps:$4 sm:$0xff]  }
 0x180   :  { %5284 = vmatprep.subr.bf16.mxu0 %v8030_v40  ;;  %5817 = vmatprep.subr.bf16.mxu1 %v8033_v41  ;;  %v8112_v40 = vld [vmem:[%s11411_s1 + $0xdc0] ss:$16 sps:$4 sm:$0xff]   ;;  %v8115_v41 = vld [vmem:[%s11411_s1 + $0xdc8] ss:$16 sps:$4 sm:$0xff]  }
 0x182   :  { %5276 = vmatmul.mubr.bf16.vlgmr.msra.gmra.mrb[0].mxu0 %v946_v43  ;;  %5809 = vmatmul.mubr.bf16.vlgmr.msra.gmra.mrb[0].mxu1 %v946_v43  ;;  %v8123_v43 = vld [vmem:[%s11411_s1 + $0xdec] ss:$16 sps:$4 sm:$0xff]  }
 0x183   :  { %5285 = vmatpush1.bf16.msra.mxu0 %v8028_v44  ;;  %5818 = vmatpush1.bf16.msra.mxu1 %v8031_v45  ;;  %v8118_v44 = vld [vmem:[%s11411_s1 + $0xde0] ss:$16 sps:$4 sm:$0xff]   ;;  %v8121_v45 = vld [vmem:[%s11411_s1 + $0xde8] ss:$16 sps:$4 sm:$0xff]  }
 0x184   :  { %5286 = vmatprep.subr.bf16.mxu0 %v8036_v46  ;;  %5819 = vmatprep.subr.bf16.mxu1 %v8039_v35  ;;  %v8127_v46 = vld [vmem:[%s11411_s1 + $0xe04] ss:$16 sps:$4 sm:$0xff]   ;;  %v8130_v35 = vld [vmem:[%s11411_s1 + $0xe0c] ss:$16 sps:$4 sm:$0xff]  }
 0x185   :  { %5316 = vmatprep.mubr.bf16.mxu0 %v9996_v47  ;;  %5849 = vmatprep.mubr.bf16.mxu1 %v9996_v47 }
 0x187   :  { %5287 = vmatpush1.bf16.msra.mxu0 %v8034_v48  ;;  %5820 = vmatpush1.bf16.msra.mxu1 %v8037_v50  ;;  %v10182_v48 = vrot.slane %v9965_v38, %v8888_v49  ;;  %v8125_v50 = vld [vmem:[%s11411_s1 + $0xe00] ss:$16 sps:$4 sm:$0xff]   ;;  %v8136_v38 = vld [vmem:[%s11411_s1 + $0xe2c] ss:$16 sps:$4 sm:$0xff]  }
 0x188   :  { %5288 = vmatprep.subr.bf16.mxu0 %v8042_v51  ;;  %5821 = vmatprep.subr.bf16.mxu1 %v8045_v53  ;;  %v8128_v51 = vld [vmem:[%s11411_s1 + $0xe08] ss:$16 sps:$4 sm:$0xff]   ;;  %v8133_v53 = vld [vmem:[%s11411_s1 + $0xe24] ss:$16 sps:$4 sm:$0xff]  }
 0x18b   :  { %5289 = vmatpush1.bf16.msra.mxu0 %v8040_v54  ;;  %5822 = vmatpush1.bf16.msra.mxu1 %v8043_v55  ;;  %v949_v54 = vcombine.high %v9996_v47, %v9996_v47  ;;  %v8131_v55 = vld [vmem:[%s11411_s1 + $0xe20] ss:$16 sps:$4 sm:$0xff]   ;;  %v8139_v47 = vld [vmem:[%s11411_s1 + $0xe44] ss:$16 sps:$4 sm:$0xff]  }
 0x18c   :  { %5290 = vmatprep.subr.bf16.mxu0 %v8048_v56  ;;  %5823 = vmatprep.subr.bf16.mxu1 %v8051_v57  ;;  %v8134_v56 = vld [vmem:[%s11411_s1 + $0xe28] ss:$16 sps:$4 sm:$0xff]   ;;  %v8142_v57 = vld [vmem:[%s11411_s1 + $0xe4c] ss:$16 sps:$4 sm:$0xff]  }
 0x18f   :  { %5291 = vmatpush1.bf16.msra.mxu0 %v8046_v58  ;;  %5824 = vmatpush1.bf16.msra.mxu1 %v8049_v59  ;;  %v8137_v58 = vld [vmem:[%s11411_s1 + $0xe40] ss:$16 sps:$4 sm:$0xff]   ;;  %v8140_v59 = vld [vmem:[%s11411_s1 + $0xe48] ss:$16 sps:$4 sm:$0xff]  }
 0x190   :  { %5292 = vmatprep.subr.bf16.mxu0 %v8054_v60  ;;  %5825 = vmatprep.subr.bf16.mxu1 %v8057_v61  ;;  %v8145_v60 = vld [vmem:[%s11411_s1 + $0xe64] ss:$16 sps:$4 sm:$0xff]   ;;  %v8148_v61 = vld [vmem:[%s11411_s1 + $0xe6c] ss:$16 sps:$4 sm:$0xff]  }
 0x193   :  { %5293 = vmatpush1.bf16.msra.mxu0 %v8052_v62  ;;  %5826 = vmatpush1.bf16.msra.mxu1 %v8055_v63  ;;  %v8143_v62 = vld [vmem:[%s11411_s1 + $0xe60] ss:$16 sps:$4 sm:$0xff]   ;;  %v8146_v63 = vld [vmem:[%s11411_s1 + $0xe68] ss:$16 sps:$4 sm:$0xff]  }
 0x194   :  { %5294 = vmatprep.subr.bf16.mxu0 %v8060_v0  ;;  %5827 = vmatprep.subr.bf16.mxu1 %v8063_v1  ;;  %v8151_v0 = vld [vmem:[%s11411_s1 + $0xe84] ss:$16 sps:$4 sm:$0xff]   ;;  %v8154_v1 = vld [vmem:[%s11411_s1 + $0xe8c] ss:$16 sps:$4 sm:$0xff]  }
 0x197   :  { %5295 = vmatpush1.bf16.msra.mxu0 %v8058_v2  ;;  %5828 = vmatpush1.bf16.msra.mxu1 %v8061_v3  ;;  %v8149_v2 = vld [vmem:[%s11411_s1 + $0xe80] ss:$16 sps:$4 sm:$0xff]   ;;  %v8152_v3 = vld [vmem:[%s11411_s1 + $0xe88] ss:$16 sps:$4 sm:$0xff]  }
 0x198   :  { %5296 = vmatprep.subr.bf16.mxu0 %v8066_v4  ;;  %5829 = vmatprep.subr.bf16.mxu1 %v8069_v5  ;;  %v8157_v4 = vld [vmem:[%s11411_s1 + $0xea4] ss:$16 sps:$4 sm:$0xff]   ;;  %v8160_v5 = vld [vmem:[%s11411_s1 + $0xeac] ss:$16 sps:$4 sm:$0xff]  }
 0x19b   :  { %5297 = vmatpush1.bf16.msra.mxu0 %v8064_v6  ;;  %5830 = vmatpush1.bf16.msra.mxu1 %v8067_v7  ;;  %v8155_v6 = vld [vmem:[%s11411_s1 + $0xea0] ss:$16 sps:$4 sm:$0xff]   ;;  %v8158_v7 = vld [vmem:[%s11411_s1 + $0xea8] ss:$16 sps:$4 sm:$0xff]  }
 0x19c   :  { %5298 = vmatprep.subr.bf16.mxu0 %v8072_v8  ;;  %5831 = vmatprep.subr.bf16.mxu1 %v8075_v9  ;;  %v8163_v8 = vld [vmem:[%s11411_s1 + $0xec4] ss:$16 sps:$4 sm:$0xff]   ;;  %v8166_v9 = vld [vmem:[%s11411_s1 + $0xecc] ss:$16 sps:$4 sm:$0xff]  }
 0x19f   :  { %5299 = vmatpush1.bf16.msra.mxu0 %v8070_v10  ;;  %5832 = vmatpush1.bf16.msra.mxu1 %v8073_v11  ;;  %v8161_v10 = vld [vmem:[%s11411_s1 + $0xec0] ss:$16 sps:$4 sm:$0xff]   ;;  %v8164_v11 = vld [vmem:[%s11411_s1 + $0xec8] ss:$16 sps:$4 sm:$0xff]  }
 0x1a0   :  { %5300 = vmatprep.subr.bf16.mxu0 %v8078_v12  ;;  %5833 = vmatprep.subr.bf16.mxu1 %v8081_v52  ;;  %v8169_v12 = vld [vmem:[%s11411_s1 + $0xee4] ss:$16 sps:$4 sm:$0xff]   ;;  %v8172_v52 = vld [vmem:[%s11411_s1 + $0xeec] ss:$16 sps:$4 sm:$0xff]  }
 0x1a3   :  { %5301 = vmatpush1.bf16.msra.mxu0 %v8076_v15  ;;  %5834 = vmatpush1.bf16.msra.mxu1 %v8079_v16  ;;  %v8167_v15 = vld [vmem:[%s11411_s1 + $0xee0] ss:$16 sps:$4 sm:$0xff]   ;;  %v8170_v16 = vld [vmem:[%s11411_s1 + $0xee8] ss:$16 sps:$4 sm:$0xff]  }
 0x1a4   :  { %5302 = vmatprep.subr.bf16.mxu0 %v8084_v17  ;;  %5835 = vmatprep.subr.bf16.mxu1 %v8087_v18  ;;  %v8175_v17 = vld [vmem:[%s11411_s1 + $0xf04] ss:$16 sps:$4 sm:$0xff]   ;;  %v8178_v18 = vld [vmem:[%s11411_s1 + $0xf0c] ss:$16 sps:$4 sm:$0xff]  }
 0x1a7   :  { %5303 = vmatpush1.bf16.msra.mxu0 %v8082_v19  ;;  %5836 = vmatpush1.bf16.msra.mxu1 %v8085_v20  ;;  %v8173_v19 = vld [vmem:[%s11411_s1 + $0xf00] ss:$16 sps:$4 sm:$0xff]   ;;  %v8176_v20 = vld [vmem:[%s11411_s1 + $0xf08] ss:$16 sps:$4 sm:$0xff]  }
 0x1a8   :  { %5304 = vmatprep.subr.bf16.mxu0 %v8090_v22  ;;  %5837 = vmatprep.subr.bf16.mxu1 %v8093_v23  ;;  %v8181_v22 = vld [vmem:[%s11411_s1 + $0xf24] ss:$16 sps:$4 sm:$0xff]   ;;  %v8184_v23 = vld [vmem:[%s11411_s1 + $0xf2c] ss:$16 sps:$4 sm:$0xff]  }
 0x1ab   :  { %5305 = vmatpush1.bf16.msra.mxu0 %v8088_v24  ;;  %5838 = vmatpush1.bf16.msra.mxu1 %v8091_v13  ;;  %v8179_v24 = vld [vmem:[%s11411_s1 + $0xf20] ss:$16 sps:$4 sm:$0xff]   ;;  %v8182_v13 = vld [vmem:[%s11411_s1 + $0xf28] ss:$16 sps:$4 sm:$0xff]  }
 0x1ac   :  { %5306 = vmatprep.subr.bf16.mxu0 %v8096_v27  ;;  %5839 = vmatprep.subr.bf16.mxu1 %v8099_v28  ;;  %v8187_v27 = vld [vmem:[%s11411_s1 + $0xf44] ss:$16 sps:$4 sm:$0xff]   ;;  %v8190_v28 = vld [vmem:[%s11411_s1 + $0xf4c] ss:$16 sps:$4 sm:$0xff]  }
 0x1af   :  { %5307 = vmatpush1.bf16.msra.mxu0 %v8094_v29  ;;  %5840 = vmatpush1.bf16.msra.mxu1 %v8097_v14  ;;  %v8185_v29 = vld [vmem:[%s11411_s1 + $0xf40] ss:$16 sps:$4 sm:$0xff]   ;;  %v8188_v14 = vld [vmem:[%s11411_s1 + $0xf48] ss:$16 sps:$4 sm:$0xff]  }
 0x1b0   :  { %5308 = vmatprep.subr.bf16.mxu0 %v8102_v30  ;;  %5841 = vmatprep.subr.bf16.mxu1 %v8105_v31  ;;  %v8193_v30 = vld [vmem:[%s11411_s1 + $0xf64] ss:$16 sps:$4 sm:$0xff]   ;;  %v8196_v31 = vld [vmem:[%s11411_s1 + $0xf6c] ss:$16 sps:$4 sm:$0xff]  }
 0x1b3   :  { %5309 = vmatpush1.bf16.msra.mxu0 %v8100_v25  ;;  %5842 = vmatpush1.bf16.msra.mxu1 %v8103_v32  ;;  %v8191_v25 = vld [vmem:[%s11411_s1 + $0xf60] ss:$16 sps:$4 sm:$0xff]   ;;  %v8194_v32 = vld [vmem:[%s11411_s1 + $0xf68] ss:$16 sps:$4 sm:$0xff]  }
 0x1b4   :  { %5310 = vmatprep.subr.bf16.mxu0 %v8108_v33  ;;  %5843 = vmatprep.subr.bf16.mxu1 %v8111_v26  ;;  %v8199_v33 = vld [vmem:[%s11411_s1 + $0xf84] ss:$16 sps:$4 sm:$0xff]   ;;  %v8202_v26 = vld [vmem:[%s11411_s1 + $0xf8c] ss:$16 sps:$4 sm:$0xff]  }
 0x1b7   :  { %5311 = vmatpush1.bf16.msra.mxu0 %v8106_v36  ;;  %5844 = vmatpush1.bf16.msra.mxu1 %v8109_v37  ;;  %v8197_v36 = vld [vmem:[%s11411_s1 + $0xf80] ss:$16 sps:$4 sm:$0xff]   ;;  %v8200_v37 = vld [vmem:[%s11411_s1 + $0xf88] ss:$16 sps:$4 sm:$0xff]  }
 0x1b8   :  { %5312 = vmatprep.subr.bf16.mxu0 %v8114_v21  ;;  %5845 = vmatprep.subr.bf16.mxu1 %v8117_v39  ;;  %v8205_v21 = vld [vmem:[%s11411_s1 + $0xfa4] ss:$16 sps:$4 sm:$0xff]   ;;  %v8208_v39 = vld [vmem:[%s11411_s1 + $0xfac] ss:$16 sps:$4 sm:$0xff]  }
 0x1bb   :  { %5313 = vmatpush1.bf16.msra.mxu0 %v8112_v40  ;;  %5846 = vmatpush1.bf16.msra.mxu1 %v8115_v41 }
 0x1bc   :  { %5314 = vmatprep.subr.bf16.mxu0 %v8120_v34  ;;  %5847 = vmatprep.subr.bf16.mxu1 %v8123_v43 }
 0x1bf   :  { %5315 = vmatpush1.bf16.msra.mxu0 %v8118_v44  ;;  %5848 = vmatpush1.bf16.msra.mxu1 %v8121_v45 }
 0x1c0   :  { %5325 = vmatprep.subr.bf16.mxu0 %v8127_v46  ;;  %5858 = vmatprep.subr.bf16.mxu1 %v8130_v35 }
 0x1c2   :  { %5317 = vmatmul.mubr.bf16.vlgmr.msra.gmra.mrb[0].mxu0 %v10182_v48  ;;  %5850 = vmatmul.mubr.bf16.vlgmr.msra.gmra.mrb[0].mxu1 %v10182_v48 }
 0x1c3   :  { %5326 = vmatpush1.bf16.msra.mxu0 %v8125_v50  ;;  %5859 = vmatpush1.bf16.msra.mxu1 %v8128_v51 }
 0x1c4   :  { %5327 = vmatprep.subr.bf16.mxu0 %v8133_v53  ;;  %5860 = vmatprep.subr.bf16.mxu1 %v8136_v38 }
 0x1c5   :  { %5357 = vmatprep.mubr.bf16.mxu0 %v949_v54  ;;  %5890 = vmatprep.mubr.bf16.mxu1 %v949_v54 }
 0x1c7   :  { %5328 = vmatpush1.bf16.msra.mxu0 %v8131_v55  ;;  %5861 = vmatpush1.bf16.msra.mxu1 %v8134_v56 }
 0x1c8   :  { %5329 = vmatprep.subr.bf16.mxu0 %v8139_v47  ;;  %5862 = vmatprep.subr.bf16.mxu1 %v8142_v57 }
 0x1cb   :  { %5330 = vmatpush1.bf16.msra.mxu0 %v8137_v58  ;;  %5863 = vmatpush1.bf16.msra.mxu1 %v8140_v59 }
 0x1cc   :  { %5331 = vmatprep.subr.bf16.mxu0 %v8145_v60  ;;  %5864 = vmatprep.subr.bf16.mxu1 %v8148_v61 }
 0x1cf   :  { %5332 = vmatpush1.bf16.msra.mxu0 %v8143_v62  ;;  %5865 = vmatpush1.bf16.msra.mxu1 %v8146_v63 }
 0x1d0   :  { %5333 = vmatprep.subr.bf16.mxu0 %v8151_v0  ;;  %5866 = vmatprep.subr.bf16.mxu1 %v8154_v1 }
 0x1d3   :  { %5334 = vmatpush1.bf16.msra.mxu0 %v8149_v2  ;;  %5867 = vmatpush1.bf16.msra.mxu1 %v8152_v3 }
 0x1d4   :  { %5335 = vmatprep.subr.bf16.mxu0 %v8157_v4  ;;  %5868 = vmatprep.subr.bf16.mxu1 %v8160_v5 }
 0x1d7   :  { %5336 = vmatpush1.bf16.msra.mxu0 %v8155_v6  ;;  %5869 = vmatpush1.bf16.msra.mxu1 %v8158_v7 }
 0x1d8   :  { %5337 = vmatprep.subr.bf16.mxu0 %v8163_v8  ;;  %5870 = vmatprep.subr.bf16.mxu1 %v8166_v9 }
 0x1db   :  { %5338 = vmatpush1.bf16.msra.mxu0 %v8161_v10  ;;  %5871 = vmatpush1.bf16.msra.mxu1 %v8164_v11 }
 0x1dc   :  { %5339 = vmatprep.subr.bf16.mxu0 %v8169_v12  ;;  %5872 = vmatprep.subr.bf16.mxu1 %v8172_v52 }
 0x1df   :  { %5340 = vmatpush1.bf16.msra.mxu0 %v8167_v15  ;;  %5873 = vmatpush1.bf16.msra.mxu1 %v8170_v16 }
 0x1e0   :  { %5341 = vmatprep.subr.bf16.mxu0 %v8175_v17  ;;  %5874 = vmatprep.subr.bf16.mxu1 %v8178_v18 }
 0x1e3   :  { %5342 = vmatpush1.bf16.msra.mxu0 %v8173_v19  ;;  %5875 = vmatpush1.bf16.msra.mxu1 %v8176_v20 }
 0x1e4   :  { %5343 = vmatprep.subr.bf16.mxu0 %v8181_v22  ;;  %5876 = vmatprep.subr.bf16.mxu1 %v8184_v23 }
 0x1e7   :  { %5344 = vmatpush1.bf16.msra.mxu0 %v8179_v24  ;;  %5877 = vmatpush1.bf16.msra.mxu1 %v8182_v13 }
 0x1e8   :  { %5345 = vmatprep.subr.bf16.mxu0 %v8187_v27  ;;  %5878 = vmatprep.subr.bf16.mxu1 %v8190_v28 }
 0x1eb   :  { %5346 = vmatpush1.bf16.msra.mxu0 %v8185_v29  ;;  %5879 = vmatpush1.bf16.msra.mxu1 %v8188_v14 }
 0x1ec   :  { %5347 = vmatprep.subr.bf16.mxu0 %v8193_v30  ;;  %5880 = vmatprep.subr.bf16.mxu1 %v8196_v31 }
 0x1ef   :  { %5348 = vmatpush1.bf16.msra.mxu0 %v8191_v25  ;;  %5881 = vmatpush1.bf16.msra.mxu1 %v8194_v32 }
 0x1f0   :  { %5349 = vmatprep.subr.bf16.mxu0 %v8199_v33  ;;  %5882 = vmatprep.subr.bf16.mxu1 %v8202_v26 }
 0x1f1   :  { %10 = vsyncpa [#allocation3], 0  ;;  %v8203_v40 = vld [vmem:[%s11411_s1 + $0xfa0] ss:$16 sps:$4 sm:$0xff]   ;;  %v8206_v41 = vld [vmem:[%s11411_s1 + $0xfa8] ss:$16 sps:$4 sm:$0xff]   ;;  %v947_v47 = vcombine.high %v10182_v48, %v10182_v48 }
 0x1f2   :  { %v8211_v34 = vld [vmem:[%s11411_s1 + $0xfc4] ss:$16 sps:$4 sm:$0xff]   ;;  %v8214_v43 = vld [vmem:[%s11411_s1 + $0xfcc] ss:$16 sps:$4 sm:$0xff]   ;;  %v8209_v45 = vld [vmem:[%s11411_s1 + $0xfc0] ss:$16 sps:$4 sm:$0xff]  }
 0x1f3   :  { %5350 = vmatpush1.bf16.msra.mxu0 %v8197_v36  ;;  %5883 = vmatpush1.bf16.msra.mxu1 %v8200_v37  ;;  %v10359_v44 = vld [vmem:[%s11410_s0 + $0x10] sm:$0xff]  ;;  %v8212_v46 = vld [vmem:[%s11411_s1 + $0xfc8] ss:$16 sps:$4 sm:$0xff]   ;;  %v8220_v50 = vld [vmem:[%s11411_s1 + $0xfec] ss:$16 sps:$4 sm:$0xff]   ;;  %s8722_s13 = smov [#allocation2]  }
 0x1f4   :  { %5351 = vmatprep.subr.bf16.mxu0 %v8205_v21  ;;  %5884 = vmatprep.subr.bf16.mxu1 %v8208_v39  ;;  %v8217_v35 = vld [vmem:[%s11411_s1 + $0xfe4] ss:$16 sps:$4 sm:$0xff]   ;;  %v10375_v51 = vrot.slane %v10359_v44, %v8888_v49  ;;  %v8215_v53 = vld [vmem:[%s11411_s1 + $0xfe0] ss:$16 sps:$4 sm:$0xff]   ;;  %v8218_v38 = vld [vmem:[%s11411_s1 + $0xfe8] ss:$16 sps:$4 sm:$0xff]  }
 0x1f5   :  { %v8223_v54 = vld [vmem:[%s11411_s1 + $0x1004] ss:$16 sps:$4 sm:$0xff]   ;;  %v8226_v55 = vld [vmem:[%s11411_s1 + $0x100c] ss:$16 sps:$4 sm:$0xff]   ;;  %v8221_v57 = vld [vmem:[%s11411_s1 + $0x1000] ss:$16 sps:$4 sm:$0xff]  }
 0x1f6   :  { %v965_v56 = vcombine.high %v10375_v51, %v10375_v51  ;;  %v8224_v58 = vld [vmem:[%s11411_s1 + $0x1008] ss:$16 sps:$4 sm:$0xff]   ;;  %v8229_v59 = vld [vmem:[%s11411_s1 + $0x1024] ss:$16 sps:$4 sm:$0xff]   ;;  %v8232_v48 = vld [vmem:[%s11411_s1 + $0x102c] ss:$16 sps:$4 sm:$0xff]  }
 0x1f7   :  { %5352 = vmatpush1.bf16.msra.mxu0 %v8203_v40  ;;  %5885 = vmatpush1.bf16.msra.mxu1 %v8206_v41  ;;  %v8227_v61 = vld [vmem:[%s11411_s1 + $0x1020] ss:$16 sps:$4 sm:$0xff]   ;;  %v8230_v62 = vld [vmem:[%s11411_s1 + $0x1028] ss:$16 sps:$4 sm:$0xff]   ;;  %v8235_v63 = vld [vmem:[%s11411_s1 + $0x1044] ss:$16 sps:$4 sm:$0xff]  }
 0x1f8   :  { %5353 = vmatprep.subr.bf16.mxu0 %v8211_v34  ;;  %5886 = vmatprep.subr.bf16.mxu1 %v8214_v43  ;;  %v10406_v60 = vrot.slane %v965_v56, %v8888_v49  ;;  %v8238_v0 = vld [vmem:[%s11411_s1 + $0x104c] ss:$16 sps:$4 sm:$0xff]   ;;  %v8233_v1 = vld [vmem:[%s11411_s1 + $0x1040] ss:$16 sps:$4 sm:$0xff]   ;;  %v8236_v2 = vld [vmem:[%s11411_s1 + $0x1048] ss:$16 sps:$4 sm:$0xff]  }
 0x1f9   :  { %v8241_v3 = vld [vmem:[%s11411_s1 + $0x1064] ss:$16 sps:$4 sm:$0xff]   ;;  %v8244_v4 = vld [vmem:[%s11411_s1 + $0x106c] ss:$16 sps:$4 sm:$0xff]   ;;  %v8239_v5 = vld [vmem:[%s11411_s1 + $0x1060] ss:$16 sps:$4 sm:$0xff]  }
 0x1fa   :  { %v8242_v6 = vld [vmem:[%s11411_s1 + $0x1068] ss:$16 sps:$4 sm:$0xff]   ;;  %v8247_v7 = vld [vmem:[%s11411_s1 + $0x1084] ss:$16 sps:$4 sm:$0xff]   ;;  %v8250_v8 = vld [vmem:[%s11411_s1 + $0x108c] ss:$16 sps:$4 sm:$0xff]  }
 0x1fb   :  { %5354 = vmatpush1.bf16.msra.mxu0 %v8209_v45  ;;  %5887 = vmatpush1.bf16.msra.mxu1 %v8212_v46  ;;  %v8245_v9 = vld [vmem:[%s11411_s1 + $0x1080] ss:$16 sps:$4 sm:$0xff]   ;;  %v8248_v10 = vld [vmem:[%s11411_s1 + $0x1088] ss:$16 sps:$4 sm:$0xff]   ;;  %v8253_v11 = vld [vmem:[%s11411_s1 + $0x10a4] ss:$16 sps:$4 sm:$0xff]  }
 0x1fc   :  { %5355 = vmatprep.subr.bf16.mxu0 %v8217_v35  ;;  %5888 = vmatprep.subr.bf16.mxu1 %v8220_v50  ;;  %v8256_v12 = vld [vmem:[%s11411_s1 + $0x10ac] ss:$16 sps:$4 sm:$0xff]   ;;  %v8251_v52 = vld [vmem:[%s11411_s1 + $0x10a0] ss:$16 sps:$4 sm:$0xff]   ;;  %v8254_v15 = vld [vmem:[%s11411_s1 + $0x10a8] ss:$16 sps:$4 sm:$0xff]  }
 0x1fd   :  { %v8259_v16 = vld [vmem:[%s11411_s1 + $0x10c4] ss:$16 sps:$4 sm:$0xff]   ;;  %v8262_v17 = vld [vmem:[%s11411_s1 + $0x10cc] ss:$16 sps:$4 sm:$0xff]   ;;  %v8257_v18 = vld [vmem:[%s11411_s1 + $0x10c0] ss:$16 sps:$4 sm:$0xff]  }
 0x1fe   :  { %v8260_v19 = vld [vmem:[%s11411_s1 + $0x10c8] ss:$16 sps:$4 sm:$0xff]   ;;  %v8265_v20 = vld [vmem:[%s11411_s1 + $0x10e4] ss:$16 sps:$4 sm:$0xff]   ;;  %v8268_v22 = vld [vmem:[%s11411_s1 + $0x10ec] ss:$16 sps:$4 sm:$0xff]  }
 0x1ff   :  { %5356 = vmatpush1.bf16.msra.mxu0 %v8215_v53  ;;  %5889 = vmatpush1.bf16.msra.mxu1 %v8218_v38  ;;  %v8263_v23 = vld [vmem:[%s11411_s1 + $0x10e0] ss:$16 sps:$4 sm:$0xff]   ;;  %v8266_v24 = vld [vmem:[%s11411_s1 + $0x10e8] ss:$16 sps:$4 sm:$0xff]   ;;  %v8271_v13 = vld [vmem:[%s11411_s1 + $0x1104] ss:$16 sps:$4 sm:$0xff]  }
 0x200   :  { %5366 = vmatprep.subr.bf16.mxu0 %v8223_v54  ;;  %5899 = vmatprep.subr.bf16.mxu1 %v8226_v55  ;;  %v8274_v27 = vld [vmem:[%s11411_s1 + $0x110c] ss:$16 sps:$4 sm:$0xff]   ;;  %v8269_v28 = vld [vmem:[%s11411_s1 + $0x1100] ss:$16 sps:$4 sm:$0xff]   ;;  %v8272_v29 = vld [vmem:[%s11411_s1 + $0x1108] ss:$16 sps:$4 sm:$0xff]  }
 0x201   :  { %v8277_v14 = vld [vmem:[%s11411_s1 + $0x1124] ss:$16 sps:$4 sm:$0xff]   ;;  %v8280_v30 = vld [vmem:[%s11411_s1 + $0x112c] ss:$16 sps:$4 sm:$0xff]   ;;  %v8275_v31 = vld [vmem:[%s11411_s1 + $0x1120] ss:$16 sps:$4 sm:$0xff]  }
 0x202   :  { %5358 = vmatmul.mubr.bf16.vlgmr.msra.gmra.mrb[0].mxu0 %v947_v47  ;;  %5891 = vmatmul.mubr.bf16.vlgmr.msra.gmra.mrb[0].mxu1 %v947_v47  ;;  %v8278_v25 = vld [vmem:[%s11411_s1 + $0x1128] ss:$16 sps:$4 sm:$0xff]   ;;  %v8283_v32 = vld [vmem:[%s11411_s1 + $0x1144] ss:$16 sps:$4 sm:$0xff]   ;;  %v8286_v33 = vld [vmem:[%s11411_s1 + $0x114c] ss:$16 sps:$4 sm:$0xff]  }
 0x203   :  { %5367 = vmatpush1.bf16.msra.mxu0 %v8221_v57  ;;  %5900 = vmatpush1.bf16.msra.mxu1 %v8224_v58  ;;  %v8281_v26 = vld [vmem:[%s11411_s1 + $0x1140] ss:$16 sps:$4 sm:$0xff]   ;;  %v8284_v36 = vld [vmem:[%s11411_s1 + $0x1148] ss:$16 sps:$4 sm:$0xff]   ;;  %v8289_v37 = vld [vmem:[%s11411_s1 + $0x1164] ss:$16 sps:$4 sm:$0xff]  }
 0x204   :  { %5368 = vmatprep.subr.bf16.mxu0 %v8229_v59  ;;  %5901 = vmatprep.subr.bf16.mxu1 %v8232_v48  ;;  %v8292_v21 = vld [vmem:[%s11411_s1 + $0x116c] ss:$16 sps:$4 sm:$0xff]   ;;  %v8287_v39 = vld [vmem:[%s11411_s1 + $0x1160] ss:$16 sps:$4 sm:$0xff]   ;;  %v8290_v40 = vld [vmem:[%s11411_s1 + $0x1168] ss:$16 sps:$4 sm:$0xff]  }
 0x205   :  { %5398 = vmatprep.mubr.bf16.mxu0 %v10406_v60  ;;  %5931 = vmatprep.mubr.bf16.mxu1 %v10406_v60  ;;  %v8295_v41 = vld [vmem:[%s11411_s1 + $0x1184] ss:$16 sps:$4 sm:$0xff]   ;;  %v8298_v34 = vld [vmem:[%s11411_s1 + $0x118c] ss:$16 sps:$4 sm:$0xff]   ;;  %v8293_v43 = vld [vmem:[%s11411_s1 + $0x1180] ss:$16 sps:$4 sm:$0xff]  }
 0x206   :  { %v8296_v45 = vld [vmem:[%s11411_s1 + $0x1188] ss:$16 sps:$4 sm:$0xff]   ;;  %v8301_v46 = vld [vmem:[%s11411_s1 + $0x11a4] ss:$16 sps:$4 sm:$0xff]   ;;  %v8304_v35 = vld [vmem:[%s11411_s1 + $0x11ac] ss:$16 sps:$4 sm:$0xff]  }
 0x207   :  { %5369 = vmatpush1.bf16.msra.mxu0 %v8227_v61  ;;  %5902 = vmatpush1.bf16.msra.mxu1 %v8230_v62  ;;  %v8299_v50 = vld [vmem:[%s11411_s1 + $0x11a0] ss:$16 sps:$4 sm:$0xff]   ;;  %v8302_v53 = vld [vmem:[%s11411_s1 + $0x11a8] ss:$16 sps:$4 sm:$0xff]   ;;  %v8307_v38 = vld [vmem:[%s11411_s1 + $0x11c4] ss:$16 sps:$4 sm:$0xff]   ;;  %v10592_v62 = vrot.slane %v10375_v51, %v8888_v49 }
 0x208   :  { %5370 = vmatprep.subr.bf16.mxu0 %v8235_v63  ;;  %5903 = vmatprep.subr.bf16.mxu1 %v8238_v0  ;;  %v8310_v54 = vld [vmem:[%s11411_s1 + $0x11cc] ss:$16 sps:$4 sm:$0xff]   ;;  %v8305_v55 = vld [vmem:[%s11411_s1 + $0x11c0] ss:$16 sps:$4 sm:$0xff]   ;;  %v8308_v56 = vld [vmem:[%s11411_s1 + $0x11c8] ss:$16 sps:$4 sm:$0xff]  }
 0x209   :  { %v8313_v47 = vld [vmem:[%s11411_s1 + $0x11e4] ss:$16 sps:$4 sm:$0xff]   ;;  %v8316_v57 = vld [vmem:[%s11411_s1 + $0x11ec] ss:$16 sps:$4 sm:$0xff]   ;;  %v8311_v58 = vld [vmem:[%s11411_s1 + $0x11e0] ss:$16 sps:$4 sm:$0xff]  }
 0x20a   :  { %v8314_v59 = vld [vmem:[%s11411_s1 + $0x11e8] ss:$16 sps:$4 sm:$0xff]   ;;  %v8319_v48 = vld [vmem:[%s11411_s1 + $0x1204] ss:$16 sps:$4 sm:$0xff]   ;;  %v8322_v61 = vld [vmem:[%s11411_s1 + $0x120c] ss:$16 sps:$4 sm:$0xff]  }
 0x20b   :  { %5371 = vmatpush1.bf16.msra.mxu0 %v8233_v1  ;;  %5904 = vmatpush1.bf16.msra.mxu1 %v8236_v2  ;;  %v8317_v63 = vld [vmem:[%s11411_s1 + $0x1200] ss:$16 sps:$4 sm:$0xff]   ;;  %v8320_v0 = vld [vmem:[%s11411_s1 + $0x1208] ss:$16 sps:$4 sm:$0xff]   ;;  %v8325_v1 = vld [vmem:[%s11411_s1 + $0x1224] ss:$16 sps:$4 sm:$0xff]   ;;  %v997_v2 = vcombine.high %v10406_v60, %v10406_v60 }
 0x20c   :  { %5372 = vmatprep.subr.bf16.mxu0 %v8241_v3  ;;  %5905 = vmatprep.subr.bf16.mxu1 %v8244_v4  ;;  %v8328_v51 = vld [vmem:[%s11411_s1 + $0x122c] ss:$16 sps:$4 sm:$0xff]   ;;  %v8323_v3 = vld [vmem:[%s11411_s1 + $0x1220] ss:$16 sps:$4 sm:$0xff]   ;;  %v8326_v4 = vld [vmem:[%s11411_s1 + $0x1228] ss:$16 sps:$4 sm:$0xff]  }
 0x20d   :  { %v8331_v60 = vld [vmem:[%s11411_s1 + $0x1244] ss:$16 sps:$4 sm:$0xff]   ;;  %s6462_s14 = sshll.u32 %s8722_s13, 4  ;;  %s6463_s14 = int_to_ptr.vmem [resolvable:$true] %s6462_s14 }
 0x20e   :  { %s8696_s15 = scalar_lea.vmem %s6463_s14, 32  ;;  %p8701_p1 = scmp.lt.s32.totalorder %s6463_s14, %s6463_s14 }
 0x20f   :  { %5373 = vmatpush1.bf16.msra.mxu0 %v8239_v5  ;;  %5906 = vmatpush1.bf16.msra.mxu1 %v8242_v6  ;;  %v8334_v5 = vld [vmem:[%s11411_s1 + $0x124c] ss:$16 sps:$4 sm:$0xff]   ;;  %v8329_v6 = vld [vmem:[%s11411_s1 + $0x1240] ss:$16 sps:$4 sm:$0xff]   ;;  %p8697_p0 = scmp.ne.s32.totalorder %s6463_s14, %s8696_s15  ;;  %p8702_p2 = scmp.lt.s32.totalorder %s8696_s15, %s8696_s15 }
 0x210   :  { %5374 = vmatprep.subr.bf16.mxu0 %v8247_v7  ;;  %5907 = vmatprep.subr.bf16.mxu1 %v8250_v8  ;;  %v8332_v7 = vld [vmem:[%s11411_s1 + $0x1248] ss:$16 sps:$4 sm:$0xff]   ;;  %v8337_v8 = vld [vmem:[%s11411_s1 + $0x1264] ss:$16 sps:$4 sm:$0xff]  }
 0x211   :  { %p8703_p3 = por %p8702_p2, %p8701_p1 }
 0x213   :  { %5375 = vmatpush1.bf16.msra.mxu0 %v8245_v9  ;;  %5908 = vmatpush1.bf16.msra.mxu1 %v8248_v10  ;;  %v8340_v9 = vld [vmem:[%s11411_s1 + $0x126c] ss:$16 sps:$4 sm:$0xff]   ;;  %v8335_v10 = vld [vmem:[%s11411_s1 + $0x1260] ss:$16 sps:$4 sm:$0xff]   ;;  %p8704_p4 = pnand %p8703_p3, %p8697_p0 }
 0x214   :  { %5376 = vmatprep.subr.bf16.mxu0 %v8253_v11  ;;  %5909 = vmatprep.subr.bf16.mxu1 %v8256_v12  ;;  %v8338_v11 = vld [vmem:[%s11411_s1 + $0x1268] ss:$16 sps:$4 sm:$0xff]   ;;  %v8343_v12 = vld [vmem:[%s11411_s1 + $0x1284] ss:$16 sps:$4 sm:$0xff]  }
 0x217   :  { %5377 = vmatpush1.bf16.msra.mxu0 %v8251_v52  ;;  %5910 = vmatpush1.bf16.msra.mxu1 %v8254_v15  ;;  %v8346_v52 = vld [vmem:[%s11411_s1 + $0x128c] ss:$16 sps:$4 sm:$0xff]   ;;  %v8341_v15 = vld [vmem:[%s11411_s1 + $0x1280] ss:$16 sps:$4 sm:$0xff]  }
 0x218   :  { %5378 = vmatprep.subr.bf16.mxu0 %v8259_v16  ;;  %5911 = vmatprep.subr.bf16.mxu1 %v8262_v17  ;;  %v8344_v16 = vld [vmem:[%s11411_s1 + $0x1288] ss:$16 sps:$4 sm:$0xff]   ;;  %v8349_v17 = vld [vmem:[%s11411_s1 + $0x12a4] ss:$16 sps:$4 sm:$0xff]  }
 0x21b   :  { %5379 = vmatpush1.bf16.msra.mxu0 %v8257_v18  ;;  %5912 = vmatpush1.bf16.msra.mxu1 %v8260_v19  ;;  %v8352_v18 = vld [vmem:[%s11411_s1 + $0x12ac] ss:$16 sps:$4 sm:$0xff]   ;;  %v8347_v19 = vld [vmem:[%s11411_s1 + $0x12a0] ss:$16 sps:$4 sm:$0xff]  }
 0x21c   :  { %5380 = vmatprep.subr.bf16.mxu0 %v8265_v20  ;;  %5913 = vmatprep.subr.bf16.mxu1 %v8268_v22  ;;  %v8350_v20 = vld [vmem:[%s11411_s1 + $0x12a8] ss:$16 sps:$4 sm:$0xff]   ;;  %v8355_v22 = vld [vmem:[%s11411_s1 + $0x12c4] ss:$16 sps:$4 sm:$0xff]  }
 0x21f   :  { %5381 = vmatpush1.bf16.msra.mxu0 %v8263_v23  ;;  %5914 = vmatpush1.bf16.msra.mxu1 %v8266_v24  ;;  %v8358_v23 = vld [vmem:[%s11411_s1 + $0x12cc] ss:$16 sps:$4 sm:$0xff]   ;;  %v8353_v24 = vld [vmem:[%s11411_s1 + $0x12c0] ss:$16 sps:$4 sm:$0xff]  }
 0x220   :  { %5382 = vmatprep.subr.bf16.mxu0 %v8271_v13  ;;  %5915 = vmatprep.subr.bf16.mxu1 %v8274_v27  ;;  %v8356_v13 = vld [vmem:[%s11411_s1 + $0x12c8] ss:$16 sps:$4 sm:$0xff]   ;;  %v8361_v27 = vld [vmem:[%s11411_s1 + $0x12e4] ss:$16 sps:$4 sm:$0xff]  }
 0x223   :  { %5383 = vmatpush1.bf16.msra.mxu0 %v8269_v28  ;;  %5916 = vmatpush1.bf16.msra.mxu1 %v8272_v29  ;;  %v8364_v28 = vld [vmem:[%s11411_s1 + $0x12ec] ss:$16 sps:$4 sm:$0xff]   ;;  %v8359_v29 = vld [vmem:[%s11411_s1 + $0x12e0] ss:$16 sps:$4 sm:$0xff]  }
 0x224   :  { %5384 = vmatprep.subr.bf16.mxu0 %v8277_v14  ;;  %5917 = vmatprep.subr.bf16.mxu1 %v8280_v30  ;;  %v8362_v14 = vld [vmem:[%s11411_s1 + $0x12e8] ss:$16 sps:$4 sm:$0xff]   ;;  %v8367_v30 = vld [vmem:[%s11411_s1 + $0x1304] ss:$16 sps:$4 sm:$0xff]  }
 0x227   :  { %5385 = vmatpush1.bf16.msra.mxu0 %v8275_v31  ;;  %5918 = vmatpush1.bf16.msra.mxu1 %v8278_v25  ;;  %v8370_v31 = vld [vmem:[%s11411_s1 + $0x130c] ss:$16 sps:$4 sm:$0xff]   ;;  %v8365_v25 = vld [vmem:[%s11411_s1 + $0x1300] ss:$16 sps:$4 sm:$0xff]  }
 0x228   :  { %5386 = vmatprep.subr.bf16.mxu0 %v8283_v32  ;;  %5919 = vmatprep.subr.bf16.mxu1 %v8286_v33  ;;  %v8368_v32 = vld [vmem:[%s11411_s1 + $0x1308] ss:$16 sps:$4 sm:$0xff]   ;;  %v8373_v33 = vld [vmem:[%s11411_s1 + $0x1324] ss:$16 sps:$4 sm:$0xff]  }
 0x22b   :  { %5387 = vmatpush1.bf16.msra.mxu0 %v8281_v26  ;;  %5920 = vmatpush1.bf16.msra.mxu1 %v8284_v36  ;;  %v8376_v26 = vld [vmem:[%s11411_s1 + $0x132c] ss:$16 sps:$4 sm:$0xff]   ;;  %v8371_v36 = vld [vmem:[%s11411_s1 + $0x1320] ss:$16 sps:$4 sm:$0xff]  }
 0x22c   :  { %5388 = vmatprep.subr.bf16.mxu0 %v8289_v37  ;;  %5921 = vmatprep.subr.bf16.mxu1 %v8292_v21  ;;  %v8374_v37 = vld [vmem:[%s11411_s1 + $0x1328] ss:$16 sps:$4 sm:$0xff]   ;;  %v8379_v21 = vld [vmem:[%s11411_s1 + $0x1344] ss:$16 sps:$4 sm:$0xff]  }
 0x22f   :  { %5389 = vmatpush1.bf16.msra.mxu0 %v8287_v39  ;;  %5922 = vmatpush1.bf16.msra.mxu1 %v8290_v40  ;;  %v8382_v39 = vld [vmem:[%s11411_s1 + $0x134c] ss:$16 sps:$4 sm:$0xff]   ;;  %v8377_v40 = vld [vmem:[%s11411_s1 + $0x1340] ss:$16 sps:$4 sm:$0xff]  }
 0x230   :  { %5390 = vmatprep.subr.bf16.mxu0 %v8295_v41  ;;  %5923 = vmatprep.subr.bf16.mxu1 %v8298_v34  ;;  %v8380_v41 = vld [vmem:[%s11411_s1 + $0x1348] ss:$16 sps:$4 sm:$0xff]   ;;  %v8385_v34 = vld [vmem:[%s11411_s1 + $0x1364] ss:$16 sps:$4 sm:$0xff]  }
 0x233   :  { %5391 = vmatpush1.bf16.msra.mxu0 %v8293_v43  ;;  %5924 = vmatpush1.bf16.msra.mxu1 %v8296_v45  ;;  %v8388_v43 = vld [vmem:[%s11411_s1 + $0x136c] ss:$16 sps:$4 sm:$0xff]   ;;  %v8383_v45 = vld [vmem:[%s11411_s1 + $0x1360] ss:$16 sps:$4 sm:$0xff]  }
 0x234   :  { %5392 = vmatprep.subr.bf16.mxu0 %v8301_v46  ;;  %5925 = vmatprep.subr.bf16.mxu1 %v8304_v35  ;;  %v8386_v46 = vld [vmem:[%s11411_s1 + $0x1368] ss:$16 sps:$4 sm:$0xff]   ;;  %v8391_v35 = vld [vmem:[%s11411_s1 + $0x1384] ss:$16 sps:$4 sm:$0xff]  }
 0x237   :  { %5393 = vmatpush1.bf16.msra.mxu0 %v8299_v50  ;;  %5926 = vmatpush1.bf16.msra.mxu1 %v8302_v53  ;;  %v8394_v50 = vld [vmem:[%s11411_s1 + $0x138c] ss:$16 sps:$4 sm:$0xff]   ;;  %v8389_v53 = vld [vmem:[%s11411_s1 + $0x1380] ss:$16 sps:$4 sm:$0xff]  }
 0x238   :  { %5394 = vmatprep.subr.bf16.mxu0 %v8307_v38  ;;  %5927 = vmatprep.subr.bf16.mxu1 %v8310_v54  ;;  %v8392_v38 = vld [vmem:[%s11411_s1 + $0x1388] ss:$16 sps:$4 sm:$0xff]   ;;  %v8397_v54 = vld [vmem:[%s11411_s1 + $0x13a4] ss:$16 sps:$4 sm:$0xff]  }
 0x23b   :  { %5395 = vmatpush1.bf16.msra.mxu0 %v8305_v55  ;;  %5928 = vmatpush1.bf16.msra.mxu1 %v8308_v56  ;;  %v8400_v55 = vld [vmem:[%s11411_s1 + $0x13ac] ss:$16 sps:$4 sm:$0xff]   ;;  %v8395_v56 = vld [vmem:[%s11411_s1 + $0x13a0] ss:$16 sps:$4 sm:$0xff]  }
 0x23c   :  { %5396 = vmatprep.subr.bf16.mxu0 %v8313_v47  ;;  %5929 = vmatprep.subr.bf16.mxu1 %v8316_v57  ;;  %v8398_v47 = vld [vmem:[%s11411_s1 + $0x13a8] ss:$16 sps:$4 sm:$0xff]   ;;  %v8403_v57 = vld [vmem:[%s11411_s1 + $0x13c4] ss:$16 sps:$4 sm:$0xff]  }
 0x23f   :  { %5397 = vmatpush1.bf16.msra.mxu0 %v8311_v58  ;;  %5930 = vmatpush1.bf16.msra.mxu1 %v8314_v59  ;;  %v8406_v58 = vld [vmem:[%s11411_s1 + $0x13cc] ss:$16 sps:$4 sm:$0xff]   ;;  %v950_v59 = vcombine.high %v10359_v44, %v10359_v44 }
 0x240   :  { %5407 = vmatprep.subr.bf16.mxu0 %v8319_v48  ;;  %5940 = vmatprep.subr.bf16.mxu1 %v8322_v61  ;;  %v8401_v48 = vld [vmem:[%s11411_s1 + $0x13c0] ss:$16 sps:$4 sm:$0xff]   ;;  %v8404_v61 = vld [vmem:[%s11411_s1 + $0x13c8] ss:$16 sps:$4 sm:$0xff]   ;;  %v8412_v44 = vld [vmem:[%s11411_s1 + $0x13ec] ss:$16 sps:$4 sm:$0xff]  }
 0x242   :  { %5399 = vmatmul.mubr.bf16.vlgmr.msra.gmra.mrb[0].mxu0 %v10592_v62  ;;  %5932 = vmatmul.mubr.bf16.vlgmr.msra.gmra.mrb[0].mxu1 %v10592_v62 }
 0x243   :  { %5408 = vmatpush1.bf16.msra.mxu0 %v8317_v63  ;;  %5941 = vmatpush1.bf16.msra.mxu1 %v8320_v0  ;;  %v8409_v63 = vld [vmem:[%s11411_s1 + $0x13e4] ss:$16 sps:$4 sm:$0xff]   ;;  %v10781_v0 = vrot.slane %v950_v59, %v8888_v49  ;;  %v8488_v59 = vld [vmem:[%s11411_s1 + $0x1588] ss:$16 sps:$4 sm:$0xff]  }
 0x244   :  { %5409 = vmatprep.subr.bf16.mxu0 %v8325_v1  ;;  %5942 = vmatprep.subr.bf16.mxu1 %v8328_v51  ;;  %v8407_v1 = vld [vmem:[%s11411_s1 + $0x13e0] ss:$16 sps:$4 sm:$0xff]   ;;  %v8410_v51 = vld [vmem:[%s11411_s1 + $0x13e8] ss:$16 sps:$4 sm:$0xff]  }
 0x245   :  { %5439 = vmatprep.mubr.bf16.mxu0 %v997_v2  ;;  %5972 = vmatprep.mubr.bf16.mxu1 %v997_v2  ;;  %v8415_v2 = vld [vmem:[%s11411_s1 + $0x1404] ss:$16 sps:$4 sm:$0xff]  }
 0x247   :  { %5410 = vmatpush1.bf16.msra.mxu0 %v8323_v3  ;;  %5943 = vmatpush1.bf16.msra.mxu1 %v8326_v4  ;;  %v8418_v3 = vld [vmem:[%s11411_s1 + $0x140c] ss:$16 sps:$4 sm:$0xff]   ;;  %v966_v4 = vcombine.high %v10781_v0, %v10781_v0 }
 0x248   :  { %5411 = vmatprep.subr.bf16.mxu0 %v8331_v60  ;;  %5944 = vmatprep.subr.bf16.mxu1 %v8334_v5  ;;  %v995_v60 = vcombine.high %v10592_v62, %v10592_v62  ;;  %v8413_v5 = vld [vmem:[%s11411_s1 + $0x1400] ss:$16 sps:$4 sm:$0xff]   ;;  %v8424_v62 = vld [vmem:[%s11411_s1 + $0x142c] ss:$16 sps:$4 sm:$0xff]  }
 0x24b   :  { %5412 = vmatpush1.bf16.msra.mxu0 %v8329_v6  ;;  %5945 = vmatpush1.bf16.msra.mxu1 %v8332_v7  ;;  %v8416_v6 = vld [vmem:[%s11411_s1 + $0x1408] ss:$16 sps:$4 sm:$0xff]   ;;  %v8421_v7 = vld [vmem:[%s11411_s1 + $0x1424] ss:$16 sps:$4 sm:$0xff]  }
 0x24c   :  { %5413 = vmatprep.subr.bf16.mxu0 %v8337_v8  ;;  %5946 = vmatprep.subr.bf16.mxu1 %v8340_v9  ;;  %v10812_v8 = vrot.slane %v966_v4, %v8888_v49  ;;  %v8419_v9 = vld [vmem:[%s11411_s1 + $0x1420] ss:$16 sps:$4 sm:$0xff]   ;;  %v8505_v4 = vld [vmem:[%s11411_s1 + $0x15e4] ss:$16 sps:$4 sm:$0xff]  }
 0x24f   :  { %5414 = vmatpush1.bf16.msra.mxu0 %v8335_v10  ;;  %5947 = vmatpush1.bf16.msra.mxu1 %v8338_v11  ;;  %v8422_v10 = vld [vmem:[%s11411_s1 + $0x1428] ss:$16 sps:$4 sm:$0xff]   ;;  %v8427_v11 = vld [vmem:[%s11411_s1 + $0x1444] ss:$16 sps:$4 sm:$0xff]  }
 0x250   :  { %5415 = vmatprep.subr.bf16.mxu0 %v8343_v12  ;;  %5948 = vmatprep.subr.bf16.mxu1 %v8346_v52  ;;  %v8430_v12 = vld [vmem:[%s11411_s1 + $0x144c] ss:$16 sps:$4 sm:$0xff]   ;;  %v8425_v52 = vld [vmem:[%s11411_s1 + $0x1440] ss:$16 sps:$4 sm:$0xff]  }
 0x253   :  { %5416 = vmatpush1.bf16.msra.mxu0 %v8341_v15  ;;  %5949 = vmatpush1.bf16.msra.mxu1 %v8344_v16  ;;  %v8428_v15 = vld [vmem:[%s11411_s1 + $0x1448] ss:$16 sps:$4 sm:$0xff]   ;;  %v8433_v16 = vld [vmem:[%s11411_s1 + $0x1464] ss:$16 sps:$4 sm:$0xff]  }
 0x254   :  { %5417 = vmatprep.subr.bf16.mxu0 %v8349_v17  ;;  %5950 = vmatprep.subr.bf16.mxu1 %v8352_v18  ;;  %v8436_v17 = vld [vmem:[%s11411_s1 + $0x146c] ss:$16 sps:$4 sm:$0xff]   ;;  %v8431_v18 = vld [vmem:[%s11411_s1 + $0x1460] ss:$16 sps:$4 sm:$0xff]  }
 0x257   :  { %5418 = vmatpush1.bf16.msra.mxu0 %v8347_v19  ;;  %5951 = vmatpush1.bf16.msra.mxu1 %v8350_v20  ;;  %v8434_v19 = vld [vmem:[%s11411_s1 + $0x1468] ss:$16 sps:$4 sm:$0xff]   ;;  %v8439_v20 = vld [vmem:[%s11411_s1 + $0x1484] ss:$16 sps:$4 sm:$0xff]  }
 0x258   :  { %5419 = vmatprep.subr.bf16.mxu0 %v8355_v22  ;;  %5952 = vmatprep.subr.bf16.mxu1 %v8358_v23  ;;  %v8442_v22 = vld [vmem:[%s11411_s1 + $0x148c] ss:$16 sps:$4 sm:$0xff]   ;;  %v8437_v23 = vld [vmem:[%s11411_s1 + $0x1480] ss:$16 sps:$4 sm:$0xff]  }
 0x25b   :  { %5420 = vmatpush1.bf16.msra.mxu0 %v8353_v24  ;;  %5953 = vmatpush1.bf16.msra.mxu1 %v8356_v13  ;;  %v8440_v24 = vld [vmem:[%s11411_s1 + $0x1488] ss:$16 sps:$4 sm:$0xff]   ;;  %v8445_v13 = vld [vmem:[%s11411_s1 + $0x14a4] ss:$16 sps:$4 sm:$0xff]  }
 0x25c   :  { %5421 = vmatprep.subr.bf16.mxu0 %v8361_v27  ;;  %5954 = vmatprep.subr.bf16.mxu1 %v8364_v28  ;;  %v8448_v27 = vld [vmem:[%s11411_s1 + $0x14ac] ss:$16 sps:$4 sm:$0xff]   ;;  %v8443_v28 = vld [vmem:[%s11411_s1 + $0x14a0] ss:$16 sps:$4 sm:$0xff]  }
 0x25f   :  { %5422 = vmatpush1.bf16.msra.mxu0 %v8359_v29  ;;  %5955 = vmatpush1.bf16.msra.mxu1 %v8362_v14  ;;  %v8446_v29 = vld [vmem:[%s11411_s1 + $0x14a8] ss:$16 sps:$4 sm:$0xff]   ;;  %v8451_v14 = vld [vmem:[%s11411_s1 + $0x14c4] ss:$16 sps:$4 sm:$0xff]  }
 0x260   :  { %5423 = vmatprep.subr.bf16.mxu0 %v8367_v30  ;;  %5956 = vmatprep.subr.bf16.mxu1 %v8370_v31  ;;  %v8454_v30 = vld [vmem:[%s11411_s1 + $0x14cc] ss:$16 sps:$4 sm:$0xff]   ;;  %v8449_v31 = vld [vmem:[%s11411_s1 + $0x14c0] ss:$16 sps:$4 sm:$0xff]  }
 0x263   :  { %5424 = vmatpush1.bf16.msra.mxu0 %v8365_v25  ;;  %5957 = vmatpush1.bf16.msra.mxu1 %v8368_v32  ;;  %v8452_v25 = vld [vmem:[%s11411_s1 + $0x14c8] ss:$16 sps:$4 sm:$0xff]   ;;  %v8457_v32 = vld [vmem:[%s11411_s1 + $0x14e4] ss:$16 sps:$4 sm:$0xff]  }
 0x264   :  { %5425 = vmatprep.subr.bf16.mxu0 %v8373_v33  ;;  %5958 = vmatprep.subr.bf16.mxu1 %v8376_v26  ;;  %v8460_v33 = vld [vmem:[%s11411_s1 + $0x14ec] ss:$16 sps:$4 sm:$0xff]   ;;  %v8455_v26 = vld [vmem:[%s11411_s1 + $0x14e0] ss:$16 sps:$4 sm:$0xff]  }
 0x267   :  { %5426 = vmatpush1.bf16.msra.mxu0 %v8371_v36  ;;  %5959 = vmatpush1.bf16.msra.mxu1 %v8374_v37  ;;  %v8458_v36 = vld [vmem:[%s11411_s1 + $0x14e8] ss:$16 sps:$4 sm:$0xff]   ;;  %v8463_v37 = vld [vmem:[%s11411_s1 + $0x1504] ss:$16 sps:$4 sm:$0xff]  }
 0x268   :  { %5427 = vmatprep.subr.bf16.mxu0 %v8379_v21  ;;  %5960 = vmatprep.subr.bf16.mxu1 %v8382_v39  ;;  %v8466_v21 = vld [vmem:[%s11411_s1 + $0x150c] ss:$16 sps:$4 sm:$0xff]   ;;  %v8461_v39 = vld [vmem:[%s11411_s1 + $0x1500] ss:$16 sps:$4 sm:$0xff]  }
 0x26b   :  { %5428 = vmatpush1.bf16.msra.mxu0 %v8377_v40  ;;  %5961 = vmatpush1.bf16.msra.mxu1 %v8380_v41  ;;  %v8464_v40 = vld [vmem:[%s11411_s1 + $0x1508] ss:$16 sps:$4 sm:$0xff]   ;;  %v8469_v41 = vld [vmem:[%s11411_s1 + $0x1524] ss:$16 sps:$4 sm:$0xff]  }
 0x26c   :  { %5429 = vmatprep.subr.bf16.mxu0 %v8385_v34  ;;  %5962 = vmatprep.subr.bf16.mxu1 %v8388_v43  ;;  %v8472_v34 = vld [vmem:[%s11411_s1 + $0x152c] ss:$16 sps:$4 sm:$0xff]   ;;  %v8467_v43 = vld [vmem:[%s11411_s1 + $0x1520] ss:$16 sps:$4 sm:$0xff]  }
 0x26f   :  { %5430 = vmatpush1.bf16.msra.mxu0 %v8383_v45  ;;  %5963 = vmatpush1.bf16.msra.mxu1 %v8386_v46  ;;  %v8470_v45 = vld [vmem:[%s11411_s1 + $0x1528] ss:$16 sps:$4 sm:$0xff]   ;;  %v8475_v46 = vld [vmem:[%s11411_s1 + $0x1544] ss:$16 sps:$4 sm:$0xff]  }
 0x270   :  { %5431 = vmatprep.subr.bf16.mxu0 %v8391_v35  ;;  %5964 = vmatprep.subr.bf16.mxu1 %v8394_v50  ;;  %v8478_v35 = vld [vmem:[%s11411_s1 + $0x154c] ss:$16 sps:$4 sm:$0xff]   ;;  %v8473_v50 = vld [vmem:[%s11411_s1 + $0x1540] ss:$16 sps:$4 sm:$0xff]  }
 0x273   :  { %5432 = vmatpush1.bf16.msra.mxu0 %v8389_v53  ;;  %5965 = vmatpush1.bf16.msra.mxu1 %v8392_v38  ;;  %v8476_v53 = vld [vmem:[%s11411_s1 + $0x1548] ss:$16 sps:$4 sm:$0xff]   ;;  %v8481_v38 = vld [vmem:[%s11411_s1 + $0x1564] ss:$16 sps:$4 sm:$0xff]  }
 0x274   :  { %5433 = vmatprep.subr.bf16.mxu0 %v8397_v54  ;;  %5966 = vmatprep.subr.bf16.mxu1 %v8400_v55  ;;  %v8484_v54 = vld [vmem:[%s11411_s1 + $0x156c] ss:$16 sps:$4 sm:$0xff]   ;;  %v8479_v55 = vld [vmem:[%s11411_s1 + $0x1560] ss:$16 sps:$4 sm:$0xff]  }
 0x277   :  { %5434 = vmatpush1.bf16.msra.mxu0 %v8395_v56  ;;  %5967 = vmatpush1.bf16.msra.mxu1 %v8398_v47  ;;  %v8482_v56 = vld [vmem:[%s11411_s1 + $0x1568] ss:$16 sps:$4 sm:$0xff]   ;;  %v8487_v47 = vld [vmem:[%s11411_s1 + $0x1584] ss:$16 sps:$4 sm:$0xff]  }
 0x278   :  { %5435 = vmatprep.subr.bf16.mxu0 %v8403_v57  ;;  %5968 = vmatprep.subr.bf16.mxu1 %v8406_v58  ;;  %v8490_v57 = vld [vmem:[%s11411_s1 + $0x158c] ss:$16 sps:$4 sm:$0xff]   ;;  %v8485_v58 = vld [vmem:[%s11411_s1 + $0x1580] ss:$16 sps:$4 sm:$0xff]  }
 0x27b   :  { %5436 = vmatpush1.bf16.msra.mxu0 %v8401_v48  ;;  %5969 = vmatpush1.bf16.msra.mxu1 %v8404_v61  ;;  %v8493_v48 = vld [vmem:[%s11411_s1 + $0x15a4] ss:$16 sps:$4 sm:$0xff]   ;;  %v8496_v61 = vld [vmem:[%s11411_s1 + $0x15ac] ss:$16 sps:$4 sm:$0xff]  }
 0x27c   :  { %5437 = vmatprep.subr.bf16.mxu0 %v8409_v63  ;;  %5970 = vmatprep.subr.bf16.mxu1 %v8412_v44  ;;  %v8491_v63 = vld [vmem:[%s11411_s1 + $0x15a0] ss:$16 sps:$4 sm:$0xff]   ;;  %v8494_v44 = vld [vmem:[%s11411_s1 + $0x15a8] ss:$16 sps:$4 sm:$0xff]  }
 0x27f   :  { %5438 = vmatpush1.bf16.msra.mxu0 %v8407_v1  ;;  %5971 = vmatpush1.bf16.msra.mxu1 %v8410_v51  ;;  %v8499_v1 = vld [vmem:[%s11411_s1 + $0x15c4] ss:$16 sps:$4 sm:$0xff]   ;;  %v8502_v51 = vld [vmem:[%s11411_s1 + $0x15cc] ss:$16 sps:$4 sm:$0xff]  }
 0x280   :  { %5448 = vmatprep.subr.bf16.mxu0 %v8415_v2  ;;  %5981 = vmatprep.subr.bf16.mxu1 %v8418_v3  ;;  %v8497_v2 = vld [vmem:[%s11411_s1 + $0x15c0] ss:$16 sps:$4 sm:$0xff]   ;;  %v8500_v3 = vld [vmem:[%s11411_s1 + $0x15c8] ss:$16 sps:$4 sm:$0xff]  }
 0x282   :  { %5440 = vmatmul.mubr.bf16.vlgmr.msra.gmra.mrb[0].mxu0 %v995_v60  ;;  %5973 = vmatmul.mubr.bf16.vlgmr.msra.gmra.mrb[0].mxu1 %v995_v60  ;;  %v8508_v60 = vld [vmem:[%s11411_s1 + $0x15ec] ss:$16 sps:$4 sm:$0xff]  }
 0x283   :  { %5449 = vmatpush1.bf16.msra.mxu0 %v8413_v5  ;;  %5982 = vmatpush1.bf16.msra.mxu1 %v8416_v6  ;;  %v8503_v5 = vld [vmem:[%s11411_s1 + $0x15e0] ss:$16 sps:$4 sm:$0xff]   ;;  %v8506_v6 = vld [vmem:[%s11411_s1 + $0x15e8] ss:$16 sps:$4 sm:$0xff]  }
 0x284   :  { %5450 = vmatprep.subr.bf16.mxu0 %v8421_v7  ;;  %5983 = vmatprep.subr.bf16.mxu1 %v8424_v62  ;;  %v8512_v7 = vld [vmem:[%s11411_s1 + $0x1604] ss:$16 sps:$4 sm:$0xff]   ;;  %v8515_v62 = vld [vmem:[%s11411_s1 + $0x160c] ss:$16 sps:$4 sm:$0xff]  }
 0x285   :  { %5480 = vmatprep.mubr.bf16.mxu0 %v10812_v8  ;;  %6013 = vmatprep.mubr.bf16.mxu1 %v10812_v8 }
 0x287   :  { %5451 = vmatpush1.bf16.msra.mxu0 %v8419_v9  ;;  %5984 = vmatpush1.bf16.msra.mxu1 %v8422_v10  ;;  %v10998_v9 = vrot.slane %v10781_v0, %v8888_v49  ;;  %v8510_v10 = vld [vmem:[%s11411_s1 + $0x1600] ss:$16 sps:$4 sm:$0xff]   ;;  %v8521_v0 = vld [vmem:[%s11411_s1 + $0x162c] ss:$16 sps:$4 sm:$0xff]  }
 0x288   :  { %5452 = vmatprep.subr.bf16.mxu0 %v8427_v11  ;;  %5985 = vmatprep.subr.bf16.mxu1 %v8430_v12  ;;  %v8513_v11 = vld [vmem:[%s11411_s1 + $0x1608] ss:$16 sps:$4 sm:$0xff]   ;;  %v8518_v12 = vld [vmem:[%s11411_s1 + $0x1624] ss:$16 sps:$4 sm:$0xff]  }
 0x28b   :  { %5453 = vmatpush1.bf16.msra.mxu0 %v8425_v52  ;;  %5986 = vmatpush1.bf16.msra.mxu1 %v8428_v15  ;;  %v998_v52 = vcombine.high %v10812_v8, %v10812_v8  ;;  %v8516_v15 = vld [vmem:[%s11411_s1 + $0x1620] ss:$16 sps:$4 sm:$0xff]   ;;  %v8524_v8 = vld [vmem:[%s11411_s1 + $0x1644] ss:$16 sps:$4 sm:$0xff]  }
 0x28c   :  { %5454 = vmatprep.subr.bf16.mxu0 %v8433_v16  ;;  %5987 = vmatprep.subr.bf16.mxu1 %v8436_v17  ;;  %v8519_v16 = vld [vmem:[%s11411_s1 + $0x1628] ss:$16 sps:$4 sm:$0xff]   ;;  %v8527_v17 = vld [vmem:[%s11411_s1 + $0x164c] ss:$16 sps:$4 sm:$0xff]  }
 0x28f   :  { %5455 = vmatpush1.bf16.msra.mxu0 %v8431_v18  ;;  %5988 = vmatpush1.bf16.msra.mxu1 %v8434_v19  ;;  %v8522_v18 = vld [vmem:[%s11411_s1 + $0x1640] ss:$16 sps:$4 sm:$0xff]   ;;  %v8525_v19 = vld [vmem:[%s11411_s1 + $0x1648] ss:$16 sps:$4 sm:$0xff]  }
 0x290   :  { %5456 = vmatprep.subr.bf16.mxu0 %v8439_v20  ;;  %5989 = vmatprep.subr.bf16.mxu1 %v8442_v22  ;;  %v8530_v20 = vld [vmem:[%s11411_s1 + $0x1664] ss:$16 sps:$4 sm:$0xff]   ;;  %v8533_v22 = vld [vmem:[%s11411_s1 + $0x166c] ss:$16 sps:$4 sm:$0xff]  }
 0x293   :  { %5457 = vmatpush1.bf16.msra.mxu0 %v8437_v23  ;;  %5990 = vmatpush1.bf16.msra.mxu1 %v8440_v24  ;;  %v8528_v23 = vld [vmem:[%s11411_s1 + $0x1660] ss:$16 sps:$4 sm:$0xff]   ;;  %v8531_v24 = vld [vmem:[%s11411_s1 + $0x1668] ss:$16 sps:$4 sm:$0xff]  }
 0x294   :  { %5458 = vmatprep.subr.bf16.mxu0 %v8445_v13  ;;  %5991 = vmatprep.subr.bf16.mxu1 %v8448_v27  ;;  %v8536_v13 = vld [vmem:[%s11411_s1 + $0x1684] ss:$16 sps:$4 sm:$0xff]   ;;  %v8539_v27 = vld [vmem:[%s11411_s1 + $0x168c] ss:$16 sps:$4 sm:$0xff]  }
 0x297   :  { %5459 = vmatpush1.bf16.msra.mxu0 %v8443_v28  ;;  %5992 = vmatpush1.bf16.msra.mxu1 %v8446_v29  ;;  %v8534_v28 = vld [vmem:[%s11411_s1 + $0x1680] ss:$16 sps:$4 sm:$0xff]   ;;  %v8537_v29 = vld [vmem:[%s11411_s1 + $0x1688] ss:$16 sps:$4 sm:$0xff]  }
 0x298   :  { %5460 = vmatprep.subr.bf16.mxu0 %v8451_v14  ;;  %5993 = vmatprep.subr.bf16.mxu1 %v8454_v30  ;;  %v8542_v14 = vld [vmem:[%s11411_s1 + $0x16a4] ss:$16 sps:$4 sm:$0xff]   ;;  %v8545_v30 = vld [vmem:[%s11411_s1 + $0x16ac] ss:$16 sps:$4 sm:$0xff]  }
 0x29b   :  { %5461 = vmatpush1.bf16.msra.mxu0 %v8449_v31  ;;  %5994 = vmatpush1.bf16.msra.mxu1 %v8452_v25  ;;  %v8540_v31 = vld [vmem:[%s11411_s1 + $0x16a0] ss:$16 sps:$4 sm:$0xff]   ;;  %v8543_v25 = vld [vmem:[%s11411_s1 + $0x16a8] ss:$16 sps:$4 sm:$0xff]  }
 0x29c   :  { %5462 = vmatprep.subr.bf16.mxu0 %v8457_v32  ;;  %5995 = vmatprep.subr.bf16.mxu1 %v8460_v33  ;;  %v8548_v32 = vld [vmem:[%s11411_s1 + $0x16c4] ss:$16 sps:$4 sm:$0xff]   ;;  %v8551_v33 = vld [vmem:[%s11411_s1 + $0x16cc] ss:$16 sps:$4 sm:$0xff]  }
 0x29f   :  { %5463 = vmatpush1.bf16.msra.mxu0 %v8455_v26  ;;  %5996 = vmatpush1.bf16.msra.mxu1 %v8458_v36  ;;  %v8546_v26 = vld [vmem:[%s11411_s1 + $0x16c0] ss:$16 sps:$4 sm:$0xff]   ;;  %v8549_v36 = vld [vmem:[%s11411_s1 + $0x16c8] ss:$16 sps:$4 sm:$0xff]  }
 0x2a0   :  { %5464 = vmatprep.subr.bf16.mxu0 %v8463_v37  ;;  %5997 = vmatprep.subr.bf16.mxu1 %v8466_v21  ;;  %v8554_v37 = vld [vmem:[%s11411_s1 + $0x16e4] ss:$16 sps:$4 sm:$0xff]   ;;  %v8557_v21 = vld [vmem:[%s11411_s1 + $0x16ec] ss:$16 sps:$4 sm:$0xff]  }
 0x2a3   :  { %5465 = vmatpush1.bf16.msra.mxu0 %v8461_v39  ;;  %5998 = vmatpush1.bf16.msra.mxu1 %v8464_v40  ;;  %v8552_v39 = vld [vmem:[%s11411_s1 + $0x16e0] ss:$16 sps:$4 sm:$0xff]   ;;  %v8555_v40 = vld [vmem:[%s11411_s1 + $0x16e8] ss:$16 sps:$4 sm:$0xff]  }
 0x2a4   :  { %5466 = vmatprep.subr.bf16.mxu0 %v8469_v41  ;;  %5999 = vmatprep.subr.bf16.mxu1 %v8472_v34  ;;  %v8560_v41 = vld [vmem:[%s11411_s1 + $0x1704] ss:$16 sps:$4 sm:$0xff]   ;;  %v8563_v34 = vld [vmem:[%s11411_s1 + $0x170c] ss:$16 sps:$4 sm:$0xff]  }
 0x2a7   :  { %5467 = vmatpush1.bf16.msra.mxu0 %v8467_v43  ;;  %6000 = vmatpush1.bf16.msra.mxu1 %v8470_v45  ;;  %v8558_v43 = vld [vmem:[%s11411_s1 + $0x1700] ss:$16 sps:$4 sm:$0xff]   ;;  %v8561_v45 = vld [vmem:[%s11411_s1 + $0x1708] ss:$16 sps:$4 sm:$0xff]  }
 0x2a8   :  { %5468 = vmatprep.subr.bf16.mxu0 %v8475_v46  ;;  %6001 = vmatprep.subr.bf16.mxu1 %v8478_v35  ;;  %v8566_v46 = vld [vmem:[%s11411_s1 + $0x1724] ss:$16 sps:$4 sm:$0xff]   ;;  %v8569_v35 = vld [vmem:[%s11411_s1 + $0x172c] ss:$16 sps:$4 sm:$0xff]  }
 0x2ab   :  { %5469 = vmatpush1.bf16.msra.mxu0 %v8473_v50  ;;  %6002 = vmatpush1.bf16.msra.mxu1 %v8476_v53  ;;  %v8564_v50 = vld [vmem:[%s11411_s1 + $0x1720] ss:$16 sps:$4 sm:$0xff]   ;;  %v8567_v53 = vld [vmem:[%s11411_s1 + $0x1728] ss:$16 sps:$4 sm:$0xff]  }
 0x2ac   :  { %5470 = vmatprep.subr.bf16.mxu0 %v8481_v38  ;;  %6003 = vmatprep.subr.bf16.mxu1 %v8484_v54  ;;  %v8572_v38 = vld [vmem:[%s11411_s1 + $0x1744] ss:$16 sps:$4 sm:$0xff]   ;;  %v8575_v54 = vld [vmem:[%s11411_s1 + $0x174c] ss:$16 sps:$4 sm:$0xff]  }
 0x2af   :  { %5471 = vmatpush1.bf16.msra.mxu0 %v8479_v55  ;;  %6004 = vmatpush1.bf16.msra.mxu1 %v8482_v56  ;;  %v8570_v55 = vld [vmem:[%s11411_s1 + $0x1740] ss:$16 sps:$4 sm:$0xff]   ;;  %v8573_v56 = vld [vmem:[%s11411_s1 + $0x1748] ss:$16 sps:$4 sm:$0xff]  }
 0x2b0   :  { %5472 = vmatprep.subr.bf16.mxu0 %v8487_v47  ;;  %6005 = vmatprep.subr.bf16.mxu1 %v8490_v57  ;;  %v8578_v47 = vld [vmem:[%s11411_s1 + $0x1764] ss:$16 sps:$4 sm:$0xff]   ;;  %v8581_v57 = vld [vmem:[%s11411_s1 + $0x176c] ss:$16 sps:$4 sm:$0xff]  }
 0x2b3   :  { %5473 = vmatpush1.bf16.msra.mxu0 %v8485_v58  ;;  %6006 = vmatpush1.bf16.msra.mxu1 %v8488_v59  ;;  %v8576_v58 = vld [vmem:[%s11411_s1 + $0x1760] ss:$16 sps:$4 sm:$0xff]   ;;  %v8579_v59 = vld [vmem:[%s11411_s1 + $0x1768] ss:$16 sps:$4 sm:$0xff]  }
 0x2b4   :  { %5474 = vmatprep.subr.bf16.mxu0 %v8493_v48  ;;  %6007 = vmatprep.subr.bf16.mxu1 %v8496_v61  ;;  %v8584_v48 = vld [vmem:[%s11411_s1 + $0x1784] ss:$16 sps:$4 sm:$0xff]   ;;  %v8587_v61 = vld [vmem:[%s11411_s1 + $0x178c] ss:$16 sps:$4 sm:$0xff]  }
 0x2b7   :  { %5475 = vmatpush1.bf16.msra.mxu0 %v8491_v63  ;;  %6008 = vmatpush1.bf16.msra.mxu1 %v8494_v44  ;;  %v8582_v63 = vld [vmem:[%s11411_s1 + $0x1780] ss:$16 sps:$4 sm:$0xff]   ;;  %v8585_v44 = vld [vmem:[%s11411_s1 + $0x1788] ss:$16 sps:$4 sm:$0xff]  }
 0x2b8   :  { %5476 = vmatprep.subr.bf16.mxu0 %v8499_v1  ;;  %6009 = vmatprep.subr.bf16.mxu1 %v8502_v51  ;;  %v8590_v1 = vld [vmem:[%s11411_s1 + $0x17a4] ss:$16 sps:$4 sm:$0xff]   ;;  %v8593_v51 = vld [vmem:[%s11411_s1 + $0x17ac] ss:$16 sps:$4 sm:$0xff]  }
 0x2bb   :  { %5477 = vmatpush1.bf16.msra.mxu0 %v8497_v2  ;;  %6010 = vmatpush1.bf16.msra.mxu1 %v8500_v3  ;;  %v8588_v2 = vld [vmem:[%s11411_s1 + $0x17a0] ss:$16 sps:$4 sm:$0xff]   ;;  %v8591_v3 = vld [vmem:[%s11411_s1 + $0x17a8] ss:$16 sps:$4 sm:$0xff]  }
 0x2bc   :  { %5478 = vmatprep.subr.bf16.mxu0 %v8505_v4  ;;  %6011 = vmatprep.subr.bf16.mxu1 %v8508_v60  ;;  %v8596_v4 = vld [vmem:[%s11411_s1 + $0x17c4] ss:$16 sps:$4 sm:$0xff]   ;;  %v8599_v60 = vld [vmem:[%s11411_s1 + $0x17cc] ss:$16 sps:$4 sm:$0xff]  }
 0x2bf   :  { %5479 = vmatpush1.bf16.msra.mxu0 %v8503_v5  ;;  %6012 = vmatpush1.bf16.msra.mxu1 %v8506_v6  ;;  %v8594_v5 = vld [vmem:[%s11411_s1 + $0x17c0] ss:$16 sps:$4 sm:$0xff]   ;;  %v8597_v6 = vld [vmem:[%s11411_s1 + $0x17c8] ss:$16 sps:$4 sm:$0xff]  }
 0x2c0   :  { %5489 = vmatprep.subr.bf16.mxu0 %v8512_v7  ;;  %6022 = vmatprep.subr.bf16.mxu1 %v8515_v62  ;;  %v8602_v7 = vld [vmem:[%s11411_s1 + $0x17e4] ss:$16 sps:$4 sm:$0xff]   ;;  %v8605_v62 = vld [vmem:[%s11411_s1 + $0x17ec] ss:$16 sps:$4 sm:$0xff]  }
 0x2c2   :  { %5481 = vmatmul.mubr.bf16.vlgmr.msra.gmra.mrb[0].mxu0 %v10998_v9  ;;  %6014 = vmatmul.mubr.bf16.vlgmr.msra.gmra.mrb[0].mxu1 %v10998_v9 }
 0x2c3   :  { %5490 = vmatpush1.bf16.msra.mxu0 %v8510_v10  ;;  %6023 = vmatpush1.bf16.msra.mxu1 %v8513_v11  ;;  %v8600_v10 = vld [vmem:[%s11411_s1 + $0x17e0] ss:$16 sps:$4 sm:$0xff]   ;;  %v8603_v11 = vld [vmem:[%s11411_s1 + $0x17e8] ss:$16 sps:$4 sm:$0xff]  }
 0x2c4   :  { %5491 = vmatprep.subr.bf16.mxu0 %v8518_v12  ;;  %6024 = vmatprep.subr.bf16.mxu1 %v8521_v0  ;;  %v8608_v12 = vld [vmem:[%s11411_s1 + $0x1804] ss:$16 sps:$4 sm:$0xff]   ;;  %v8611_v0 = vld [vmem:[%s11411_s1 + $0x180c] ss:$16 sps:$4 sm:$0xff]  }
 0x2c5   :  { %5521 = vmatprep.mubr.bf16.mxu0 %v998_v52  ;;  %6054 = vmatprep.mubr.bf16.mxu1 %v998_v52  ;;  %v996_v52 = vcombine.high %v10998_v9, %v10998_v9  ;;  %v8617_v9 = vld [vmem:[%s11411_s1 + $0x182c] ss:$16 sps:$4 sm:$0xff]  }
 0x2c7   :  { %5492 = vmatpush1.bf16.msra.mxu0 %v8516_v15  ;;  %6025 = vmatpush1.bf16.msra.mxu1 %v8519_v16  ;;  %v8606_v15 = vld [vmem:[%s11411_s1 + $0x1800] ss:$16 sps:$4 sm:$0xff]   ;;  %v8609_v16 = vld [vmem:[%s11411_s1 + $0x1808] ss:$16 sps:$4 sm:$0xff]  }
 0x2c8   :  { %5493 = vmatprep.subr.bf16.mxu0 %v8524_v8  ;;  %6026 = vmatprep.subr.bf16.mxu1 %v8527_v17  ;;  %v8614_v8 = vld [vmem:[%s11411_s1 + $0x1824] ss:$16 sps:$4 sm:$0xff]   ;;  %v8612_v17 = vld [vmem:[%s11411_s1 + $0x1820] ss:$16 sps:$4 sm:$0xff]  }
 0x2cb   :  { %5494 = vmatpush1.bf16.msra.mxu0 %v8522_v18  ;;  %6027 = vmatpush1.bf16.msra.mxu1 %v8525_v19  ;;  %v8615_v18 = vld [vmem:[%s11411_s1 + $0x1828] ss:$16 sps:$4 sm:$0xff]   ;;  %v8620_v19 = vld [vmem:[%s11411_s1 + $0x1844] ss:$16 sps:$4 sm:$0xff]  }
 0x2cc   :  { %5495 = vmatprep.subr.bf16.mxu0 %v8530_v20  ;;  %6028 = vmatprep.subr.bf16.mxu1 %v8533_v22  ;;  %v8623_v20 = vld [vmem:[%s11411_s1 + $0x184c] ss:$16 sps:$4 sm:$0xff]   ;;  %v8721_v22 = vmov 0  }
 0x2cf   :  { %5496 = vmatpush1.bf16.msra.mxu0 %v8528_v23  ;;  %6029 = vmatpush1.bf16.msra.mxu1 %v8531_v24  ;;  %v8618_v23 = vld [vmem:[%s11411_s1 + $0x1840] ss:$16 sps:$4 sm:$0xff]   ;;  %v8621_v24 = vld [vmem:[%s11411_s1 + $0x1848] ss:$16 sps:$4 sm:$0xff]  }
 0x2d0   :  { %5497 = vmatprep.subr.bf16.mxu0 %v8536_v13  ;;  %6030 = vmatprep.subr.bf16.mxu1 %v8539_v27  ;;  %v8626_v13 = vld [vmem:[%s11411_s1 + $0x1864] ss:$16 sps:$4 sm:$0xff]   ;;  %v8629_v27 = vld [vmem:[%s11411_s1 + $0x186c] ss:$16 sps:$4 sm:$0xff]  }
 0x2d3   :  { %5498 = vmatpush1.bf16.msra.mxu0 %v8534_v28  ;;  %6031 = vmatpush1.bf16.msra.mxu1 %v8537_v29  ;;  %v8624_v28 = vld [vmem:[%s11411_s1 + $0x1860] ss:$16 sps:$4 sm:$0xff]   ;;  %v8627_v29 = vld [vmem:[%s11411_s1 + $0x1868] ss:$16 sps:$4 sm:$0xff]  }
 0x2d4   :  { %5499 = vmatprep.subr.bf16.mxu0 %v8542_v14  ;;  %6032 = vmatprep.subr.bf16.mxu1 %v8545_v30  ;;  %v8632_v14 = vld [vmem:[%s11411_s1 + $0x1884] ss:$16 sps:$4 sm:$0xff]   ;;  %v8635_v30 = vld [vmem:[%s11411_s1 + $0x188c] ss:$16 sps:$4 sm:$0xff]  }
 0x2d7   :  { %5500 = vmatpush1.bf16.msra.mxu0 %v8540_v31  ;;  %6033 = vmatpush1.bf16.msra.mxu1 %v8543_v25  ;;  %v8630_v31 = vld [vmem:[%s11411_s1 + $0x1880] ss:$16 sps:$4 sm:$0xff]   ;;  %v8633_v25 = vld [vmem:[%s11411_s1 + $0x1888] ss:$16 sps:$4 sm:$0xff]  }
 0x2d8   :  { %5501 = vmatprep.subr.bf16.mxu0 %v8548_v32  ;;  %6034 = vmatprep.subr.bf16.mxu1 %v8551_v33  ;;  %v8638_v32 = vld [vmem:[%s11411_s1 + $0x18a4] ss:$16 sps:$4 sm:$0xff]   ;;  %v8641_v33 = vld [vmem:[%s11411_s1 + $0x18ac] ss:$16 sps:$4 sm:$0xff]  }
 0x2db   :  { %5502 = vmatpush1.bf16.msra.mxu0 %v8546_v26  ;;  %6035 = vmatpush1.bf16.msra.mxu1 %v8549_v36  ;;  %v8636_v26 = vld [vmem:[%s11411_s1 + $0x18a0] ss:$16 sps:$4 sm:$0xff]   ;;  %v8639_v36 = vld [vmem:[%s11411_s1 + $0x18a8] ss:$16 sps:$4 sm:$0xff]  }
 0x2dc   :  { %5503 = vmatprep.subr.bf16.mxu0 %v8554_v37  ;;  %6036 = vmatprep.subr.bf16.mxu1 %v8557_v21  ;;  %v8644_v37 = vld [vmem:[%s11411_s1 + $0x18c4] ss:$16 sps:$4 sm:$0xff]   ;;  %v8647_v21 = vld [vmem:[%s11411_s1 + $0x18cc] ss:$16 sps:$4 sm:$0xff]  }
 0x2df   :  { %5504 = vmatpush1.bf16.msra.mxu0 %v8552_v39  ;;  %6037 = vmatpush1.bf16.msra.mxu1 %v8555_v40  ;;  %v8642_v39 = vld [vmem:[%s11411_s1 + $0x18c0] ss:$16 sps:$4 sm:$0xff]   ;;  %v8645_v40 = vld [vmem:[%s11411_s1 + $0x18c8] ss:$16 sps:$4 sm:$0xff]  }
 0x2e0   :  { %5505 = vmatprep.subr.bf16.mxu0 %v8560_v41  ;;  %6038 = vmatprep.subr.bf16.mxu1 %v8563_v34  ;;  %v8650_v41 = vld [vmem:[%s11411_s1 + $0x18e4] ss:$16 sps:$4 sm:$0xff]   ;;  %v8653_v34 = vld [vmem:[%s11411_s1 + $0x18ec] ss:$16 sps:$4 sm:$0xff]  }
 0x2e3   :  { %5506 = vmatpush1.bf16.msra.mxu0 %v8558_v43  ;;  %6039 = vmatpush1.bf16.msra.mxu1 %v8561_v45  ;;  %v8648_v43 = vld [vmem:[%s11411_s1 + $0x18e0] ss:$16 sps:$4 sm:$0xff]   ;;  %v8651_v45 = vld [vmem:[%s11411_s1 + $0x18e8] ss:$16 sps:$4 sm:$0xff]  }
 0x2e4   :  { %5507 = vmatprep.subr.bf16.mxu0 %v8566_v46  ;;  %6040 = vmatprep.subr.bf16.mxu1 %v8569_v35  ;;  %v6470_v46 = vld.sshfl [vmem:[%s11410_s0 + $0x18] sm:$0x1 pattern:$0x75316420]  ;;  %v8654_v35 = vld [vmem:[%s11413_s3 + $0x40] sm:$0xff]  }
 0x2e7   :  { %5508 = vmatpush1.bf16.msra.mxu0 %v8564_v50  ;;  %6041 = vmatpush1.bf16.msra.mxu1 %v8567_v53  ;;  %v8655_v50 = vld [vmem:[%s11413_s3 + $0xc0] sm:$0xff]   ;;  %v1012_v53 = vrot.slane %v6470_v46, %v8888_v49  ;;  %v8659_v49 = vld [vmem:[%s11413_s3 + $0xc8] sm:$0xff]  }
 0x2e8   :  { %5509 = vmatprep.subr.bf16.mxu0 %v8572_v38  ;;  %6042 = vmatprep.subr.bf16.mxu1 %v8575_v54  ;;  %v8656_v38 = vld [vmem:[%s11413_s3] sm:$0xff]  }
 0x2e9   :  { %v8657_v54 = vld [vmem:[%s11413_s3 + $0x80] sm:$0xff]  }
 0x2eb   :  { %5510 = vmatpush1.bf16.msra.mxu0 %v8570_v55  ;;  %6043 = vmatpush1.bf16.msra.mxu1 %v8573_v56  ;;  %v8658_v55 = vld [vmem:[%s11413_s3 + $0x48] sm:$0xff]  }
 0x2ec   :  { %5511 = vmatprep.subr.bf16.mxu0 %v8578_v47  ;;  %6044 = vmatprep.subr.bf16.mxu1 %v8581_v57  ;;  %v8660_v56 = vld [vmem:[%s11413_s3 + $0x8] sm:$0xff]   ;;  %v8662_v57 = vld [vmem:[%s11413_s3 + $0x50] sm:$0xff]  }
 0x2ed   :  { %v8661_v47 = vld [vmem:[%s11413_s3 + $0x88] sm:$0xff]  }
 0x2ef   :  { %5512 = vmatpush1.bf16.msra.mxu0 %v8576_v58  ;;  %6045 = vmatpush1.bf16.msra.mxu1 %v8579_v59  ;;  %v8663_v58 = vld [vmem:[%s11413_s3 + $0xd0] sm:$0xff]  }
 0x2f0   :  { %5513 = vmatprep.subr.bf16.mxu0 %v8584_v48  ;;  %6046 = vmatprep.subr.bf16.mxu1 %v8587_v61  ;;  %v8664_v59 = vld [vmem:[%s11413_s3 + $0x10] sm:$0xff]   ;;  %v8666_v61 = vld [vmem:[%s11413_s3 + $0x58] sm:$0xff]  }
 0x2f1   :  { %v8665_v48 = vld [vmem:[%s11413_s3 + $0x90] sm:$0xff]  }
 0x2f3   :  { %5514 = vmatpush1.bf16.msra.mxu0 %v8582_v63  ;;  %6047 = vmatpush1.bf16.msra.mxu1 %v8585_v44  ;;  %v8667_v63 = vld [vmem:[%s11413_s3 + $0xd8] sm:$0xff]  }
 0x2f4   :  { %5515 = vmatprep.subr.bf16.mxu0 %v8590_v1  ;;  %6048 = vmatprep.subr.bf16.mxu1 %v8593_v51  ;;  %v8668_v44 = vld [vmem:[%s11413_s3 + $0x18] sm:$0xff]   ;;  %v8670_v51 = vld [vmem:[%s11413_s3 + $0x60] sm:$0xff]  }
 0x2f5   :  { %v8669_v1 = vld [vmem:[%s11413_s3 + $0x98] sm:$0xff]  }
 0x2f7   :  { %5516 = vmatpush1.bf16.msra.mxu0 %v8588_v2  ;;  %6049 = vmatpush1.bf16.msra.mxu1 %v8591_v3  ;;  %v8671_v2 = vld [vmem:[%s11413_s3 + $0xe0] sm:$0xff]  }
 0x2f8   :  { %5517 = vmatprep.subr.bf16.mxu0 %v8596_v4  ;;  %6050 = vmatprep.subr.bf16.mxu1 %v8599_v60  ;;  %v8672_v3 = vld [vmem:[%s11413_s3 + $0x20] sm:$0xff]   ;;  %v8674_v60 = vld [vmem:[%s11413_s3 + $0x68] sm:$0xff]  }
 0x2f9   :  { %v8673_v4 = vld [vmem:[%s11413_s3 + $0xa0] sm:$0xff]  }
 0x2fb   :  { %5518 = vmatpush1.bf16.msra.mxu0 %v8594_v5  ;;  %6051 = vmatpush1.bf16.msra.mxu1 %v8597_v6  ;;  %v8675_v5 = vld [vmem:[%s11413_s3 + $0xe8] sm:$0xff]  }
 0x2fc   :  { %5519 = vmatprep.subr.bf16.mxu0 %v8602_v7  ;;  %6052 = vmatprep.subr.bf16.mxu1 %v8605_v62  ;;  %v8676_v6 = vld [vmem:[%s11413_s3 + $0x28] sm:$0xff]   ;;  %v8678_v62 = vld [vmem:[%s11413_s3 + $0x70] sm:$0xff]  }
 0x2fd   :  { %v8677_v7 = vld [vmem:[%s11413_s3 + $0xa8] sm:$0xff]  }
 0x2ff   :  { %5520 = vmatpush1.bf16.msra.mxu0 %v8600_v10  ;;  %6053 = vmatpush1.bf16.msra.mxu1 %v8603_v11  ;;  %v8679_v10 = vld [vmem:[%s11413_s3 + $0xf0] sm:$0xff]  }
 0x300   :  { %5530 = vmatprep.subr.bf16.mxu0 %v8608_v12  ;;  %6063 = vmatprep.subr.bf16.mxu1 %v8611_v0  ;;  %v8680_v11 = vld [vmem:[%s11413_s3 + $0x30] sm:$0xff]   ;;  %v8682_v0 = vld [vmem:[%s11413_s3 + $0x78] sm:$0xff]  }
 0x301   :  { %v8681_v12 = vld [vmem:[%s11413_s3 + $0xb0] sm:$0xff]  }
 0x302   :  { %5522 = vmatmul.mubr.bf16.vlgmr.msra.gmra.mrb[0].mxu0 %v996_v52  ;;  %6055 = vmatmul.mubr.bf16.vlgmr.msra.gmra.mrb[0].mxu1 %v996_v52  ;;  %v8683_v52 = vld [vmem:[%s11413_s3 + $0xf8] sm:$0xff]  }
 0x303   :  { %5531 = vmatpush1.bf16.msra.mxu0 %v8606_v15  ;;  %6064 = vmatpush1.bf16.msra.mxu1 %v8609_v16  ;;  %v8684_v15 = vld [vmem:[%s11413_s3 + $0x38] sm:$0xff]  }
 0x304   :  { %5532 = vmatprep.subr.bf16.mxu0 %v8614_v8  ;;  %6065 = vmatprep.subr.bf16.mxu1 %v8617_v9  ;;  %v8685_v16 = vld [vmem:[%s11413_s3 + $0xb8] sm:$0xff]   ;;  %v830_v8 = vsub.s32 0, %v8870_v42  ;;  %v838_v9 = vsub.s32 2, %v8870_v42 }
 0x305   :  { %5562 = vmatprep.mubr.bf16.mxu0 %v8721_v22  ;;  %6095 = vmatprep.mubr.bf16.mxu1 %v8721_v22 }
 0x307   :  { %5533 = vmatpush1.bf16.msra.mxu0 %v8612_v17  ;;  %6066 = vmatpush1.bf16.msra.mxu1 %v8615_v18  ;;  %v826_v17 = vld [vmem:[%s11412_s2] sm:$0xf]  ;;  %v834_v18 = vsub.s32 1, %v8870_v42 }
 0x308   :  { %5534 = vmatprep.subr.bf16.mxu0 %v8620_v19  ;;  %6067 = vmatprep.subr.bf16.mxu1 %v8623_v20  ;;  %v842_v19 = vsub.s32 3, %v8870_v42  ;;  %v831_v20 = vrot.slane %v826_v17, %v830_v8  ;;  %v839_v22 = vrot.slane %v826_v17, %v838_v9 }
 0x30b   :  { %5535 = vmatpush1.bf16.msra.mxu0 %v8618_v23  ;;  %6068 = vmatpush1.bf16.msra.mxu1 %v8621_v24  ;;  %v835_v23 = vrot.slane %v826_v17, %v834_v18  ;;  %v843_v24 = vrot.slane %v826_v17, %v842_v19 }
 0x30c   :  { %5536 = vmatprep.subr.bf16.mxu0 %v8626_v13  ;;  %6069 = vmatprep.subr.bf16.mxu1 %v8629_v27 }
 0x30f   :  { %5537 = vmatpush1.bf16.msra.mxu0 %v8624_v28  ;;  %6070 = vmatpush1.bf16.msra.mxu1 %v8627_v29 }
 0x310   :  { %5538 = vmatprep.subr.bf16.mxu0 %v8632_v14  ;;  %6071 = vmatprep.subr.bf16.mxu1 %v8635_v30 }
 0x313   :  { %5539 = vmatpush1.bf16.msra.mxu0 %v8630_v31  ;;  %6072 = vmatpush1.bf16.msra.mxu1 %v8633_v25 }
 0x314   :  { %5540 = vmatprep.subr.bf16.mxu0 %v8638_v32  ;;  %6073 = vmatprep.subr.bf16.mxu1 %v8641_v33 }
 0x317   :  { %5541 = vmatpush1.bf16.msra.mxu0 %v8636_v26  ;;  %6074 = vmatpush1.bf16.msra.mxu1 %v8639_v36 }
 0x318   :  { %5542 = vmatprep.subr.bf16.mxu0 %v8644_v37  ;;  %6075 = vmatprep.subr.bf16.mxu1 %v8647_v21 }
 0x31b   :  { %5543 = vmatpush1.bf16.msra.mxu0 %v8642_v39  ;;  %6076 = vmatpush1.bf16.msra.mxu1 %v8645_v40 }
 0x31c   :  { %5544 = vmatprep.subr.bf16.mxu0 %v8650_v41  ;;  %6077 = vmatprep.subr.bf16.mxu1 %v8653_v34 }
 0x31f   :  { %5545 = vmatpush1.bf16.msra.mxu0 %v8648_v43  ;;  %6078 = vmatpush1.bf16.msra.mxu1 %v8651_v45 }
 0x320   :  { %7304 = vmatprep.subr.bf16.mxu0 %v8654_v35  ;;  %7326 = vmatprep.subr.bf16.mxu1 %v8655_v50  ;;  %v7271_v35 = vld [vmem:[%s11414_s4] ss:$0 sm:$0xff] }
 0x322   :  { %5563 = vmatmul.mubr.bf16.vlgmr.msra.gmra.mrb[0].mxu0 %v1012_v53  ;;  %6096 = vmatmul.mubr.bf16.vlgmr.msra.gmra.mrb[0].mxu1 %v1012_v53 }
 0x323   :  { %7305 = vmatpush3.bf16.msra.mxu0 %v8656_v38  ;;  %7327 = vmatpush3.bf16.msra.mxu1 %v8657_v54 }
 0x324   :  { %7306 = vmatprep.subr.bf16.mxu0 %v8658_v55  ;;  %7328 = vmatprep.subr.bf16.mxu1 %v8659_v49 }
 0x327   :  { %7307 = vmatpush3.bf16.msra.mxu0 %v8660_v56  ;;  %7329 = vmatpush3.bf16.msra.mxu1 %v8661_v47 }
 0x328   :  { %7308 = vmatprep.subr.bf16.mxu0 %v8662_v57  ;;  %7330 = vmatprep.subr.bf16.mxu1 %v8663_v58 }
 0x32b   :  { %7309 = vmatpush3.bf16.msra.mxu0 %v8664_v59  ;;  %7331 = vmatpush3.bf16.msra.mxu1 %v8665_v48 }
 0x32c   :  { %7310 = vmatprep.subr.bf16.mxu0 %v8666_v61  ;;  %7332 = vmatprep.subr.bf16.mxu1 %v8667_v63 }
 0x32f   :  { %7311 = vmatpush3.bf16.msra.mxu0 %v8668_v44  ;;  %7333 = vmatpush3.bf16.msra.mxu1 %v8669_v1 }
 0x330   :  { %7312 = vmatprep.subr.bf16.mxu0 %v8670_v51  ;;  %7334 = vmatprep.subr.bf16.mxu1 %v8671_v2 }
 0x333   :  { %7313 = vmatpush3.bf16.msra.mxu0 %v8672_v3  ;;  %7335 = vmatpush3.bf16.msra.mxu1 %v8673_v4 }
 0x334   :  { %7314 = vmatprep.subr.bf16.mxu0 %v8674_v60  ;;  %7336 = vmatprep.subr.bf16.mxu1 %v8675_v5 }
 0x337   :  { %7315 = vmatpush3.bf16.msra.mxu0 %v8676_v6  ;;  %7337 = vmatpush3.bf16.msra.mxu1 %v8677_v7 }
 0x338   :  { %7316 = vmatprep.subr.bf16.mxu0 %v8678_v62  ;;  %7338 = vmatprep.subr.bf16.mxu1 %v8679_v10 }
 0x33b   :  { %7317 = vmatpush3.bf16.msra.mxu0 %v8680_v11  ;;  %7339 = vmatpush3.bf16.msra.mxu1 %v8681_v12 }
 0x33c   :  { %7318 = vmatprep.subr.bf16.mxu0 %v8682_v0  ;;  %7340 = vmatprep.subr.bf16.mxu1 %v8683_v52 }
 0x33f   :  { %7319 = vmatpush3.bf16.msra.mxu0 %v8684_v15  ;;  %7341 = vmatpush3.bf16.msra.mxu1 %v8685_v16 }
 0x3f5   :  { %v5564_v13 = vpop.f32.mrb[0].mxu0  ;;  %v6097_v27 = vpop.f32.mrb[0].mxu1 }
 0x3f6   :  { %v7348_v28 = vadd.f32 %v5564_v13, %v831_v20  ;;  %v7350_v29 = vadd.f32 %v6097_v27, %v839_v22  ;;  %v5566_v14 = vpop.f32.mrb[1].mxu0  ;;  %v6099_v30 = vpop.f32.mrb[1].mxu1 }
 0x3f7   :  { %v7349_v31 = vadd.f32 %v5566_v14, %v835_v23  ;;  %v7351_v25 = vadd.f32 %v6099_v30, %v843_v24  ;;  %v5568_v32 = vpop.f32.mrb[2].mxu0  ;;  %v6101_v33 = vpop.f32.mrb[2].mxu1 }
 0x3f8   :  { %8686 = vtanh.f32 %v7348_v28  ;;  %v5569_v26 = vpop.f32.mrb[3].mxu0  ;;  %v6102_v36 = vpop.f32.mrb[3].mxu1 }
 0x3f9   :  { %8688 = vtanh.f32 %v7350_v29 }
 0x3fa   :  { %8690 = vtanh.f32 %v7349_v31 }
 0x3fb   :  { %8692 = vtanh.f32 %v7351_v25 }
 0x402   :  { %v8687_v42 = vpop.eup %8686 }
 0x403   :  { %v8689_v37 = vpop.eup %8688  ;;  %v6108_v41 = vpack.c.bf16 %v8687_v42, %v8687_v42 }
 0x404   :  { %v8691_v21 = vpop.eup %8690  ;;  %v6110_v43 = vpack.c.bf16 %v8689_v37, %v8689_v37 }
 0x405   :  { %v8693_v39 = vpop.eup %8692  ;;  %v6109_v40 = vpack.c.bf16 %v8691_v21, %v8691_v21 }
 0x406   :  { %v6111_v34 = vpack.c.bf16 %v8693_v39, %v8693_v39 }
 0x407   :  { %6407 = vmatprep.mubr.bf16.mxu0 %v6109_v40 }
 0x408   :  { %6447 = vmatprep.mubr.bf16.mxu1 %v6111_v34  ;;  %6408 = vmatmul.mubr.bf16.vlgmr.msra.gmra.mrb[4].mxu0 %v6108_v41 }
 0x409   :  { %6448 = vmatmul.mubr.bf16.vlgmr.msra.gmra.mrb[4].mxu1 %v6110_v43 }
 0x4db   :  { %v7320_v45 = vpop.f32.mrb[4].mxu0 }
 0x4dc   :  { %v7342_v46 = vpop.f32.mrb[4].mxu1  ;;  %v7321_v50 = vpop.f32.mrb[5].mxu0 }
 0x4dd   :  { %v7322_v53 = vadd.f32 %v7321_v50, %v7320_v45  ;;  %v7343_v38 = vpop.f32.mrb[5].mxu1  ;;  %v7323_v54 = vpop.f32.mrb[6].mxu0 }
 0x4de   :  { %v7344_v55 = vadd.f32 %v7343_v38, %v7342_v46  ;;  %v7345_v49 = vpop.f32.mrb[6].mxu1  ;;  %v7324_v56 = vpop.f32.mrb[7].mxu0 }
 0x4df   :  { %v6410_v47 = vadd.f32 %v7322_v53, %v7271_v35  ;;  %v7346_v57 = vpop.f32.mrb[7].mxu1 }
 0x4e1   :  { %v6450_v58 = vadd.f32 %v7344_v55, %v6410_v47 }
 0x4e3   :  { %6455 = vst [vmem:[#allocation2] sm:$0x3] %v6450_v58 }
 0x4e4   :  { %8707 = shalt.err (!%p8704_p4)
}
 0x4e5   :  { %s8708_s17 = scalar_lea.hbm %s11415_s5, 32 }
 0x4e6   :  { %p8709_p5 = scmp.ne.s32.totalorder %s11415_s5, %s8708_s17  ;;  %p8712_p6 = scmp.lt.u32.totalorder %s8708_s17, %s11415_s5 }
 0x4e8   :  { %p8714_p7 = pnand %p8712_p6, %p8709_p5 }
 0x4ea   :  { %8717 = shalt.err (!%p8714_p7)
}
 0x4eb   :  { %6465 = dma.vmem_to_hbm [thread:$0]  %s6463_s14, 32, %s11415_s5, [#allocation3]  }
 0x4ec   :  { %8718 = dma.done.wait [#allocation3], 32  }
 0x4ed   :  { %8719 = vsyncadd [#allocation3], 4294967264 }
 0x4ee   :  { %6469 = vsyncpa [#allocation3], 1 }

</bundles_post_ra>
